<compile_context>
chip_gen: v5e
topology: v5e:2x2
jax: 0.10.0
libtpu: 0.0.40
codegen_flags: <defaults>
</compile_context>

<pallas_src>
import functools

import jax
import jax.numpy as jnp
from jax.experimental import pallas as pl
from jax.experimental.pallas import tpu as pltpu

EPS = 1e-5  # LayerNorm epsilon (PyTorch default)


def _vmem_budget_bytes():
    """~75% of physical per-core VMEM (generation-aware); conservative fallback."""
    cap = 64 * 1024 * 1024  # v7x per-TC capacity as the safe fallback
    try:
        info = pltpu.get_tpu_info()
        cap = int(getattr(info, "vmem_capacity_bytes", cap)) or cap
    except Exception:
        pass
    return (cap * 3) // 4


# ---------------------------------------------------------------------------
# Kernel 1: layer_norm_in + fused gated projections + output gate.
#   y  = zn @ [W_ab_g^T | W_ab_p^T | W_g^T] + [b_ab_g | b_ab_p | b_g]
#   ab = sigmoid(y[:, :2ch]) * mask * y[:, 2ch:4ch]
#   a, b written CHANNEL-MAJOR ([ch, tile_r]) via an in-kernel 2-D transpose,
#   g  = sigmoid(y[:, 4ch:]) written channels-last for kernel 3.
# ---------------------------------------------------------------------------
def _proj_kernel(z_ref, mask_ref, ln_g_ref, ln_b_ref, w_ref, b_ref,
                 a_ref, b_out_ref, g_ref, *, ch, compute_dtype):
    z = z_ref[...].astype(jnp.float32)                         # [tile_r, c_z]
    mu = jnp.mean(z, axis=-1, keepdims=True)
    var = jnp.mean(jnp.square(z - mu), axis=-1, keepdims=True)
    zn = (z - mu) * jax.lax.rsqrt(var + EPS)
    zn = zn * ln_g_ref[...] + ln_b_ref[...]

    # one wide MXU matmul (compute-dtype operands, f32 accumulation)
    y = jnp.dot(zn.astype(compute_dtype), w_ref[...],
                preferred_element_type=jnp.float32) + b_ref[...]

    # TODO(synk): pad the fused column groups to 128-lane multiples when
    # c_hidden is not a multiple of 128 to avoid masked lane slices here.
    gate = jax.nn.sigmoid(y[:, :2 * ch]) * mask_ref[...]
    ab = gate * y[:, 2 * ch:4 * ch]                            # [tile_r, 2ch] f32
    ab_t = ab.T                                                # [2ch, tile_r] (XLU)
    a_ref[...] = ab_t[:ch, :].astype(a_ref.dtype)
    b_out_ref[...] = ab_t[ch:, :].astype(b_out_ref.dtype)
    g_ref[...] = jax.nn.sigmoid(y[:, 4 * ch:]).astype(g_ref.dtype)


# ---------------------------------------------------------------------------
# Kernel 2: triangle contraction, channel-batched and spatially tiled with an
# f32 accumulator.  The "swapdims" of the reference is absorbed into the MXU
# contraction pattern, so a and b use the same channel-major layout.
# ---------------------------------------------------------------------------
def _triangle_kernel(a_ref, b_ref, o_ref, acc_ref, *, outgoing):
    @pl.when(pl.program_id(4) == 0)
    def _():
        acc_ref[...] = jnp.zeros_like(acc_ref)

    if outgoing:
        # p[c,i,k] = sum_j a[c,i,j] * b[c,k,j]
        acc_ref[...] += jnp.einsum("cij,ckj->cik", a_ref[...], b_ref[...],
                                   preferred_element_type=jnp.float32)
    else:
        # p[c,i,k] = sum_j a[c,j,i] * b[c,j,k]
        acc_ref[...] += jnp.einsum("cji,cjk->cik", a_ref[...], b_ref[...],
                                   preferred_element_type=jnp.float32)

    @pl.when(pl.program_id(4) == pl.num_programs(4) - 1)
    def _():
        o_ref[...] = acc_ref[...].astype(o_ref.dtype)


# ---------------------------------------------------------------------------
# Kernel 3: layer_norm_out + output projection * precomputed gate.
# Reads x channel-major ([ch, tile_r]) and transposes in-kernel — no XLA
# relayout of the triangle output.
# ---------------------------------------------------------------------------
def _output_kernel(x_ref, g_ref, ln_g_ref, ln_b_ref, w_ref, b_ref, o_ref,
                   *, compute_dtype):
    x = x_ref[...].astype(jnp.float32).T                       # [tile_r, ch]
    mu = jnp.mean(x, axis=-1, keepdims=True)
    var = jnp.mean(jnp.square(x - mu), axis=-1, keepdims=True)
    xn = (x - mu) * jax.lax.rsqrt(var + EPS)
    xn = xn * ln_g_ref[...] + ln_b_ref[...]

    out = jnp.dot(xn.astype(compute_dtype), w_ref[...],
                  preferred_element_type=jnp.float32) + b_ref[...]
    o_ref[...] = (out * g_ref[...].astype(jnp.float32)).astype(o_ref.dtype)


# ---------------------------------------------------------------------------
# Wrapper
# ---------------------------------------------------------------------------
@functools.partial(jax.jit, static_argnames=("c_hidden", "outgoing",
                                             "compute_dtype", "x_dtype",
                                             "row_tile"))
def triangle_multiplicative_update(z, mask, params, *, c_hidden, outgoing=True,
                                   compute_dtype=jnp.bfloat16,
                                   x_dtype=jnp.float32,
                                   row_tile=4096):
    """z: [B, N, N, c_z], mask: [B, N, N]  ->  [B, N, N, c_z]"""
    B, N, _, c_z = z.shape
    R = N * N
    ch = c_hidden
    dt = z.dtype
    cdt = jnp.dtype(compute_dtype)
    xdt = jnp.dtype(x_dtype)          # triangle-output dtype (f32: exact LN stats)
    cb = cdt.itemsize
    xb = xdt.itemsize
    wide = 4 * ch + c_z
    budget = _vmem_budget_bytes()

    # ---- row tiling for kernels 1 & 3 (flat R = N*N rows) ----
    per_row = 16 * (c_z + ch) + 12 * wide          # rough f32-temporary bytes/row
    cap = max(128, ((budget // 2) // per_row // 128) * 128)
    tile_r = min(row_tile, R, cap)
    if tile_r < R:
        tile_r = max(128, (tile_r // 128) * 128)   # lane-dense channel-major writes
    n_rt = pl.cdiv(R, tile_r)

    # ---- kernel-2 tiling derived from the VMEM budget ----
    ts = min(N, 256)                               # i/k spatial tile (MXU-friendly)
    if N <= 512:
        tj = N                                     # contraction tile must divide N
    else:
        tj = next((t for t in (512, 384, 256, 128) if N % t == 0), N)
    per_c = 2 * ts * tj * cb * 2 + 2 * ts * ts * xb + ts * ts * 4
    tc = int(max(1, min(ch, (budget * 3 // 5) // per_c, 8)))
    n_ct, n_st, n_jt = pl.cdiv(ch, tc), pl.cdiv(N, ts), N // tj

    # ---- inputs / parameters (weights pre-transposed, stored in compute dtype)
    z_flat = z.reshape(B, R, c_z)
    # mask kept f32: it is <=1/c_z of kernel-1 bytes; avoids narrow packed loads.
    mask_flat = mask.astype(jnp.float32).reshape(B, R, 1)

    w_fused = jnp.concatenate(
        [params["w_ab_g"].T, params["w_ab_p"].T, params["w_g"].T],
        axis=1).astype(cdt)                                    # [c_z, 4ch+c_z]
    b_fused = jnp.concatenate(
        [params["b_ab_g"], params["b_ab_p"], params["b_g"]],
        axis=0).astype(jnp.float32).reshape(1, wide)
    ln_in_g = params["ln_in_g"].astype(jnp.float32).reshape(1, c_z)
    ln_in_b = params["ln_in_b"].astype(jnp.float32).reshape(1, c_z)
    ln_out_g = params["ln_out_g"].astype(jnp.float32).reshape(1, ch)
    ln_out_b = params["ln_out_b"].astype(jnp.float32).reshape(1, ch)
    w_z_t = params["w_z"].T.astype(cdt)                        # [ch, c_z]
    b_z = params["b_z"].astype(jnp.float32).reshape(1, c_z)

    # ---- kernel 1: LN_in + fused projections; a/b emitted channel-major ----
    k1_cost = pl.CostEstimate(
        flops=2 * B * R * c_z * wide,
        transcendentals=B * R * (2 * ch + c_z),
        bytes_accessed=B * R * (c_z * dt.itemsize + 4 + (2 * ch + c_z) * cb))
    a_cm, b_cm, g_flat = pl.pallas_call(
        functools.partial(_proj_kernel, ch=ch, compute_dtype=cdt),
        out_shape=(jax.ShapeDtypeStruct((B, ch, R), cdt),
                   jax.ShapeDtypeStruct((B, ch, R), cdt),
                   jax.ShapeDtypeStruct((B, R, c_z), cdt)),
        grid=(B, n_rt),
        in_specs=[
            pl.BlockSpec((None, tile_r, c_z), lambda b, r: (b, r, 0)),
            pl.BlockSpec((None, tile_r, 1), lambda b, r: (b, r, 0)),
            pl.BlockSpec((1, c_z), lambda b, r: (0, 0)),
            pl.BlockSpec((1, c_z), lambda b, r: (0, 0)),
            pl.BlockSpec((c_z, wide), lambda b, r: (0, 0)),
            pl.BlockSpec((1, wide), lambda b, r: (0, 0)),
        ],
        out_specs=(
            pl.BlockSpec((None, ch, tile_r), lambda b, r: (b, 0, r)),
            pl.BlockSpec((None, ch, tile_r), lambda b, r: (b, 0, r)),
            pl.BlockSpec((None, tile_r, c_z), lambda b, r: (b, r, 0)),
        ),
        compiler_params=pltpu.CompilerParams(
            dimension_semantics=("parallel", "parallel"),
            vmem_limit_bytes=budget),
        cost_estimate=k1_cost,
    )(z_flat, mask_flat, ln_in_g, ln_in_b, w_fused, b_fused)

    # free reshapes: [B, ch, R] -> [B, ch, N, N] (contiguous, no data movement)
    a4 = a_cm.reshape(B, ch, N, N)
    b4 = b_cm.reshape(B, ch, N, N)

    # ---- kernel 2: spatially tiled, channel-batched triangle matmul ----
    if outgoing:
        a_spec = pl.BlockSpec((None, tc, ts, tj), lambda b, c, i, k, j: (b, c, i, j))
        b_spec = pl.BlockSpec((None, tc, ts, tj), lambda b, c, i, k, j: (b, c, k, j))
    else:
        a_spec = pl.BlockSpec((None, tc, tj, ts), lambda b, c, i, k, j: (b, c, j, i))
        b_spec = pl.BlockSpec((None, tc, tj, ts), lambda b, c, i, k, j: (b, c, j, k))
    k2_cost = pl.CostEstimate(
        flops=2 * B * ch * N * N * N,
        transcendentals=0,
        bytes_accessed=B * ch * N * N * (2 * cb * n_st + xb))
    p = pl.pallas_call(
        functools.partial(_triangle_kernel, outgoing=outgoing),
        out_shape=jax.ShapeDtypeStruct((B, ch, N, N), xdt),
        grid=(B, n_ct, n_st, n_st, n_jt),
        in_specs=[a_spec, b_spec],
        out_specs=pl.BlockSpec((None, tc, ts, ts),
                               lambda b, c, i, k, j: (b, c, i, k)),
        scratch_shapes=[pltpu.VMEM((tc, ts, ts), jnp.float32)],
        compiler_params=pltpu.CompilerParams(
            dimension_semantics=("parallel", "parallel", "parallel", "parallel",
                                 "arbitrary"),
            vmem_limit_bytes=budget),
        cost_estimate=k2_cost,
    )(a4, b4)

    # free reshape: [B, ch, N, N] -> [B, ch, R]
    x_flat = p.reshape(B, ch, R)

    # ---- kernel 3: LN_out + output projection * precomputed gate ----
    k3_cost = pl.CostEstimate(
        flops=2 * B * R * ch * c_z,
        transcendentals=0,
        bytes_accessed=B * R * (ch * xb + c_z * cb + c_z * dt.itemsize))
    out_flat = pl.pallas_call(
        functools.partial(_output_kernel, compute_dtype=cdt),
        out_shape=jax.ShapeDtypeStruct((B, R, c_z), dt),
        grid=(B, n_rt),
        in_specs=[
            pl.BlockSpec((None, ch, tile_r), lambda b, r: (b, 0, r)),
            pl.BlockSpec((None, tile_r, c_z), lambda b, r: (b, r, 0)),
            pl.BlockSpec((1, ch), lambda b, r: (0, 0)),
            pl.BlockSpec((1, ch), lambda b, r: (0, 0)),
            pl.BlockSpec((ch, c_z), lambda b, r: (0, 0)),
            pl.BlockSpec((1, c_z), lambda b, r: (0, 0)),
        ],
        out_specs=pl.BlockSpec((None, tile_r, c_z), lambda b, r: (b, r, 0)),
        compiler_params=pltpu.CompilerParams(
            dimension_semantics=("parallel", "parallel"),
            vmem_limit_bytes=budget),
        cost_estimate=k3_cost,
    )(x_flat, g_flat, ln_out_g, ln_out_b, w_z_t, b_z)

    return out_flat.reshape(B, N, N, c_z)


# ---------------------------------------------------------------------------
# Pure-JAX reference (mirrors the PyTorch forward, block_size=None, no mp)
# ---------------------------------------------------------------------------
def reference_forward(z, mask, params, *, c_hidden, outgoing=True):
    def ln(x, g, b):
        mu = jnp.mean(x, -1, keepdims=True)
        var = jnp.mean(jnp.square(x - mu), -1, keepdims=True)
        return (x - mu) / jnp.sqrt(var + EPS) * g + b

    zn = ln(z, params["ln_in_g"], params["ln_in_b"])
    m = mask[..., None]
    ab = jax.nn.sigmoid(zn @ params["w_ab_g"].T + params["b_ab_g"]) * m
    ab = ab * (zn @ params["w_ab_p"].T + params["b_ab_p"])
    a, b = ab[..., :c_hidden], ab[..., c_hidden:]
    if outgoing:
        x = jnp.einsum("bijc,bkjc->bikc", a, b)
    else:
        x = jnp.einsum("bjic,bjkc->bikc", a, b)
    xn = ln(x, params["ln_out_g"], params["ln_out_b"])
    out = (xn @ params["w_z"].T + params["b_z"]) * jax.nn.sigmoid(
        zn @ params["w_g"].T + params["b_g"])
    return out


def init_params(key, c_z, c_hidden):
    # Deterministic synthetic parameters (shapes from the module __init__).
    # NOTE: the real module uses 'gating'/'final' zero-inits; random values are
    # used here so the kernel exercises every term non-trivially.
    ks = jax.random.split(key, 12)
    n = lambda k, s: (0.1 * jax.random.normal(k, s)).astype(jnp.float32)
    return {
        "w_ab_p": n(ks[0], (2 * c_hidden, c_z)),
        "b_ab_p": n(ks[1], (2 * c_hidden,)),
        "w_ab_g": n(ks[2], (2 * c_hidden, c_z)),
        "b_ab_g": n(ks[3], (2 * c_hidden,)),
        "w_g": n(ks[4], (c_z, c_z)),
        "b_g": n(ks[5], (c_z,)),
        "w_z": n(ks[6], (c_z, c_hidden)),
        "b_z": n(ks[7], (c_z,)),
        "ln_in_g": 1.0 + n(ks[8], (c_z,)),
        "ln_in_b": n(ks[9], (c_z,)),
        "ln_out_g": 1.0 + n(ks[10], (c_hidden,)),
        "ln_out_b": n(ks[11], (c_hidden,)),
    }


if __name__ == "__main__":
    # Small but lane-aligned shapes (c_z != c_hidden to catch shape mix-ups).
    B, N, c_z, c_hidden = 2, 16, 256, 128

    key = jax.random.PRNGKey(0)
    kz, km, kp = jax.random.split(key, 3)
    z = jax.random.normal(kz, (B, N, N, c_z), dtype=jnp.float32)
    mask = (jax.random.uniform(km, (B, N, N)) > 0.2).astype(jnp.float32)
    params = init_params(kp, c_z, c_hidden)

    for outgoing in (True, False):
        ref = reference_forward(z, mask, params, c_hidden=c_hidden,
                                outgoing=outgoing)

        # f32 MXU-operand path: should match the f32 reference tightly.
        out_f32 = triangle_multiplicative_update(
            z, mask, params, c_hidden=c_hidden, outgoing=outgoing,
            compute_dtype=jnp.float32)
        out_f32 = jax.block_until_ready(out_f32)
        assert out_f32.shape == (B, N, N, c_z) and out_f32.dtype == z.dtype
        assert jnp.allclose(out_f32, ref, rtol=1e-3, atol=1e-3), (
            f"f32 path (outgoing={outgoing}) max abs err "
            f"{jnp.max(jnp.abs(out_f32 - ref))}")

        # bf16 MXU-operand path (production default): bf16-level tolerance.
        out_bf16 = triangle_multiplicative_update(
            z, mask, params, c_hidden=c_hidden, outgoing=outgoing,
            compute_dtype=jnp.bfloat16)
        out_bf16 = jax.block_until_ready(out_bf16)
        assert out_bf16.shape == (B, N, N, c_z) and out_bf16.dtype == z.dtype
        assert jnp.allclose(out_bf16, ref, rtol=5e-2, atol=5e-2), (
            f"bf16 path (outgoing={outgoing}) max abs err "
            f"{jnp.max(jnp.abs(out_bf16 - ref))}")

    print("KERNEL_OK")
</pallas_src>

<mosaic_0001>
module attributes {stable_mosaic.version = 11 : i64} {
  func.func @_triangle_kernel(%arg0: i32, %arg1: i32, %arg2: i32, %arg3: i32, %arg4: i32, %arg5: memref<1x8x16x16xf32, #tpu.memory_space<vmem>>, %arg6: memref<1x8x16x16xf32, #tpu.memory_space<vmem>>, %arg7: memref<1x8x16x16xf32, #tpu.memory_space<vmem>>, %arg8: memref<8x16x16xf32, #tpu.memory_space<vmem>>) attributes {dimension_semantics = [#tpu.dimension_semantics<parallel>, #tpu.dimension_semantics<parallel>, #tpu.dimension_semantics<parallel>, #tpu.dimension_semantics<parallel>, #tpu.dimension_semantics<arbitrary>], iteration_bounds = array<i64: 2, 16, 1, 1, 1>, scalar_prefetch = 0 : i64, scratch_operands = 1 : i64, tpu.core_type = #tpu.core_type<tc>, window_params = [{transform_indices = @transform_0, window_bounds = array<i64: 1, 8, 16, 16>}, {transform_indices = @transform_1, window_bounds = array<i64: 1, 8, 16, 16>}, {transform_indices = @transform_2, window_bounds = array<i64: 1, 8, 16, 16>}]} {
    %c0_i32 = arith.constant 0 : i32
    %0 = arith.cmpi eq, %arg4, %c0_i32 : i32
    %1 = arith.extui %0 : i1 to i32
    %c0_i32_0 = arith.constant 0 : i32
    %2 = arith.cmpi ne, %1, %c0_i32_0 : i32
    scf.if %2 {
      %cst_16 = arith.constant 0.000000e+00 : f32
      %14 = vector.broadcast %cst_16 : f32 to vector<8x16x16xf32>
      %c0_17 = arith.constant 0 : index
      %c0_18 = arith.constant 0 : index
      %c0_19 = arith.constant 0 : index
      %15 = vector.load %arg8[%c0_17, %c0_18, %c0_19] : memref<8x16x16xf32, #tpu.memory_space<vmem>>, vector<8x16x16xf32>
      tpu.vector_store %arg8[%c0_17, %c0_18, %c0_19], %14 {strides = array<i32>} : memref<8x16x16xf32, #tpu.memory_space<vmem>>, vector<8x16x16xf32>,
    } else {
    }
    %c0 = arith.constant 0 : index
    %c0_1 = arith.constant 0 : index
    %c0_2 = arith.constant 0 : index
    %3 = vector.load %arg8[%c0, %c0_1, %c0_2] : memref<8x16x16xf32, #tpu.memory_space<vmem>>, vector<8x16x16xf32>
    %c0_3 = arith.constant 0 : index
    %c0_4 = arith.constant 0 : index
    %c0_5 = arith.constant 0 : index
    %c0_6 = arith.constant 0 : index
    %4 = vector.load %arg5[%c0_3, %c0_4, %c0_5, %c0_6] : memref<1x8x16x16xf32, #tpu.memory_space<vmem>>, vector<1x8x16x16xf32>
    %5 = vector.shape_cast %4 : vector<1x8x16x16xf32> to vector<8x16x16xf32>
    %c0_7 = arith.constant 0 : index
    %c0_8 = arith.constant 0 : index
    %c0_9 = arith.constant 0 : index
    %c0_10 = arith.constant 0 : index
    %6 = vector.load %arg6[%c0_7, %c0_8, %c0_9, %c0_10] : memref<1x8x16x16xf32, #tpu.memory_space<vmem>>, vector<1x8x16x16xf32>
    %7 = vector.shape_cast %6 : vector<1x8x16x16xf32> to vector<8x16x16xf32>
    "tpu.trace_start"() <{level = 10 : i32, message = "cij,ckj->cik"}> : () -> ()
    %cst = arith.constant dense<0.000000e+00> : vector<8x16x16xf32>
    %8 = tpu.matmul %5, %7, %cst {dimension_numbers = #tpu.dot_dimension_numbers<[2], [2], [1], [1], [0, 0, 0, 1, 1, 1], [0], [0]>} : vector<8x16x16xf32>, vector<8x16x16xf32>, vector<8x16x16xf32> -> vector<8x16x16xf32>
    "tpu.trace_stop"() : () -> ()
    %9 = arith.addf %3, %8 : vector<8x16x16xf32>
    %c0_11 = arith.constant 0 : index
    %c0_12 = arith.constant 0 : index
    %c0_13 = arith.constant 0 : index
    %10 = vector.load %arg8[%c0_11, %c0_12, %c0_13] : memref<8x16x16xf32, #tpu.memory_space<vmem>>, vector<8x16x16xf32>
    tpu.vector_store %arg8[%c0_11, %c0_12, %c0_13], %9 {strides = array<i32>} : memref<8x16x16xf32, #tpu.memory_space<vmem>>, vector<8x16x16xf32>,
    %c0_i32_14 = arith.constant 0 : i32
    %11 = arith.cmpi eq, %arg4, %c0_i32_14 : i32
    %12 = arith.extui %11 : i1 to i32
    %c0_i32_15 = arith.constant 0 : i32
    %13 = arith.cmpi ne, %12, %c0_i32_15 : i32
    scf.if %13 {
      %c0_16 = arith.constant 0 : index
      %c0_17 = arith.constant 0 : index
      %c0_18 = arith.constant 0 : index
      %14 = vector.load %arg8[%c0_16, %c0_17, %c0_18] : memref<8x16x16xf32, #tpu.memory_space<vmem>>, vector<8x16x16xf32>
      %c0_19 = arith.constant 0 : index
      %c0_20 = arith.constant 0 : index
      %c0_21 = arith.constant 0 : index
      %c0_22 = arith.constant 0 : index
      %15 = vector.load %arg7[%c0_19, %c0_20, %c0_21, %c0_22] : memref<1x8x16x16xf32, #tpu.memory_space<vmem>>, vector<1x8x16x16xf32>
      %16 = vector.shape_cast %15 : vector<1x8x16x16xf32> to vector<8x16x16xf32>
      %17 = vector.shape_cast %14 : vector<8x16x16xf32> to vector<1x8x16x16xf32>
      tpu.vector_store %arg7[%c0_19, %c0_20, %c0_21, %c0_22], %17 {strides = array<i32>} : memref<1x8x16x16xf32, #tpu.memory_space<vmem>>, vector<1x8x16x16xf32>,
    } else {
    }
    return
  }
  func.func @transform_0(%arg0: i32, %arg1: i32, %arg2: i32, %arg3: i32, %arg4: i32) -> (i32, i32, i32, i32) {
    %c0_i32 = arith.constant 0 : i32
    return %arg0, %arg1, %arg2, %arg4 : i32, i32, i32, i32
  }
  func.func @transform_1(%arg0: i32, %arg1: i32, %arg2: i32, %arg3: i32, %arg4: i32) -> (i32, i32, i32, i32) {
    %c0_i32 = arith.constant 0 : i32
    return %arg0, %arg1, %arg3, %arg4 : i32, i32, i32, i32
  }
  func.func @transform_2(%arg0: i32, %arg1: i32, %arg2: i32, %arg3: i32, %arg4: i32) -> (i32, i32, i32, i32) {
    %c0_i32 = arith.constant 0 : i32
    return %arg0, %arg1, %arg2, %arg3 : i32, i32, i32, i32
  }
}

module attributes {stable_mosaic.version = 11 : i64} {
  func.func @_proj_kernel(%arg0: i32, %arg1: i32, %arg2: memref<1x256x256xf32, #tpu.memory_space<vmem>>, %arg3: memref<1x256x1xf32, #tpu.memory_space<vmem>>, %arg4: memref<1x256xf32, #tpu.memory_space<vmem>>, %arg5: memref<1x256xf32, #tpu.memory_space<vmem>>, %arg6: memref<256x768xf32, #tpu.memory_space<vmem>>, %arg7: memref<1x768xf32, #tpu.memory_space<vmem>>, %arg8: memref<1x128x256xf32, #tpu.memory_space<vmem>>, %arg9: memref<1x128x256xf32, #tpu.memory_space<vmem>>, %arg10: memref<1x256x256xf32, #tpu.memory_space<vmem>>) attributes {dimension_semantics = [#tpu.dimension_semantics<parallel>, #tpu.dimension_semantics<parallel>], iteration_bounds = array<i64: 2, 1>, scalar_prefetch = 0 : i64, scratch_operands = 0 : i64, tpu.core_type = #tpu.core_type<tc>, window_params = [{transform_indices = @transform_0, window_bounds = array<i64: 1, 256, 256>}, {transform_indices = @transform_1, window_bounds = array<i64: 1, 256, 1>}, {pipeline_mode = #tpu.pipeline_mode<synchronous>, transform_indices = @transform_2, window_bounds = array<i64: 1, 256>}, {pipeline_mode = #tpu.pipeline_mode<synchronous>, transform_indices = @transform_3, window_bounds = array<i64: 1, 256>}, {pipeline_mode = #tpu.pipeline_mode<synchronous>, transform_indices = @transform_4, window_bounds = array<i64: 256, 768>}, {pipeline_mode = #tpu.pipeline_mode<synchronous>, transform_indices = @transform_5, window_bounds = array<i64: 1, 768>}, {transform_indices = @transform_6, window_bounds = array<i64: 1, 128, 256>}, {transform_indices = @transform_7, window_bounds = array<i64: 1, 128, 256>}, {transform_indices = @transform_8, window_bounds = array<i64: 1, 256, 256>}]} {
    %c0 = arith.constant 0 : index
    %c0_0 = arith.constant 0 : index
    %c0_1 = arith.constant 0 : index
    %0 = vector.load %arg2[%c0, %c0_0, %c0_1] : memref<1x256x256xf32, #tpu.memory_space<vmem>>, vector<1x256x256xf32>
    %1 = vector.shape_cast %0 : vector<1x256x256xf32> to vector<256x256xf32>
    %cst = arith.constant dense<0.000000e+00> : vector<256xf32>
    %2 = vector.multi_reduction <add>, %1, %cst [1] : vector<256x256xf32> to vector<256xf32>
    %3 = vector.shape_cast %2 : vector<256xf32> to vector<256x1xf32>
    %cst_2 = arith.constant 2.560000e+02 : f32
    %4 = vector.broadcast %cst_2 : f32 to vector<256x1xf32>
    %5 = arith.divf %3, %4 : vector<256x1xf32>
    %6 = vector.broadcast %5 : vector<256x1xf32> to vector<256x256xf32>
    %7 = arith.subf %1, %6 : vector<256x256xf32>
    %8 = arith.mulf %7, %7 : vector<256x256xf32>
    %cst_3 = arith.constant dense<0.000000e+00> : vector<256xf32>
    %9 = vector.multi_reduction <add>, %8, %cst_3 [1] : vector<256x256xf32> to vector<256xf32>
    %10 = vector.shape_cast %9 : vector<256xf32> to vector<256x1xf32>
    %cst_4 = arith.constant 2.560000e+02 : f32
    %11 = vector.broadcast %cst_4 : f32 to vector<256x1xf32>
    %12 = arith.divf %10, %11 : vector<256x1xf32>
    %13 = vector.broadcast %5 : vector<256x1xf32> to vector<256x256xf32>
    %14 = arith.subf %1, %13 : vector<256x256xf32>
    %cst_5 = arith.constant 9.99999974E-6 : f32
    %15 = vector.broadcast %cst_5 : f32 to vector<256x1xf32>
    %16 = arith.addf %12, %15 : vector<256x1xf32>
    %17 = math.rsqrt %16 : vector<256x1xf32>
    %18 = vector.broadcast %17 : vector<256x1xf32> to vector<256x256xf32>
    %19 = arith.mulf %14, %18 : vector<256x256xf32>
    %c0_6 = arith.constant 0 : index
    %c0_7 = arith.constant 0 : index
    %20 = vector.load %arg4[%c0_6, %c0_7] : memref<1x256xf32, #tpu.memory_space<vmem>>, vector<1x256xf32>
    %21 = vector.broadcast %20 : vector<1x256xf32> to vector<256x256xf32>
    %22 = arith.mulf %19, %21 : vector<256x256xf32>
    %c0_8 = arith.constant 0 : index
    %c0_9 = arith.constant 0 : index
    %23 = vector.load %arg5[%c0_8, %c0_9] : memref<1x256xf32, #tpu.memory_space<vmem>>, vector<1x256xf32>
    %24 = vector.broadcast %23 : vector<1x256xf32> to vector<256x256xf32>
    %25 = arith.addf %22, %24 : vector<256x256xf32>
    %c0_10 = arith.constant 0 : index
    %c0_11 = arith.constant 0 : index
    %26 = vector.load %arg6[%c0_10, %c0_11] : memref<256x768xf32, #tpu.memory_space<vmem>>, vector<256x768xf32>
    %cst_12 = arith.constant dense<0.000000e+00> : vector<256x768xf32>
    %27 = tpu.matmul %25, %26, %cst_12 {dimension_numbers = #tpu.dot_dimension_numbers<[1], [0], [0], [1], [0, 0, 1, 1], [], []>} : vector<256x256xf32>, vector<256x768xf32>, vector<256x768xf32> -> vector<256x768xf32>
    %c0_13 = arith.constant 0 : index
    %c0_14 = arith.constant 0 : index
    %28 = vector.load %arg7[%c0_13, %c0_14] : memref<1x768xf32, #tpu.memory_space<vmem>>, vector<1x768xf32>
    %29 = vector.broadcast %28 : vector<1x768xf32> to vector<256x768xf32>
    %30 = arith.addf %27, %29 : vector<256x768xf32>
    %31 = vector.extract_strided_slice %30 {offsets = [0, 0], sizes = [256, 256], strides = [1, 1]} : vector<256x768xf32> to vector<256x256xf32>
    %32 = arith.negf %31 : vector<256x256xf32>
    %33 = math.exp %32 : vector<256x256xf32>
    %cst_15 = arith.constant 1.000000e+00 : f32
    %34 = vector.broadcast %cst_15 : f32 to vector<256x256xf32>
    %35 = arith.addf %34, %33 : vector<256x256xf32>
    %36 = arith.divf %34, %35 : vector<256x256xf32>
    %c0_16 = arith.constant 0 : index
    %c0_17 = arith.constant 0 : index
    %c0_18 = arith.constant 0 : index
    %37 = vector.load %arg3[%c0_16, %c0_17, %c0_18] : memref<1x256x1xf32, #tpu.memory_space<vmem>>, vector<1x256x1xf32>
    %38 = vector.shape_cast %37 : vector<1x256x1xf32> to vector<256x1xf32>
    %39 = vector.broadcast %38 : vector<256x1xf32> to vector<256x256xf32>
    %40 = arith.mulf %36, %39 : vector<256x256xf32>
    %41 = vector.extract_strided_slice %30 {offsets = [0, 256], sizes = [256, 256], strides = [1, 1]} : vector<256x768xf32> to vector<256x256xf32>
    %42 = arith.mulf %40, %41 : vector<256x256xf32>
    %43 = tpu.transpose %42, [1, 0] : vector<256x256xf32> -> vector<256x256xf32>
    %44 = vector.extract_strided_slice %43 {offsets = [0, 0], sizes = [128, 256], strides = [1, 1]} : vector<256x256xf32> to vector<128x256xf32>
    %c0_19 = arith.constant 0 : index
    %c0_20 = arith.constant 0 : index
    %c0_21 = arith.constant 0 : index
    %45 = vector.load %arg8[%c0_19, %c0_20, %c0_21] : memref<1x128x256xf32, #tpu.memory_space<vmem>>, vector<1x128x256xf32>
    %46 = vector.shape_cast %45 : vector<1x128x256xf32> to vector<128x256xf32>
    %47 = vector.shape_cast %44 : vector<128x256xf32> to vector<1x128x256xf32>
    tpu.vector_store %arg8[%c0_19, %c0_20, %c0_21], %47 {strides = array<i32>} : memref<1x128x256xf32, #tpu.memory_space<vmem>>, vector<1x128x256xf32>,
    %48 = vector.extract_strided_slice %43 {offsets = [128, 0], sizes = [128, 256], strides = [1, 1]} : vector<256x256xf32> to vector<128x256xf32>
    %c0_22 = arith.constant 0 : index
    %c0_23 = arith.constant 0 : index
    %c0_24 = arith.constant 0 : index
    %49 = vector.load %arg9[%c0_22, %c0_23, %c0_24] : memref<1x128x256xf32, #tpu.memory_space<vmem>>, vector<1x128x256xf32>
    %50 = vector.shape_cast %49 : vector<1x128x256xf32> to vector<128x256xf32>
    %51 = vector.shape_cast %48 : vector<128x256xf32> to vector<1x128x256xf32>
    tpu.vector_store %arg9[%c0_22, %c0_23, %c0_24], %51 {strides = array<i32>} : memref<1x128x256xf32, #tpu.memory_space<vmem>>, vector<1x128x256xf32>,
    %52 = vector.extract_strided_slice %30 {offsets = [0, 512], sizes = [256, 256], strides = [1, 1]} : vector<256x768xf32> to vector<256x256xf32>
    %53 = arith.negf %52 : vector<256x256xf32>
    %54 = math.exp %53 : vector<256x256xf32>
    %cst_25 = arith.constant 1.000000e+00 : f32
    %55 = vector.broadcast %cst_25 : f32 to vector<256x256xf32>
    %56 = arith.addf %55, %54 : vector<256x256xf32>
    %57 = arith.divf %55, %56 : vector<256x256xf32>
    %c0_26 = arith.constant 0 : index
    %c0_27 = arith.constant 0 : index
    %c0_28 = arith.constant 0 : index
    %58 = vector.load %arg10[%c0_26, %c0_27, %c0_28] : memref<1x256x256xf32, #tpu.memory_space<vmem>>, vector<1x256x256xf32>
    %59 = vector.shape_cast %58 : vector<1x256x256xf32> to vector<256x256xf32>
    %60 = vector.shape_cast %57 : vector<256x256xf32> to vector<1x256x256xf32>
    tpu.vector_store %arg10[%c0_26, %c0_27, %c0_28], %60 {strides = array<i32>} : memref<1x256x256xf32, #tpu.memory_space<vmem>>, vector<1x256x256xf32>,
    return
  }
  func.func @transform_0(%arg0: i32, %arg1: i32) -> (i32, i32, i32) {
    %c0_i32 = arith.constant 0 : i32
    %c0_i32_0 = arith.constant 0 : i32
    return %arg0, %arg1, %c0_i32 : i32, i32, i32
  }
  func.func @transform_1(%arg0: i32, %arg1: i32) -> (i32, i32, i32) {
    %c0_i32 = arith.constant 0 : i32
    %c0_i32_0 = arith.constant 0 : i32
    return %arg0, %arg1, %c0_i32 : i32, i32, i32
  }
  func.func @transform_2(%arg0: i32, %arg1: i32) -> (i32, i32) {
    %c0_i32 = arith.constant 0 : i32
    %c0_i32_0 = arith.constant 0 : i32
    %c0_i32_1 = arith.constant 0 : i32
    return %c0_i32, %c0_i32_0 : i32, i32
  }
  func.func @transform_3(%arg0: i32, %arg1: i32) -> (i32, i32) {
    %c0_i32 = arith.constant 0 : i32
    %c0_i32_0 = arith.constant 0 : i32
    %c0_i32_1 = arith.constant 0 : i32
    return %c0_i32, %c0_i32_0 : i32, i32
  }
  func.func @transform_4(%arg0: i32, %arg1: i32) -> (i32, i32) {
    %c0_i32 = arith.constant 0 : i32
    %c0_i32_0 = arith.constant 0 : i32
    %c0_i32_1 = arith.constant 0 : i32
    return %c0_i32, %c0_i32_0 : i32, i32
  }
  func.func @transform_5(%arg0: i32, %arg1: i32) -> (i32, i32) {
    %c0_i32 = arith.constant 0 : i32
    %c0_i32_0 = arith.constant 0 : i32
    %c0_i32_1 = arith.constant 0 : i32
    return %c0_i32, %c0_i32_0 : i32, i32
  }
  func.func @transform_6(%arg0: i32, %arg1: i32) -> (i32, i32, i32) {
    %c0_i32 = arith.constant 0 : i32
    %c0_i32_0 = arith.constant 0 : i32
    return %arg0, %c0_i32, %arg1 : i32, i32, i32
  }
  func.func @transform_7(%arg0: i32, %arg1: i32) -> (i32, i32, i32) {
    %c0_i32 = arith.constant 0 : i32
    %c0_i32_0 = arith.constant 0 : i32
    return %arg0, %c0_i32, %arg1 : i32, i32, i32
  }
  func.func @transform_8(%arg0: i32, %arg1: i32) -> (i32, i32, i32) {
    %c0_i32 = arith.constant 0 : i32
    %c0_i32_0 = arith.constant 0 : i32
    return %arg0, %arg1, %c0_i32 : i32, i32, i32
  }
}

module attributes {stable_mosaic.version = 11 : i64} {
  func.func @_output_kernel(%arg0: i32, %arg1: i32, %arg2: memref<1x128x256xf32, #tpu.memory_space<vmem>>, %arg3: memref<1x256x256xf32, #tpu.memory_space<vmem>>, %arg4: memref<1x128xf32, #tpu.memory_space<vmem>>, %arg5: memref<1x128xf32, #tpu.memory_space<vmem>>, %arg6: memref<128x256xf32, #tpu.memory_space<vmem>>, %arg7: memref<1x256xf32, #tpu.memory_space<vmem>>, %arg8: memref<1x256x256xf32, #tpu.memory_space<vmem>>) attributes {dimension_semantics = [#tpu.dimension_semantics<parallel>, #tpu.dimension_semantics<parallel>], iteration_bounds = array<i64: 2, 1>, scalar_prefetch = 0 : i64, scratch_operands = 0 : i64, tpu.core_type = #tpu.core_type<tc>, window_params = [{transform_indices = @transform_0, window_bounds = array<i64: 1, 128, 256>}, {transform_indices = @transform_1, window_bounds = array<i64: 1, 256, 256>}, {pipeline_mode = #tpu.pipeline_mode<synchronous>, transform_indices = @transform_2, window_bounds = array<i64: 1, 128>}, {pipeline_mode = #tpu.pipeline_mode<synchronous>, transform_indices = @transform_3, window_bounds = array<i64: 1, 128>}, {pipeline_mode = #tpu.pipeline_mode<synchronous>, transform_indices = @transform_4, window_bounds = array<i64: 128, 256>}, {pipeline_mode = #tpu.pipeline_mode<synchronous>, transform_indices = @transform_5, window_bounds = array<i64: 1, 256>}, {transform_indices = @transform_6, window_bounds = array<i64: 1, 256, 256>}]} {
    %c0 = arith.constant 0 : index
    %c0_0 = arith.constant 0 : index
    %c0_1 = arith.constant 0 : index
    %0 = vector.load %arg2[%c0, %c0_0, %c0_1] : memref<1x128x256xf32, #tpu.memory_space<vmem>>, vector<1x128x256xf32>
    %1 = vector.shape_cast %0 : vector<1x128x256xf32> to vector<128x256xf32>
    %2 = tpu.transpose %1, [1, 0] : vector<128x256xf32> -> vector<256x128xf32>
    %cst = arith.constant dense<0.000000e+00> : vector<256xf32>
    %3 = vector.multi_reduction <add>, %2, %cst [1] : vector<256x128xf32> to vector<256xf32>
    %4 = vector.shape_cast %3 : vector<256xf32> to vector<256x1xf32>
    %cst_2 = arith.constant 1.280000e+02 : f32
    %5 = vector.broadcast %cst_2 : f32 to vector<256x1xf32>
    %6 = arith.divf %4, %5 : vector<256x1xf32>
    %7 = vector.broadcast %6 : vector<256x1xf32> to vector<256x128xf32>
    %8 = arith.subf %2, %7 : vector<256x128xf32>
    %9 = arith.mulf %8, %8 : vector<256x128xf32>
    %cst_3 = arith.constant dense<0.000000e+00> : vector<256xf32>
    %10 = vector.multi_reduction <add>, %9, %cst_3 [1] : vector<256x128xf32> to vector<256xf32>
    %11 = vector.shape_cast %10 : vector<256xf32> to vector<256x1xf32>
    %cst_4 = arith.constant 1.280000e+02 : f32
    %12 = vector.broadcast %cst_4 : f32 to vector<256x1xf32>
    %13 = arith.divf %11, %12 : vector<256x1xf32>
    %14 = vector.broadcast %6 : vector<256x1xf32> to vector<256x128xf32>
    %15 = arith.subf %2, %14 : vector<256x128xf32>
    %cst_5 = arith.constant 9.99999974E-6 : f32
    %16 = vector.broadcast %cst_5 : f32 to vector<256x1xf32>
    %17 = arith.addf %13, %16 : vector<256x1xf32>
    %18 = math.rsqrt %17 : vector<256x1xf32>
    %19 = vector.broadcast %18 : vector<256x1xf32> to vector<256x128xf32>
    %20 = arith.mulf %15, %19 : vector<256x128xf32>
    %c0_6 = arith.constant 0 : index
    %c0_7 = arith.constant 0 : index
    %21 = vector.load %arg4[%c0_6, %c0_7] : memref<1x128xf32, #tpu.memory_space<vmem>>, vector<1x128xf32>
    %22 = vector.broadcast %21 : vector<1x128xf32> to vector<256x128xf32>
    %23 = arith.mulf %20, %22 : vector<256x128xf32>
    %c0_8 = arith.constant 0 : index
    %c0_9 = arith.constant 0 : index
    %24 = vector.load %arg5[%c0_8, %c0_9] : memref<1x128xf32, #tpu.memory_space<vmem>>, vector<1x128xf32>
    %25 = vector.broadcast %24 : vector<1x128xf32> to vector<256x128xf32>
    %26 = arith.addf %23, %25 : vector<256x128xf32>
    %c0_10 = arith.constant 0 : index
    %c0_11 = arith.constant 0 : index
    %27 = vector.load %arg6[%c0_10, %c0_11] : memref<128x256xf32, #tpu.memory_space<vmem>>, vector<128x256xf32>
    %cst_12 = arith.constant dense<0.000000e+00> : vector<256x256xf32>
    %28 = tpu.matmul %26, %27, %cst_12 {dimension_numbers = #tpu.dot_dimension_numbers<[1], [0], [0], [1], [0, 0, 1, 1], [], []>} : vector<256x128xf32>, vector<128x256xf32>, vector<256x256xf32> -> vector<256x256xf32>
    %c0_13 = arith.constant 0 : index
    %c0_14 = arith.constant 0 : index
    %29 = vector.load %arg7[%c0_13, %c0_14] : memref<1x256xf32, #tpu.memory_space<vmem>>, vector<1x256xf32>
    %30 = vector.broadcast %29 : vector<1x256xf32> to vector<256x256xf32>
    %31 = arith.addf %28, %30 : vector<256x256xf32>
    %c0_15 = arith.constant 0 : index
    %c0_16 = arith.constant 0 : index
    %c0_17 = arith.constant 0 : index
    %32 = vector.load %arg3[%c0_15, %c0_16, %c0_17] : memref<1x256x256xf32, #tpu.memory_space<vmem>>, vector<1x256x256xf32>
    %33 = vector.shape_cast %32 : vector<1x256x256xf32> to vector<256x256xf32>
    %34 = arith.mulf %31, %33 : vector<256x256xf32>
    %c0_18 = arith.constant 0 : index
    %c0_19 = arith.constant 0 : index
    %c0_20 = arith.constant 0 : index
    %35 = vector.load %arg8[%c0_18, %c0_19, %c0_20] : memref<1x256x256xf32, #tpu.memory_space<vmem>>, vector<1x256x256xf32>
    %36 = vector.shape_cast %35 : vector<1x256x256xf32> to vector<256x256xf32>
    %37 = vector.shape_cast %34 : vector<256x256xf32> to vector<1x256x256xf32>
    tpu.vector_store %arg8[%c0_18, %c0_19, %c0_20], %37 {strides = array<i32>} : memref<1x256x256xf32, #tpu.memory_space<vmem>>, vector<1x256x256xf32>,
    return
  }
  func.func @transform_0(%arg0: i32, %arg1: i32) -> (i32, i32, i32) {
    %c0_i32 = arith.constant 0 : i32
    %c0_i32_0 = arith.constant 0 : i32
    return %arg0, %c0_i32, %arg1 : i32, i32, i32
  }
  func.func @transform_1(%arg0: i32, %arg1: i32) -> (i32, i32, i32) {
    %c0_i32 = arith.constant 0 : i32
    %c0_i32_0 = arith.constant 0 : i32
    return %arg0, %arg1, %c0_i32 : i32, i32, i32
  }
  func.func @transform_2(%arg0: i32, %arg1: i32) -> (i32, i32) {
    %c0_i32 = arith.constant 0 : i32
    %c0_i32_0 = arith.constant 0 : i32
    %c0_i32_1 = arith.constant 0 : i32
    return %c0_i32, %c0_i32_0 : i32, i32
  }
  func.func @transform_3(%arg0: i32, %arg1: i32) -> (i32, i32) {
    %c0_i32 = arith.constant 0 : i32
    %c0_i32_0 = arith.constant 0 : i32
    %c0_i32_1 = arith.constant 0 : i32
    return %c0_i32, %c0_i32_0 : i32, i32
  }
  func.func @transform_4(%arg0: i32, %arg1: i32) -> (i32, i32) {
    %c0_i32 = arith.constant 0 : i32
    %c0_i32_0 = arith.constant 0 : i32
    %c0_i32_1 = arith.constant 0 : i32
    return %c0_i32, %c0_i32_0 : i32, i32
  }
  func.func @transform_5(%arg0: i32, %arg1: i32) -> (i32, i32) {
    %c0_i32 = arith.constant 0 : i32
    %c0_i32_0 = arith.constant 0 : i32
    %c0_i32_1 = arith.constant 0 : i32
    return %c0_i32, %c0_i32_0 : i32, i32
  }
  func.func @transform_6(%arg0: i32, %arg1: i32) -> (i32, i32, i32) {
    %c0_i32 = arith.constant 0 : i32
    %c0_i32_0 = arith.constant 0 : i32
    return %arg0, %arg1, %c0_i32 : i32, i32, i32
  }
}

</mosaic_0001>

<bundles_post_ra>
// kernel: triangle_multiplicative_update.4
= control target key start
LH: loop header
LB: loop body
LE: loop exit
PB: predicated region body
PF: predicated region fallthrough
CT: control target
= control target key end

     0   :  { %s1050_s9 = smov 0   ;;  %s1052_s10 = smov 0   ;;  %s1243_s0 = inlined_call_operand.vmem [shape: f32[2,128,16,16], index: 0, kind: input, shape index: {}]   ;;  %s1244_s1 = inlined_call_operand.vmem [shape: f32[2,128,16,16], index: 1, kind: input, shape index: {}]   ;;  %s1245_s2 = inlined_call_operand.vmem [shape: f32[2,128,16,16], index: 2, kind: output, shape index: {}]  }
   0x1   :  { %s1054_s11 = smov 0   ;;  %s1056_s12 = smov 0  }
   0x2   :  { %s1058_s13 = smov 0  }
   0x3 LB: > { %s41_s14 = sadd.s32 1, %s1024_s11  ;;  %s45_s15 = sadd.s32 1, %s1028_s12  ;;  %s1032_s13 = sphi %s1058_s13, %s12_s13   ;;  %s1028_s12 = sphi %s1056_s12, %s1249_s12   ;;  %s1024_s11 = sphi %s1054_s11, %s1248_s11   ;;  %s1020_s10 = sphi %s1052_s10, %s1247_s10   ;;  %s1016_s9 = sphi %s1050_s9, %s1246_s9  }
   0x4   : > { %p43_p0 = scmp.ge.s32.totalorder %s41_s14, 16  ;;  %p906_p1 = scmp.ge.s32.totalorder %s1032_s13, 1 }
   0x5   : > { %p201_p2 = scmp.lt.s32.totalorder %s1032_s13, 33 }
   0x6   : > { %s1251_s14 = smov (%p43_p0, %s41_s14), 0  ;;  %s1253_s15 = smov (!%p43_p0, %s45_s15), %s1028_s12 }
   0x7   : > { %p202_p3 = pnand %p906_p1, %p201_p2  ;;  %p47_p4 = scmp.ge.s32.totalorder %s1253_s15, 2 }
   0x8   : > { %s907_s16 = sshll.u32 (!%p202_p3), %s1016_s9, 3  ;;  %p266_p5 = scmp.lt.s32.totalorder (!%p202_p3), %s1020_s10, 1 }
   0x9   : > { %s1255_s15 = smov (%p47_p4, %s1253_s15), 0  ;;  %205 = sbr.rel (%p202_p3) target bundleno = 198 (0xc6), region = 28 }
   0xa   : > { %p268_p6 = scmp.lt.s32.totalorder (!%p202_p3), %s907_s16, 127 }
   0xe   : > { %s1257_s10 = smov (!%p266_p5, %s1020_s10), 1  ;;  %s1259_s16 = smov (!%p268_p6, %s907_s16), 127  ;;  %vm325_vm0 = vcmask 130048   ;;  %v1034_v8 = vmov 0.0  }
   0xf   : > { %s909_s17 = sshll.u32 %s1257_s10, 8  ;;  %s908_s18 = sshll.u32 %s1259_s16, 1  ;;  %326 = vst.msk [vmem:[#allocation2] sm:$0xff] %vm325_vm0, %v1034_v8 }
  0x10   : > { %s278_s19 = sadd.s32 %s909_s17, %s908_s18  ;;  %327 = vst.msk [vmem:[#allocation2 + $0x8] sm:$0xff] %vm325_vm0, %v1034_v8 }
  0x11   : > { %s1080_s20 = sshll.u32 %s278_s19, 3  ;;  %328 = vst.msk [vmem:[#allocation2 + $0x10] sm:$0xff] %vm325_vm0, %v1034_v8 }
  0x12   : > { %s1086_s23 = scalar_lea.vmem %s1244_s1, %s1080_s20  ;;  %s1102_s26 = scalar_lea.vmem %s1243_s0, %s1080_s20  ;;  %329 = vst.msk [vmem:[#allocation2 + $0x18] sm:$0xff] %vm325_vm0, %v1034_v8 }
  0x13   : > { %v379_v0 = vld [vmem:[%s1086_s23 + $0x28] sm:$0xff]  ;;  %v381_v1 = vld [vmem:[%s1086_s23 + $0x38] sm:$0xff]  ;;  %v378_v4 = vld [vmem:[%s1086_s23 + $0x20] sm:$0xff]  ;;  %330 = vst.msk [vmem:[#allocation2 + $0x20] sm:$0xff] %vm325_vm0, %v1034_v8  ;;  %s1181_s29 = scalar_lea.vmem %s1245_s2, %s1080_s20 }
  0x14   : > { %927 = vmatpush.xpose.msk.msra.mxu2 %vm325_vm0, %v379_v0  ;;  %931 = vmatpush.xpose.msk.msra.mxu3 %vm325_vm0, %v381_v1  ;;  %v375_v2 = vld [vmem:[%s1086_s23 + $0x8] sm:$0xff]  ;;  %v377_v3 = vld [vmem:[%s1086_s23 + $0x18] sm:$0xff]  ;;  %v380_v5 = vld [vmem:[%s1086_s23 + $0x30] sm:$0xff]  ;;  %331 = vst.msk [vmem:[#allocation2 + $0x28] sm:$0xff] %vm325_vm0, %v1034_v8 }
  0x15   : > { %919 = vmatpush.xpose.msk.msra.mxu0 %vm325_vm0, %v375_v2  ;;  %923 = vmatpush.xpose.msk.msra.mxu1 %vm325_vm0, %v377_v3  ;;  %v387_v6 = vld [vmem:[%s1086_s23 + $0x68] sm:$0xff]  ;;  %v389_v7 = vld [vmem:[%s1086_s23 + $0x78] sm:$0xff]  ;;  %v374_v9 = vld [vmem:[%s1086_s23] sm:$0xff]  ;;  %332 = vst.msk [vmem:[#allocation2 + $0x30] sm:$0xff] %vm325_vm0, %v1034_v8 }
  0x16   : > { %v376_v10 = vld [vmem:[%s1086_s23 + $0x10] sm:$0xff]  ;;  %v362_v11 = vld [vmem:[%s1102_s26 + $0x20] sm:$0xff]  ;;  %v383_v13 = vld [vmem:[%s1086_s23 + $0x48] sm:$0xff]  ;;  %333 = vst.msk [vmem:[#allocation2 + $0x38] sm:$0xff] %vm325_vm0, %v1034_v8 }
  0x17   : > { %v364_v12 = vld [vmem:[%s1102_s26 + $0x30] sm:$0xff]  ;;  %v385_v14 = vld [vmem:[%s1086_s23 + $0x58] sm:$0xff]  ;;  %v358_v15 = vld [vmem:[%s1102_s26] sm:$0xff]  ;;  %334 = vst.msk [vmem:[#allocation2 + $0x40] sm:$0xff] %vm325_vm0, %v1034_v8 }
  0x18   : > { %928 = vmatpush.xpose.msk.msra.mxu2 %vm325_vm0, %v378_v4  ;;  %932 = vmatpush.xpose.msk.msra.mxu3 %vm325_vm0, %v380_v5  ;;  %v360_v16 = vld [vmem:[%s1102_s26 + $0x10] sm:$0xff]  ;;  %v386_v17 = vld [vmem:[%s1086_s23 + $0x60] sm:$0xff]  ;;  %335 = vst.msk [vmem:[#allocation2 + $0x48] sm:$0xff] %vm325_vm0, %v1034_v8  ;;  %v363_v21 = vld [vmem:[%s1102_s26 + $0x28] sm:$0xff] }
  0x19   : > { %920 = vmatpush.xpose.msk.msra.mxu0 %vm325_vm0, %v374_v9  ;;  %924 = vmatpush.xpose.msk.msra.mxu1 %vm325_vm0, %v376_v10  ;;  %v388_v18 = vld [vmem:[%s1086_s23 + $0x70] sm:$0xff]  ;;  %v382_v19 = vld [vmem:[%s1086_s23 + $0x40] sm:$0xff]  ;;  %v365_v22 = vld [vmem:[%s1102_s26 + $0x38] sm:$0xff]  ;;  %336 = vst.msk [vmem:[#allocation2 + $0x50] sm:$0xff] %vm325_vm0, %v1034_v8 }
  0x1a   : > { %v384_v20 = vld [vmem:[%s1086_s23 + $0x50] sm:$0xff]  ;;  %337 = vst.msk [vmem:[#allocation2 + $0x58] sm:$0xff] %vm325_vm0, %v1034_v8  ;;  %v359_v23 = vld [vmem:[%s1102_s26 + $0x8] sm:$0xff]  ;;  %v361_v24 = vld [vmem:[%s1102_s26 + $0x18] sm:$0xff] }
  0x1b   : > { %929 = vmatmul.msk.f32.vlgmr.msra.gmra.mxu2 %vm325_vm0, %v362_v11  ;;  %933 = vmatmul.msk.f32.vlgmr.msra.gmra.mxu3 %vm325_vm0, %v364_v12  ;;  %338 = vst.msk [vmem:[#allocation2 + $0x60] sm:$0xff] %vm325_vm0, %v1034_v8  ;;  %v370_v25 = vld [vmem:[%s1102_s26 + $0x60] sm:$0xff]  ;;  %v372_v26 = vld [vmem:[%s1102_s26 + $0x70] sm:$0xff]  ;;  %v371_v29 = vld [vmem:[%s1102_s26 + $0x68] sm:$0xff] }
  0x1c   : > { %943 = vmatpush.xpose.msk.msrb.mxu2 %vm325_vm0, %v387_v6  ;;  %947 = vmatpush.xpose.msk.msrb.mxu3 %vm325_vm0, %v389_v7  ;;  %339 = vst.msk [vmem:[#allocation2 + $0x68] sm:$0xff] %vm325_vm0, %v1034_v8  ;;  %v366_v27 = vld [vmem:[%s1102_s26 + $0x40] sm:$0xff]  ;;  %v368_v28 = vld [vmem:[%s1102_s26 + $0x50] sm:$0xff]  ;;  %v373_v30 = vld [vmem:[%s1102_s26 + $0x78] sm:$0xff] }
  0x1d   : > { %935 = vmatpush.xpose.msk.msrb.mxu0 %vm325_vm0, %v383_v13  ;;  %939 = vmatpush.xpose.msk.msrb.mxu1 %vm325_vm0, %v385_v14  ;;  %340 = vst.msk [vmem:[#allocation2 + $0x70] sm:$0xff] %vm325_vm0, %v1034_v8  ;;  %v367_v31 = vld [vmem:[%s1102_s26 + $0x48] sm:$0xff]  ;;  %v369_v32 = vld [vmem:[%s1102_s26 + $0x58] sm:$0xff]  ;;  %v342_v33 = vld [vmem:[#allocation2] sm:$0xff] }
  0x1e   : > { %921 = vmatmul.msk.f32.vlgmr.msra.gmra.mxu0 %vm325_vm0, %v358_v15  ;;  %925 = vmatmul.msk.f32.vlgmr.msra.gmra.mxu1 %vm325_vm0, %v360_v16  ;;  %341 = vst.msk [vmem:[#allocation2 + $0x78] sm:$0xff] %vm325_vm0, %v1034_v8  ;;  %v344_v34 = vld [vmem:[#allocation2 + $0x10] sm:$0xff]  ;;  %v346_v39 = vld [vmem:[#allocation2 + $0x20] sm:$0xff]  ;;  %v343_v45 = vld [vmem:[#allocation2 + $0x8] sm:$0xff] }
  0x1f   : > { %v348_v40 = vld [vmem:[#allocation2 + $0x30] sm:$0xff]  ;;  %v345_v46 = vld [vmem:[#allocation2 + $0x18] sm:$0xff]  ;;  %v347_v52 = vld [vmem:[#allocation2 + $0x28] sm:$0xff] }
  0x20   : > { %944 = vmatpush.xpose.msk.msrb.mxu2 %vm325_vm0, %v386_v17  ;;  %948 = vmatpush.xpose.msk.msrb.mxu3 %vm325_vm0, %v388_v18  ;;  %v349_v54 = vld [vmem:[#allocation2 + $0x38] sm:$0xff]  ;;  %v350_v60 = vld [vmem:[#allocation2 + $0x40] sm:$0xff]  ;;  %v352_v61 = vld [vmem:[#allocation2 + $0x50] sm:$0xff] }
  0x21   : > { %936 = vmatpush.xpose.msk.msrb.mxu0 %vm325_vm0, %v382_v19  ;;  %940 = vmatpush.xpose.msk.msrb.mxu1 %vm325_vm0, %v384_v20  ;;  %v351_v11 = vld [vmem:[#allocation2 + $0x48] sm:$0xff]  ;;  %v353_v12 = vld [vmem:[#allocation2 + $0x58] sm:$0xff] }
  0x22   : > { %v354_v3 = vld [vmem:[#allocation2 + $0x60] sm:$0xff] }
  0x23   : > { %930 = vmatmul.msk.f32.gmra.mxu2 %vm325_vm0, %v363_v21  ;;  %934 = vmatmul.msk.f32.gmra.mxu3 %vm325_vm0, %v365_v22  ;;  %v355_v20 = vld [vmem:[#allocation2 + $0x68] sm:$0xff] }
  0x24   : > { %v356_v4 = vld [vmem:[#allocation2 + $0x70] sm:$0xff] }
  0x25   : > { %v357_v22 = vld [vmem:[#allocation2 + $0x78] sm:$0xff] }
  0x26   : > { %922 = vmatmul.msk.f32.gmra.mxu0 %vm325_vm0, %v359_v23  ;;  %926 = vmatmul.msk.f32.gmra.mxu1 %vm325_vm0, %v361_v24 }
  0x2b   : > { %945 = vmatmul.msk.f32.vlgmr.msrb.gmra.mxu2 %vm325_vm0, %v370_v25  ;;  %949 = vmatmul.msk.f32.vlgmr.msrb.gmra.mxu3 %vm325_vm0, %v372_v26 }
  0x2e   : > { %937 = vmatmul.msk.f32.vlgmr.msrb.gmra.mxu0 %vm325_vm0, %v366_v27  ;;  %941 = vmatmul.msk.f32.vlgmr.msrb.gmra.mxu1 %vm325_vm0, %v368_v28 }
  0x33   : > { %946 = vmatmul.msk.f32.gmra.mxu2 %vm325_vm0, %v371_v29  ;;  %950 = vmatmul.msk.f32.gmra.mxu3 %vm325_vm0, %v373_v30 }
  0x36   : > { %938 = vmatmul.msk.f32.gmra.mxu0 %vm325_vm0, %v367_v31  ;;  %942 = vmatmul.msk.f32.gmra.mxu1 %vm325_vm0, %v369_v32 }
  0x9b   : > { %v420_v35 = vpop.f32.mrf.mxu0  ;;  %v455_v36 = vpop.f32.mrf.mxu1 }
  0x9c   : > { %v671_v37 = vadd.f32 %v420_v35, %v342_v33  ;;  %v673_v38 = vadd.f32 %v455_v36, %v344_v34 }
  0x9e   : > { %687 = vst.msk [vmem:[#allocation2] sm:$0xff] %vm325_vm0, %v671_v37  ;;  %v490_v41 = vpop.f32.mrf.mxu2  ;;  %v525_v42 = vpop.f32.mrf.mxu3 }
  0x9f   : > { %689 = vst.msk [vmem:[#allocation2 + $0x10] sm:$0xff] %vm325_vm0, %v673_v38  ;;  %v675_v43 = vadd.f32 %v490_v41, %v346_v39  ;;  %v677_v44 = vadd.f32 %v525_v42, %v348_v40 }
  0xa1   : > { %691 = vst.msk [vmem:[#allocation2 + $0x20] sm:$0xff] %vm325_vm0, %v675_v43 }
  0xa2   : > { %693 = vst.msk [vmem:[#allocation2 + $0x30] sm:$0xff] %vm325_vm0, %v677_v44 }
  0xa3   : > { %v423_v47 = vpop.f32.mrf.mxu0  ;;  %v458_v48 = vpop.f32.mrf.mxu1 }
  0xa4   : > { %v672_v49 = vadd.f32 %v423_v47, %v343_v45  ;;  %v674_v51 = vadd.f32 %v458_v48, %v345_v46 }
  0xa5   : > { %v706_v50 = vld [vmem:[#allocation2] sm:$0xff] }
  0xa6   : > { %722 = vst.msk [vmem:[%s1181_s29] sm:$0xff] %vm325_vm0, %v706_v50  ;;  %v708_v53 = vld [vmem:[#allocation2 + $0x10] sm:$0xff]  ;;  %v493_v55 = vpop.f32.mrf.mxu2  ;;  %v528_v56 = vpop.f32.mrf.mxu3 }
  0xa7   : > { %724 = vst.msk [vmem:[%s1181_s29 + $0x10] sm:$0xff] %vm325_vm0, %v708_v53  ;;  %v676_v57 = vadd.f32 %v493_v55, %v347_v52  ;;  %v678_v59 = vadd.f32 %v528_v56, %v349_v54 }
  0xa8   : > { %688 = vst.msk [vmem:[#allocation2 + $0x8] sm:$0xff] %vm325_vm0, %v672_v49  ;;  %v710_v58 = vld [vmem:[#allocation2 + $0x20] sm:$0xff] }
  0xa9   : > { %690 = vst.msk [vmem:[#allocation2 + $0x18] sm:$0xff] %vm325_vm0, %v674_v51  ;;  %v712_v62 = vld [vmem:[#allocation2 + $0x30] sm:$0xff] }
  0xaa   : > { %726 = vst.msk [vmem:[%s1181_s29 + $0x20] sm:$0xff] %vm325_vm0, %v710_v58 }
  0xab   : > { %728 = vst.msk [vmem:[%s1181_s29 + $0x30] sm:$0xff] %vm325_vm0, %v712_v62  ;;  %v560_v63 = vpop.f32.mrf.mxu0  ;;  %v595_v0 = vpop.f32.mrf.mxu1 }
  0xac   : > { %692 = vst.msk [vmem:[#allocation2 + $0x28] sm:$0xff] %vm325_vm0, %v676_v57  ;;  %v679_v1 = vadd.f32 %v560_v63, %v350_v60  ;;  %v681_v2 = vadd.f32 %v595_v0, %v352_v61 }
  0xad   : > { %694 = vst.msk [vmem:[#allocation2 + $0x38] sm:$0xff] %vm325_vm0, %v678_v59 }
  0xae   : > { %695 = vst.msk [vmem:[#allocation2 + $0x40] sm:$0xff] %vm325_vm0, %v679_v1  ;;  %v630_v6 = vpop.f32.mrf.mxu2  ;;  %v665_v7 = vpop.f32.mrf.mxu3 }
  0xaf   : > { %v707_v5 = vld [vmem:[#allocation2 + $0x8] sm:$0xff]  ;;  %697 = vst.msk [vmem:[#allocation2 + $0x50] sm:$0xff] %vm325_vm0, %v681_v2  ;;  %v683_v9 = vadd.f32 %v630_v6, %v354_v3  ;;  %v685_v10 = vadd.f32 %v665_v7, %v356_v4 }
  0xb0   : > { %723 = vst.msk [vmem:[%s1181_s29 + $0x8] sm:$0xff] %vm325_vm0, %v707_v5  ;;  %v709_v8 = vld [vmem:[#allocation2 + $0x18] sm:$0xff] }
  0xb1   : > { %725 = vst.msk [vmem:[%s1181_s29 + $0x18] sm:$0xff] %vm325_vm0, %v709_v8 }
  0xb2   : > { %699 = vst.msk [vmem:[#allocation2 + $0x60] sm:$0xff] %vm325_vm0, %v683_v9 }
  0xb3   : > { %v711_v13 = vld [vmem:[#allocation2 + $0x28] sm:$0xff]  ;;  %701 = vst.msk [vmem:[#allocation2 + $0x70] sm:$0xff] %vm325_vm0, %v685_v10  ;;  %v563_v14 = vpop.f32.mrf.mxu0  ;;  %v598_v15 = vpop.f32.mrf.mxu1 }
  0xb4   : > { %727 = vst.msk [vmem:[%s1181_s29 + $0x28] sm:$0xff] %vm325_vm0, %v711_v13  ;;  %v713_v16 = vld [vmem:[#allocation2 + $0x38] sm:$0xff]  ;;  %v680_v17 = vadd.f32 %v563_v14, %v351_v11  ;;  %v682_v19 = vadd.f32 %v598_v15, %v353_v12 }
  0xb5   : > { %729 = vst.msk [vmem:[%s1181_s29 + $0x38] sm:$0xff] %vm325_vm0, %v713_v16  ;;  %v714_v18 = vld [vmem:[#allocation2 + $0x40] sm:$0xff] }
  0xb6   : > { %730 = vst.msk [vmem:[%s1181_s29 + $0x40] sm:$0xff] %vm325_vm0, %v714_v18  ;;  %v716_v21 = vld [vmem:[#allocation2 + $0x50] sm:$0xff]  ;;  %v633_v23 = vpop.f32.mrf.mxu2  ;;  %v668_v24 = vpop.f32.mrf.mxu3 }
  0xb7   : > { %732 = vst.msk [vmem:[%s1181_s29 + $0x50] sm:$0xff] %vm325_vm0, %v716_v21  ;;  %v684_v25 = vadd.f32 %v633_v23, %v355_v20  ;;  %v686_v27 = vadd.f32 %v668_v24, %v357_v22 }
  0xb8   : > { %696 = vst.msk [vmem:[#allocation2 + $0x48] sm:$0xff] %vm325_vm0, %v680_v17 }
  0xb9   : > { %v718_v26 = vld [vmem:[#allocation2 + $0x60] sm:$0xff]  ;;  %698 = vst.msk [vmem:[#allocation2 + $0x58] sm:$0xff] %vm325_vm0, %v682_v19 }
  0xba   : > { %734 = vst.msk [vmem:[%s1181_s29 + $0x60] sm:$0xff] %vm325_vm0, %v718_v26  ;;  %v720_v28 = vld [vmem:[#allocation2 + $0x70] sm:$0xff] }
  0xbb   : > { %736 = vst.msk [vmem:[%s1181_s29 + $0x70] sm:$0xff] %vm325_vm0, %v720_v28 }
  0xbc   : > { %700 = vst.msk [vmem:[#allocation2 + $0x68] sm:$0xff] %vm325_vm0, %v684_v25 }
  0xbd   : > { %702 = vst.msk [vmem:[#allocation2 + $0x78] sm:$0xff] %vm325_vm0, %v686_v27 }
  0xbf   : > { %v715_v29 = vld [vmem:[#allocation2 + $0x48] sm:$0xff] }
  0xc0   : > { %731 = vst.msk [vmem:[%s1181_s29 + $0x48] sm:$0xff] %vm325_vm0, %v715_v29  ;;  %v717_v30 = vld [vmem:[#allocation2 + $0x58] sm:$0xff] }
  0xc1   : > { %733 = vst.msk [vmem:[%s1181_s29 + $0x58] sm:$0xff] %vm325_vm0, %v717_v30 }
  0xc3   : > { %v719_v31 = vld [vmem:[#allocation2 + $0x68] sm:$0xff] }
  0xc4   : > { %735 = vst.msk [vmem:[%s1181_s29 + $0x68] sm:$0xff] %vm325_vm0, %v719_v31  ;;  %v721_v32 = vld [vmem:[#allocation2 + $0x78] sm:$0xff] }
  0xc5   : > { %737 = vst.msk [vmem:[%s1181_s29 + $0x78] sm:$0xff] %vm325_vm0, %v721_v32 }
  0xc6 PF: > { %s12_s13 = sadd.s32 1, %s1032_s13   ;;  %s1246_s9 = smov %s1024_s11 }
  0xc7   : > { %p9_p7 = scmp.ge.s32.totalorder %s12_s13, 34   ;;  %s1247_s10 = smov %s1028_s12 }
  0xc8   : > { %s1248_s11 = smov %s1251_s14  ;;  %s1249_s12 = smov %s1255_s15 }
  0xc9   :  { %11 = sbr.rel (!%p9_p7) target bundleno = 3 (0x3), region = 69 }

// kernel: triangle_multiplicative_update.3
= control target key start
LH: loop header
LB: loop body
LE: loop exit
PB: predicated region body
PF: predicated region fallthrough
CT: control target
= control target key end

     0   :  { %s7058_s27 = smov 0   ;;  %s7060_s28 = smov 0   ;;  %s13161_s0 = inlined_call_operand.vmem [shape: f32[2,256,256], index: 0, kind: input, shape index: {}]   ;;  %s13162_s1 = inlined_call_operand.vmem [shape: f32[2,256,1], index: 1, kind: input, shape index: {}]   ;;  %s13163_s2 = inlined_call_operand.vmem [shape: f32[1,256], index: 2, kind: input, shape index: {}]   ;;  %s13164_s3 = inlined_call_operand.vmem [shape: f32[1,256], index: 3, kind: input, shape index: {}]   ;;  %s13165_s4 = inlined_call_operand.vmem [shape: f32[256,768], index: 4, kind: input, shape index: {}]   ;;  %s13166_s5 = inlined_call_operand.vmem [shape: f32[1,768], index: 5, kind: input, shape index: {}]   ;;  %s13167_s6 = inlined_call_operand.vmem [shape: f32[2,128,256], index: 6, kind: output, shape index: {0}]   ;;  %s13168_s7 = inlined_call_operand.vmem [shape: f32[2,128,256], index: 7, kind: output, shape index: {1}]   ;;  %s13169_s8 = inlined_call_operand.vmem [shape: f32[2,256,256], index: 8, kind: output, shape index: {2}]  }
   0x1   :  { %s7062_s29 = smov 0  }
   0x2 LB: > { %s31_s30 = sadd.s32 1, %s7005_s28  ;;  %p6232_p0 = scmp.ge.s32.totalorder %s7009_s29, 1  ;;  %s7009_s29 = sphi %s7062_s29, %s19_s29   ;;  %s7005_s28 = sphi %s7060_s28, %s14039_s28   ;;  %s7001_s27 = sphi %s7058_s27, %s14038_s27  }
   0x3   : > { %p33_p1 = scmp.ge.s32.totalorder %s31_s30, 2  ;;  %p310_p2 = scmp.lt.s32.totalorder %s7009_s29, 3 }
   0x5   : > { %s14041_s30 = smov (%p33_p1, %s31_s30), 0  ;;  %p311_p3 = pnand %p6232_p0, %p310_p2 }
   0x7   : > { %314 = sbr.rel (%p311_p3) target bundleno = 1455 (0x5af), region = 44 }
   0xc   : > { %p382_p4 = scmp.lt.s32.totalorder %s7001_s27, 1  ;;  %v7011_v24 = vmov 256.0  }
   0xd   : > { %6407 = vrcp.f32 %v7011_v24 }
   0xe   : > { %s14043_s27 = smov (!%p382_p4, %s7001_s27), 1 }
   0xf   : > { %s6373_s9 = sshll.u32 %s14043_s27, 9  ;;  %s8499_s22 = sshll.u32 %s14043_s27, 8 }
  0x10   : > { %s7084_s12 = scalar_lea.vmem %s13161_s0, %s6373_s9  ;;  %s8523_s25 = scalar_lea.vmem %s13162_s1, %s8499_s22 }
  0x11   : > { %v437_v0 = vld [vmem:[%s7084_s12 + $0x20] sm:$0xff]  ;;  %v438_v1 = vld [vmem:[%s7084_s12 + $0x28] sm:$0xff]  ;;  %v435_v9 = vld [vmem:[%s7084_s12 + $0x10] sm:$0xff]  ;;  %s11882_s16 = scalar_lea.vmem %s13169_s8, %s6373_s9  ;;  %s12399_s19 = scalar_lea.vmem %s13167_s6, %s8499_s22 }
  0x12   : > { %v433_v2 = vld [vmem:[%s7084_s12] sm:$0xff]  ;;  %v503_v3 = vadd.f32 %v438_v1, %v437_v0  ;;  %v434_v4 = vld [vmem:[%s7084_s12 + $0x8] sm:$0xff]  ;;  %v439_v10 = vld [vmem:[%s7084_s12 + $0x30] sm:$0xff] }
  0x13   : > { %v7091_v5 = vld [vmem:[%s7084_s12 + $0x40] sm:$0xff]  ;;  %v7094_v6 = vld [vmem:[%s7084_s12 + $0x48] sm:$0xff]  ;;  %v497_v7 = vadd.f32 %v434_v4, %v433_v2  ;;  %v440_v11 = vld [vmem:[%s7084_s12 + $0x38] sm:$0xff]  ;;  %v6408_v25 = vpop.eup %6407 }
  0x14   : > { %v509_v8 = vadd.f32 %v7094_v6, %v7091_v5  ;;  %504 = vadd.xlane.f32.xlu1 %v503_v3  ;;  %v436_v12 = vld [vmem:[%s7084_s12 + $0x18] sm:$0xff]  ;;  %v443_v13 = vld [vmem:[%s7084_s12 + $0x50] sm:$0xff]  ;;  %v506_v15 = vadd.f32 %v440_v11, %v439_v10  ;;  %v7105_v18 = vld [vmem:[%s7084_s12 + $0x60] sm:$0xff]  ;;  %v594_v26 = vmul.f32 256.0, %v6408_v25  ;;  %vm598_vm0 = vweird.f32 %v6408_v25 }
  0x15   : > { %498 = vadd.xlane.f32.xlu0 %v497_v7  ;;  %v444_v14 = vld [vmem:[%s7084_s12 + $0x58] sm:$0xff]  ;;  %v500_v16 = vadd.f32 %v436_v12, %v435_v9  ;;  %v7108_v19 = vld [vmem:[%s7084_s12 + $0x68] sm:$0xff]  ;;  %v7111_v20 = vld [vmem:[%s7084_s12 + $0x70] sm:$0xff] }
  0x16   : > { %510 = vadd.xlane.f32.xlu2 %v509_v8  ;;  %v512_v17 = vadd.f32 %v444_v14, %v443_v13  ;;  %v7114_v21 = vld [vmem:[%s7084_s12 + $0x78] sm:$0xff]  ;;  %v515_v22 = vadd.f32 %v7108_v19, %v7105_v18  ;;  %v595_v27 = vsub.f32 1.0, %v594_v26  ;;  %v7141_v49 = vld [vmem:[%s7084_s12 + $0xa0] sm:$0xff]  ;;  %v7147_v53 = vld [vmem:[%s7084_s12 + $0xa8] sm:$0xff] }
  0x17   : > { %v518_v23 = vadd.f32 %v7114_v21, %v7111_v20  ;;  %v7150_v54 = vld [vmem:[%s7084_s12 + $0x80] sm:$0xff]  ;;  %v7153_v55 = vld [vmem:[%s7084_s12 + $0x88] sm:$0xff]  ;;  %v527_v60 = vadd.f32 %v7147_v53, %v7141_v49  ;;  %v7205_v24 = vld [vmem:[%s7084_s12 + $0xb0] sm:$0xff] }
  0x18   : > { %v596_v28 = vmul.f32 %v6408_v25, %v595_v27  ;;  %v521_v61 = vadd.f32 %v7153_v55, %v7150_v54  ;;  %v1534_v27 = vld [vmem:[%s13165_s4 + $0x2d0] sm:$0xff] }
  0x19   : > { %1650 = vmatpush.msra.mxu0 %v1534_v27  ;;  %v1606_v27 = vld [vmem:[%s13165_s4 + $0x510] sm:$0xff] }
  0x1a   : > { %v597_v29 = vadd.f32 %v6408_v25, %v596_v28  ;;  %v1630_v28 = vld [vmem:[%s13165_s4 + $0x5d0] sm:$0xff] }
  0x1b   : > { %1763 = vmatpush.msra.mxu1 %v1630_v28  ;;  %v1511_v28 = vld [vmem:[%s13165_s4 + $0x218] sm:$0xff] }
  0x1c   : > { %507 = vadd.xlane.f32.xlu1 %v506_v15  ;;  %v7120_v30 = vsel %vm598_vm0, %v6408_v25, %v597_v29  ;;  %v7208_v25 = vld [vmem:[%s7084_s12 + $0xb8] sm:$0xff] }
  0x1d   : > { %501 = vadd.xlane.f32.xlu0 %v500_v16  ;;  %v1535_v29 = vld [vmem:[%s13165_s4 + $0x2d8] sm:$0xff] }
  0x1e   : > { %513 = vadd.xlane.f32.xlu2 %v512_v17  ;;  %1876 = vmatpush.msra.mxu2 %v1535_v29  ;;  %v1607_v29 = vld [vmem:[%s13165_s4 + $0x518] sm:$0xff] }
  0x25   : > { %516 = vadd.xlane.f32.xlu0 %v515_v22  ;;  %v7199_v22 = vld [vmem:[%s7084_s12 + $0xd0] sm:$0xff] }
  0x26   : > { %519 = vadd.xlane.f32.xlu2 %v518_v23  ;;  %v7202_v23 = vld [vmem:[%s7084_s12 + $0xd8] sm:$0xff] }
  0x87   : > { %v505_v31 = vpop.xlane.xlu1 %504 }
  0x88   : > { %v602_v32 = vmul.f32 %v7120_v30, %v505_v31  ;;  %v499_v33 = vpop.xlane.xlu0 %498  ;;  %v1631_v31 = vld [vmem:[%s13165_s4 + $0x5d8] sm:$0xff] }
  0x89   : > { %v511_v34 = vpop.xlane.xlu2 %510  ;;  %v600_v35 = vmul.f32 %v7120_v30, %v499_v33  ;;  %v1624_v33 = vld [vmem:[%s13165_s4 + $0x5a0] sm:$0xff]  ;;  %1989 = vmatpush.msra.mxu3 %v1631_v31 }
  0x8a   : > { %v7124_v36 = vsub.f32 %v437_v0, %v602_v32  ;;  %v7126_v37 = vsub.f32 %v438_v1, %v602_v32  ;;  %v604_v7 = vmul.f32 %v7120_v30, %v511_v34  ;;  %v1528_v32 = vld [vmem:[%s13165_s4 + $0x2a0] sm:$0xff]  ;;  %v1529_v34 = vld [vmem:[%s13165_s4 + $0x2a8] sm:$0xff]  ;;  %1764 = vmatpush.msra.mxu1 %v1624_v33 }
  0x8b   : > { %v7128_v38 = vsub.f32 %v433_v2, %v600_v35  ;;  %v7130_v39 = vsub.f32 %v434_v4, %v600_v35  ;;  %v1625_v35 = vld [vmem:[%s13165_s4 + $0x5a8] sm:$0xff]  ;;  %1651 = vmatpush.msra.mxu0 %v1528_v32  ;;  %1877 = vmatpush.msra.mxu2 %v1529_v34  ;;  %v1504_v31 = vld [vmem:[%s13165_s4 + $0x1e0] sm:$0xff] }
  0x8c   : > { %v700_v40 = vmul.f32 %v7124_v36, %v7124_v36  ;;  %v701_v41 = vmul.f32 %v7126_v37, %v7126_v37  ;;  %1990 = vmatpush.msra.mxu3 %v1625_v35  ;;  %v1600_v32 = vld [vmem:[%s13165_s4 + $0x4e0] sm:$0xff]  ;;  %v1505_v33 = vld [vmem:[%s13165_s4 + $0x1e8] sm:$0xff]  ;;  %v1498_v35 = vld [vmem:[%s13165_s4 + $0x1b0] sm:$0xff] }
  0x8d   : > { %v696_v42 = vmul.f32 %v7128_v38, %v7128_v38  ;;  %v697_v43 = vmul.f32 %v7130_v39, %v7130_v39  ;;  %v1601_v34 = vld [vmem:[%s13165_s4 + $0x4e8] sm:$0xff] }
  0x8e   : > { %v766_v44 = vadd.f32 %v701_v41, %v700_v40  ;;  %v536_v40 = vadd.f32 %v7202_v23, %v7199_v22  ;;  %v530_v41 = vadd.f32 %v7208_v25, %v7205_v24 }
  0x8f   : > { %v760_v45 = vadd.f32 %v697_v43, %v696_v42  ;;  %v508_v46 = vpop.xlane.xlu1 %507 }
  0x90   : > { %v502_v47 = vpop.xlane.xlu0 %501  ;;  %767 = vadd.xlane.f32.xlu2 %v766_v44  ;;  %v603_v52 = vmul.f32 %v7120_v30, %v508_v46 }
  0x91   : > { %v514_v48 = vpop.xlane.xlu2 %513  ;;  %v601_v50 = vmul.f32 %v7120_v30, %v502_v47  ;;  %761 = vadd.xlane.f32.xlu1 %v760_v45 }
  0x92   : > { %v605_v51 = vmul.f32 %v7120_v30, %v514_v48  ;;  %v7167_v62 = vsub.f32 %v439_v10, %v603_v52  ;;  %v7169_v63 = vsub.f32 %v440_v11, %v603_v52  ;;  %v7185_v10 = vld [vmem:[%s7084_s12 + $0x90] sm:$0xff]  ;;  %v7188_v11 = vld [vmem:[%s7084_s12 + $0x98] sm:$0xff]  ;;  %v7255_v48 = vld [vmem:[%s7084_s12 + $0xc0] sm:$0xff] }
  0x93   : > { %v7155_v56 = vsub.f32 %v435_v9, %v601_v50  ;;  %v7157_v57 = vsub.f32 %v436_v12, %v601_v50  ;;  %v524_v16 = vadd.f32 %v7188_v11, %v7185_v10 }
  0x94   : > { %v7159_v58 = vsub.f32 %v443_v13, %v605_v51  ;;  %v7161_v59 = vsub.f32 %v444_v14, %v605_v51  ;;  %v702_v8 = vmul.f32 %v7167_v62, %v7167_v62  ;;  %v703_v9 = vmul.f32 %v7169_v63, %v7169_v63 }
  0x95   : > { %v698_v0 = vmul.f32 %v7155_v56, %v7155_v56  ;;  %v699_v1 = vmul.f32 %v7157_v57, %v7157_v57  ;;  %v7191_v13 = vsub.f32 %v7091_v5, %v604_v7  ;;  %v7194_v14 = vsub.f32 %v7094_v6, %v604_v7 }
  0x96   : > { %v706_v3 = vmul.f32 %v7159_v58, %v7159_v58  ;;  %v707_v4 = vmul.f32 %v7161_v59, %v7161_v59  ;;  %v769_v15 = vadd.f32 %v703_v9, %v702_v8  ;;  %v1522_v8 = vld [vmem:[%s13165_s4 + $0x270] sm:$0xff] }
  0x97   : > { %v763_v2 = vadd.f32 %v699_v1, %v698_v0  ;;  %v704_v6 = vmul.f32 %v7191_v13, %v7191_v13  ;;  %v705_v26 = vmul.f32 %v7194_v14, %v7194_v14  ;;  %v7273_v1 = vld [vmem:[%s7084_s12 + $0xe0] sm:$0xff]  ;;  %v1618_v9 = vld [vmem:[%s13165_s4 + $0x570] sm:$0xff]  ;;  %1652 = vmatpush.msra.mxu0 %v1522_v8  ;;  %v1577_v8 = vld [vmem:[%s13165_s4 + $0x428] sm:$0xff] }
  0x98   : > { %528 = vadd.xlane.f32.xlu2 %v527_v60  ;;  %v775_v12 = vadd.f32 %v707_v4, %v706_v3  ;;  %v517_v17 = vpop.xlane.xlu0 %516  ;;  %v7281_v3 = vld [vmem:[%s7084_s12 + $0xf0] sm:$0xff]  ;;  %v7284_v4 = vld [vmem:[%s7084_s12 + $0xf8] sm:$0xff]  ;;  %1765 = vmatpush.msra.mxu1 %v1618_v9 }
  0x99   : > { %522 = vadd.xlane.f32.xlu1 %v521_v61  ;;  %764 = vadd.xlane.f32.xlu0 %v763_v2  ;;  %v606_v5 = vmul.f32 %v7120_v30, %v517_v17  ;;  %v772_v44 = vadd.f32 %v705_v26, %v704_v6  ;;  %v520_v45 = vpop.xlane.xlu2 %519  ;;  %v7276_v2 = vld [vmem:[%s7084_s12 + $0xe8] sm:$0xff]  ;;  %v542_v7 = vadd.f32 %v7284_v4, %v7281_v3  ;;  %v1612_v17 = vld [vmem:[%s13165_s4 + $0x540] sm:$0xff]  ;;  %v1510_v26 = vld [vmem:[%s13165_s4 + $0x210] sm:$0xff] }
  0x9a   : > { %v607_v46 = vmul.f32 %v7120_v30, %v520_v45  ;;  %1766 = vmatpush.msra.mxu1 %v1612_v17  ;;  %v1613_v6 = vld [vmem:[%s13165_s4 + $0x548] sm:$0xff]  ;;  %v1492_v45 = vld [vmem:[%s13165_s4 + $0x180] sm:$0xff]  ;;  %v1474_v9 = vld [vmem:[%s13165_s4 + $0xf0] sm:$0xff] }
  0x9b   : > { %v7244_v42 = vsub.f32 %v7105_v18, %v606_v5  ;;  %v7247_v43 = vsub.f32 %v7108_v19, %v606_v5  ;;  %v7258_v19 = vld [vmem:[%s7084_s12 + $0xc8] sm:$0xff]  ;;  %v1468_v17 = vld [vmem:[%s13165_s4 + $0xc0] sm:$0xff] }
  0x9c   : > { %v7261_v50 = vsub.f32 %v7111_v20, %v607_v46  ;;  %v7264_v51 = vsub.f32 %v7114_v21, %v607_v46  ;;  %v533_v52 = vadd.f32 %v7258_v19, %v7255_v48  ;;  %v539_v21 = vadd.f32 %v7276_v2, %v7273_v1  ;;  %v1517_v5 = vld [vmem:[%s13165_s4 + $0x248] sm:$0xff]  ;;  %1767 = vmatpush.msra.mxu1 %v1606_v27  ;;  %v1588_v46 = vld [vmem:[%s13165_s4 + $0x480] sm:$0xff]  ;;  %v1462_v27 = vld [vmem:[%s13165_s4 + $0x90] sm:$0xff] }
  0x9d   : > { %v708_v47 = vmul.f32 %v7244_v42, %v7244_v42  ;;  %v709_v18 = vmul.f32 %v7247_v43, %v7247_v43 }
  0x9e   : > { %v710_v61 = vmul.f32 %v7261_v50, %v7261_v50  ;;  %v711_v0 = vmul.f32 %v7264_v51, %v7264_v51  ;;  %1768 = vmatpush.msra.mxu1 %v1600_v32  ;;  %v1456_v32 = vld [vmem:[%s13165_s4 + $0x60] sm:$0xff] }
  0x9f   : > { %v778_v60 = vadd.f32 %v709_v18, %v708_v47  ;;  %v1493_v47 = vld [vmem:[%s13165_s4 + $0x188] sm:$0xff] }
  0xa0   : > { %776 = vadd.xlane.f32.xlu2 %v775_v12  ;;  %v781_v20 = vadd.f32 %v711_v0, %v710_v61  ;;  %v1523_v12 = vld [vmem:[%s13165_s4 + $0x278] sm:$0xff]  ;;  %v1589_v18 = vld [vmem:[%s13165_s4 + $0x488] sm:$0xff] }
  0xa1   : > { %770 = vadd.xlane.f32.xlu1 %v769_v15  ;;  %525 = vadd.xlane.f32.xlu0 %v524_v16  ;;  %v1619_v15 = vld [vmem:[%s13165_s4 + $0x578] sm:$0xff]  ;;  %v1516_v16 = vld [vmem:[%s13165_s4 + $0x240] sm:$0xff] }
  0xa2   : > { %1878 = vmatpush.msra.mxu2 %v1523_v12  ;;  %1991 = vmatpush.msra.mxu3 %v1619_v15  ;;  %v1487_v61 = vld [vmem:[%s13165_s4 + $0x158] sm:$0xff]  ;;  %v1570_v12 = vld [vmem:[%s13165_s4 + $0x3f0] sm:$0xff] }
  0xa3   : > { %1653 = vmatpush.msra.mxu0 %v1516_v16  ;;  %v1583_v0 = vld [vmem:[%s13165_s4 + $0x458] sm:$0xff] }
  0xa4   : > { %1879 = vmatpush.msra.mxu2 %v1517_v5  ;;  %1992 = vmatpush.msra.mxu3 %v1613_v6  ;;  %v1475_v15 = vld [vmem:[%s13165_s4 + $0xf8] sm:$0xff]  ;;  %v1564_v5 = vld [vmem:[%s13165_s4 + $0x3c0] sm:$0xff]  ;;  %v1469_v6 = vld [vmem:[%s13165_s4 + $0xc8] sm:$0xff] }
  0xa5   : > { %1654 = vmatpush.msra.mxu0 %v1510_v26  ;;  %v1571_v16 = vld [vmem:[%s13165_s4 + $0x3f8] sm:$0xff]  ;;  %v1565_v26 = vld [vmem:[%s13165_s4 + $0x3c8] sm:$0xff] }
  0xa6   : > { %1880 = vmatpush.msra.mxu2 %v1511_v28  ;;  %1993 = vmatpush.msra.mxu3 %v1607_v29  ;;  %v1558_v28 = vld [vmem:[%s13165_s4 + $0x390] sm:$0xff]  ;;  %v1463_v29 = vld [vmem:[%s13165_s4 + $0x98] sm:$0xff] }
  0xa7   : > { %1655 = vmatpush.msra.mxu0 %v1504_v31  ;;  %v1559_v31 = vld [vmem:[%s13165_s4 + $0x398] sm:$0xff] }
  0xa8   : > { %537 = vadd.xlane.f32.xlu2 %v536_v40  ;;  %1881 = vmatpush.msra.mxu2 %v1505_v33  ;;  %v1594_v40 = vld [vmem:[%s13165_s4 + $0x4b0] sm:$0xff]  ;;  %v1552_v33 = vld [vmem:[%s13165_s4 + $0x360] sm:$0xff] }
  0xa9   : > { %531 = vadd.xlane.f32.xlu1 %v530_v41  ;;  %773 = vadd.xlane.f32.xlu0 %v772_v44  ;;  %v1499_v41 = vld [vmem:[%s13165_s4 + $0x1b8] sm:$0xff] }
  0xaa   : > { %1994 = vmatpush.msra.mxu3 %v1601_v34  ;;  %1656 = vmatpush.msra.mxu0 %v1498_v35  ;;  %v1595_v44 = vld [vmem:[%s13165_s4 + $0x4b8] sm:$0xff]  ;;  %v1457_v34 = vld [vmem:[%s13165_s4 + $0x68] sm:$0xff] }
  0xab   : > { %1769 = vmatpush.msra.mxu1 %v1594_v40  ;;  %1882 = vmatpush.msra.mxu2 %v1499_v41  ;;  %v1553_v35 = vld [vmem:[%s13165_s4 + $0x368] sm:$0xff] }
  0xac   : > { %1995 = vmatpush.msra.mxu3 %v1595_v44  ;;  %1657 = vmatpush.msra.mxu0 %v1492_v45  ;;  %v1450_v45 = vld [vmem:[%s13165_s4 + $0x30] sm:$0xff] }
  0xad   : > { %1770 = vmatpush.msra.mxu1 %v1588_v46  ;;  %1883 = vmatpush.msra.mxu2 %v1493_v47  ;;  %v1546_v46 = vld [vmem:[%s13165_s4 + $0x330] sm:$0xff]  ;;  %v1451_v47 = vld [vmem:[%s13165_s4 + $0x38] sm:$0xff] }
  0xae   : > { %1996 = vmatpush.msra.mxu3 %v1589_v18 }
  0xaf   : > { %1884 = vmatpush.msra.mxu2 %v1487_v61  ;;  %v1444_v61 = vld [vmem:[%s13165_s4] sm:$0xff] }
  0xb0   : > { %1997 = vmatpush.msra.mxu3 %v1583_v0  ;;  %v1540_v0 = vld [vmem:[%s13165_s4 + $0x300] sm:$0xff] }
  0xb1   : > { %534 = vadd.xlane.f32.xlu0 %v533_v52  ;;  %779 = vadd.xlane.f32.xlu1 %v778_v60  ;;  %v1486_v52 = vld [vmem:[%s13165_s4 + $0x150] sm:$0xff] }
  0xb2   : > { %v1582_v60 = vld [vmem:[%s13165_s4 + $0x450] sm:$0xff]  ;;  %1658 = vmatpush.msra.mxu0 %v1486_v52  ;;  %1998 = vmatpush.msra.mxu3 %v1577_v8  ;;  %v1547_v52 = vld [vmem:[%s13165_s4 + $0x338] sm:$0xff] }
  0xb3   : > { %1771 = vmatpush.msra.mxu1 %v1582_v60 }
  0xb4   : > { %1999 = vmatpush.msra.mxu3 %v1571_v16 }
  0xb6   : > { %2000 = vmatpush.msra.mxu3 %v1565_v26 }
  0xb8   : > { %2001 = vmatpush.msra.mxu3 %v1559_v31 }
  0xb9   : > { %782 = vadd.xlane.f32.xlu0 %v781_v20  ;;  %540 = vadd.xlane.f32.xlu1 %v539_v21  ;;  %v1480_v20 = vld [vmem:[%s13165_s4 + $0x120] sm:$0xff] }
  0xba   : > { %v1576_v21 = vld [vmem:[%s13165_s4 + $0x420] sm:$0xff]  ;;  %1659 = vmatpush.msra.mxu0 %v1480_v20  ;;  %2002 = vmatpush.msra.mxu3 %v1553_v35  ;;  %v1445_v20 = vld [vmem:[%s13165_s4 + $0x8] sm:$0xff] }
  0xbb   : > { %1772 = vmatpush.msra.mxu1 %v1576_v21 }
  0xbc   : > { %1660 = vmatpush.msra.mxu0 %v1474_v9  ;;  %2003 = vmatpush.msra.mxu3 %v1547_v52 }
  0xbd   : > { %1773 = vmatpush.msra.mxu1 %v1570_v12 }
  0xbe   : > { %1661 = vmatpush.msra.mxu0 %v1468_v17 }
  0xbf   : > { %1774 = vmatpush.msra.mxu1 %v1564_v5 }
  0xc0   : > { %1662 = vmatpush.msra.mxu0 %v1462_v27 }
  0xc1   : > { %543 = vadd.xlane.f32.xlu0 %v542_v7  ;;  %v1481_v7 = vld [vmem:[%s13165_s4 + $0x128] sm:$0xff]  ;;  %1775 = vmatpush.msra.mxu1 %v1558_v28 }
  0xc2   : > { %1885 = vmatpush.msra.mxu2 %v1481_v7  ;;  %1663 = vmatpush.msra.mxu0 %v1456_v32  ;;  %v1541_v7 = vld [vmem:[%s13165_s4 + $0x308] sm:$0xff] }
  0xc3   : > { %1776 = vmatpush.msra.mxu1 %v1552_v33  ;;  %2004 = vmatpush.msra.mxu3 %v1541_v7  ;;  %v7502_v7 = vld [vmem:[%s7084_s12 + $0x100] sm:$0xff] }
  0xc4   : > { %1886 = vmatpush.msra.mxu2 %v1475_v15  ;;  %1664 = vmatpush.msra.mxu0 %v1450_v45 }
  0xc5   : > { %1777 = vmatpush.msra.mxu1 %v1546_v46  ;;  %v1304_v46 = vld [vmem:[%s13163_s2] sm:$0x3] }
  0xc6   : > { %1887 = vmatpush.msra.mxu2 %v1469_v6  ;;  %1665 = vmatpush.msra.mxu0 %v1444_v61  ;;  %v1374_v61 = vld [vmem:[%s13164_s3] sm:$0x3] }
  0xc7   : > { %1778 = vmatpush.msra.mxu1 %v1540_v0 }
  0xc8   : > { %1888 = vmatpush.msra.mxu2 %v1463_v29 }
  0xca   : > { %1889 = vmatpush.msra.mxu2 %v1457_v34 }
  0xcc   : > { %1890 = vmatpush.msra.mxu2 %v1451_v47 }
  0xce   : > { %1891 = vmatpush.msra.mxu2 %v1445_v20 }
 0x103   : > { %v768_v40 = vpop.xlane.xlu2 %767 }
 0x104   : > { %v858_v41 = vmul.f32 %v768_v40, %v7120_v30  ;;  %v762_v44 = vpop.xlane.xlu1 %761 }
 0x105   : > { %v856_v18 = vmul.f32 %v762_v44, %v7120_v30 }
 0x106   : > { %v7446_v60 = vadd.f32 1e-05, %v858_v41 }
 0x107   : > { %v888_v21 = vadd.f32 1e-05, %v856_v18 }
 0x108   : > { %6409 = vrsqrt.f32 %v7446_v60  ;;  %vm946_vm1 = vweird.f32 %v7446_v60 }
 0x109   : > { %6411 = vrsqrt.f32 %v888_v21  ;;  %vm926_vm5 = vweird.f32 %v888_v21 }
 0x10b   : > { %v529_v8 = vpop.xlane.xlu2 %528 }
 0x10c   : > { %v610_v9 = vmul.f32 %v7120_v30, %v529_v8  ;;  %v523_v12 = vpop.xlane.xlu1 %522  ;;  %v765_v15 = vpop.xlane.xlu0 %764 }
 0x10d   : > { %v608_v16 = vmul.f32 %v7120_v30, %v523_v12  ;;  %v857_v17 = vmul.f32 %v765_v15, %v7120_v30  ;;  %v7507_v15 = vld [vmem:[%s7084_s12 + $0x108] sm:$0xff] }
 0x10e   : > { %v7464_v5 = vpop.eup %6409  ;;  %v7467_v6 = vsub.f32 %v7141_v49, %v610_v9  ;;  %v7470_v26 = vsub.f32 %v7147_v53, %v610_v9 }
 0x10f   : > { %v6412_v27 = vpop.eup %6411  ;;  %v941_v28 = vmul.f32 %v7464_v5, %v7446_v60  ;;  %v7475_v29 = vsub.f32 %v7150_v54, %v608_v16  ;;  %v7478_v31 = vsub.f32 %v7153_v55, %v608_v16  ;;  %v7480_v33 = vadd.f32 1e-05, %v857_v17  ;;  %v7510_v16 = vld [vmem:[%s7084_s12 + $0x120] sm:$0xff]  ;;  %v7513_v17 = vld [vmem:[%s7084_s12 + $0x128] sm:$0xff] }
 0x110   : > { %13354 = vst [vmem:[#allocation2_spill] sm:$0xff] %v7470_v26  ;;  %v921_v32 = vmul.f32 %v6412_v27, %v888_v21  ;;  %v716_v49 = vmul.f32 %v7467_v6, %v7467_v6  ;;  %v717_v54 = vmul.f32 %v7470_v26, %v7470_v26  ;;  %vm947_vm2 = vweird.f32 %v7464_v5  ;;  %v7555_v26 = vld [vmem:[%s7084_s12 + $0x118] sm:$0xff] }
 0x111   : > { %v942_v34 = vmul.f32 %v7464_v5, %v941_v28  ;;  %v712_v53 = vmul.f32 %v7475_v29, %v7475_v29  ;;  %v713_v35 = vmul.f32 %v7478_v31, %v7478_v31  ;;  %6413 = vrsqrt.f32 %v7480_v33  ;;  %vm7528_vm4 = vmor %vm946_vm1, %vm947_vm2 }
 0x112   : > { %v922_v40 = vmul.f32 %v6412_v27, %v921_v32  ;;  %v790_v45 = vadd.f32 %v717_v54, %v716_v49  ;;  %vm927_vm3 = vweird.f32 %v6412_v27  ;;  %v7515_v28 = vperm.slane %v1304_v46, 0 }
 0x113   : > { %v943_v55 = vmul.f32 0.5, %v942_v34  ;;  %v777_v41 = vpop.xlane.xlu2 %776  ;;  %v784_v44 = vadd.f32 %v713_v35, %v712_v53  ;;  %v7517_v32 = vperm.slane %v1304_v46, 1  ;;  %v7521_v53 = vperm.slane %v1374_v61, 0  ;;  %vm928_vm6 = vmor %vm926_vm5, %vm927_vm3 }
 0x114   : > { %v923_v47 = vmul.f32 0.5, %v922_v40  ;;  %v771_v18 = vpop.xlane.xlu1 %770  ;;  %v526_v52 = vpop.xlane.xlu0 %525  ;;  %791 = vadd.xlane.f32.xlu0 %v790_v45  ;;  %v861_v9 = vmul.f32 %v777_v41, %v7120_v30  ;;  %v545_v41 = vadd.f32 %v7507_v15, %v7502_v7  ;;  %v551_v60 = vadd.f32 %v7513_v17, %v7510_v16 }
 0x115   : > { %v944_v0 = vsub.f32 1.5, %v943_v55  ;;  %v859_v20 = vmul.f32 %v771_v18, %v7120_v30  ;;  %785 = vadd.xlane.f32.xlu2 %v784_v44  ;;  %v609_v12 = vmul.f32 %v7120_v30, %v526_v52  ;;  %vm936_vm8 = vweird.f32 %v7480_v33 }
 0x116   : > { %v924_v8 = vsub.f32 1.5, %v923_v47  ;;  %v7539_v45 = vadd.f32 1e-05, %v861_v9  ;;  %v7547_v47 = vperm.slane %v1374_v61, 1 }
 0x117   : > { %v7519_v49 = vadd.f32 1e-05, %v859_v20  ;;  %v6414_v34 = vpop.eup %6413  ;;  %v945_v35 = vmul.f32 %v7464_v5, %v944_v0  ;;  %v7542_v46 = vsub.f32 %v7185_v10, %v609_v12  ;;  %v7545_v21 = vsub.f32 %v7188_v11, %v609_v12 }
 0x118   : > { %v925_v40 = vmul.f32 %v6412_v27, %v924_v8  ;;  %v931_v55 = vmul.f32 %v6414_v34, %v7480_v33  ;;  %v7552_v8 = vld [vmem:[%s7084_s12 + $0x110] sm:$0xff]  ;;  %vm937_vm7 = vweird.f32 %v6414_v34  ;;  %vm976_vm15 = vweird.f32 %v7539_v45 }
 0x119   : > { %6415 = vrsqrt.f32 %v7519_v49  ;;  %v949_v10 = vsel %vm7528_vm4, %v7464_v5, %v945_v35  ;;  %v715_v5 = vmul.f32 %v7545_v21, %v7545_v21  ;;  %v7571_v35 = vadd.f32 %v7555_v26, %v7552_v8  ;;  %vm938_vm9 = vmor %vm936_vm8, %vm937_vm7 }
 0x11a   : > { %v929_v44 = vsel %vm928_vm6, %v6412_v27, %v925_v40  ;;  %v932_v0 = vmul.f32 %v6414_v34, %v931_v55  ;;  %6417 = vrsqrt.f32 %v7539_v45  ;;  %v714_v40 = vmul.f32 %v7542_v46, %v7542_v46 }
 0x11b   : > { %v1240_v18 = vmul.f32 %v929_v44, %v7128_v38  ;;  %v1241_v52 = vmul.f32 %v929_v44, %v7130_v39  ;;  %v538_v20 = vpop.xlane.xlu2 %537  ;;  %v1244_v44 = vmul.f32 %v949_v10, %v7124_v36  ;;  %vm956_vm10 = vweird.f32 %v7519_v49 }
 0x11c   : > { %v613_v27 = vmul.f32 %v7120_v30, %v538_v20  ;;  %v532_v11 = vpop.xlane.xlu1 %531  ;;  %v774_v9 = vpop.xlane.xlu0 %773  ;;  %v933_v12 = vmul.f32 0.5, %v932_v0  ;;  %552 = vadd.xlane.f32.xlu0 %v551_v60 }
 0x11d   : > { %v1310_v61 = vmul.f32 %v7515_v28, %v1240_v18  ;;  %v1311_v38 = vmul.f32 %v7517_v32, %v1241_v52  ;;  %v611_v39 = vmul.f32 %v7120_v30, %v532_v11  ;;  %546 = vadd.xlane.f32.xlu2 %v545_v41 }
 0x11e   : > { %v934_v60 = vsub.f32 1.5, %v933_v12  ;;  %v7589_v20 = vsub.f32 %v7199_v22, %v613_v27  ;;  %v7598_v33 = vsub.f32 %v7202_v23, %v613_v27  ;;  %v1245_v23 = vmul.f32 %v949_v10, %v7126_v37 }
 0x11f   : > { %v7573_v54 = vpop.eup %6415  ;;  %v7576_v55 = vadd.f32 %v7521_v53, %v1310_v61  ;;  %v7579_v41 = vadd.f32 %v7547_v47, %v1311_v38  ;;  %v7586_v52 = vsub.f32 %v7205_v24, %v611_v39  ;;  %v7592_v11 = vsub.f32 %v7208_v25, %v611_v39 }
 0x120   : > { %v951_v18 = vmul.f32 %v7573_v54, %v7519_v49  ;;  %v935_v0 = vmul.f32 %v6414_v34, %v934_v60  ;;  %13359 = vst [vmem:[#allocation5_spill] sm:$0xff] %v7589_v20  ;;  %v860_v61 = vmul.f32 %v774_v9, %v7120_v30  ;;  %v787_v38 = vadd.f32 %v715_v5, %v714_v40  ;;  %v7609_v12 = vpop.eup %6417 }
 0x121   : > { %13357 = vst [vmem:[#allocation3_spill] sm:$0xff] %v7576_v55  ;;  %1666 = vmatmul.f32.vlgmr.msra.gmra.mxu0 %v7576_v55  ;;  %1779 = vmatmul.f32.vlgmr.msra.gmra.mxu1 %v7579_v41  ;;  %v718_v25 = vmul.f32 %v7586_v52, %v7586_v52  ;;  %v719_v9 = vmul.f32 %v7592_v11, %v7592_v11  ;;  %vm957_vm11 = vweird.f32 %v7573_v54  ;;  %vm977_vm0 = vweird.f32 %v7609_v12 }
 0x122   : > { %13358 = vst [vmem:[#allocation4_spill] sm:$0xff] %v7579_v41  ;;  %v952_v36 = vmul.f32 %v7573_v54, %v951_v18  ;;  %1892 = vmatmul.f32.vlgmr.msra.gmra.mxu2 %v7576_v55  ;;  %v939_v22 = vsel %vm938_vm9, %v6414_v34, %v935_v0  ;;  %v7602_v24 = vadd.f32 1e-05, %v860_v61  ;;  %2005 = vmatmul.f32.vlgmr.msra.gmra.mxu3 %v7579_v41  ;;  %vm958_vm12 = vmor %vm956_vm10, %vm957_vm11 }
 0x123   : > { %13360 = vst [vmem:[#allocation6_spill] sm:$0xff] %v7598_v33  ;;  %v1242_v27 = vmul.f32 %v939_v22, %v7155_v56  ;;  %v1243_v39 = vmul.f32 %v939_v22, %v7157_v57  ;;  %788 = vadd.xlane.f32.xlu1 %v787_v38  ;;  %v722_v18 = vmul.f32 %v7589_v20, %v7589_v20  ;;  %vm978_vm2 = vmor %vm976_vm15, %vm977_vm0 }
 0x124   : > { %v953_v40 = vmul.f32 0.5, %v952_v36  ;;  %v780_v34 = vpop.xlane.xlu1 %779  ;;  %v535_v5 = vpop.xlane.xlu0 %534  ;;  %6419 = vrsqrt.f32 %v7602_v24  ;;  %v971_v10 = vmul.f32 %v7609_v12, %v7539_v45  ;;  %v793_v36 = vadd.f32 %v719_v9, %v718_v25 }
 0x125   : > { %v862_v60 = vmul.f32 %v780_v34, %v7120_v30  ;;  %v1312_v0 = vmul.f32 %v7515_v28, %v1242_v27  ;;  %v1313_v37 = vmul.f32 %v7517_v32, %v1243_v39  ;;  %v612_v57 = vmul.f32 %v7120_v30, %v535_v5  ;;  %v7646_v5 = vld [vmem:[%s7084_s12 + $0x130] sm:$0xff] }
 0x126   : > { %v954_v56 = vsub.f32 1.5, %v953_v40  ;;  %v723_v38 = vmul.f32 %v7598_v33, %v7598_v33  ;;  %794 = vadd.xlane.f32.xlu2 %v793_v36  ;;  %v1314_v25 = vmul.f32 %v7515_v28, %v1244_v44  ;;  %v1315_v44 = vmul.f32 %v7517_v32, %v1245_v23 }
 0x127   : > { %v7624_v61 = vadd.f32 1e-05, %v862_v60  ;;  %v7629_v22 = vadd.f32 %v7521_v53, %v1312_v0  ;;  %v7632_v27 = vadd.f32 %v7547_v47, %v1313_v37  ;;  %v7638_v40 = vsub.f32 %v7255_v48, %v612_v57  ;;  %v7649_v60 = vld [vmem:[%s7084_s12 + $0x138] sm:$0xff]  ;;  %v7657_v48 = vld [vmem:[%s7084_s12 + $0x150] sm:$0xff] }
 0x128   : > { %v955_v39 = vmul.f32 %v7573_v54, %v954_v56  ;;  %v7642_v9 = vsub.f32 %v7258_v19, %v612_v57  ;;  %v799_v34 = vadd.f32 %v723_v38, %v722_v18  ;;  %v972_v37 = vmul.f32 %v7609_v12, %v971_v10  ;;  %v7660_v19 = vld [vmem:[%s7084_s12 + $0x158] sm:$0xff] }
 0x129   : > { %13361 = vst [vmem:[#allocation7_spill] sm:$0xff] %v7629_v22  ;;  %6421 = vrsqrt.f32 %v7624_v61  ;;  %1669 = vmatmul.f32.gmra.mxu0 %v7629_v22  ;;  %1782 = vmatmul.f32.gmra.mxu1 %v7632_v27  ;;  %v554_v38 = vadd.f32 %v7649_v60, %v7646_v5  ;;  %v720_v23 = vmul.f32 %v7638_v40, %v7638_v40  ;;  %vm966_vm13 = vweird.f32 %v7602_v24 }
 0x12a   : > { %13362 = vst [vmem:[#allocation8_spill] sm:$0xff] %v7632_v27  ;;  %v6420_v0 = vpop.eup %6419  ;;  %1895 = vmatmul.f32.gmra.mxu2 %v7629_v22  ;;  %v959_v18 = vsel %vm958_vm12, %v7573_v54, %v955_v39  ;;  %800 = vadd.xlane.f32.xlu0 %v799_v34  ;;  %v7674_v54 = vadd.f32 %v7521_v53, %v1314_v25  ;;  %vm986_vm3 = vweird.f32 %v7624_v61 }
 0x12b   : > { %v961_v56 = vmul.f32 %v6420_v0, %v7602_v24  ;;  %549 = vadd.xlane.f32.xlu1 %v7571_v35  ;;  %2008 = vmatmul.f32.gmra.mxu3 %v7632_v27  ;;  %v560_v35 = vadd.f32 %v7660_v19, %v7657_v48  ;;  %v721_v34 = vmul.f32 %v7642_v9, %v7642_v9  ;;  %vm967_vm14 = vweird.f32 %v6420_v0 }
 0x12c   : > { %v541_v57 = vpop.xlane.xlu1 %540  ;;  %v783_v49 = vpop.xlane.xlu0 %782  ;;  %13363 = vst [vmem:[#allocation9_spill] sm:$0xff] %v7674_v54  ;;  %v7690_v25 = vadd.f32 %v7547_v47, %v1315_v44  ;;  %vm968_vm1 = vmor %vm966_vm13, %vm967_vm14 }
 0x12d   : > { %v614_v10 = vmul.f32 %v7120_v30, %v541_v57  ;;  %v863_v36 = vmul.f32 %v783_v49, %v7120_v30  ;;  %v962_v39 = vmul.f32 %v6420_v0, %v961_v56  ;;  %v973_v57 = vmul.f32 0.5, %v972_v37 }
 0x12e   : > { %v1246_v49 = vmul.f32 %v959_v18, %v7167_v62  ;;  %13364 = vst [vmem:[#allocation10_spill] sm:$0xff] %v7690_v25  ;;  %v1247_v56 = vmul.f32 %v959_v18, %v7169_v63  ;;  %555 = vadd.xlane.f32.xlu2 %v554_v38  ;;  %v796_v37 = vadd.f32 %v721_v34, %v720_v23  ;;  %v7719_v34 = vld [vmem:[%s7084_s12 + $0x148] sm:$0xff] }
 0x12f   : > { %v7680_v27 = vpop.eup %6421  ;;  %v7684_v22 = vsub.f32 %v7273_v1, %v614_v10  ;;  %v7687_v41 = vsub.f32 %v7276_v2, %v614_v10  ;;  %v963_v55 = vmul.f32 0.5, %v962_v39  ;;  %v7693_v33 = vadd.f32 1e-05, %v863_v36  ;;  %v7716_v39 = vld [vmem:[%s7084_s12 + $0x140] sm:$0xff] }
 0x130   : > { %v981_v20 = vmul.f32 %v7680_v27, %v7624_v61  ;;  %v974_v63 = vsub.f32 1.5, %v973_v57  ;;  %v1316_v44 = vmul.f32 %v7515_v28, %v1246_v49  ;;  %v1317_v10 = vmul.f32 %v7517_v32, %v1247_v56 }
 0x131   : > { %v724_v62 = vmul.f32 %v7684_v22, %v7684_v22  ;;  %v725_v1 = vmul.f32 %v7687_v41, %v7687_v41  ;;  %v964_v2 = vsub.f32 1.5, %v963_v55  ;;  %6423 = vrsqrt.f32 %v7693_v33  ;;  %1672 = vmatmul.f32.gmra.mxu0 %v7674_v54  ;;  %1785 = vmatmul.f32.gmra.mxu1 %v7690_v25 }
 0x132   : > { %1898 = vmatmul.f32.gmra.mxu2 %v7674_v54  ;;  %561 = vadd.xlane.f32.xlu0 %v560_v35  ;;  %v982_v36 = vmul.f32 %v7680_v27, %v981_v20  ;;  %v975_v57 = vmul.f32 %v7609_v12, %v974_v63  ;;  %v7723_v49 = vadd.f32 %v7521_v53, %v1316_v44  ;;  %vm987_vm4 = vweird.f32 %v7680_v27 }
 0x133   : > { %v965_v55 = vmul.f32 %v6420_v0, %v964_v2  ;;  %797 = vadd.xlane.f32.xlu1 %v796_v37  ;;  %2011 = vmatmul.f32.gmra.mxu3 %v7690_v25  ;;  %v802_v23 = vadd.f32 %v725_v1, %v724_v62  ;;  %v557_v37 = vadd.f32 %v7719_v34, %v7716_v39  ;;  %vm988_vm5 = vmor %vm986_vm3, %vm987_vm4  ;;  %vm996_vm6 = vweird.f32 %v7693_v33 }
 0x134   : > { %v544_v18 = vpop.xlane.xlu0 %543  ;;  %13365 = vst [vmem:[#allocation11_spill] sm:$0xff] %v7723_v49  ;;  %v7741_v62 = vadd.f32 %v7547_v47, %v1317_v10  ;;  %v983_v2 = vmul.f32 0.5, %v982_v36 }
 0x135   : > { %v615_v38 = vmul.f32 %v7120_v30, %v544_v18  ;;  %v969_v35 = vsel %vm968_vm1, %v6420_v0, %v965_v55 }
 0x136   : > { %v1248_v20 = vmul.f32 %v969_v35, %v7191_v13  ;;  %13366 = vst [vmem:[#allocation12_spill] sm:$0xff] %v7741_v62  ;;  %v1249_v1 = vmul.f32 %v969_v35, %v7194_v14  ;;  %803 = vadd.xlane.f32.xlu2 %v802_v23  ;;  %v7748_v13 = vld [vmem:[%s7084_s12 + $0x160] sm:$0xff]  ;;  %v984_v18 = vsub.f32 1.5, %v983_v2  ;;  %v7785_v2 = vld [vmem:[%s7084_s12 + $0x170] sm:$0xff] }
 0x137   : > { %v7725_v24 = vpop.eup %6423  ;;  %v7733_v56 = vsub.f32 %v7281_v3, %v615_v38  ;;  %v7736_v0 = vsub.f32 %v7284_v4, %v615_v38  ;;  %v7751_v3 = vld [vmem:[%s7084_s12 + $0x168] sm:$0xff]  ;;  %v979_v4 = vsel %vm978_vm2, %v7609_v12, %v975_v57 }
 0x138   : > { %v991_v45 = vmul.f32 %v7725_v24, %v7693_v33  ;;  %v1318_v63 = vmul.f32 %v7515_v28, %v1248_v20  ;;  %v1319_v55 = vmul.f32 %v7517_v32, %v1249_v1  ;;  %v563_v12 = vadd.f32 %v7751_v3, %v7748_v13 }
 0x139   : > { %1675 = vmatmul.f32.gmra.mxu0 %v7723_v49  ;;  %1788 = vmatmul.f32.gmra.mxu1 %v7741_v62  ;;  %v726_v14 = vmul.f32 %v7733_v56, %v7733_v56  ;;  %v727_v44 = vmul.f32 %v7736_v0, %v7736_v0  ;;  %v1250_v36 = vmul.f32 %v979_v4, %v7159_v58  ;;  %vm997_vm7 = vweird.f32 %v7725_v24 }
 0x13a   : > { %1901 = vmatmul.f32.gmra.mxu2 %v7723_v49  ;;  %v992_v10 = vmul.f32 %v7725_v24, %v991_v45  ;;  %v7770_v38 = vadd.f32 %v7521_v53, %v1318_v63  ;;  %v1251_v35 = vmul.f32 %v979_v4, %v7161_v59  ;;  %v7774_v57 = vadd.f32 %v7547_v47, %v1319_v55  ;;  %v7788_v45 = vld [vmem:[%s7084_s12 + $0x178] sm:$0xff]  ;;  %vm998_vm8 = vmor %vm996_vm6, %vm997_vm7 }
 0x13b   : > { %558 = vadd.xlane.f32.xlu1 %v557_v37  ;;  %2014 = vmatmul.f32.gmra.mxu3 %v7741_v62  ;;  %v805_v23 = vadd.f32 %v727_v44, %v726_v14  ;;  %v985_v20 = vmul.f32 %v7680_v27, %v984_v18  ;;  %v1320_v58 = vmul.f32 %v7515_v28, %v1250_v36 }
 0x13c   : > { %13367 = vst [vmem:[#allocation13_spill] sm:$0xff] %v7770_v38  ;;  %v993_v37 = vmul.f32 0.5, %v992_v10  ;;  %v1321_v59 = vmul.f32 %v7517_v32, %v1251_v35  ;;  %v566_v14 = vadd.f32 %v7788_v45, %v7785_v2 }
 0x13d   : > { %13368 = vst [vmem:[#allocation14_spill] sm:$0xff] %v7774_v57  ;;  %v989_v61 = vsel %vm988_vm5, %v7680_v27, %v985_v20  ;;  %v7793_v4 = vadd.f32 %v7521_v53, %v1320_v58 }
 0x13e   : > { %564 = vadd.xlane.f32.xlu2 %v563_v12  ;;  %v994_v1 = vsub.f32 1.5, %v993_v37  ;;  %v1252_v63 = vmul.f32 %v989_v61, %v7244_v42  ;;  %v7799_v27 = vadd.f32 %v7547_v47, %v1321_v59  ;;  %v1253_v44 = vmul.f32 %v989_v61, %v7247_v43 }
 0x13f   : > { %13369 = vst [vmem:[#allocation15_spill] sm:$0xff] %v7793_v4 }
 0x140   : > { %13370 = vst [vmem:[#allocation16_spill] sm:$0xff] %v7799_v27  ;;  %v995_v55 = vmul.f32 %v7725_v24, %v994_v1  ;;  %v1322_v33 = vmul.f32 %v7515_v28, %v1252_v63  ;;  %v1323_v42 = vmul.f32 %v7517_v32, %v1253_v44 }
 0x141   : > { %1678 = vmatmul.f32.gmra.mxu0 %v7770_v38  ;;  %1791 = vmatmul.f32.gmra.mxu1 %v7774_v57 }
 0x142   : > { %1904 = vmatmul.f32.gmra.mxu2 %v7770_v38  ;;  %v999_v18 = vsel %vm998_vm8, %v7725_v24, %v995_v55  ;;  %v7811_v43 = vadd.f32 %v7521_v53, %v1322_v33  ;;  %v7815_v12 = vadd.f32 %v7547_v47, %v1323_v42 }
 0x143   : > { %806 = vadd.xlane.f32.xlu1 %v805_v23  ;;  %2017 = vmatmul.f32.gmra.mxu3 %v7774_v57  ;;  %v1254_v10 = vmul.f32 %v999_v18, %v7261_v50  ;;  %v1255_v36 = vmul.f32 %v999_v18, %v7264_v51 }
 0x144   : > { %13371 = vst [vmem:[#allocation17_spill] sm:$0xff] %v7811_v43 }
 0x145   : > { %13372 = vst [vmem:[#allocation18_spill] sm:$0xff] %v7815_v12  ;;  %v1324_v23 = vmul.f32 %v7515_v28, %v1254_v10  ;;  %v1325_v24 = vmul.f32 %v7517_v32, %v1255_v36 }
 0x147   : > { %v7825_v35 = vadd.f32 %v7521_v53, %v1324_v23  ;;  %v7828_v50 = vadd.f32 %v7547_v47, %v1325_v24 }
 0x149   : > { %1681 = vmatmul.f32.gmra.mxu0 %v7793_v4  ;;  %1794 = vmatmul.f32.gmra.mxu1 %v7799_v27  ;;  %13373 = vst [vmem:[#allocation19_spill] sm:$0xff] %v7825_v35 }
 0x14a   : > { %1907 = vmatmul.f32.gmra.mxu2 %v7793_v4  ;;  %13374 = vst [vmem:[#allocation20_spill] sm:$0xff] %v7828_v50 }
 0x14b   : > { %567 = vadd.xlane.f32.xlu1 %v566_v14  ;;  %2020 = vmatmul.f32.gmra.mxu3 %v7799_v27 }
 0x151   : > { %1684 = vmatmul.f32.gmra.mxu0 %v7811_v43  ;;  %1797 = vmatmul.f32.gmra.mxu1 %v7815_v12 }
 0x152   : > { %1910 = vmatmul.f32.gmra.mxu2 %v7811_v43 }
 0x153   : > { %2023 = vmatmul.f32.gmra.mxu3 %v7815_v12 }
 0x159   : > { %1687 = vmatmul.f32.gmra.mxu0 %v7825_v35  ;;  %1800 = vmatmul.f32.gmra.mxu1 %v7828_v50 }
 0x15a   : > { %1913 = vmatmul.f32.gmra.mxu2 %v7825_v35  ;;  %v7875_v35 = vld [vmem:[%s7084_s12 + $0x1a0] sm:$0xff] }
 0x15b   : > { %2026 = vmatmul.f32.gmra.mxu3 %v7828_v50  ;;  %v7872_v50 = vld [vmem:[%s7084_s12 + $0x188] sm:$0xff] }
 0x187   : > { %v792_v20 = vpop.xlane.xlu0 %791 }
 0x188   : > { %v786_v51 = vpop.xlane.xlu2 %785  ;;  %v866_v58 = vmul.f32 %v792_v20, %v7120_v30 }
 0x189   : > { %v864_v37 = vmul.f32 %v786_v51, %v7120_v30 }
 0x18a   : > { %v7836_v61 = vadd.f32 1e-05, %v866_v58 }
 0x18b   : > { %v896_v59 = vadd.f32 1e-05, %v864_v37 }
 0x18c   : > { %vm1026_vm12 = vweird.f32 %v7836_v61 }
 0x18d   : > { %6425 = vrsqrt.f32 %v896_v59  ;;  %vm1006_vm10 = vweird.f32 %v896_v59 }
 0x18e   : > { %6427 = vrsqrt.f32 %v7836_v61 }
 0x18f   : > { %v553_v63 = vpop.xlane.xlu0 %552 }
 0x190   : > { %v547_v1 = vpop.xlane.xlu2 %546  ;;  %v618_v44 = vmul.f32 %v7120_v30, %v553_v63 }
 0x191   : > { %v616_v14 = vmul.f32 %v7120_v30, %v547_v1 }
 0x192   : > { %v7848_v18 = vsub.f32 %v7510_v16, %v618_v44  ;;  %v7851_v10 = vsub.f32 %v7513_v17, %v618_v44 }
 0x193   : > { %v6426_v55 = vpop.eup %6425  ;;  %v7842_v33 = vsub.f32 %v7502_v7, %v616_v14  ;;  %v7845_v42 = vsub.f32 %v7507_v15, %v616_v14 }
 0x194   : > { %v1001_v36 = vmul.f32 %v6426_v55, %v896_v59  ;;  %v7857_v51 = vpop.eup %6427  ;;  %v732_v15 = vmul.f32 %v7848_v18, %v7848_v18  ;;  %v733_v16 = vmul.f32 %v7851_v10, %v7851_v10  ;;  %vm1007_vm9 = vweird.f32 %v6426_v55 }
 0x195   : > { %v728_v23 = vmul.f32 %v7842_v33, %v7842_v33  ;;  %v729_v24 = vmul.f32 %v7845_v42, %v7845_v42  ;;  %v1021_v63 = vmul.f32 %v7857_v51, %v7836_v61  ;;  %vm1008_vm11 = vmor %vm1006_vm10, %vm1007_vm9  ;;  %vm1027_vm13 = vweird.f32 %v7857_v51 }
 0x196   : > { %v1002_v7 = vmul.f32 %v6426_v55, %v1001_v36  ;;  %v789_v17 = vpop.xlane.xlu1 %788  ;;  %v814_v1 = vadd.f32 %v733_v16, %v732_v15  ;;  %v7869_v36 = vld [vmem:[%s7084_s12 + $0x180] sm:$0xff]  ;;  %vm1028_vm15 = vmor %vm1026_vm12, %vm1027_vm13 }
 0x197   : > { %v808_v20 = vadd.f32 %v729_v24, %v728_v23  ;;  %v865_v58 = vmul.f32 %v789_v17, %v7120_v30  ;;  %v7878_v23 = vld [vmem:[%s7084_s12 + $0x1a8] sm:$0xff]  ;;  %v1022_v15 = vmul.f32 %v7857_v51, %v1021_v63  ;;  %v569_v17 = vadd.f32 %v7872_v50, %v7869_v36 }
 0x198   : > { %v1003_v37 = vmul.f32 0.5, %v1002_v7  ;;  %815 = vadd.xlane.f32.xlu1 %v814_v1 }
 0x199   : > { %809 = vadd.xlane.f32.xlu0 %v808_v20  ;;  %v7866_v44 = vadd.f32 1e-05, %v865_v58  ;;  %v795_v7 = vpop.xlane.xlu2 %794 }
 0x19a   : > { %v1004_v14 = vsub.f32 1.5, %v1003_v37  ;;  %v867_v16 = vmul.f32 %v795_v7, %v7120_v30  ;;  %v575_v37 = vadd.f32 %v7878_v23, %v7875_v35 }
 0x19b   : > { %6429 = vrsqrt.f32 %v7866_v44  ;;  %vm1016_vm0 = vweird.f32 %v7866_v44 }
 0x19c   : > { %v1005_v24 = vmul.f32 %v6426_v55, %v1004_v14  ;;  %v7889_v59 = vadd.f32 1e-05, %v867_v16 }
 0x19d   : > { %v801_v12 = vpop.xlane.xlu0 %800 }
 0x19e   : > { %v1009_v20 = vsel %vm1008_vm11, %v6426_v55, %v1005_v24  ;;  %v550_v14 = vpop.xlane.xlu1 %549  ;;  %v869_v63 = vmul.f32 %v801_v12, %v7120_v30  ;;  %v1023_v55 = vmul.f32 0.5, %v1022_v15  ;;  %6431 = vrsqrt.f32 %v7889_v59 }
 0x19f   : > { %v1256_v58 = vmul.f32 %v1009_v20, %v7475_v29  ;;  %v1257_v1 = vmul.f32 %v1009_v20, %v7478_v31  ;;  %v617_v43 = vmul.f32 %v7120_v30, %v550_v14  ;;  %vm1036_vm2 = vweird.f32 %v7889_v59 }
 0x1a0   : > { %576 = vadd.xlane.f32.xlu1 %v575_v37  ;;  %v7909_v15 = vadd.f32 1e-05, %v869_v63 }
 0x1a1   : > { %v1326_v7 = vmul.f32 %v7515_v28, %v1256_v58  ;;  %v1327_v27 = vmul.f32 %v7517_v32, %v1257_v1  ;;  %570 = vadd.xlane.f32.xlu0 %v569_v17  ;;  %v6430_v24 = vpop.eup %6429  ;;  %v7897_v29 = vsub.f32 %v7552_v8, %v617_v43  ;;  %v7900_v31 = vsub.f32 %v7555_v26, %v617_v43  ;;  %v556_v58 = vpop.xlane.xlu2 %555 }
 0x1a2   : > { %v1011_v20 = vmul.f32 %v6430_v24, %v7866_v44  ;;  %v1024_v17 = vsub.f32 1.5, %v1023_v55  ;;  %v619_v43 = vmul.f32 %v7120_v30, %v556_v58  ;;  %6433 = vrsqrt.f32 %v7909_v15 }
 0x1a3   : > { %v7903_v16 = vadd.f32 %v7521_v53, %v1326_v7  ;;  %v7906_v12 = vadd.f32 %v7547_v47, %v1327_v27  ;;  %v730_v8 = vmul.f32 %v7897_v29, %v7897_v29  ;;  %v731_v26 = vmul.f32 %v7900_v31, %v7900_v31 }
 0x1a4   : > { %v1012_v1 = vmul.f32 %v6430_v24, %v1011_v20  ;;  %v7919_v27 = vpop.eup %6431  ;;  %v1025_v20 = vmul.f32 %v7857_v51, %v1024_v17  ;;  %vm1017_vm14 = vweird.f32 %v6430_v24  ;;  %v7943_v17 = vsub.f32 %v7649_v60, %v619_v43 }
 0x1a5   : > { %13375 = vst [vmem:[#allocation21_spill] sm:$0xff] %v7903_v16  ;;  %1690 = vmatmul.f32.gmra.mxu0 %v7903_v16  ;;  %1803 = vmatmul.f32.gmra.mxu1 %v7906_v12  ;;  %v811_v63 = vadd.f32 %v731_v26, %v730_v8  ;;  %v1031_v7 = vmul.f32 %v7919_v27, %v7889_v59  ;;  %v7936_v26 = vld [vmem:[%s7084_s12 + $0x190] sm:$0xff]  ;;  %vm1018_vm1 = vmor %vm1016_vm0, %vm1017_vm14  ;;  %vm1037_vm3 = vweird.f32 %v7919_v27  ;;  %vm1056_vm8 = vweird.f32 %v7909_v15 }
 0x1a6   : > { %13376 = vst [vmem:[#allocation22_spill] sm:$0xff] %v7906_v12  ;;  %1916 = vmatmul.f32.gmra.mxu2 %v7903_v16  ;;  %v1013_v37 = vmul.f32 0.5, %v1012_v1  ;;  %v798_v14 = vpop.xlane.xlu1 %797  ;;  %2029 = vmatmul.f32.gmra.mxu3 %v7906_v12  ;;  %v7931_v1 = vsub.f32 %v7646_v5, %v619_v43  ;;  %v7939_v12 = vld [vmem:[%s7084_s12 + $0x198] sm:$0xff]  ;;  %v1029_v5 = vsel %vm1028_vm15, %v7857_v51, %v1025_v20  ;;  %vm1038_vm4 = vmor %vm1036_vm2, %vm1037_vm3 }
 0x1a7   : > { %v868_v55 = vmul.f32 %v798_v14, %v7120_v30  ;;  %812 = vadd.xlane.f32.xlu2 %v811_v63  ;;  %v1032_v61 = vmul.f32 %v7919_v27, %v1031_v7  ;;  %v735_v51 = vmul.f32 %v7943_v17, %v7943_v17 }
 0x1a8   : > { %v1014_v58 = vsub.f32 1.5, %v1013_v37  ;;  %v562_v37 = vpop.xlane.xlu0 %561  ;;  %v7949_v4 = vpop.eup %6433  ;;  %v734_v43 = vmul.f32 %v7931_v1, %v7931_v1 }
 0x1a9   : > { %v7933_v8 = vadd.f32 1e-05, %v868_v55  ;;  %v1033_v14 = vmul.f32 0.5, %v1032_v61  ;;  %v804_v63 = vpop.xlane.xlu2 %803  ;;  %v572_v55 = vadd.f32 %v7939_v12, %v7936_v26  ;;  %v621_v60 = vmul.f32 %v7120_v30, %v562_v37 }
 0x1aa   : > { %v1015_v16 = vmul.f32 %v6430_v24, %v1014_v58  ;;  %v870_v57 = vmul.f32 %v804_v63, %v7120_v30  ;;  %vm1057_vm9 = vweird.f32 %v7949_v4 }
 0x1ab   : > { %6435 = vrsqrt.f32 %v7933_v8  ;;  %v1034_v61 = vsub.f32 1.5, %v1033_v14  ;;  %vm1046_vm5 = vweird.f32 %v7933_v8  ;;  %vm1058_vm10 = vmor %vm1056_vm8, %vm1057_vm9 }
 0x1ac   : > { %v1019_v7 = vsel %vm1018_vm1, %v6430_v24, %v1015_v16  ;;  %v7964_v20 = vadd.f32 1e-05, %v870_v57 }
 0x1ad   : > { %v1258_v58 = vmul.f32 %v1019_v7, %v7542_v46  ;;  %v1259_v44 = vmul.f32 %v1019_v7, %v7545_v21  ;;  %v1260_v46 = vmul.f32 %v1029_v5, %v7467_v6  ;;  %v1051_v21 = vmul.f32 %v7949_v4, %v7909_v15 }
 0x1ae   : > { %v559_v38 = vpop.xlane.xlu1 %558  ;;  %v7975_v7 = vsub.f32 %v7657_v48, %v621_v60  ;;  %v1035_v62 = vmul.f32 %v7919_v27, %v1034_v61  ;;  %6437 = vrsqrt.f32 %v7964_v20  ;;  %vm1066_vm11 = vweird.f32 %v7964_v20 }
 0x1af   : > { %v1328_v24 = vmul.f32 %v7515_v28, %v1258_v58  ;;  %v1329_v16 = vmul.f32 %v7517_v32, %v1259_v44  ;;  %573 = vadd.xlane.f32.xlu2 %v572_v55  ;;  %v817_v58 = vadd.f32 %v735_v51, %v734_v43  ;;  %v13379_v44 = vld [vmem:[#allocation2_spill] sm:$0xff]  ;;  %v7984_v55 = vsub.f32 %v7660_v19, %v621_v60 }
 0x1b0   : > { %v1261_v6 = vmul.f32 %v1029_v5, %v13379_v44  ;;  %v1330_v48 = vmul.f32 %v7515_v28, %v1260_v46  ;;  %v1052_v5 = vmul.f32 %v7949_v4, %v1051_v21  ;;  %v620_v43 = vmul.f32 %v7120_v30, %v559_v38 }
 0x1b1   : > { %v7966_v37 = vpop.eup %6435  ;;  %v7969_v14 = vadd.f32 %v7521_v53, %v1328_v24  ;;  %v7972_v63 = vadd.f32 %v7547_v47, %v1329_v16  ;;  %818 = vadd.xlane.f32.xlu0 %v817_v58  ;;  %v738_v19 = vmul.f32 %v7975_v7, %v7975_v7  ;;  %v1039_v61 = vsel %vm1038_vm4, %v7919_v27, %v1035_v62  ;;  %v565_v46 = vpop.xlane.xlu2 %564 }
 0x1b2   : > { %v1041_v57 = vmul.f32 %v7966_v37, %v7933_v8  ;;  %v1331_v60 = vmul.f32 %v7517_v32, %v1261_v6  ;;  %v739_v16 = vmul.f32 %v7984_v55, %v7984_v55  ;;  %v8002_v21 = vadd.f32 %v7521_v53, %v1330_v48 }
 0x1b3   : > { %13377 = vst [vmem:[#allocation23_spill] sm:$0xff] %v7969_v14  ;;  %1693 = vmatmul.f32.gmra.mxu0 %v7969_v14  ;;  %1806 = vmatmul.f32.gmra.mxu1 %v7972_v63  ;;  %v1053_v38 = vmul.f32 0.5, %v1052_v5  ;;  %v1262_v44 = vmul.f32 %v1039_v61, %v7586_v52  ;;  %v8008_v62 = vsub.f32 %v7716_v39, %v620_v43  ;;  %v8021_v52 = vld [vmem:[%s7084_s12 + $0x1b8] sm:$0xff]  ;;  %vm1047_vm6 = vweird.f32 %v7966_v37 }
 0x1b4   : > { %13378 = vst [vmem:[#allocation24_spill] sm:$0xff] %v7972_v63  ;;  %1919 = vmatmul.f32.gmra.mxu2 %v7969_v14  ;;  %v1042_v59 = vmul.f32 %v7966_v37, %v1041_v57  ;;  %2032 = vmatmul.f32.gmra.mxu3 %v7972_v63  ;;  %v8004_v58 = vpop.eup %6437  ;;  %v823_v27 = vadd.f32 %v739_v16, %v738_v19  ;;  %v8018_v63 = vld [vmem:[%s7084_s12 + $0x1b0] sm:$0xff]  ;;  %vm1048_vm7 = vmor %vm1046_vm5, %vm1047_vm6 }
 0x1b5   : > { %13380 = vst [vmem:[#allocation2_spill] sm:$0xff] %v8002_v21  ;;  %v8011_v57 = vadd.f32 %v7547_v47, %v1331_v60  ;;  %v1061_v48 = vmul.f32 %v8004_v58, %v7964_v20  ;;  %v622_v5 = vmul.f32 %v7120_v30, %v565_v46  ;;  %v8027_v39 = vsub.f32 %v7719_v34, %v620_v43  ;;  %v8030_v19 = vld [vmem:[%s7084_s12 + $0x1d0] sm:$0xff]  ;;  %v8033_v60 = vld [vmem:[%s7084_s12 + $0x1d8] sm:$0xff] }
 0x1b6   : > { %v807_v51 = vpop.xlane.xlu1 %806  ;;  %v1043_v24 = vmul.f32 0.5, %v1042_v59  ;;  %v1263_v59 = vmul.f32 %v1039_v61, %v7592_v11  ;;  %824 = vadd.xlane.f32.xlu1 %v823_v27  ;;  %v1054_v11 = vsub.f32 1.5, %v1053_v38  ;;  %v1332_v61 = vmul.f32 %v7515_v28, %v1262_v44 }
 0x1b7   : > { %13381 = vst [vmem:[#allocation25_spill] sm:$0xff] %v8011_v57  ;;  %v871_v16 = vmul.f32 %v807_v51, %v7120_v30  ;;  %v578_v46 = vadd.f32 %v8021_v52, %v8018_v63  ;;  %v736_v34 = vmul.f32 %v8008_v62, %v8008_v62  ;;  %v1062_v38 = vmul.f32 %v8004_v58, %v1061_v48 }
 0x1b8   : > { %v1044_v6 = vsub.f32 1.5, %v1043_v24  ;;  %v1333_v43 = vmul.f32 %v7517_v32, %v1263_v59  ;;  %v737_v27 = vmul.f32 %v8027_v39, %v8027_v39  ;;  %v584_v59 = vadd.f32 %v8033_v60, %v8030_v19 }
 0x1b9   : > { %v8053_v44 = vadd.f32 1e-05, %v871_v16  ;;  %579 = vadd.xlane.f32.xlu0 %v578_v46  ;;  %v1055_v48 = vmul.f32 %v7949_v4, %v1054_v11  ;;  %vm1067_vm12 = vweird.f32 %v8004_v58 }
 0x1ba   : > { %v1045_v24 = vmul.f32 %v7966_v37, %v1044_v6  ;;  %v8049_v6 = vsub.f32 %v7748_v13, %v622_v5  ;;  %v8062_v13 = vsub.f32 %v7751_v3, %v622_v5  ;;  %v8070_v16 = vadd.f32 %v7547_v47, %v1333_v43  ;;  %v8083_v43 = vld [vmem:[%s7084_s12 + $0x1c8] sm:$0xff]  ;;  %vm1068_vm13 = vmor %vm1066_vm11, %vm1067_vm12 }
 0x1bb   : > { %1696 = vmatmul.f32.gmra.mxu0 %v8002_v21  ;;  %1809 = vmatmul.f32.gmra.mxu1 %v8011_v57  ;;  %6439 = vrsqrt.f32 %v8053_v44  ;;  %v1063_v3 = vmul.f32 0.5, %v1062_v38  ;;  %vm1076_vm14 = vweird.f32 %v8053_v44 }
 0x1bc   : > { %1922 = vmatmul.f32.gmra.mxu2 %v8002_v21  ;;  %2035 = vmatmul.f32.gmra.mxu3 %v8011_v57  ;;  %v1049_v51 = vsel %vm1048_vm7, %v7966_v37, %v1045_v24  ;;  %v8065_v37 = vadd.f32 %v7521_v53, %v1332_v61  ;;  %v820_v24 = vadd.f32 %v737_v27, %v736_v34  ;;  %v8080_v34 = vld [vmem:[%s7084_s12 + $0x1c0] sm:$0xff]  ;;  %v4243_v21 = vld [vmem:[%s8523_s25 + $0xa8] sm:$0xff] }
 0x1bd   : > { %13383 = vst [vmem:[#allocation27_spill] sm:$0xff] %v8070_v16  ;;  %v1264_v15 = vmul.f32 %v1049_v51, %v7638_v40  ;;  %v1265_v46 = vmul.f32 %v1049_v51, %v7642_v9  ;;  %v740_v61 = vmul.f32 %v8049_v6, %v8049_v6  ;;  %v741_v11 = vmul.f32 %v8062_v13, %v8062_v13 }
 0x1be   : > { %v568_v8 = vpop.xlane.xlu1 %567  ;;  %13382 = vst [vmem:[#allocation26_spill] sm:$0xff] %v8065_v37  ;;  %821 = vadd.xlane.f32.xlu2 %v820_v24  ;;  %585 = vadd.xlane.f32.xlu1 %v584_v59  ;;  %v1059_v40 = vsel %vm1058_vm10, %v7949_v4, %v1055_v48  ;;  %v1064_v51 = vsub.f32 1.5, %v1063_v3  ;;  %v581_v4 = vadd.f32 %v8083_v43, %v8080_v34  ;;  %v13385_v3 = vld [vmem:[#allocation6_spill] sm:$0xff] }
 0x1bf   : > { %v623_v5 = vmul.f32 %v7120_v30, %v568_v8  ;;  %v1334_v9 = vmul.f32 %v7515_v28, %v1264_v15  ;;  %v1335_v38 = vmul.f32 %v7517_v32, %v1265_v46  ;;  %v826_v24 = vadd.f32 %v741_v11, %v740_v61  ;;  %v13384_v15 = vld [vmem:[#allocation5_spill] sm:$0xff]  ;;  %v8116_v61 = vld [vmem:[%s7084_s12 + $0x1e0] sm:$0xff]  ;;  %v8119_v11 = vld [vmem:[%s7084_s12 + $0x1e8] sm:$0xff] }
 0x1c0   : > { %v1266_v46 = vmul.f32 %v1059_v40, %v13384_v15  ;;  %v1065_v15 = vmul.f32 %v8004_v58, %v1064_v51 }
 0x1c1   : > { %v8092_v27 = vpop.eup %6439  ;;  %v8095_v59 = vsub.f32 %v7785_v2, %v623_v5  ;;  %v8098_v8 = vsub.f32 %v7788_v45, %v623_v5  ;;  %827 = vadd.xlane.f32.xlu0 %v826_v24  ;;  %v1267_v2 = vmul.f32 %v1059_v40, %v13385_v3  ;;  %v8112_v45 = vadd.f32 %v7547_v47, %v1335_v38 }
 0x1c2   : > { %v1071_v48 = vmul.f32 %v8092_v27, %v8053_v44  ;;  %v1336_v38 = vmul.f32 %v7515_v28, %v1266_v46  ;;  %v587_v24 = vadd.f32 %v8119_v11, %v8116_v61  ;;  %v1536_v46 = vld [vmem:[%s13165_s4 + $0x2e0] sm:$0xff]  ;;  %v1069_v3 = vsel %vm1068_vm13, %v8004_v58, %v1065_v15  ;;  %v1530_v58 = vld [vmem:[%s13165_s4 + $0x2b0] sm:$0xff]  ;;  %v8174_v44 = vld [vmem:[%s7084_s12 + $0x1f8] sm:$0xff] }
 0x1c3   : > { %1699 = vmatmul.f32.gmra.mxu0 %v8065_v37  ;;  %1812 = vmatmul.f32.gmra.mxu1 %v8070_v16  ;;  %13387 = vst [vmem:[#allocation6_spill] sm:$0xff] %v8112_v45  ;;  %v742_v20 = vmul.f32 %v8095_v59, %v8095_v59  ;;  %v743_v40 = vmul.f32 %v8098_v8, %v8098_v8  ;;  %v1626_v15 = vld [vmem:[%s13165_s4 + $0x5b0] sm:$0xff]  ;;  %vm1077_vm15 = vweird.f32 %v8092_v27 }
 0x1c4   : > { %1925 = vmatmul.f32.gmra.mxu2 %v8065_v37  ;;  %2038 = vmatmul.f32.gmra.mxu3 %v8070_v16  ;;  %v8109_v16 = vadd.f32 %v7521_v53, %v1334_v9  ;;  %v1072_v5 = vmul.f32 %v8092_v27, %v1071_v48  ;;  %v1337_v51 = vmul.f32 %v7517_v32, %v1267_v2  ;;  %v1633_v48 = vld [vmem:[%s13165_s4 + $0x5e8] sm:$0xff]  ;;  %v1632_v2 = vld [vmem:[%s13165_s4 + $0x5e0] sm:$0xff]  ;;  %v1627_v37 = vld [vmem:[%s13165_s4 + $0x5b8] sm:$0xff] }
 0x1c5   : > { %2441 = vmatpush.msrb.mxu3 %v1633_v48  ;;  %2102 = vmatpush.msrb.mxu0 %v1536_v46  ;;  %vm1078_vm0 = vmor %vm1076_vm14, %vm1077_vm15 }
 0x1c6   : > { %13386 = vst [vmem:[#allocation5_spill] sm:$0xff] %v8109_v16  ;;  %582 = vadd.xlane.f32.xlu2 %v581_v4  ;;  %v1073_v9 = vmul.f32 0.5, %v1072_v5  ;;  %v1537_v4 = vld [vmem:[%s13165_s4 + $0x2e8] sm:$0xff]  ;;  %2215 = vmatpush.msrb.mxu1 %v1632_v2 }
 0x1c7   : > { %2328 = vmatpush.msrb.mxu2 %v1537_v4  ;;  %v1269_v4 = vmul.f32 %v1069_v3, %v7687_v41  ;;  %2442 = vmatpush.msrb.mxu3 %v1627_v37  ;;  %v1621_v2 = vld [vmem:[%s13165_s4 + $0x588] sm:$0xff] }
 0x1c8   : > { %v1074_v5 = vsub.f32 1.5, %v1073_v9  ;;  %v1268_v9 = vmul.f32 %v1069_v3, %v7684_v22  ;;  %2103 = vmatpush.msrb.mxu0 %v1530_v58  ;;  %2216 = vmatpush.msrb.mxu1 %v1626_v15  ;;  %v1524_v58 = vld [vmem:[%s13165_s4 + $0x280] sm:$0xff] }
 0x1c9   : > { %588 = vadd.xlane.f32.xlu0 %v587_v24  ;;  %v1339_v41 = vmul.f32 %v7517_v32, %v1269_v4  ;;  %2443 = vmatpush.msrb.mxu3 %v1621_v2  ;;  %v1620_v2 = vld [vmem:[%s13165_s4 + $0x580] sm:$0xff] }
 0x1ca   : > { %v1075_v48 = vmul.f32 %v8092_v27, %v1074_v5  ;;  %v1338_v22 = vmul.f32 %v7515_v28, %v1268_v9  ;;  %2104 = vmatpush.msrb.mxu0 %v1524_v58  ;;  %2217 = vmatpush.msrb.mxu1 %v1620_v2 }
 0x1cb   : > { %1702 = vmatmul.f32.gmra.mxu0 %v8109_v16  ;;  %1815 = vmatmul.f32.gmra.mxu1 %v8112_v45  ;;  %v8189_v24 = vadd.f32 %v7547_v47, %v1339_v41 }
 0x1cc   : > { %1928 = vmatmul.f32.gmra.mxu2 %v8109_v16  ;;  %2041 = vmatmul.f32.gmra.mxu3 %v8112_v45  ;;  %v829_v16 = vadd.f32 %v743_v40, %v742_v20  ;;  %v1531_v45 = vld [vmem:[%s13165_s4 + $0x2b8] sm:$0xff]  ;;  %v8160_v20 = vadd.f32 %v7521_v53, %v1336_v38  ;;  %v8165_v40 = vadd.f32 %v7547_v47, %v1337_v51  ;;  %v8171_v38 = vld [vmem:[%s7084_s12 + $0x1f0] sm:$0xff]  ;;  %s11934_s12 = scalar_lea.vmem %s13168_s7, %s8499_s22 }
 0x1cd   : > { %2329 = vmatpush.msrb.mxu2 %v1531_v45  ;;  %v1079_v37 = vsel %vm1078_vm0, %v8092_v27, %v1075_v48  ;;  %v8186_v45 = vadd.f32 %v7521_v53, %v1338_v22  ;;  %13391 = vst [vmem:[#allocation31_spill] sm:$0xff] %v8189_v24 }
 0x1ce   : > { %13388 = vst [vmem:[#allocation28_spill] sm:$0xff] %v8160_v20  ;;  %830 = vadd.xlane.f32.xlu2 %v829_v16  ;;  %v590_v16 = vadd.f32 %v8174_v44, %v8171_v38  ;;  %v1270_v51 = vmul.f32 %v1079_v37, %v7733_v56  ;;  %v1271_v46 = vmul.f32 %v1079_v37, %v7736_v0  ;;  %v1525_v0 = vld [vmem:[%s13165_s4 + $0x288] sm:$0xff] }
 0x1cf   : > { %13389 = vst [vmem:[#allocation29_spill] sm:$0xff] %v8165_v40  ;;  %2330 = vmatpush.msrb.mxu2 %v1525_v0 }
 0x1d0   : > { %13390 = vst [vmem:[#allocation30_spill] sm:$0xff] %v8186_v45  ;;  %v1340_v27 = vmul.f32 %v7515_v28, %v1270_v51  ;;  %v1341_v3 = vmul.f32 %v7517_v32, %v1271_v46 }
 0x1d2   : > { %v8200_v5 = vadd.f32 %v7521_v53, %v1340_v27  ;;  %v8203_v56 = vadd.f32 %v7547_v47, %v1341_v3 }
 0x1d3   : > { %1705 = vmatmul.f32.gmra.mxu0 %v8160_v20  ;;  %1818 = vmatmul.f32.gmra.mxu1 %v8165_v40 }
 0x1d4   : > { %1931 = vmatmul.f32.gmra.mxu2 %v8160_v20  ;;  %2044 = vmatmul.f32.gmra.mxu3 %v8165_v40  ;;  %13392 = vst [vmem:[#allocation32_spill] sm:$0xff] %v8200_v5 }
 0x1d5   : > { %13393 = vst [vmem:[#allocation33_spill] sm:$0xff] %v8203_v56 }
 0x1d6   : > { %591 = vadd.xlane.f32.xlu2 %v590_v16 }
 0x1db   : > { %1708 = vmatmul.f32.gmra.mxu0 %v8186_v45  ;;  %1821 = vmatmul.f32.gmra.mxu1 %v8189_v24 }
 0x1dc   : > { %1934 = vmatmul.f32.gmra.mxu2 %v8186_v45  ;;  %2047 = vmatmul.f32.gmra.mxu3 %v8189_v24 }
 0x1e3   : > { %1711 = vmatmul.f32.gmra.mxu0 %v8200_v5  ;;  %1824 = vmatmul.f32.gmra.mxu1 %v8203_v56 }
 0x1e4   : > { %1937 = vmatmul.f32.gmra.mxu2 %v8200_v5  ;;  %2050 = vmatmul.f32.gmra.mxu3 %v8203_v56 }
 0x20b   : > { %v816_v9 = vpop.xlane.xlu1 %815 }
 0x20c   : > { %v810_v15 = vpop.xlane.xlu0 %809  ;;  %v874_v48 = vmul.f32 %v816_v9, %v7120_v30 }
 0x20d   : > { %v872_v4 = vmul.f32 %v810_v15, %v7120_v30 }
 0x20e   : > { %v8220_v41 = vadd.f32 1e-05, %v874_v48 }
 0x20f   : > { %v904_v22 = vadd.f32 1e-05, %v872_v4 }
 0x210   : > { %vm1106_vm4 = vweird.f32 %v8220_v41 }
 0x211   : > { %6441 = vrsqrt.f32 %v904_v22  ;;  %vm1086_vm2 = vweird.f32 %v904_v22 }
 0x212   : > { %6443 = vrsqrt.f32 %v8220_v41 }
 0x213   : > { %v577_v16 = vpop.xlane.xlu1 %576 }
 0x214   : > { %v571_v37 = vpop.xlane.xlu0 %570  ;;  %v626_v46 = vmul.f32 %v7120_v30, %v577_v16 }
 0x215   : > { %v624_v51 = vmul.f32 %v7120_v30, %v571_v37 }
 0x216   : > { %v8235_v15 = vsub.f32 %v7875_v35, %v626_v46  ;;  %v8238_v9 = vsub.f32 %v7878_v23, %v626_v46 }
 0x217   : > { %v6442_v27 = vpop.eup %6441  ;;  %v8226_v3 = vsub.f32 %v7869_v36, %v624_v51  ;;  %v8229_v0 = vsub.f32 %v7872_v50, %v624_v51 }
 0x218   : > { %v1081_v58 = vmul.f32 %v6442_v27, %v904_v22  ;;  %v8244_v50 = vpop.eup %6443  ;;  %v748_v23 = vmul.f32 %v8235_v15, %v8235_v15  ;;  %v749_v46 = vmul.f32 %v8238_v9, %v8238_v9  ;;  %vm1087_vm1 = vweird.f32 %v6442_v27 }
 0x219   : > { %v744_v4 = vmul.f32 %v8226_v3, %v8226_v3  ;;  %v745_v36 = vmul.f32 %v8229_v0, %v8229_v0  ;;  %v1101_v2 = vmul.f32 %v8244_v50, %v8220_v41  ;;  %vm1088_vm3 = vmor %vm1086_vm2, %vm1087_vm1  ;;  %vm1107_vm5 = vweird.f32 %v8244_v50 }
 0x21a   : > { %v1082_v48 = vmul.f32 %v6442_v27, %v1081_v58  ;;  %v813_v51 = vpop.xlane.xlu2 %812  ;;  %vm1108_vm6 = vmor %vm1106_vm4, %vm1107_vm5 }
 0x21b   : > { %v832_v37 = vadd.f32 %v745_v36, %v744_v4  ;;  %v873_v35 = vmul.f32 %v813_v51, %v7120_v30  ;;  %v1102_v58 = vmul.f32 %v8244_v50, %v1101_v2  ;;  %v838_v4 = vadd.f32 %v749_v46, %v748_v23 }
 0x21c   : > { %v1083_v16 = vmul.f32 0.5, %v1082_v48 }
 0x21d   : > { %833 = vadd.xlane.f32.xlu1 %v832_v37  ;;  %v905_v5 = vadd.f32 1e-05, %v873_v35  ;;  %v1103_v45 = vmul.f32 0.5, %v1102_v58 }
 0x21e   : > { %v1084_v56 = vsub.f32 1.5, %v1083_v16 }
 0x21f   : > { %6445 = vrsqrt.f32 %v905_v5  ;;  %v1104_v23 = vsub.f32 1.5, %v1103_v45  ;;  %v1615_v45 = vld [vmem:[%s13165_s4 + $0x558] sm:$0xff]  ;;  %vm1096_vm8 = vweird.f32 %v905_v5 }
 0x220   : > { %v1085_v24 = vmul.f32 %v6442_v27, %v1084_v56  ;;  %2444 = vmatpush.msrb.mxu3 %v1615_v45 }
 0x222   : > { %v1089_v36 = vsel %vm1088_vm3, %v6442_v27, %v1085_v24  ;;  %v574_v51 = vpop.xlane.xlu2 %573 }
 0x223   : > { %v1272_v48 = vmul.f32 %v1089_v36, %v7842_v33  ;;  %v1273_v37 = vmul.f32 %v1089_v36, %v7845_v42  ;;  %v625_v35 = vmul.f32 %v7120_v30, %v574_v51  ;;  %v1105_v51 = vmul.f32 %v8244_v50, %v1104_v23  ;;  %v1614_v23 = vld [vmem:[%s13165_s4 + $0x550] sm:$0xff] }
 0x224   : > { %v819_v24 = vpop.xlane.xlu0 %818  ;;  %2218 = vmatpush.msrb.mxu1 %v1614_v23  ;;  %v1513_v23 = vld [vmem:[%s13165_s4 + $0x228] sm:$0xff] }
 0x225   : > { %v1342_v40 = vmul.f32 %v7515_v28, %v1272_v48  ;;  %v1343_v16 = vmul.f32 %v7517_v32, %v1273_v37  ;;  %839 = vadd.xlane.f32.xlu1 %v838_v4  ;;  %v6446_v56 = vpop.eup %6445  ;;  %v8266_v33 = vsub.f32 %v7936_v26, %v625_v35  ;;  %v8269_v42 = vsub.f32 %v7939_v12, %v625_v35  ;;  %v1519_v12 = vld [vmem:[%s13165_s4 + $0x258] sm:$0xff]  ;;  %v1518_v4 = vld [vmem:[%s13165_s4 + $0x250] sm:$0xff] }
 0x226   : > { %v1091_v27 = vmul.f32 %v6446_v56, %v905_v5  ;;  %v875_v46 = vmul.f32 %v819_v24, %v7120_v30  ;;  %2331 = vmatpush.msrb.mxu2 %v1519_v12  ;;  %2105 = vmatpush.msrb.mxu0 %v1518_v4  ;;  %vm1097_vm7 = vweird.f32 %v6446_v56 }
 0x227   : > { %v8260_v22 = vadd.f32 %v7521_v53, %v1342_v40  ;;  %v8263_v2 = vadd.f32 %v7547_v47, %v1343_v16  ;;  %v746_v58 = vmul.f32 %v8266_v33, %v8266_v33  ;;  %v747_v40 = vmul.f32 %v8269_v42, %v8269_v42  ;;  %vm1098_vm9 = vmor %vm1096_vm8, %vm1097_vm7 }
 0x228   : > { %v1092_v26 = vmul.f32 %v6446_v56, %v1091_v27  ;;  %v8291_v36 = vadd.f32 1e-05, %v875_v46  ;;  %v1109_v27 = vsel %vm1108_vm6, %v8244_v50, %v1105_v51  ;;  %2332 = vmatpush.msrb.mxu2 %v1513_v23 }
 0x229   : > { %13394 = vst [vmem:[#allocation34_spill] sm:$0xff] %v8260_v22  ;;  %1714 = vmatmul.f32.gmra.mxu0 %v8260_v22  ;;  %1827 = vmatmul.f32.gmra.mxu1 %v8263_v2  ;;  %v835_v48 = vadd.f32 %v747_v40, %v746_v58  ;;  %v825_v35 = vpop.xlane.xlu1 %824  ;;  %v1276_v5 = vmul.f32 %v1109_v27, %v7848_v18 }
 0x22a   : > { %13395 = vst [vmem:[#allocation35_spill] sm:$0xff] %v8263_v2  ;;  %1940 = vmatmul.f32.gmra.mxu2 %v8260_v22  ;;  %2053 = vmatmul.f32.gmra.mxu3 %v8263_v2  ;;  %v1093_v37 = vmul.f32 0.5, %v1092_v26  ;;  %6447 = vrsqrt.f32 %v8291_v36  ;;  %v877_v41 = vmul.f32 %v825_v35, %v7120_v30  ;;  %vm1116_vm10 = vweird.f32 %v8291_v36  ;;  %v4235_v22 = vld [vmem:[%s8523_s25 + $0x68] sm:$0xff] }
 0x22b   : > { %836 = vadd.xlane.f32.xlu0 %v835_v48 }
 0x22c   : > { %v1094_v16 = vsub.f32 1.5, %v1093_v37  ;;  %v8297_v58 = vadd.f32 1e-05, %v877_v41  ;;  %v580_v45 = vpop.xlane.xlu0 %579  ;;  %v1277_v37 = vmul.f32 %v1109_v27, %v7851_v10  ;;  %v1346_v41 = vmul.f32 %v7515_v28, %v1276_v5 }
 0x22d   : > { %v627_v48 = vmul.f32 %v7120_v30, %v580_v45 }
 0x22e   : > { %v1095_v24 = vmul.f32 %v6446_v56, %v1094_v16  ;;  %6449 = vrsqrt.f32 %v8297_v58  ;;  %vm1136_vm13 = vweird.f32 %v8297_v58 }
 0x22f   : > { %v8318_v35 = vsub.f32 %v8018_v63, %v627_v48 }
 0x230   : > { %v1099_v46 = vsel %vm1098_vm9, %v6446_v56, %v1095_v24  ;;  %v6448_v40 = vpop.eup %6447  ;;  %v8321_v24 = vsub.f32 %v8021_v52, %v627_v48  ;;  %v1347_v48 = vmul.f32 %v7517_v32, %v1277_v37 }
 0x231   : > { %v1274_v26 = vmul.f32 %v1099_v46, %v7897_v29  ;;  %v1275_v12 = vmul.f32 %v1099_v46, %v7900_v31  ;;  %v1111_v50 = vmul.f32 %v6448_v40, %v8291_v36  ;;  %v822_v18 = vpop.xlane.xlu2 %821  ;;  %v586_v16 = vpop.xlane.xlu1 %585  ;;  %vm1117_vm11 = vweird.f32 %v6448_v40 }
 0x232   : > { %v876_v10 = vmul.f32 %v822_v18, %v7120_v30  ;;  %v629_v27 = vmul.f32 %v7120_v30, %v586_v16  ;;  %v750_v63 = vmul.f32 %v8318_v35, %v8318_v35  ;;  %v751_v52 = vmul.f32 %v8321_v24, %v8321_v24  ;;  %vm1118_vm12 = vmor %vm1116_vm10, %vm1117_vm11 }
 0x233   : > { %v1344_v56 = vmul.f32 %v7515_v28, %v1274_v26  ;;  %v1345_v4 = vmul.f32 %v7517_v32, %v1275_v12  ;;  %v1112_v51 = vmul.f32 %v6448_v40, %v1111_v50  ;;  %v1609_v26 = vld [vmem:[%s13165_s4 + $0x528] sm:$0xff]  ;;  %v1512_v12 = vld [vmem:[%s13165_s4 + $0x220] sm:$0xff]  ;;  %v8370_v23 = vadd.f32 %v7547_v47, %v1347_v48 }
 0x234   : > { %2445 = vmatpush.msrb.mxu3 %v1609_v26  ;;  %v8340_v45 = vpop.eup %6449  ;;  %v8342_v50 = vadd.f32 1e-05, %v876_v10  ;;  %v841_v18 = vadd.f32 %v751_v52, %v750_v63  ;;  %2106 = vmatpush.msrb.mxu0 %v1512_v12  ;;  %v7012_v36 = vmov 0  }
 0x235   : > { %v8312_v29 = vadd.f32 %v7521_v53, %v1344_v56  ;;  %v8315_v31 = vadd.f32 %v7547_v47, %v1345_v4  ;;  %v1113_v46 = vmul.f32 0.5, %v1112_v51  ;;  %v8345_v56 = vsub.f32 %v8030_v19, %v629_v27  ;;  %13399 = vst [vmem:[#allocation39_spill] sm:$0xff] %v8370_v23  ;;  %6404 = vset.pattern.permute.xlu1 %v7012_v36 }
 0x236   : > { %v8348_v4 = vsub.f32 %v8033_v60, %v629_v27  ;;  %v1131_v51 = vmul.f32 %v8340_v45, %v8297_v58  ;;  %6451 = vrsqrt.f32 %v8342_v50  ;;  %v828_v60 = vpop.xlane.xlu0 %827  ;;  %842 = vadd.xlane.f32.xlu2 %v841_v18  ;;  %6406 = vset.pattern.permute.xlu0 %v7012_v36  ;;  %vm1137_vm14 = vweird.f32 %v8340_v45  ;;  %v1500_v58 = vld [vmem:[%s13165_s4 + $0x1c0] sm:$0xff] }
 0x237   : > { %13396 = vst [vmem:[#allocation36_spill] sm:$0xff] %v8312_v29  ;;  %v1114_v5 = vsub.f32 1.5, %v1113_v46  ;;  %1717 = vmatmul.f32.gmra.mxu0 %v8312_v29  ;;  %1830 = vmatmul.f32.gmra.mxu1 %v8315_v31  ;;  %v754_v19 = vmul.f32 %v8345_v56, %v8345_v56  ;;  %v8366_v46 = vadd.f32 %v7521_v53, %v1346_v41  ;;  %vm1126_vm15 = vweird.f32 %v8342_v50  ;;  %vm8453_vm1 = vmor %vm1136_vm13, %vm1137_vm14 }
 0x238   : > { %13397 = vst [vmem:[#allocation37_spill] sm:$0xff] %v8315_v31  ;;  %1943 = vmatmul.f32.gmra.mxu2 %v8312_v29  ;;  %2056 = vmatmul.f32.gmra.mxu3 %v8315_v31  ;;  %v755_v37 = vmul.f32 %v8348_v4, %v8348_v4  ;;  %v878_v27 = vmul.f32 %v828_v60, %v7120_v30  ;;  %v4240_v29 = vld [vmem:[%s8523_s25 + $0x90] sm:$0xff] }
 0x239   : > { %v1115_v16 = vmul.f32 %v6448_v40, %v1114_v5  ;;  %13398 = vst [vmem:[#allocation38_spill] sm:$0xff] %v8366_v46  ;;  %v1132_v26 = vmul.f32 %v8340_v45, %v1131_v51  ;;  %v583_v63 = vpop.xlane.xlu2 %582  ;;  %6405 = vset.pattern.permute.xlu2 %v7012_v36 }
 0x23a   : > { %v847_v52 = vadd.f32 %v755_v37, %v754_v19  ;;  %v628_v41 = vmul.f32 %v7120_v30, %v583_v63  ;;  %v8376_v18 = vadd.f32 1e-05, %v878_v27  ;;  %v1506_v37 = vld [vmem:[%s13165_s4 + $0x1f0] sm:$0xff]  ;;  %v8410_v27 = vpop.f32.mrf.mxu0 }
 0x23b   : > { %v1119_v10 = vsel %vm1118_vm12, %v6448_v40, %v1115_v16  ;;  %v1133_v16 = vmul.f32 0.5, %v1132_v26  ;;  %2107 = vmatpush.msrb.mxu0 %v1506_v37  ;;  %v1597_v37 = vld [vmem:[%s13165_s4 + $0x4c8] sm:$0xff] }
 0x23c   : > { %v1278_v12 = vmul.f32 %v1119_v10, %v7931_v1  ;;  %v1279_v5 = vmul.f32 %v1119_v10, %v7943_v17  ;;  %848 = vadd.xlane.f32.xlu1 %v847_v52  ;;  %v8378_v40 = vpop.eup %6451  ;;  %v8381_v48 = vsub.f32 %v8080_v34, %v628_v41  ;;  %v8384_v51 = vsub.f32 %v8083_v43, %v628_v41  ;;  %v1608_v1 = vld [vmem:[%s13165_s4 + $0x520] sm:$0xff]  ;;  %v1507_v17 = vld [vmem:[%s13165_s4 + $0x1f8] sm:$0xff]  ;;  %v1602_v10 = vld [vmem:[%s13165_s4 + $0x4f0] sm:$0xff] }
 0x23d   : > { %6453 = vrsqrt.f32 %v8376_v18  ;;  %v1121_v34 = vmul.f32 %v8378_v40, %v8342_v50  ;;  %2219 = vmatpush.msrb.mxu1 %v1608_v1  ;;  %v1603_v43 = vld [vmem:[%s13165_s4 + $0x4f8] sm:$0xff]  ;;  %2333 = vmatpush.msrb.mxu2 %v1507_v17  ;;  %v1134_v41 = vsub.f32 1.5, %v1133_v16  ;;  %v1501_v16 = vld [vmem:[%s13165_s4 + $0x1c8] sm:$0xff]  ;;  %vm1127_vm0 = vweird.f32 %v8378_v40 }
 0x23e   : > { %v1348_v19 = vmul.f32 %v7515_v28, %v1278_v12  ;;  %v1349_v60 = vmul.f32 %v7517_v32, %v1279_v5  ;;  %v589_v63 = vpop.xlane.xlu0 %588  ;;  %v752_v52 = vmul.f32 %v8381_v48, %v8381_v48  ;;  %v753_v36 = vmul.f32 %v8384_v51, %v8384_v51  ;;  %v8417_v12 = vpop.f32.mrf.mxu1  ;;  %2446 = vmatpush.msrb.mxu3 %v1603_v43  ;;  %vm1128_vm2 = vmor %vm1126_vm15, %vm1127_vm0 }
 0x23f   : > { %1720 = vmatmul.f32.gmra.mxu0 %v8366_v46  ;;  %1833 = vmatmul.f32.gmra.mxu1 %v8370_v23  ;;  %v1122_v26 = vmul.f32 %v8378_v40, %v1121_v34  ;;  %v630_v5 = vmul.f32 %v7120_v30, %v589_v63  ;;  %v1135_v63 = vmul.f32 %v8340_v45, %v1134_v41  ;;  %vm1146_vm3 = vweird.f32 %v8376_v18 }
 0x240   : > { %1946 = vmatmul.f32.gmra.mxu2 %v8366_v46  ;;  %2059 = vmatmul.f32.gmra.mxu3 %v8370_v23  ;;  %v844_v23 = vadd.f32 %v753_v36, %v752_v52  ;;  %v8425_v31 = vadd.f32 %v7521_v53, %v1348_v19  ;;  %v8428_v17 = vadd.f32 %v7547_v47, %v1349_v60 }
 0x241   : > { %v1123_v1 = vmul.f32 0.5, %v1122_v26  ;;  %v831_v34 = vpop.xlane.xlu2 %830  ;;  %2220 = vmatpush.msrb.mxu1 %v1602_v10  ;;  %v8442_v60 = vsub.f32 %v8116_v61, %v630_v5  ;;  %2334 = vmatpush.msrb.mxu2 %v1501_v16  ;;  %v8460_v36 = vsub.f32 %v8119_v11, %v630_v5  ;;  %v1596_v11 = vld [vmem:[%s13165_s4 + $0x4c0] sm:$0xff]  ;;  %v8477_v5 = vpop.f32.mrf.mxu3 }
 0x242   : > { %13400 = vst [vmem:[#allocation40_spill] sm:$0xff] %v8425_v31  ;;  %v879_v43 = vmul.f32 %v831_v34, %v7120_v30  ;;  %845 = vadd.xlane.f32.xlu0 %v844_v23  ;;  %2447 = vmatpush.msrb.mxu3 %v1597_v37  ;;  %v8484_v37 = vpop.f32.mrf.mxu0 }
 0x243   : > { %v8422_v46 = vpop.eup %6453  ;;  %13401 = vst [vmem:[#allocation41_spill] sm:$0xff] %v8428_v17  ;;  %v1124_v10 = vsub.f32 1.5, %v1123_v1  ;;  %v8462_v1 = vpop.f32.mrf.mxu2  ;;  %v756_v34 = vmul.f32 %v8442_v60, %v8442_v60  ;;  %2108 = vmatpush.msrb.mxu0 %v1500_v58  ;;  %2221 = vmatpush.msrb.mxu1 %v1596_v11 }
 0x244   : > { %v1141_v19 = vmul.f32 %v8422_v46, %v8376_v18  ;;  %v8444_v26 = vadd.f32 1e-05, %v879_v43  ;;  %vm1147_vm4 = vweird.f32 %v8422_v46 }
 0x245   : > { %v1125_v61 = vmul.f32 %v8378_v40, %v1124_v10  ;;  %v1139_v10 = vsel %vm8453_vm1, %v8340_v45, %v1135_v63  ;;  %vm1148_vm5 = vmor %vm1146_vm3, %vm1147_vm4 }
 0x246   : > { %v1142_v23 = vmul.f32 %v8422_v46, %v1141_v19  ;;  %6455 = vrsqrt.f32 %v8444_v26  ;;  %v1282_v63 = vmul.f32 %v1139_v10, %v7975_v7  ;;  %v1283_v18 = vmul.f32 %v1139_v10, %v7984_v55  ;;  %v1495_v55 = vld [vmem:[%s13165_s4 + $0x198] sm:$0xff] }
 0x247   : > { %1723 = vmatmul.f32.gmra.mxu0 %v8425_v31  ;;  %1836 = vmatmul.f32.gmra.mxu1 %v8428_v17  ;;  %v1129_v41 = vsel %vm1128_vm2, %v8378_v40, %v1125_v61  ;;  %v757_v40 = vmul.f32 %v8460_v36, %v8460_v36  ;;  %v8491_v61 = vpop.f32.mrf.mxu1  ;;  %vm1156_vm6 = vweird.f32 %v8444_v26 }
 0x248   : > { %1949 = vmatmul.f32.gmra.mxu2 %v8425_v31  ;;  %2062 = vmatmul.f32.gmra.mxu3 %v8428_v17  ;;  %v1143_v50 = vmul.f32 0.5, %v1142_v23  ;;  %v1280_v43 = vmul.f32 %v1129_v41, %v8008_v62  ;;  %v1281_v16 = vmul.f32 %v1129_v41, %v8027_v39  ;;  %v1352_v10 = vmul.f32 %v7515_v28, %v1282_v63  ;;  %v1494_v63 = vld [vmem:[%s13165_s4 + $0x190] sm:$0xff] }
 0x249   : > { %v592_v17 = vpop.xlane.xlu2 %591  ;;  %v850_v39 = vadd.f32 %v757_v40, %v756_v34  ;;  %v1353_v40 = vmul.f32 %v7517_v32, %v1283_v18  ;;  %2335 = vmatpush.msrb.mxu2 %v1495_v55  ;;  %2109 = vmatpush.msrb.mxu0 %v1494_v63 }
 0x24a   : > { %v1144_v19 = vsub.f32 1.5, %v1143_v50  ;;  %v1350_v23 = vmul.f32 %v7515_v28, %v1280_v43  ;;  %v1351_v58 = vmul.f32 %v7517_v32, %v1281_v16  ;;  %v631_v62 = vmul.f32 %v7120_v30, %v592_v17 }
 0x24b   : > { %851 = vadd.xlane.f32.xlu2 %v850_v39  ;;  %v8536_v16 = vpop.f32.mrf.mxu2  ;;  %v4222_v39 = vld [vmem:[%s8523_s25] sm:$0xff] }
 0x24c   : > { %v6456_v45 = vpop.eup %6455  ;;  %v8503_v52 = vadd.f32 %v7521_v53, %v1350_v23  ;;  %v8506_v11 = vsub.f32 %v8171_v38, %v631_v62  ;;  %v8509_v41 = vsub.f32 %v8174_v44, %v631_v62  ;;  %v8513_v17 = vadd.f32 %v7547_v47, %v1351_v58  ;;  %v1591_v38 = vld [vmem:[%s13165_s4 + $0x498] sm:$0xff] }
 0x24d   : > { %v1145_v50 = vmul.f32 %v8422_v46, %v1144_v19  ;;  %v1151_v34 = vmul.f32 %v6456_v45, %v8444_v26  ;;  %v8540_v19 = vpop.f32.mrf.mxu3  ;;  %2448 = vmatpush.msrb.mxu3 %v1591_v38  ;;  %vm1157_vm7 = vweird.f32 %v6456_v45  ;;  %v8561_v26 = vadd.f32 %v7547_v47, %v1353_v40 }
 0x24e   : > { %13404 = vst [vmem:[#allocation42_spill] sm:$0xff] %v8503_v52  ;;  %v758_v7 = vmul.f32 %v8506_v11, %v8506_v11  ;;  %v759_v43 = vmul.f32 %v8509_v41, %v8509_v41  ;;  %vm1158_vm8 = vmor %vm1156_vm6, %vm1157_vm7 }
 0x24f   : > { %13405 = vst [vmem:[#allocation43_spill] sm:$0xff] %v8513_v17  ;;  %1726 = vmatmul.f32.gmra.mxu0 %v8503_v52  ;;  %v1152_v44 = vmul.f32 %v6456_v45, %v1151_v34  ;;  %1839 = vmatmul.f32.gmra.mxu1 %v8513_v17  ;;  %v1149_v23 = vsel %vm1148_vm5, %v8422_v46, %v1145_v50  ;;  %v8545_v34 = vpop.f32.mrf.mxu0  ;;  %v1590_v46 = vld [vmem:[%s13165_s4 + $0x490] sm:$0xff]  ;;  %v8554_v18 = vpop.f32.mrf.mxu1 }
 0x250   : > { %1952 = vmatmul.f32.gmra.mxu2 %v8503_v52  ;;  %2065 = vmatmul.f32.gmra.mxu3 %v8513_v17  ;;  %v853_v62 = vadd.f32 %v759_v43, %v758_v7  ;;  %v8557_v50 = vadd.f32 %v7521_v53, %v1352_v10  ;;  %v1284_v7 = vmul.f32 %v1149_v23, %v8049_v6  ;;  %v1489_v6 = vld [vmem:[%s13165_s4 + $0x168] sm:$0xff]  ;;  %v4226_v43 = vld [vmem:[%s8523_s25 + $0x20] sm:$0xff] }
 0x251   : > { %v1153_v58 = vmul.f32 0.5, %v1152_v44  ;;  %13407 = vst [vmem:[#allocation45_spill] sm:$0xff] %v8561_v26  ;;  %v1285_v55 = vmul.f32 %v1149_v23, %v8062_v13  ;;  %2222 = vmatpush.msrb.mxu1 %v1590_v46  ;;  %2336 = vmatpush.msrb.mxu2 %v1489_v6  ;;  %v4223_v6 = vld [vmem:[%s8523_s25 + $0x8] sm:$0xff] }
 0x252   : > { %854 = vadd.xlane.f32.xlu0 %v853_v62  ;;  %13406 = vst [vmem:[#allocation44_spill] sm:$0xff] %v8557_v50  ;;  %v1354_v44 = vmul.f32 %v7515_v28, %v1284_v7  ;;  %v1585_v62 = vld [vmem:[%s13165_s4 + $0x468] sm:$0xff]  ;;  %v1584_v7 = vld [vmem:[%s13165_s4 + $0x460] sm:$0xff] }
 0x253   : > { %v1154_v52 = vsub.f32 1.5, %v1153_v58  ;;  %v1355_v13 = vmul.f32 %v7517_v32, %v1285_v55  ;;  %v8574_v10 = vpop.f32.mrf.mxu2  ;;  %2449 = vmatpush.msrb.mxu3 %v1585_v62  ;;  %2223 = vmatpush.msrb.mxu1 %v1584_v7  ;;  %v4230_v7 = vld [vmem:[%s8523_s25 + $0x40] sm:$0xff] }
 0x254   : > { %v8579_v23 = vadd.f32 %v7521_v53, %v1354_v44 }
 0x255   : > { %4256 = vperm.xlu1 %6404, %v4222_v39   ;;  %v1155_v38 = vmul.f32 %v6456_v45, %v1154_v52  ;;  %v8576_v40 = vpop.f32.mrf.mxu3 }
 0x256   : > { %13408 = vst [vmem:[#allocation46_spill] sm:$0xff] %v8579_v23 }
 0x257   : > { %1729 = vmatmul.f32.gmra.mxu0 %v8557_v50  ;;  %1842 = vmatmul.f32.gmra.mxu1 %v8561_v26  ;;  %v1159_v52 = vsel %vm1158_vm8, %v6456_v45, %v1155_v38  ;;  %v8585_v39 = vpop.f32.mrf.mxu0  ;;  %v8588_v45 = vadd.f32 %v7547_v47, %v1355_v13  ;;  %v8591_v46 = vpop.f32.mrf.mxu1  ;;  %v4228_v38 = vld [vmem:[%s8523_s25 + $0x30] sm:$0xff] }
 0x258   : > { %1955 = vmatmul.f32.gmra.mxu2 %v8557_v50  ;;  %2068 = vmatmul.f32.gmra.mxu3 %v8561_v26  ;;  %v1286_v58 = vmul.f32 %v1159_v52, %v8095_v59  ;;  %v1287_v63 = vmul.f32 %v1159_v52, %v8098_v8  ;;  %v1488_v59 = vld [vmem:[%s13165_s4 + $0x160] sm:$0xff]  ;;  %v4224_v52 = vld [vmem:[%s8523_s25 + $0x10] sm:$0xff]  ;;  %v4229_v26 = vld [vmem:[%s8523_s25 + $0x38] sm:$0xff] }
 0x259   : > { %13409 = vst [vmem:[#allocation47_spill] sm:$0xff] %v8588_v45  ;;  %2110 = vmatpush.msrb.mxu0 %v1488_v59 }
 0x25a   : > { %v1356_v8 = vmul.f32 %v7515_v28, %v1286_v58  ;;  %v1357_v55 = vmul.f32 %v7517_v32, %v1287_v63  ;;  %v1483_v63 = vld [vmem:[%s13165_s4 + $0x138] sm:$0xff] }
 0x25b   : > { %v8607_v44 = vpop.f32.mrf.mxu2  ;;  %2337 = vmatpush.msrb.mxu2 %v1483_v63  ;;  %v1482_v63 = vld [vmem:[%s13165_s4 + $0x130] sm:$0xff] }
 0x25c   : > { %v8610_v13 = vadd.f32 %v7521_v53, %v1356_v8  ;;  %v8616_v58 = vadd.f32 %v7547_v47, %v1357_v55  ;;  %v4225_v8 = vld [vmem:[%s8523_s25 + $0x18] sm:$0xff]  ;;  %v4231_v55 = vld [vmem:[%s8523_s25 + $0x48] sm:$0xff]  ;;  %2111 = vmatpush.msrb.mxu0 %v1482_v63 }
 0x25d   : > { %4276 = vperm.xlu1 %6404, %v4226_v43   ;;  %v8613_v43 = vpop.f32.mrf.mxu3  ;;  %v1573_v63 = vld [vmem:[%s13165_s4 + $0x408] sm:$0xff] }
 0x25e   : > { %13410 = vst [vmem:[#allocation48_spill] sm:$0xff] %v8610_v13 }
 0x25f   : > { %1732 = vmatmul.f32.gmra.mxu0 %v8579_v23  ;;  %1845 = vmatmul.f32.gmra.mxu1 %v8588_v45  ;;  %13411 = vst [vmem:[#allocation49_spill] sm:$0xff] %v8616_v58  ;;  %v8619_v62 = vpop.f32.mrf.mxu0  ;;  %v8625_v59 = vpop.f32.mrf.mxu1 }
 0x260   : > { %1958 = vmatmul.f32.gmra.mxu2 %v8579_v23  ;;  %2071 = vmatmul.f32.gmra.mxu3 %v8588_v45  ;;  %v1477_v45 = vld [vmem:[%s13165_s4 + $0x108] sm:$0xff] }
 0x261   : > { %2338 = vmatpush.msrb.mxu2 %v1477_v45  ;;  %v4237_v45 = vld [vmem:[%s8523_s25 + $0x78] sm:$0xff] }
 0x263   : > { %4261 = vperm.xlu2 %6405, %v4223_v6   ;;  %v8635_v6 = vpop.f32.mrf.mxu2 }
 0x265   : > { %4286 = vperm.xlu1 %6404, %v4228_v38   ;;  %v1579_v38 = vld [vmem:[%s13165_s4 + $0x438] sm:$0xff] }
 0x266   : > { %4266 = vperm.xlu0 %6406, %v4224_v52   ;;  %2450 = vmatpush.msrb.mxu3 %v1579_v38  ;;  %v8637_v52 = vpop.f32.mrf.mxu3 }
 0x267   : > { %1735 = vmatmul.f32.gmra.mxu0 %v8610_v13  ;;  %1848 = vmatmul.f32.gmra.mxu1 %v8616_v58  ;;  %v8648_v38 = vpop.f32.mrf.mxu1 }
 0x268   : > { %1961 = vmatmul.f32.gmra.mxu2 %v8610_v13  ;;  %2074 = vmatmul.f32.gmra.mxu3 %v8616_v58  ;;  %v8645_v58 = vpop.f32.mrf.mxu0  ;;  %v4227_v13 = vld [vmem:[%s8523_s25 + $0x28] sm:$0xff] }
 0x269   : > { %2451 = vmatpush.msrb.mxu3 %v1573_v63 }
 0x26b   : > { %4271 = vperm.xlu2 %6405, %v4225_v8   ;;  %v4233_v8 = vld [vmem:[%s8523_s25 + $0x58] sm:$0xff] }
 0x26d   : > { %4296 = vperm.xlu1 %6404, %v4230_v7   ;;  %v1578_v7 = vld [vmem:[%s13165_s4 + $0x430] sm:$0xff] }
 0x26e   : > { %4301 = vperm.xlu0 %6406, %v4231_v55   ;;  %2224 = vmatpush.msrb.mxu1 %v1578_v7  ;;  %v4234_v55 = vld [vmem:[%s8523_s25 + $0x60] sm:$0xff]  ;;  %v8658_v7 = vpop.f32.mrf.mxu2  ;;  %v8660_v23 = vpop.f32.mrf.mxu3 }
 0x26f   : > { %13412 = vst [vmem:[#allocation50_spill] sm:$0xff] %v8658_v7  ;;  %v8666_v17 = vpop.f32.mrf.mxu1 }
 0x270   : > { %13413 = vst [vmem:[#allocation51_spill] sm:$0xff] %v8660_v23  ;;  %v8664_v50 = vpop.f32.mrf.mxu0 }
 0x271   : > { %13414 = vst [vmem:[#allocation52_spill] sm:$0xff] %v8666_v17 }
 0x273   : > { %4281 = vperm.xlu2 %6405, %v4227_v13   ;;  %v4239_v13 = vld [vmem:[%s8523_s25 + $0x88] sm:$0xff] }
 0x275   : > { %4311 = vperm.xlu1 %6404, %v4233_v8   ;;  %v4236_v8 = vld [vmem:[%s8523_s25 + $0x70] sm:$0xff] }
 0x276   : > { %4316 = vperm.xlu0 %6406, %v4234_v55   ;;  %v8670_v63 = vpop.f32.mrf.mxu2  ;;  %v4232_v55 = vld [vmem:[%s8523_s25 + $0x50] sm:$0xff]  ;;  %v8673_v31 = vpop.f32.mrf.mxu3 }
 0x277   : > { %13415 = vst [vmem:[#allocation53_spill] sm:$0xff] %v8670_v63 }
 0x278   : > { %13416 = vst [vmem:[#allocation54_spill] sm:$0xff] %v8673_v31  ;;  %v8676_v2 = vpop.f32.mrf.mxu0 }
 0x279   : > { %13417 = vst [vmem:[#allocation55_spill] sm:$0xff] %v8676_v2 }
 0x27b   : > { %4291 = vperm.xlu2 %6405, %v4229_v26   ;;  %v1572_v26 = vld [vmem:[%s13165_s4 + $0x400] sm:$0xff] }
 0x27c   : > { %2225 = vmatpush.msrb.mxu1 %v1572_v26  ;;  %v4238_v26 = vld [vmem:[%s8523_s25 + $0x80] sm:$0xff] }
 0x27d   : > { %4326 = vperm.xlu1 %6404, %v4236_v8   ;;  %v1476_v8 = vld [vmem:[%s13165_s4 + $0x100] sm:$0xff] }
 0x27e   : > { %4331 = vperm.xlu0 %6406, %v4237_v45   ;;  %v8684_v45 = vpop.f32.mrf.mxu1  ;;  %2112 = vmatpush.msrb.mxu0 %v1476_v8  ;;  %v8689_v57 = vpop.f32.mrf.mxu2 }
 0x27f   : > { %13418 = vst [vmem:[#allocation56_spill] sm:$0xff] %v8684_v45  ;;  %v8692_v14 = vpop.f32.mrf.mxu3 }
 0x280   : > { %13419 = vst [vmem:[#allocation57_spill] sm:$0xff] %v8689_v57  ;;  %v8694_v2 = vpop.f32.mrf.mxu0 }
 0x281   : > { %13420 = vst [vmem:[#allocation58_spill] sm:$0xff] %v8692_v14 }
 0x282   : > { %13421 = vst [vmem:[#allocation59_spill] sm:$0xff] %v8694_v2 }
 0x283   : > { %4306 = vperm.xlu2 %6405, %v4232_v55  }
 0x285   : > { %4341 = vperm.xlu1 %6404, %v4239_v13   ;;  %v4242_v13 = vld [vmem:[%s8523_s25 + $0xa0] sm:$0xff] }
 0x286   : > { %4346 = vperm.xlu0 %6406, %v4240_v29   ;;  %v8696_v8 = vpop.f32.mrf.mxu1  ;;  %v4245_v29 = vld [vmem:[%s8523_s25 + $0xb8] sm:$0xff] }
 0x287   : > { %13422 = vst [vmem:[#allocation60_spill] sm:$0xff] %v8696_v8  ;;  %v8703_v57 = vpop.f32.mrf.mxu3 }
 0x288   : > { %13424 = vst [vmem:[#allocation62_spill] sm:$0xff] %v8703_v57  ;;  %v4241_v57 = vld [vmem:[%s8523_s25 + $0x98] sm:$0xff] }
 0x28b   : > { %4321 = vperm.xlu2 %6405, %v4235_v22   ;;  %v1567_v22 = vld [vmem:[%s13165_s4 + $0x3d8] sm:$0xff] }
 0x28c   : > { %2452 = vmatpush.msrb.mxu3 %v1567_v22 }
 0x28d   : > { %4356 = vperm.xlu1 %6404, %v4242_v13   ;;  %v8701_v13 = vpop.f32.mrf.mxu2 }
 0x28e   : > { %4361 = vperm.xlu0 %6406, %v4243_v21   ;;  %13423 = vst [vmem:[#allocation61_spill] sm:$0xff] %v8701_v13  ;;  %v1471_v21 = vld [vmem:[%s13165_s4 + $0xd8] sm:$0xff] }
 0x28f   : > { %2339 = vmatpush.msrb.mxu2 %v1471_v21  ;;  %v8723_v7 = vpop.f32.mrf.mxu3 }
 0x290   : > { %v834_v20 = vpop.xlane.xlu1 %833  ;;  %13428 = vst [vmem:[#allocation66_spill] sm:$0xff] %v8723_v7 }
 0x291   : > { %v880_v55 = vmul.f32 %v834_v20, %v7120_v30 }
 0x293   : > { %v912_v45 = vadd.f32 1e-05, %v880_v55  ;;  %4336 = vperm.xlu2 %6405, %v4238_v26  }
 0x295   : > { %6457 = vrsqrt.f32 %v912_v45  ;;  %4371 = vperm.xlu1 %6404, %v4245_v29   ;;  %v8716_v29 = vpop.f32.mrf.mxu1  ;;  %vm1166_vm10 = vweird.f32 %v912_v45 }
 0x296   : > { %13426 = vst [vmem:[#allocation64_spill] sm:$0xff] %v8716_v29 }
 0x298   : > { %v840_v31 = vpop.xlane.xlu1 %839 }
 0x299   : > { %v882_v63 = vmul.f32 %v840_v31, %v7120_v30  ;;  %v8713_v31 = vpop.f32.mrf.mxu0 }
 0x29a   : > { %13425 = vst [vmem:[#allocation63_spill] sm:$0xff] %v8713_v31  ;;  %v8721_v31 = vpop.f32.mrf.mxu2 }
 0x29b   : > { %v6458_v20 = vpop.eup %6457  ;;  %v8705_v2 = vadd.f32 1e-05, %v882_v63  ;;  %4351 = vperm.xlu2 %6405, %v4241_v57   ;;  %13427 = vst [vmem:[#allocation65_spill] sm:$0xff] %v8721_v31 }
 0x29c   : > { %v1161_v55 = vmul.f32 %v6458_v20, %v912_v45  ;;  %vm1167_vm9 = vweird.f32 %v6458_v20 }
 0x29d   : > { %6459 = vrsqrt.f32 %v8705_v2  ;;  %vm1168_vm11 = vmor %vm1166_vm10, %vm1167_vm9  ;;  %v8729_v29 = vpop.f32.mrf.mxu1  ;;  %vm1186_vm13 = vweird.f32 %v8705_v2 }
 0x29e   : > { %v1162_v26 = vmul.f32 %v6458_v20, %v1161_v55  ;;  %v837_v13 = vpop.xlane.xlu0 %836  ;;  %13429 = vst [vmem:[#allocation67_spill] sm:$0xff] %v8729_v29 }
 0x29f   : > { %v881_v8 = vmul.f32 %v837_v13, %v7120_v30 }
 0x2a0   : > { %v1163_v63 = vmul.f32 0.5, %v1162_v26 }
 0x2a1   : > { %v913_v17 = vadd.f32 1e-05, %v881_v8  ;;  %v8725_v26 = vpop.f32.mrf.mxu0 }
 0x2a2   : > { %v1164_v14 = vsub.f32 1.5, %v1163_v63 }
 0x2a3   : > { %v6460_v23 = vpop.eup %6459  ;;  %6461 = vrsqrt.f32 %v913_v17  ;;  %vm1176_vm15 = vweird.f32 %v913_v17 }
 0x2a4   : > { %v1165_v21 = vmul.f32 %v6458_v20, %v1164_v14  ;;  %v1181_v22 = vmul.f32 %v6460_v23, %v8705_v2  ;;  %v4244_v14 = vld [vmem:[%s8523_s25 + $0xb0] sm:$0xff]  ;;  %vm1187_vm14 = vweird.f32 %v6460_v23  ;;  %v1465_v2 = vld [vmem:[%s13165_s4 + $0xa8] sm:$0xff] }
 0x2a5   : > { %4366 = vperm.xlu2 %6405, %v4244_v14   ;;  %vm1188_vm1 = vmor %vm1186_vm13, %vm1187_vm14  ;;  %2340 = vmatpush.msrb.mxu2 %v1465_v2 }
 0x2a6   : > { %v1169_v55 = vsel %vm1168_vm11, %v6458_v20, %v1165_v21  ;;  %v1182_v57 = vmul.f32 %v6460_v23, %v1181_v22  ;;  %v8744_v22 = vpop.f32.mrf.mxu2 }
 0x2a7   : > { %v1288_v13 = vmul.f32 %v1169_v55, %v8226_v3  ;;  %v1289_v63 = vmul.f32 %v1169_v55, %v8229_v0  ;;  %13432 = vst [vmem:[#allocation70_spill] sm:$0xff] %v8744_v22  ;;  %v8746_v55 = vpop.f32.mrf.mxu3 }
 0x2a8   : > { %v1183_v21 = vmul.f32 0.5, %v1182_v57  ;;  %13433 = vst [vmem:[#allocation71_spill] sm:$0xff] %v8746_v55 }
 0x2a9   : > { %v1358_v45 = vmul.f32 %v7515_v28, %v1288_v13  ;;  %v1359_v8 = vmul.f32 %v7517_v32, %v1289_v63  ;;  %v6462_v31 = vpop.eup %6461  ;;  %v1470_v13 = vld [vmem:[%s13165_s4 + $0xd0] sm:$0xff] }
 0x2aa   : > { %v1171_v3 = vmul.f32 %v6462_v31, %v913_v17  ;;  %v1566_v63 = vld [vmem:[%s13165_s4 + $0x3d0] sm:$0xff]  ;;  %v1184_v57 = vsub.f32 1.5, %v1183_v21  ;;  %2113 = vmatpush.msrb.mxu0 %v1470_v13  ;;  %vm1177_vm12 = vweird.f32 %v6462_v31  ;;  %v1561_v17 = vld [vmem:[%s13165_s4 + $0x3a8] sm:$0xff] }
 0x2ab   : > { %v8735_v7 = vadd.f32 %v7521_v53, %v1358_v45  ;;  %v8738_v20 = vadd.f32 %v7547_v47, %v1359_v8  ;;  %v843_v45 = vpop.xlane.xlu2 %842  ;;  %2226 = vmatpush.msrb.mxu1 %v1566_v63  ;;  %v8754_v8 = vpop.f32.mrf.mxu0  ;;  %vm1178_vm0 = vmor %vm1176_vm15, %vm1177_vm12  ;;  %2453 = vmatpush.msrb.mxu3 %v1561_v17 }
 0x2ac   : > { %v1172_v0 = vmul.f32 %v6462_v31, %v1171_v3  ;;  %v883_v3 = vmul.f32 %v843_v45, %v7120_v30  ;;  %v1185_v29 = vmul.f32 %v6460_v23, %v1184_v57 }
 0x2ad   : > { %13430 = vst [vmem:[#allocation68_spill] sm:$0xff] %v8735_v7  ;;  %1738 = vmatmul.f32.gmra.mxu0 %v8735_v7  ;;  %1851 = vmatmul.f32.gmra.mxu1 %v8738_v20 }
 0x2ae   : > { %13431 = vst [vmem:[#allocation69_spill] sm:$0xff] %v8738_v20  ;;  %1964 = vmatmul.f32.gmra.mxu2 %v8735_v7  ;;  %2077 = vmatmul.f32.gmra.mxu3 %v8738_v20  ;;  %v1173_v14 = vmul.f32 0.5, %v1172_v0  ;;  %v8757_v20 = vpop.f32.mrf.mxu1  ;;  %v915_v55 = vadd.f32 1e-05, %v883_v3  ;;  %v8771_v57 = vpop.f32.mrf.mxu2 }
 0x2af   : > { %v849_v21 = vpop.xlane.xlu1 %848 }
 0x2b0   : > { %v1174_v7 = vsub.f32 1.5, %v1173_v14  ;;  %v885_v0 = vmul.f32 %v849_v21, %v7120_v30  ;;  %6463 = vrsqrt.f32 %v915_v55  ;;  %vm1196_vm2 = vweird.f32 %v915_v55 }
 0x2b2   : > { %v1175_v22 = vmul.f32 %v6462_v31, %v1174_v7  ;;  %v8763_v14 = vadd.f32 1e-05, %v885_v0  ;;  %v1189_v7 = vsel %vm1188_vm1, %v6460_v23, %v1185_v29 }
 0x2b3   : > { %v8778_v3 = vpop.f32.mrf.mxu0  ;;  %v1292_v21 = vmul.f32 %v1189_v7, %v8235_v15  ;;  %v1293_v0 = vmul.f32 %v1189_v7, %v8238_v9 }
 0x2b4   : > { %v1179_v13 = vsel %vm1178_vm0, %v6462_v31, %v1175_v22  ;;  %v8773_v31 = vpop.f32.mrf.mxu3  ;;  %6465 = vrsqrt.f32 %v8763_v14  ;;  %vm1216_vm5 = vweird.f32 %v8763_v14 }
 0x2b5   : > { %v1290_v63 = vmul.f32 %v1179_v13, %v8266_v33  ;;  %v1291_v45 = vmul.f32 %v1179_v13, %v8269_v42  ;;  %13434 = vst [vmem:[#allocation72_spill] sm:$0xff] %v8773_v31  ;;  %v846_v2 = vpop.xlane.xlu0 %845  ;;  %v1362_v9 = vmul.f32 %v7515_v28, %v1292_v21  ;;  %v1363_v7 = vmul.f32 %v7517_v32, %v1293_v0  ;;  %v1560_v21 = vld [vmem:[%s13165_s4 + $0x3a0] sm:$0xff] }
 0x2b6   : > { %v6464_v22 = vpop.eup %6463  ;;  %v8788_v13 = vpop.f32.mrf.mxu1  ;;  %2227 = vmatpush.msrb.mxu1 %v1560_v21 }
 0x2b7   : > { %v1360_v33 = vmul.f32 %v7515_v28, %v1290_v63  ;;  %v1361_v42 = vmul.f32 %v7517_v32, %v1291_v45  ;;  %13437 = vst [vmem:[#allocation75_spill] sm:$0xff] %v8788_v13  ;;  %v1191_v63 = vmul.f32 %v6464_v22, %v915_v55  ;;  %v884_v45 = vmul.f32 %v846_v2, %v7120_v30  ;;  %v8810_v0 = vpop.f32.mrf.mxu2 }
 0x2b8   : > { %vm1197_vm3 = vweird.f32 %v6464_v22  ;;  %13438 = vst [vmem:[#allocation76_spill] sm:$0xff] %v8810_v0 }
 0x2b9   : > { %v8783_v23 = vadd.f32 %v7521_v53, %v1360_v33  ;;  %v8786_v29 = vadd.f32 %v7547_v47, %v1361_v42  ;;  %v1192_v17 = vmul.f32 %v6464_v22, %v1191_v63  ;;  %v8799_v33 = vadd.f32 1e-05, %v884_v45  ;;  %v1464_v63 = vld [vmem:[%s13165_s4 + $0xa0] sm:$0xff]  ;;  %vm1198_vm4 = vmor %vm1196_vm2, %vm1197_vm3 }
 0x2ba   : > { %v8795_v15 = vpop.eup %6465  ;;  %2114 = vmatpush.msrb.mxu0 %v1464_v63 }
 0x2bb   : > { %13435 = vst [vmem:[#allocation73_spill] sm:$0xff] %v8783_v23  ;;  %1741 = vmatmul.f32.gmra.mxu0 %v8783_v23  ;;  %1854 = vmatmul.f32.gmra.mxu1 %v8786_v29  ;;  %v1211_v42 = vmul.f32 %v8795_v15, %v8763_v14  ;;  %v1193_v2 = vmul.f32 0.5, %v1192_v17  ;;  %6467 = vrsqrt.f32 %v8799_v33  ;;  %v8818_v17 = vadd.f32 %v7547_v47, %v1363_v7 }
 0x2bc   : > { %13436 = vst [vmem:[#allocation74_spill] sm:$0xff] %v8786_v29  ;;  %1967 = vmatmul.f32.gmra.mxu2 %v8783_v23  ;;  %2080 = vmatmul.f32.gmra.mxu3 %v8786_v29  ;;  %v8812_v45 = vpop.f32.mrf.mxu3  ;;  %v8815_v29 = vadd.f32 %v7521_v53, %v1362_v9  ;;  %v8821_v23 = vpop.f32.mrf.mxu0  ;;  %vm1217_vm6 = vweird.f32 %v8795_v15  ;;  %vm1206_vm7 = vweird.f32 %v8799_v33 }
 0x2bd   : > { %v1194_v13 = vsub.f32 1.5, %v1193_v2  ;;  %13439 = vst [vmem:[#allocation77_spill] sm:$0xff] %v8812_v45  ;;  %v1212_v55 = vmul.f32 %v8795_v15, %v1211_v42  ;;  %vm1218_vm9 = vmor %vm1216_vm5, %vm1217_vm6 }
 0x2be   : > { %13440 = vst [vmem:[#allocation78_spill] sm:$0xff] %v8815_v29  ;;  %v8825_v0 = vpop.f32.mrf.mxu1  ;;  %v852_v9 = vpop.xlane.xlu2 %851 }
 0x2bf   : > { %13441 = vst [vmem:[#allocation79_spill] sm:$0xff] %v8818_v17  ;;  %v1195_v2 = vmul.f32 %v6464_v22, %v1194_v13  ;;  %v1213_v42 = vmul.f32 0.5, %v1212_v55  ;;  %v886_v21 = vmul.f32 %v852_v9, %v7120_v30  ;;  %v1458_v55 = vld [vmem:[%s13165_s4 + $0x70] sm:$0xff] }
 0x2c0   : > { %13442 = vst [vmem:[#allocation80_spill] sm:$0xff] %v8821_v23  ;;  %2115 = vmatpush.msrb.mxu0 %v1458_v55  ;;  %v1549_v55 = vld [vmem:[%s13165_s4 + $0x348] sm:$0xff] }
 0x2c1   : > { %13443 = vst [vmem:[#allocation81_spill] sm:$0xff] %v8825_v0  ;;  %v1199_v45 = vsel %vm1198_vm4, %v6464_v22, %v1195_v2  ;;  %v6468_v7 = vpop.eup %6467  ;;  %v1459_v0 = vld [vmem:[%s13165_s4 + $0x78] sm:$0xff]  ;;  %v1554_v2 = vld [vmem:[%s13165_s4 + $0x370] sm:$0xff] }
 0x2c2   : > { %v1294_v63 = vmul.f32 %v1199_v45, %v8318_v35  ;;  %v1295_v13 = vmul.f32 %v1199_v45, %v8321_v24  ;;  %v1201_v23 = vmul.f32 %v6468_v7, %v8799_v33  ;;  %v1555_v22 = vld [vmem:[%s13165_s4 + $0x378] sm:$0xff]  ;;  %v8844_v45 = vadd.f32 1e-05, %v886_v21  ;;  %2341 = vmatpush.msrb.mxu2 %v1459_v0  ;;  %2228 = vmatpush.msrb.mxu1 %v1554_v2  ;;  %v8856_v0 = vpop.f32.mrf.mxu2 }
 0x2c3   : > { %1744 = vmatmul.f32.gmra.mxu0 %v8815_v29  ;;  %1857 = vmatmul.f32.gmra.mxu1 %v8818_v17  ;;  %vm1207_vm8 = vweird.f32 %v6468_v7 }
 0x2c4   : > { %1970 = vmatmul.f32.gmra.mxu2 %v8815_v29  ;;  %2083 = vmatmul.f32.gmra.mxu3 %v8818_v17  ;;  %v1364_v35 = vmul.f32 %v7515_v28, %v1294_v63  ;;  %v1365_v24 = vmul.f32 %v7517_v32, %v1295_v13  ;;  %v1202_v9 = vmul.f32 %v6468_v7, %v1201_v23  ;;  %v1214_v17 = vsub.f32 1.5, %v1213_v42  ;;  %v8858_v21 = vpop.f32.mrf.mxu3  ;;  %v1453_v23 = vld [vmem:[%s13165_s4 + $0x48] sm:$0xff]  ;;  %v8878_v2 = vpop.f32.mrf.mxu0  ;;  %vm1208_vm10 = vmor %vm1206_vm7, %vm1207_vm8 }
 0x2c5   : > { %2454 = vmatpush.msrb.mxu3 %v1555_v22  ;;  %6469 = vrsqrt.f32 %v8844_v45  ;;  %v855_v13 = vpop.xlane.xlu0 %854  ;;  %2342 = vmatpush.msrb.mxu2 %v1453_v23  ;;  %v1548_v23 = vld [vmem:[%s13165_s4 + $0x340] sm:$0xff]  ;;  %vm1226_vm11 = vweird.f32 %v8844_v45 }
 0x2c6   : > { %v8850_v29 = vadd.f32 %v7521_v53, %v1364_v35  ;;  %v8853_v31 = vadd.f32 %v7547_v47, %v1365_v24  ;;  %v1203_v63 = vmul.f32 0.5, %v1202_v9  ;;  %v887_v22 = vmul.f32 %v855_v13, %v7120_v30  ;;  %v1452_v35 = vld [vmem:[%s13165_s4 + $0x40] sm:$0xff]  ;;  %v8880_v30 = vpop.f32.mrf.mxu1  ;;  %2229 = vmatpush.msrb.mxu1 %v1548_v23 }
 0x2c7   : > { %v1215_v24 = vmul.f32 %v8795_v15, %v1214_v17  ;;  %2455 = vmatpush.msrb.mxu3 %v1549_v55  ;;  %2116 = vmatpush.msrb.mxu0 %v1452_v35 }
 0x2c8   : > { %13444 = vst [vmem:[#allocation82_spill] sm:$0xff] %v8850_v29  ;;  %v1204_v42 = vsub.f32 1.5, %v1203_v63  ;;  %v919_v63 = vadd.f32 1e-05, %v887_v22  ;;  %v4246_v22 = vld [vmem:[%s8523_s25 + $0xc0] sm:$0xff] }
 0x2c9   : > { %13445 = vst [vmem:[#allocation83_spill] sm:$0xff] %v8853_v31  ;;  %v1219_v55 = vsel %vm1218_vm9, %v8795_v15, %v1215_v24  ;;  %4376 = vperm.xlu0 %6406, %v4246_v22  }
 0x2ca   : > { %v1205_v9 = vmul.f32 %v6468_v7, %v1204_v42  ;;  %6471 = vrsqrt.f32 %v919_v63  ;;  %v8902_v15 = vpop.f32.mrf.mxu2  ;;  %vm1236_vm14 = vweird.f32 %v919_v63 }
 0x2cb   : > { %1747 = vmatmul.f32.gmra.mxu0 %v8850_v29  ;;  %1860 = vmatmul.f32.gmra.mxu1 %v8853_v31  ;;  %v6470_v17 = vpop.eup %6469 }
 0x2cc   : > { %1973 = vmatmul.f32.gmra.mxu2 %v8850_v29  ;;  %2086 = vmatmul.f32.gmra.mxu3 %v8853_v31  ;;  %v1209_v13 = vsel %vm1208_vm10, %v6468_v7, %v1205_v9  ;;  %v1221_v42 = vmul.f32 %v6470_v17, %v8844_v45  ;;  %v1298_v9 = vmul.f32 %v1219_v55, %v8345_v56  ;;  %vm1227_vm12 = vweird.f32 %v6470_v17  ;;  %v1447_v56 = vld [vmem:[%s13165_s4 + $0x18] sm:$0xff] }
 0x2cd   : > { %v1296_v31 = vmul.f32 %v1209_v13, %v8381_v48  ;;  %v1297_v14 = vmul.f32 %v1209_v13, %v8384_v51  ;;  %v1299_v29 = vmul.f32 %v1219_v55, %v8348_v4  ;;  %v8904_v48 = vpop.f32.mrf.mxu3  ;;  %v1543_v55 = vld [vmem:[%s13165_s4 + $0x318] sm:$0xff]  ;;  %vm1228_vm13 = vmor %vm1226_vm11, %vm1227_vm12  ;;  %2343 = vmatpush.msrb.mxu2 %v1447_v56 }
 0x2ce   : > { %v1222_v7 = vmul.f32 %v6470_v17, %v1221_v42  ;;  %13446 = vst [vmem:[#allocation84_spill] sm:$0xff] %v8904_v48  ;;  %v8923_v42 = vpop.f32.mrf.mxu0  ;;  %v8925_v22 = vpop.f32.mrf.mxu1  ;;  %2456 = vmatpush.msrb.mxu3 %v1543_v55 }
 0x2cf   : > { %v1366_v33 = vmul.f32 %v7515_v28, %v1296_v31  ;;  %v1367_v35 = vmul.f32 %v7517_v32, %v1297_v14  ;;  %v1446_v14 = vld [vmem:[%s13165_s4 + $0x10] sm:$0xff]  ;;  %13449 = vst [vmem:[#allocation87_spill] sm:$0xff] %v8923_v42 }
 0x2d0   : > { %v1223_v31 = vmul.f32 0.5, %v1222_v7  ;;  %v6472_v13 = vpop.eup %6471  ;;  %13450 = vst [vmem:[#allocation88_spill] sm:$0xff] %v8925_v22  ;;  %2117 = vmatpush.msrb.mxu0 %v1446_v14  ;;  %v4248_v14 = vld [vmem:[%s8523_s25 + $0xd0] sm:$0xff] }
 0x2d1   : > { %v8907_v51 = vadd.f32 %v7521_v53, %v1366_v33  ;;  %v8910_v24 = vadd.f32 %v7547_v47, %v1367_v35  ;;  %v1231_v23 = vmul.f32 %v6472_v13, %v919_v63  ;;  %v1368_v33 = vmul.f32 %v7515_v28, %v1298_v9  ;;  %4386 = vperm.xlu1 %6404, %v4248_v14  }
 0x2d2   : > { %v1224_v4 = vsub.f32 1.5, %v1223_v31  ;;  %v1369_v35 = vmul.f32 %v7517_v32, %v1299_v29  ;;  %vm1237_vm15 = vweird.f32 %v6472_v13 }
 0x2d3   : > { %13447 = vst [vmem:[#allocation85_spill] sm:$0xff] %v8907_v51  ;;  %1750 = vmatmul.f32.gmra.mxu0 %v8907_v51  ;;  %1863 = vmatmul.f32.gmra.mxu1 %v8910_v24  ;;  %v1232_v31 = vmul.f32 %v6472_v13, %v1231_v23  ;;  %v8934_v22 = vadd.f32 %v7521_v53, %v1368_v33  ;;  %v8941_v23 = vpop.f32.mrf.mxu2  ;;  %vm1238_vm0 = vmor %vm1236_vm14, %vm1237_vm15 }
 0x2d4   : > { %13448 = vst [vmem:[#allocation86_spill] sm:$0xff] %v8910_v24  ;;  %1976 = vmatmul.f32.gmra.mxu2 %v8907_v51  ;;  %2089 = vmatmul.f32.gmra.mxu3 %v8910_v24  ;;  %v1225_v7 = vmul.f32 %v6470_v17, %v1224_v4  ;;  %v8937_v45 = vadd.f32 %v7547_v47, %v1369_v35 }
 0x2d5   : > { %v1233_v42 = vmul.f32 0.5, %v1232_v31  ;;  %13451 = vst [vmem:[#allocation89_spill] sm:$0xff] %v8934_v22  ;;  %v8943_v56 = vpop.f32.mrf.mxu3 }
 0x2d6   : > { %v1229_v48 = vsel %vm1228_vm13, %v6470_v17, %v1225_v7  ;;  %13452 = vst [vmem:[#allocation90_spill] sm:$0xff] %v8937_v45  ;;  %v8947_v63 = vpop.f32.mrf.mxu0  ;;  %v8949_v55 = vpop.f32.mrf.mxu1 }
 0x2d7   : > { %v1300_v9 = vmul.f32 %v1229_v48, %v8442_v60  ;;  %v1301_v29 = vmul.f32 %v1229_v48, %v8460_v36  ;;  %v1234_v4 = vsub.f32 1.5, %v1233_v42  ;;  %13453 = vst [vmem:[#allocation91_spill] sm:$0xff] %v8949_v55  ;;  %v1542_v48 = vld [vmem:[%s13165_s4 + $0x310] sm:$0xff] }
 0x2d8   : > { %2230 = vmatpush.msrb.mxu1 %v1542_v48 }
 0x2d9   : > { %v1235_v17 = vmul.f32 %v6472_v13, %v1234_v4  ;;  %v1370_v60 = vmul.f32 %v7515_v28, %v1300_v9  ;;  %v1371_v36 = vmul.f32 %v7517_v32, %v1301_v29  ;;  %v1635_v4 = vld [vmem:[%s13165_s4 + $0x5f8] sm:$0xff] }
 0x2da   : > { %2893 = vmatpush.msra.mxu3 %v1635_v4  ;;  %v13464_v4 = vld [vmem:[#allocation3_spill] sm:$0xff] }
 0x2db   : > { %1753 = vmatmul.f32.gmra.mxu0 %v8934_v22  ;;  %1866 = vmatmul.f32.gmra.mxu1 %v8937_v45  ;;  %v1239_v42 = vsel %vm1238_vm0, %v6472_v13, %v1235_v17  ;;  %v8960_v33 = vadd.f32 %v7521_v53, %v1370_v60  ;;  %v8963_v35 = vadd.f32 %v7547_v47, %v1371_v36  ;;  %v8967_v9 = vpop.f32.mrf.mxu2  ;;  %v1539_v13 = vld [vmem:[%s13165_s4 + $0x2f8] sm:$0xff] }
 0x2dc   : > { %1979 = vmatmul.f32.gmra.mxu2 %v8934_v22  ;;  %2092 = vmatmul.f32.gmra.mxu3 %v8937_v45  ;;  %v1302_v7 = vmul.f32 %v1239_v42, %v8506_v11  ;;  %v1303_v31 = vmul.f32 %v1239_v42, %v8509_v41  ;;  %13456 = vst [vmem:[#allocation94_spill] sm:$0xff] %v8967_v9  ;;  %v4249_v17 = vld [vmem:[%s8523_s25 + $0xd8] sm:$0xff]  ;;  %v13471_v45 = vld [vmem:[#allocation8_spill] sm:$0xff] }
 0x2dd   : > { %13454 = vst [vmem:[#allocation92_spill] sm:$0xff] %v8960_v33  ;;  %v8969_v29 = vpop.f32.mrf.mxu3  ;;  %2780 = vmatpush.msra.mxu2 %v1539_v13  ;;  %4391 = vperm.xlu0 %6406, %v4249_v17   ;;  %v13465_v17 = vld [vmem:[#allocation4_spill] sm:$0xff] }
 0x2de   : > { %13455 = vst [vmem:[#allocation93_spill] sm:$0xff] %v8963_v35  ;;  %v1372_v11 = vmul.f32 %v7515_v28, %v1302_v7  ;;  %v1373_v41 = vmul.f32 %v7517_v32, %v1303_v31  ;;  %v8984_v60 = vpop.f32.mrf.mxu0  ;;  %v8986_v36 = vpop.f32.mrf.mxu1  ;;  %v1636_v28 = vld [vmem:[%s13166_s5] sm:$0x3f]  ;;  %v1538_v31 = vld [vmem:[%s13165_s4 + $0x2f0] sm:$0xff] }
 0x2df   : > { %13457 = vst [vmem:[#allocation95_spill] sm:$0xff] %v8969_v29  ;;  %2554 = vmatpush.msra.mxu0 %v1538_v31 }
 0x2e0   : > { %v8989_v48 = vadd.f32 %v7521_v53, %v1372_v11  ;;  %v8992_v14 = vadd.f32 %v7547_v47, %v1373_v41  ;;  %v9005_v53 = vperm.slane %v1636_v28, 0  ;;  %v9020_v11 = vperm.slane %v1636_v28, 1  ;;  %v1634_v41 = vld [vmem:[%s13165_s4 + $0x5f0] sm:$0xff] }
 0x2e1   : > { %2667 = vmatpush.msra.mxu1 %v1634_v41 }
 0x2e2   : > { %13458 = vst [vmem:[#allocation96_spill] sm:$0xff] %v8989_v48  ;;  %v1668_v13 = vadd.f32 %v8410_v27, %v9005_v53  ;;  %v4247_v27 = vld [vmem:[%s8523_s25 + $0xc8] sm:$0xff]  ;;  %v1897_v41 = vadd.f32 %v8536_v16, %v9020_v11  ;;  %v1532_v16 = vld [vmem:[%s13165_s4 + $0x2c0] sm:$0xff]  ;;  %v1680_v24 = vadd.f32 %v8619_v62, %v9005_v53 }
 0x2e3   : > { %1756 = vmatmul.f32.gmra.mxu0 %v8960_v33  ;;  %1869 = vmatmul.f32.gmra.mxu1 %v8963_v35  ;;  %13459 = vst [vmem:[#allocation97_spill] sm:$0xff] %v8992_v14  ;;  %v9001_v32 = vpop.f32.mrf.mxu2 }
 0x2e4   : > { %1982 = vmatmul.f32.gmra.mxu2 %v8960_v33  ;;  %2095 = vmatmul.f32.gmra.mxu3 %v8963_v35  ;;  %13460 = vst [vmem:[#allocation98_spill] sm:$0xff] %v9001_v32  ;;  %v13470_v33 = vld [vmem:[#allocation7_spill] sm:$0xff]  ;;  %v2010_v22 = vadd.f32 %v8540_v19, %v1897_v41  ;;  %v1622_v19 = vld [vmem:[%s13165_s4 + $0x590] sm:$0xff]  ;;  %v1900_v41 = vadd.f32 %v8574_v10, %v9020_v11 }
 0x2e5   : > { %v9003_v42 = vpop.f32.mrf.mxu3  ;;  %4381 = vperm.xlu2 %6405, %v4247_v27   ;;  %2555 = vmatpush.msra.mxu0 %v1532_v16  ;;  %v1793_v10 = vadd.f32 %v8625_v59, %v1680_v24  ;;  %v4253_v24 = vld [vmem:[%s8523_s25 + $0xf8] sm:$0xff] }
 0x2e6   : > { %13461 = vst [vmem:[#allocation99_spill] sm:$0xff] %v9003_v42  ;;  %v9007_v47 = vpop.f32.mrf.mxu0  ;;  %v9009_v7 = vpop.f32.mrf.mxu1 }
 0x2e7   : > { %13462 = vst [vmem:[#allocation100_spill] sm:$0xff] %v9007_v47 }
 0x2e8   : > { %13463 = vst [vmem:[#allocation101_spill] sm:$0xff] %v9009_v7  ;;  %v13513_v7 = vld [vmem:[#allocation20_spill] sm:$0xff] }
 0x2eb   : > { %1759 = vmatmul.f32.gmra.mxu0 %v8989_v48  ;;  %1872 = vmatmul.f32.gmra.mxu1 %v8992_v14  ;;  %v9026_v31 = vpop.f32.mrf.mxu2 }
 0x2ec   : > { %1985 = vmatmul.f32.gmra.mxu2 %v8989_v48  ;;  %2098 = vmatmul.f32.gmra.mxu3 %v8992_v14  ;;  %v1781_v14 = vadd.f32 %v8417_v12, %v1668_v13  ;;  %13466 = vst [vmem:[#allocation102_spill] sm:$0xff] %v9026_v31 }
 0x2ed   : > { %v9028_v48 = vpop.f32.mrf.mxu3 }
 0x2ee   : > { %13467 = vst [vmem:[#allocation103_spill] sm:$0xff] %v9028_v48  ;;  %v9033_v35 = vpop.f32.mrf.mxu0  ;;  %v9035_v28 = vpop.f32.mrf.mxu1 }
 0x2ef   : > { %13468 = vst [vmem:[#allocation104_spill] sm:$0xff] %v9033_v35 }
 0x2f0   : > { %13469 = vst [vmem:[#allocation105_spill] sm:$0xff] %v9035_v28 }
 0x2f3   : > { %2118 = vmatmul.f32.vlgmr.msrb.gmra.mxu0 %v13464_v4  ;;  %2231 = vmatmul.f32.vlgmr.msrb.gmra.mxu1 %v13465_v17  ;;  %v9049_v27 = vpop.f32.mrf.mxu2 }
 0x2f4   : > { %2344 = vmatmul.f32.vlgmr.msrb.gmra.mxu2 %v13464_v4  ;;  %2457 = vmatmul.f32.vlgmr.msrb.gmra.mxu3 %v13465_v17  ;;  %v1894_v4 = vadd.f32 %v8462_v1, %v9020_v11  ;;  %v6243_v17 = vmul.f32 -1.442695, %v1781_v14  ;;  %v1533_v1 = vld [vmem:[%s13165_s4 + $0x2c8] sm:$0xff]  ;;  %v1671_v14 = vadd.f32 %v8484_v37, %v9005_v53  ;;  %13472 = vst [vmem:[#allocation106_spill] sm:$0xff] %v9049_v27 }
 0x2f5   : > { %2781 = vmatpush.msra.mxu2 %v1533_v1  ;;  %v1629_v37 = vld [vmem:[%s13165_s4 + $0x5c8] sm:$0xff] }
 0x2f6   : > { %v2007_v12 = vadd.f32 %v8477_v5, %v1894_v4  ;;  %6473 = vpow2.f32 %v6243_v17  ;;  %v1674_v5 = vadd.f32 %v8545_v34, %v9005_v53  ;;  %v1784_v4 = vadd.f32 %v8491_v61, %v1671_v14  ;;  %v4251_v17 = vld [vmem:[%s8523_s25 + $0xe8] sm:$0xff]  ;;  %v9067_v1 = vpop.f32.mrf.mxu1  ;;  %v1628_v61 = vld [vmem:[%s13165_s4 + $0x5c0] sm:$0xff]  ;;  %v4252_v34 = vld [vmem:[%s8523_s25 + $0xf0] sm:$0xff]  ;;  %2894 = vmatpush.msra.mxu3 %v1629_v37 }
 0x2f7   : > { %13475 = vst [vmem:[#allocation109_spill] sm:$0xff] %v9067_v1  ;;  %v1527_v14 = vld [vmem:[%s13165_s4 + $0x298] sm:$0xff]  ;;  %4401 = vperm.xlu1 %6404, %v4251_v17   ;;  %2668 = vmatpush.msra.mxu1 %v1628_v61  ;;  %v1906_v17 = vadd.f32 %v8635_v6, %v9020_v11  ;;  %v1520_v61 = vld [vmem:[%s13165_s4 + $0x260] sm:$0xff]  ;;  %v13478_v6 = vld [vmem:[#allocation12_spill] sm:$0xff] }
 0x2f8   : > { %v6244_v13 = vmul.f32 -1.442695, %v2007_v12  ;;  %v9065_v12 = vpop.f32.mrf.mxu0  ;;  %v1787_v51 = vadd.f32 %v8554_v18, %v1674_v5  ;;  %v6245_v62 = vmul.f32 -1.442695, %v1784_v4  ;;  %4406 = vperm.xlu0 %6406, %v4252_v34   ;;  %2782 = vmatpush.msra.mxu2 %v1527_v14  ;;  %v1521_v18 = vld [vmem:[%s13165_s4 + $0x268] sm:$0xff] }
 0x2f9   : > { %13474 = vst [vmem:[#allocation108_spill] sm:$0xff] %v9065_v12  ;;  %v1617_v5 = vld [vmem:[%s13165_s4 + $0x568] sm:$0xff]  ;;  %v6246_v4 = vmul.f32 -1.442695, %v2010_v22  ;;  %2669 = vmatpush.msra.mxu1 %v1622_v19 }
 0x2fa   : > { %6475 = vpow2.f32 %v6244_v13  ;;  %v1526_v13 = vld [vmem:[%s13165_s4 + $0x290] sm:$0xff]  ;;  %v6247_v16 = vmul.f32 -1.442695, %v1787_v51  ;;  %2783 = vmatpush.msra.mxu2 %v1521_v18  ;;  %v2019_v51 = vadd.f32 %v8637_v52, %v1906_v17 }
 0x2fb   : > { %2121 = vmatmul.f32.gmra.mxu0 %v13470_v33  ;;  %2234 = vmatmul.f32.gmra.mxu1 %v13471_v45  ;;  %6477 = vpow2.f32 %v6245_v62  ;;  %v1903_v62 = vadd.f32 %v8607_v44, %v9020_v11  ;;  %v13482_v44 = vld [vmem:[#allocation14_spill] sm:$0xff] }
 0x2fc   : > { %2347 = vmatmul.f32.gmra.mxu2 %v13470_v33  ;;  %2460 = vmatmul.f32.gmra.mxu3 %v13471_v45  ;;  %v9051_v33 = vpop.f32.mrf.mxu3  ;;  %v6474_v45 = vpop.eup %6473 }
 0x2fd   : > { %13473 = vst [vmem:[#allocation107_spill] sm:$0xff] %v9051_v33  ;;  %v9100_v37 = vadd.f32 1.0, %v6474_v45  ;;  %2556 = vmatpush.msra.mxu0 %v1526_v13  ;;  %v2013_v45 = vadd.f32 %v8576_v40, %v1900_v41  ;;  %v1616_v40 = vld [vmem:[%s13165_s4 + $0x560] sm:$0xff]  ;;  %v6252_v41 = vmul.f32 -1.442695, %v2019_v51 }
 0x2fe   : > { %2670 = vmatpush.msra.mxu1 %v1616_v40  ;;  %v9129_v13 = vpop.f32.mrf.mxu1 }
 0x2ff   : > { %6479 = vrcp.f32 %v9100_v37  ;;  %2557 = vmatpush.msra.mxu0 %v1520_v61  ;;  %13480 = vst [vmem:[#allocation113_spill] sm:$0xff] %v9129_v13  ;;  %v6248_v52 = vmul.f32 -1.442695, %v2013_v45  ;;  %v2016_v45 = vadd.f32 %v8613_v43, %v1903_v62  ;;  %v13486_v62 = vld [vmem:[#allocation52_spill] sm:$0xff]  ;;  %vm3267_vm2 = vweird.f32 %v9100_v37 }
 0x300   : > { %v6476_v34 = vpop.eup %6475  ;;  %6481 = vpow2.f32 %v6246_v4  ;;  %v9127_v14 = vpop.f32.mrf.mxu0 }
 0x301   : > { %v9125_v22 = vadd.f32 1.0, %v6476_v34  ;;  %6483 = vpow2.f32 %v6247_v16  ;;  %13479 = vst [vmem:[#allocation112_spill] sm:$0xff] %v9127_v14  ;;  %v6478_v18 = vpop.eup %6477  ;;  %v13481_v16 = vld [vmem:[#allocation13_spill] sm:$0xff]  ;;  %v13500_v14 = vld [vmem:[#allocation56_spill] sm:$0xff] }
 0x302   : > { %v9143_v34 = vadd.f32 1.0, %v6478_v18 }
 0x303   : > { %2124 = vmatmul.f32.gmra.mxu0 %v7674_v54  ;;  %2237 = vmatmul.f32.gmra.mxu1 %v7690_v25  ;;  %vm3282_vm5 = vweird.f32 %v9125_v22 }
 0x304   : > { %2350 = vmatmul.f32.gmra.mxu2 %v7674_v54  ;;  %2463 = vmatmul.f32.gmra.mxu3 %v7690_v25  ;;  %v1623_v25 = vld [vmem:[%s13165_s4 + $0x598] sm:$0xff]  ;;  %v4250_v54 = vld [vmem:[%s8523_s25 + $0xe0] sm:$0xff]  ;;  %v9113_v59 = vpop.f32.mrf.mxu3  ;;  %vm3297_vm10 = vweird.f32 %v9143_v34 }
 0x305   : > { %2895 = vmatpush.msra.mxu3 %v1623_v25  ;;  %4396 = vperm.xlu2 %6405, %v4250_v54   ;;  %v1677_v54 = vadd.f32 %v8585_v39, %v9005_v53  ;;  %v9111_v25 = vpop.f32.mrf.mxu2  ;;  %13477 = vst [vmem:[#allocation111_spill] sm:$0xff] %v9113_v59  ;;  %v6251_v39 = vmul.f32 -1.442695, %v1793_v10  ;;  %v9136_v17 = vpop.eup %6479 }
 0x306   : > { %13476 = vst [vmem:[#allocation110_spill] sm:$0xff] %v9111_v25  ;;  %v6482_v4 = vpop.eup %6481  ;;  %vm3268_vm1 = vweird.f32 %v9136_v17  ;;  %v13501_v25 = vld [vmem:[#allocation17_spill] sm:$0xff] }
 0x307   : > { %2896 = vmatpush.msra.mxu3 %v1617_v5  ;;  %v1790_v19 = vadd.f32 %v8591_v46, %v1677_v54  ;;  %6485 = vpow2.f32 %v6251_v39  ;;  %v1683_v5 = vadd.f32 %v8645_v58, %v9005_v53  ;;  %v1686_v46 = vadd.f32 %v8664_v50, %v9005_v53  ;;  %v6484_v61 = vpop.eup %6483  ;;  %v1515_v58 = vld [vmem:[%s13165_s4 + $0x238] sm:$0xff]  ;;  %v13485_v39 = vld [vmem:[#allocation50_spill] sm:$0xff]  ;;  %vm9252_vm4 = vmor %vm3267_vm2, %vm3268_vm1 }
 0x308   : > { %6487 = vrcp.f32 %v9125_v22  ;;  %v1611_v50 = vld [vmem:[%s13165_s4 + $0x538] sm:$0xff]  ;;  %2784 = vmatpush.msra.mxu2 %v1515_v58  ;;  %v9159_v43 = vadd.f32 1.0, %v6482_v4  ;;  %v9171_v58 = vpop.f32.mrf.mxu0  ;;  %v9173_v4 = vpop.f32.mrf.mxu1 }
 0x309   : > { %6489 = vpow2.f32 %v6248_v52  ;;  %v6249_v10 = vmul.f32 -1.442695, %v1790_v19  ;;  %v1796_v54 = vadd.f32 %v8648_v38, %v1683_v5  ;;  %2897 = vmatpush.msra.mxu3 %v1611_v50  ;;  %v9163_v19 = vadd.f32 1.0, %v6484_v61  ;;  %13487 = vst [vmem:[#allocation50_spill] sm:$0xff] %v9171_v58 }
 0x30a   : > { %6491 = vpow2.f32 %v6252_v41  ;;  %v1799_v41 = vadd.f32 %v13486_v62, %v1686_v46  ;;  %v3263_v38 = vmul.f32 %v9136_v17, %v9100_v37  ;;  %v6250_v5 = vmul.f32 -1.442695, %v2016_v45  ;;  %13488 = vst [vmem:[#allocation52_spill] sm:$0xff] %v9173_v4  ;;  %v13489_v46 = vld [vmem:[#allocation51_spill] sm:$0xff] }
 0x30b   : > { %2127 = vmatmul.f32.gmra.mxu0 %v7723_v49  ;;  %2240 = vmatmul.f32.gmra.mxu1 %v13478_v6  ;;  %6493 = vpow2.f32 %v6249_v10  ;;  %vm3312_vm13 = vweird.f32 %v9159_v43 }
 0x30c   : > { %2353 = vmatmul.f32.gmra.mxu2 %v7723_v49  ;;  %2466 = vmatmul.f32.gmra.mxu3 %v13478_v6  ;;  %v9157_v40 = vpop.f32.mrf.mxu3  ;;  %6495 = vrcp.f32 %v9143_v34  ;;  %v6255_v62 = vmul.f32 -1.442695, %v1799_v41  ;;  %v3264_v45 = vsub.f32 1.0, %v3263_v38  ;;  %v13491_v49 = vld [vmem:[#allocation15_spill] sm:$0xff]  ;;  %v13493_v38 = vld [vmem:[#allocation54_spill] sm:$0xff] }
 0x30d   : > { %4411 = vperm.xlu2 %6405, %v4253_v24   ;;  %v9155_v51 = vpop.f32.mrf.mxu2  ;;  %13484 = vst [vmem:[#allocation115_spill] sm:$0xff] %v9157_v40  ;;  %v1909_v24 = vadd.f32 %v13485_v39, %v9020_v11  ;;  %v6486_v52 = vpop.eup %6485  ;;  %v6253_v39 = vmul.f32 -1.442695, %v1796_v54  ;;  %6497 = vrcp.f32 %v9159_v43  ;;  %v13492_v40 = vld [vmem:[#allocation16_spill] sm:$0xff] }
 0x30e   : > { %13483 = vst [vmem:[#allocation114_spill] sm:$0xff] %v9155_v51  ;;  %v9168_v18 = vpop.eup %6487  ;;  %v9176_v10 = vadd.f32 1.0, %v6486_v52  ;;  %6499 = vrcp.f32 %v9163_v19 }
 0x30f   : > { %v6490_v50 = vpop.eup %6489  ;;  %v2022_v61 = vadd.f32 %v13489_v46, %v1909_v24  ;;  %6501 = vpow2.f32 %v6250_v5  ;;  %v3278_v52 = vmul.f32 %v9168_v18, %v9125_v22  ;;  %v13494_v5 = vld [vmem:[#allocation55_spill] sm:$0xff]  ;;  %vm3283_vm6 = vweird.f32 %v9168_v18 }
 0x310   : > { %v9184_v4 = vadd.f32 1.0, %v6490_v50  ;;  %6503 = vpow2.f32 %v6253_v39  ;;  %v1689_v46 = vadd.f32 %v13494_v5, %v9005_v53  ;;  %vm9300_vm7 = vmor %vm3282_vm5, %vm3283_vm6  ;;  %vm3387_vm0 = vweird.f32 %v9176_v10 }
 0x311   : > { %6505 = vrcp.f32 %v9176_v10  ;;  %v6254_v41 = vmul.f32 -1.442695, %v2022_v61  ;;  %v3279_v61 = vsub.f32 1.0, %v3278_v52 }
 0x312   : > { %6507 = vpow2.f32 %v6255_v62  ;;  %v1802_v1 = vadd.f32 %v13500_v14, %v1689_v46 }
 0x313   : > { %2130 = vmatmul.f32.gmra.mxu0 %v13481_v16  ;;  %2243 = vmatmul.f32.gmra.mxu1 %v13482_v44  ;;  %6509 = vrcp.f32 %v9184_v4  ;;  %v3280_v46 = vmul.f32 %v9168_v18, %v3279_v61 }
 0x314   : > { %2356 = vmatmul.f32.gmra.mxu2 %v13481_v16  ;;  %2469 = vmatmul.f32.gmra.mxu3 %v13482_v44  ;;  %v6492_v44 = vpop.eup %6491  ;;  %v13490_v16 = vld [vmem:[#allocation53_spill] sm:$0xff]  ;;  %v6257_v28 = vmul.f32 -1.442695, %v1802_v1 }
 0x315   : > { %v1912_v6 = vadd.f32 %v13490_v16, %v9020_v11  ;;  %v6494_v54 = vpop.eup %6493  ;;  %v9188_v24 = vadd.f32 1.0, %v6492_v44  ;;  %v9201_v44 = vpop.f32.mrf.mxu3  ;;  %v3281_v1 = vadd.f32 %v9168_v18, %v3280_v46 }
 0x316   : > { %v9192_v16 = vpop.eup %6495  ;;  %13496 = vst [vmem:[#allocation53_spill] sm:$0xff] %v9201_v44  ;;  %v9206_v58 = vadd.f32 1.0, %v6494_v54  ;;  %v3273_v44 = vand.u32 2147483648, %v9100_v37  ;;  %v9219_v54 = vpop.f32.mrf.mxu1 }
 0x317   : > { %v2025_v50 = vadd.f32 %v13493_v38, %v1912_v6  ;;  %v9203_v39 = vpop.eup %6497  ;;  %6511 = vrcp.f32 %v9188_v24  ;;  %v3271_v6 = vand.u32 2147483647, %v9100_v37  ;;  %v3293_v62 = vmul.f32 %v9192_v16, %v9143_v34  ;;  %v13497_v38 = vld [vmem:[#allocation57_spill] sm:$0xff]  ;;  %13499 = vst [vmem:[#allocation55_spill] sm:$0xff] %v9219_v54  ;;  %v1514_v54 = vld [vmem:[%s13165_s4 + $0x230] sm:$0xff] }
 0x318   : > { %v9208_v51 = vpop.eup %6499  ;;  %6513 = vpow2.f32 %v6254_v41  ;;  %v1915_v5 = vadd.f32 %v13497_v38, %v9020_v11  ;;  %v13502_v41 = vld [vmem:[#allocation18_spill] sm:$0xff]  ;;  %v1610_v37 = vld [vmem:[%s13165_s4 + $0x530] sm:$0xff]  ;;  %v3274_v61 = vor.u32 1.1754944e-38, %v3273_v44  ;;  %2558 = vmatpush.msra.mxu0 %v1514_v54  ;;  %v3286_v44 = vand.u32 2147483647, %v9125_v22 }
 0x319   : > { %v6256_v59 = vmul.f32 -1.442695, %v2025_v50  ;;  %6515 = vrcp.f32 %v9206_v58  ;;  %vm9234_vm3 = vcmp.eq.f32.partialorder %v3271_v6, 8.507059e+37  ;;  %v3294_v38 = vsub.f32 1.0, %v3293_v62  ;;  %2671 = vmatpush.msra.mxu1 %v1610_v37 }
 0x31a   : > { %v3308_v62 = vmul.f32 %v9203_v39, %v9159_v43  ;;  %v3288_v54 = vand.u32 2147483648, %v9125_v22  ;;  %vm9304_vm8 = vcmp.eq.f32.partialorder %v3286_v44, 8.507059e+37  ;;  %v1605_v22 = vld [vmem:[%s13165_s4 + $0x508] sm:$0xff]  ;;  %vm3298_vm9 = vweird.f32 %v9192_v16 }
 0x31b   : > { %2133 = vmatmul.f32.gmra.mxu0 %v13491_v49  ;;  %2246 = vmatmul.f32.gmra.mxu1 %v13492_v40  ;;  %6517 = vpow2.f32 %v6256_v59  ;;  %v3303_v44 = vand.u32 2147483648, %v9143_v34  ;;  %vm9342_vm11 = vmor %vm3297_vm10, %vm3298_vm9  ;;  %vm3313_vm14 = vweird.f32 %v9203_v39  ;;  %vm3402_vm6 = vweird.f32 %v9188_v24 }
 0x31c   : > { %2359 = vmatmul.f32.gmra.mxu2 %v13491_v49  ;;  %2472 = vmatmul.f32.gmra.mxu3 %v13492_v40  ;;  %v3265_v40 = vmul.f32 %v9136_v17, %v3264_v45  ;;  %v9199_v49 = vpop.f32.mrf.mxu2  ;;  %v6502_v45 = vpop.eup %6501  ;;  %v3309_v37 = vsub.f32 1.0, %v3308_v62  ;;  %v1509_v62 = vld [vmem:[%s13165_s4 + $0x208] sm:$0xff]  ;;  %vm9396_vm2 = vmor %vm3312_vm13, %vm3313_vm14  ;;  %vm3357_vm9 = vweird.f32 %v9206_v58 }
 0x31d   : > { %13495 = vst [vmem:[#allocation51_spill] sm:$0xff] %v9199_v49  ;;  %v9217_v49 = vpop.f32.mrf.mxu0  ;;  %v6504_v13 = vpop.eup %6503  ;;  %v9232_v14 = vadd.f32 1.0, %v6502_v45  ;;  %v13505_v45 = vld [vmem:[#allocation58_spill] sm:$0xff]  ;;  %2785 = vmatpush.msra.mxu2 %v1509_v62  ;;  %2898 = vmatpush.msra.mxu3 %v1605_v22 }
 0x31e   : > { %13498 = vst [vmem:[#allocation54_spill] sm:$0xff] %v9217_v49  ;;  %v3266_v52 = vadd.f32 %v9136_v17, %v3265_v40  ;;  %v9226_v33 = vpop.eup %6505  ;;  %v2028_v6 = vadd.f32 %v13505_v45, %v1915_v5  ;;  %v3295_v49 = vmul.f32 %v9192_v16, %v3294_v38  ;;  %v3289_v40 = vor.u32 1.1754944e-38, %v3288_v54 }
 0x31f   : > { %v6508_v50 = vpop.eup %6507  ;;  %v3383_v5 = vmul.f32 %v9226_v33, %v9176_v10  ;;  %6519 = vrcp.f32 %v9232_v14  ;;  %v3310_v54 = vmul.f32 %v9203_v39, %v3309_v37  ;;  %vm3388_vm1 = vweird.f32 %v9226_v33 }
 0x320   : > { %v9265_v27 = vadd.f32 1.0, %v6508_v50  ;;  %v6258_v50 = vmul.f32 -1.442695, %v2028_v6 }
 0x323   : > { %2136 = vmatmul.f32.gmra.mxu0 %v13501_v25  ;;  %2249 = vmatmul.f32.gmra.mxu1 %v13502_v41 }
 0x324   : > { %2362 = vmatmul.f32.gmra.mxu2 %v13501_v25  ;;  %2475 = vmatmul.f32.gmra.mxu3 %v13502_v41  ;;  %v9245_v25 = vpop.eup %6509  ;;  %v9247_v41 = vadd.f32 1.0, %v6504_v13  ;;  %v3270_v13 = vsel %vm9252_vm4, %v9136_v17, %v3266_v52  ;;  %v9274_v59 = vpop.f32.mrf.mxu2 }
 0x325   : > { %v9258_v12 = vpop.eup %6511  ;;  %13508 = vst [vmem:[#allocation57_spill] sm:$0xff] %v9274_v59  ;;  %v9276_v17 = vpop.f32.mrf.mxu3  ;;  %v9291_v38 = vsel %vm9234_vm3, %v3274_v61, %v3270_v13  ;;  %v13512_v59 = vld [vmem:[#allocation19_spill] sm:$0xff]  ;;  %v3301_v61 = vand.u32 2147483647, %v9143_v34  ;;  %vm9410_vm3 = vmor %vm3387_vm0, %vm3388_vm1 }
 0x326   : > { %v6514_v45 = vpop.eup %6513  ;;  %13509 = vst [vmem:[#allocation56_spill] sm:$0xff] %v9276_v17  ;;  %6521 = vrcp.f32 %v9247_v41  ;;  %v3398_v48 = vmul.f32 %v9258_v12, %v9188_v24  ;;  %v3384_v17 = vsub.f32 1.0, %v3383_v5  ;;  %v3285_v5 = vsel %vm9300_vm7, %v9168_v18, %v3281_v1 }
 0x327   : > { %v9278_v52 = vpop.eup %6515  ;;  %v9287_v31 = vadd.f32 1.0, %v6514_v45  ;;  %6523 = vpow2.f32 %v6257_v28  ;;  %v3296_v45 = vadd.f32 %v9192_v16, %v3295_v49  ;;  %vm9346_vm12 = vcmp.eq.f32.partialorder %v3301_v61, 8.507059e+37 }
 0x328   : > { %6525 = vrcp.f32 %v9265_v27  ;;  %v6518_v13 = vpop.eup %6517  ;;  %v3385_v18 = vmul.f32 %v9226_v33, %v3384_v17  ;;  %v3353_v1 = vmul.f32 %v9278_v52, %v9206_v58  ;;  %v3304_v28 = vor.u32 1.1754944e-38, %v3303_v44 }
 0x329   : > { %6527 = vpow2.f32 %v6258_v50  ;;  %v9334_v6 = vadd.f32 1.0, %v6518_v13  ;;  %v9338_v50 = vsel %vm9304_vm8, %v3289_v40, %v3285_v5  ;;  %v3300_v37 = vsel %vm9342_vm11, %v9192_v16, %v3296_v45 }
 0x32a   : > { %v9283_v35 = vpop.f32.mrf.mxu0  ;;  %v9285_v46 = vpop.f32.mrf.mxu1  ;;  %6529 = vrcp.f32 %v9287_v31  ;;  %v3318_v40 = vand.u32 2147483648, %v9159_v43  ;;  %v3311_v13 = vadd.f32 %v9203_v39, %v3310_v54  ;;  %v3386_v45 = vadd.f32 %v9226_v33, %v3385_v18 }
 0x32b   : > { %13510 = vst [vmem:[#allocation58_spill] sm:$0xff] %v9283_v35  ;;  %2139 = vmatmul.f32.gmra.mxu0 %v13512_v59  ;;  %2252 = vmatmul.f32.gmra.mxu1 %v13513_v7  ;;  %v3354_v44 = vsub.f32 1.0, %v3353_v1  ;;  %6531 = vrcp.f32 %v9334_v6  ;;  %v3391_v35 = vand.u32 2147483647, %v9176_v10  ;;  %v9390_v29 = vsel %vm9346_vm12, %v3304_v28, %v3300_v37 }
 0x32c   : > { %13511 = vst [vmem:[#allocation116_spill] sm:$0xff] %v9285_v46  ;;  %2365 = vmatmul.f32.gmra.mxu2 %v13512_v59  ;;  %2478 = vmatmul.f32.gmra.mxu3 %v13513_v7  ;;  %v3316_v7 = vand.u32 2147483647, %v9159_v43  ;;  %v3399_v59 = vsub.f32 1.0, %v3398_v48  ;;  %v9325_v46 = vpop.eup %6519  ;;  %v3315_v34 = vsel %vm9396_vm2, %v9203_v39, %v3311_v13  ;;  %vm3403_vm4 = vweird.f32 %v9258_v12  ;;  %v1604_v39 = vld [vmem:[%s13165_s4 + $0x500] sm:$0xff] }
 0x32d   : > { %v9332_v49 = vpop.eup %6521  ;;  %v3368_v48 = vmul.f32 %v9325_v46, %v9232_v14  ;;  %v3408_v28 = vand.u32 2147483648, %v9188_v24  ;;  %2672 = vmatpush.msra.mxu1 %v1604_v39  ;;  %vm3392_vm5 = vcmp.eq.f32.partialorder %v3391_v35, 8.507059e+37  ;;  %vm9437_vm7 = vmor %vm3402_vm6, %vm3403_vm4  ;;  %vm3358_vm10 = vweird.f32 %v9278_v52 }
 0x32e   : > { %v6524_v17 = vpop.eup %6523  ;;  %vm9363_vm15 = vcmp.eq.f32.partialorder %v3316_v7, 8.507059e+37  ;;  %v3400_v16 = vmul.f32 %v9258_v12, %v3399_v59  ;;  %v3393_v59 = vand.u32 2147483648, %v9176_v10  ;;  %v3390_v10 = vsel %vm9410_vm3, %v9226_v33, %v3386_v45  ;;  %vm9484_vm13 = vmor %vm3357_vm9, %vm3358_vm10 }
 0x32f   : > { %v9360_v61 = vpop.eup %6525  ;;  %v9376_v54 = vadd.f32 1.0, %v6524_v17  ;;  %v3369_v17 = vsub.f32 1.0, %v3368_v48  ;;  %v3361_v5 = vand.u32 2147483647, %v9206_v58  ;;  %v3363_v43 = vand.u32 2147483648, %v9206_v58 }
 0x330   : > { %v6528_v7 = vpop.eup %6527  ;;  %v3401_v37 = vadd.f32 %v9258_v12, %v3400_v16  ;;  %v3355_v16 = vmul.f32 %v9278_v52, %v3354_v44  ;;  %vm3372_vm11 = vweird.f32 %v9232_v14  ;;  %vm3373_vm12 = vweird.f32 %v9325_v46 }
 0x331   : > { %v9356_v62 = vpop.f32.mrf.mxu2  ;;  %v9358_v22 = vpop.f32.mrf.mxu3  ;;  %v9423_v13 = vadd.f32 1.0, %v6528_v7  ;;  %6533 = vrcp.f32 %v9376_v54  ;;  %v3370_v48 = vmul.f32 %v9325_v46, %v3369_v17  ;;  %v3376_v39 = vand.u32 2147483647, %v9232_v14  ;;  %vm9530_vm2 = vmor %vm3372_vm11, %vm3373_vm12 }
 0x332   : > { %13522 = vst [vmem:[#allocation117_spill] sm:$0xff] %v9356_v62  ;;  %v13527_v62 = vld [vmem:[#allocation22_spill] sm:$0xff]  ;;  %v9386_v42 = vpop.eup %6529  ;;  %v3356_v44 = vadd.f32 %v9278_v52, %v3355_v16  ;;  %vm9488_vm14 = vcmp.eq.f32.partialorder %v3361_v5, 8.507059e+37  ;;  %v3413_v5 = vmul.f32 %v9332_v49, %v9247_v41  ;;  %vm3448_vm1 = vweird.f32 %v9360_v61 }
 0x333   : > { %13523 = vst [vmem:[#allocation118_spill] sm:$0xff] %v9358_v22  ;;  %v13526_v22 = vld [vmem:[#allocation21_spill] sm:$0xff]  ;;  %2255 = vmatmul.f32.gmra.mxu1 %v13527_v62  ;;  %v9446_v45 = vpop.eup %6531  ;;  %6535 = vrcp.f32 %v9423_v13  ;;  %vm9516_vm0 = vcmp.eq.f32.partialorder %v3376_v39, 8.507059e+37  ;;  %vm3462_vm4 = vweird.f32 %v9334_v6  ;;  %vm3418_vm9 = vweird.f32 %v9332_v49 }
 0x334   : > { %2142 = vmatmul.f32.gmra.mxu0 %v13526_v22  ;;  %2368 = vmatmul.f32.gmra.mxu2 %v13526_v22  ;;  %v3319_v22 = vor.u32 1.1754944e-38, %v3318_v40  ;;  %v1508_v40 = vld [vmem:[%s13165_s4 + $0x200] sm:$0xff]  ;;  %v3458_v16 = vmul.f32 %v9446_v45, %v9334_v6  ;;  %v3360_v58 = vsel %vm9484_vm13, %v9278_v52, %v3356_v44  ;;  %v1599_v52 = vld [vmem:[%s13165_s4 + $0x4d8] sm:$0xff]  ;;  %v3414_v33 = vsub.f32 1.0, %v3413_v5 }
 0x335   : > { %2481 = vmatmul.f32.gmra.mxu3 %v13527_v62  ;;  %v3406_v62 = vand.u32 2147483647, %v9188_v24  ;;  %2559 = vmatpush.msra.mxu0 %v1508_v40  ;;  %vm3463_vm6 = vweird.f32 %v9446_v45  ;;  %v13559_v39 = vld [vmem:[#allocation61_spill] sm:$0xff]  ;;  %vm3432_vm10 = vweird.f32 %v9287_v31  ;;  %vm3433_vm12 = vweird.f32 %v9386_v42 }
 0x336   : > { %v9433_v47 = vsel %vm9363_vm15, %v3319_v22, %v3315_v34  ;;  %v3405_v22 = vsel %vm9437_vm7, %v9258_v12, %v3401_v37  ;;  %vm3447_vm15 = vweird.f32 %v9265_v27  ;;  %v3459_v7 = vsub.f32 1.0, %v3458_v16  ;;  %2899 = vmatpush.msra.mxu3 %v1599_v52  ;;  %vm9618_vm13 = vmor %vm3462_vm4, %vm3463_vm6 }
 0x337   : > { %vm9441_vm8 = vcmp.eq.f32.partialorder %v3406_v62, 8.507059e+37  ;;  %v3409_v62 = vor.u32 1.1754944e-38, %v3408_v28  ;;  %v9478_v17 = vpop.eup %6533  ;;  %v3466_v16 = vand.u32 2147483647, %v9334_v6  ;;  %vm3343_vm6 = vweird.f32 %v9245_v25 }
 0x338   : > { %v9382_v18 = vpop.f32.mrf.mxu0  ;;  %v9384_v1 = vpop.f32.mrf.mxu1  ;;  %v3460_v9 = vmul.f32 %v9446_v45, %v3459_v7 }
 0x339   : > { %13528 = vst [vmem:[#allocation119_spill] sm:$0xff] %v9382_v18  ;;  %v3394_v18 = vor.u32 1.1754944e-38, %v3393_v59  ;;  %v13538_v59 = vld [vmem:[#allocation23_spill] sm:$0xff]  ;;  %v9472_v40 = vsel %vm9441_vm8, %v3409_v62, %v3405_v22  ;;  %v3378_v22 = vand.u32 2147483648, %v9232_v14  ;;  %v9514_v44 = vpop.eup %6535  ;;  %v3468_v14 = vand.u32 2147483648, %v9334_v6 }
 0x33a   : > { %13529 = vst [vmem:[#allocation120_spill] sm:$0xff] %v9384_v1  ;;  %v3443_v1 = vmul.f32 %v9360_v61, %v9265_v27  ;;  %vm9579_vm7 = vcmp.eq.f32.partialorder %v3466_v16, 8.507059e+37  ;;  %vm3417_vm8 = vweird.f32 %v9247_v41  ;;  %v1502_v16 = vld [vmem:[%s13165_s4 + $0x1d0] sm:$0xff] }
 0x33b   : > { %v9448_v24 = vsel %vm3392_vm5, %v3394_v18, %v3390_v10  ;;  %vm9551_vm5 = vmor %vm3447_vm15, %vm3448_vm1  ;;  %v3469_v7 = vor.u32 1.1754944e-38, %v3468_v14  ;;  %2560 = vmatpush.msra.mxu0 %v1502_v16  ;;  %vm3328_vm15 = vweird.f32 %v9208_v51 }
 0x33c   : > { %v3444_v35 = vsub.f32 1.0, %v3443_v1  ;;  %2145 = vmatmul.f32.gmra.mxu0 %v13538_v59  ;;  %v13539_v1 = vld [vmem:[#allocation24_spill] sm:$0xff]  ;;  %2371 = vmatmul.f32.gmra.mxu2 %v13538_v59  ;;  %v3371_v59 = vadd.f32 %v9325_v46, %v3370_v48 }
 0x33d   : > { %2258 = vmatmul.f32.gmra.mxu1 %v13539_v1  ;;  %2484 = vmatmul.f32.gmra.mxu3 %v13539_v1 }
 0x33e   : > { %v3445_v10 = vmul.f32 %v9360_v61, %v3444_v35  ;;  %v3451_v35 = vand.u32 2147483647, %v9265_v27 }
 0x33f   : > { %v1968_v18 = vpop.f32.mrf.mxu2  ;;  %v2081_v34 = vpop.f32.mrf.mxu3 }
 0x340   : > { %v1969_v12 = vadd.f32 %v1968_v18, %v9020_v11  ;;  %v9466_v37 = vpop.f32.mrf.mxu0  ;;  %v9468_v28 = vpop.f32.mrf.mxu1  ;;  %v13547_v18 = vld [vmem:[#allocation59_spill] sm:$0xff]  ;;  %vm9534_vm3 = vcmp.eq.f32.partialorder %v3451_v35, 8.507059e+37 }
 0x341   : > { %13540 = vst [vmem:[#allocation121_spill] sm:$0xff] %v9466_v37  ;;  %v1692_v1 = vadd.f32 %v13547_v18, %v9005_v53  ;;  %v3453_v37 = vand.u32 2147483648, %v9265_v27 }
 0x342   : > { %13541 = vst [vmem:[#allocation122_spill] sm:$0xff] %v9468_v28  ;;  %v9494_v62 = vadd.f32 %v2081_v34, %v1969_v12  ;;  %v3364_v28 = vor.u32 1.1754944e-38, %v3363_v43  ;;  %v3428_v34 = vmul.f32 %v9386_v42, %v9287_v31  ;;  %v1503_v12 = vld [vmem:[%s13165_s4 + $0x1d8] sm:$0xff]  ;;  %v3446_v43 = vadd.f32 %v9360_v61, %v3445_v10 }
 0x343   : > { %2786 = vmatpush.msra.mxu2 %v1503_v12  ;;  %v13554_v12 = vld [vmem:[#allocation60_spill] sm:$0xff]  ;;  %v3461_v10 = vadd.f32 %v9446_v45, %v3460_v9 }
 0x344   : > { %13546 = vst [vmem:[#allocation123_spill] sm:$0xff] %v9494_v62  ;;  %v9524_v18 = vsel %vm9488_vm14, %v3364_v28, %v3360_v58  ;;  %v3379_v62 = vor.u32 1.1754944e-38, %v3378_v22  ;;  %v1805_v52 = vadd.f32 %v13554_v12, %v1692_v1  ;;  %v3375_v28 = vsel %vm9530_vm2, %v9325_v46, %v3371_v59  ;;  %v13555_v58 = vld [vmem:[#allocation2_spill] sm:$0xff]  ;;  %v13556_v22 = vld [vmem:[#allocation25_spill] sm:$0xff]  ;;  %vm9658_vm2 = vmor %vm3432_vm10, %vm3433_vm12 }
 0x345   : > { %2148 = vmatmul.f32.gmra.mxu0 %v13555_v58  ;;  %2261 = vmatmul.f32.gmra.mxu1 %v13556_v22  ;;  %v3454_v46 = vor.u32 1.1754944e-38, %v3453_v37  ;;  %v3429_v59 = vsub.f32 1.0, %v3428_v34  ;;  %v1918_v12 = vadd.f32 %v13559_v39, %v9020_v11  ;;  %v3450_v27 = vsel %vm9551_vm5, %v9360_v61, %v3446_v43  ;;  %v13586_v43 = vld [vmem:[#allocation70_spill] sm:$0xff] }
 0x346   : > { %2374 = vmatmul.f32.gmra.mxu2 %v13555_v58  ;;  %2487 = vmatmul.f32.gmra.mxu3 %v13556_v22  ;;  %v3421_v37 = vand.u32 2147483647, %v9247_v41  ;;  %v9568_v34 = vsel %vm9516_vm0, %v3379_v62, %v3375_v28  ;;  %v3423_v58 = vand.u32 2147483648, %v9247_v41  ;;  %v6259_v61 = vmul.f32 -1.442695, %v1805_v52  ;;  %v1598_v52 = vld [vmem:[%s13165_s4 + $0x4d0] sm:$0xff]  ;;  %vm9637_vm0 = vmor %vm3417_vm8, %vm3418_vm9 }
 0x347   : > { %v1971_v35 = vpop.f32.mrf.mxu2  ;;  %v2084_v32 = vpop.f32.mrf.mxu3  ;;  %v3415_v62 = vmul.f32 %v9332_v49, %v3414_v33  ;;  %v9587_v48 = vsel %vm9534_vm3, %v3454_v46, %v3450_v27  ;;  %v13565_v28 = vld [vmem:[#allocation62_spill] sm:$0xff]  ;;  %v3338_v1 = vmul.f32 %v9245_v25, %v9184_v4  ;;  %2673 = vmatpush.msra.mxu1 %v1598_v52  ;;  %vm3327_vm14 = vweird.f32 %v9163_v19  ;;  %v13573_v52 = vld [vmem:[#allocation65_spill] sm:$0xff]  ;;  %v13587_v33 = vld [vmem:[#allocation67_spill] sm:$0xff] }
 0x348   : > { %v1972_v5 = vadd.f32 %v1971_v35, %v9020_v11  ;;  %v3323_v35 = vmul.f32 %v9208_v51, %v9163_v19  ;;  %v9575_v39 = vpop.f32.mrf.mxu0  ;;  %v9577_v55 = vpop.f32.mrf.mxu1  ;;  %v2031_v14 = vadd.f32 %v13565_v28, %v1918_v12  ;;  %vm9600_vm11 = vcmp.eq.f32.partialorder %v3421_v37, 8.507059e+37  ;;  %v13568_v12 = vld [vmem:[#allocation63_spill] sm:$0xff]  ;;  %v13569_v37 = vld [vmem:[#allocation26_spill] sm:$0xff]  ;;  %vm9721_vm5 = vmor %vm3327_vm14, %vm3328_vm15 }
 0x349   : > { %13561 = vst [vmem:[#allocation60_spill] sm:$0xff] %v9575_v39  ;;  %v3424_v46 = vor.u32 1.1754944e-38, %v3423_v58  ;;  %6537 = vpow2.f32 %v6259_v61  ;;  %v1695_v28 = vadd.f32 %v13568_v12, %v9005_v53  ;;  %v3416_v9 = vadd.f32 %v9332_v49, %v3415_v62 }
 0x34a   : > { %v9573_v22 = vadd.f32 %v2084_v32, %v1972_v5  ;;  %13562 = vst [vmem:[#allocation61_spill] sm:$0xff] %v9577_v55  ;;  %v3430_v32 = vmul.f32 %v9386_v42, %v3429_v59  ;;  %v3436_v59 = vand.u32 2147483647, %v9287_v31  ;;  %v3438_v5 = vand.u32 2147483648, %v9287_v31  ;;  %v13570_v55 = vld [vmem:[#allocation27_spill] sm:$0xff] }
 0x34b   : > { %v3324_v27 = vsub.f32 1.0, %v3323_v35  ;;  %v6260_v62 = vmul.f32 -1.442695, %v2031_v14  ;;  %v1921_v6 = vadd.f32 %v13573_v52, %v9020_v11  ;;  %v3465_v12 = vsel %vm9618_vm13, %v9446_v45, %v3461_v10  ;;  %v13579_v45 = vld [vmem:[#allocation64_spill] sm:$0xff] }
 0x34c   : > { %13560 = vst [vmem:[#allocation59_spill] sm:$0xff] %v9573_v22  ;;  %v3431_v35 = vadd.f32 %v9386_v42, %v3430_v32  ;;  %v3339_v22 = vsub.f32 1.0, %v3338_v1  ;;  %vm9641_vm1 = vcmp.eq.f32.partialorder %v3436_v59, 8.507059e+37  ;;  %v3439_v14 = vor.u32 1.1754944e-38, %v3438_v5  ;;  %v13590_v59 = vld [vmem:[#allocation5_spill] sm:$0xff] }
 0x34d   : > { %2151 = vmatmul.f32.gmra.mxu0 %v13569_v37  ;;  %2264 = vmatmul.f32.gmra.mxu1 %v13570_v55  ;;  %v3325_v52 = vmul.f32 %v9208_v51, %v3324_v27  ;;  %v1808_v10 = vadd.f32 %v13579_v45, %v1695_v28  ;;  %v1698_v1 = vadd.f32 %v8725_v26, %v9005_v53  ;;  %v3331_v5 = vand.u32 2147483647, %v9163_v19 }
 0x34e   : > { %2377 = vmatmul.f32.gmra.mxu2 %v13569_v37  ;;  %2490 = vmatmul.f32.gmra.mxu3 %v13570_v55  ;;  %v3420_v41 = vsel %vm9637_vm0, %v9332_v49, %v3416_v9  ;;  %v9665_v27 = vsel %vm9579_vm7, %v3469_v7, %v3465_v12  ;;  %v3435_v26 = vsel %vm9658_vm2, %v9386_v42, %v3431_v35  ;;  %v3333_v49 = vand.u32 2147483648, %v9163_v19  ;;  %v13585_v37 = vld [vmem:[#allocation66_spill] sm:$0xff] }
 0x34f   : > { %v1974_v16 = vpop.f32.mrf.mxu2  ;;  %v2087_v32 = vpop.f32.mrf.mxu3  ;;  %13582 = vst [vmem:[#allocation63_spill] sm:$0xff] %v9665_v27  ;;  %vm3342_vm3 = vweird.f32 %v9184_v4  ;;  %6539 = vpow2.f32 %v6260_v62  ;;  %v2034_v58 = vadd.f32 %v13585_v37, %v1921_v6  ;;  %v1924_v7 = vadd.f32 %v13586_v43, %v9020_v11  ;;  %v1497_v62 = vld [vmem:[%s13165_s4 + $0x1a8] sm:$0xff]  ;;  %v13591_v37 = vld [vmem:[#allocation6_spill] sm:$0xff] }
 0x350   : > { %v1975_v61 = vadd.f32 %v1974_v16, %v9020_v11  ;;  %v9672_v28 = vpop.f32.mrf.mxu0  ;;  %v9674_v31 = vpop.f32.mrf.mxu1  ;;  %v9682_v42 = vsel %vm9600_vm11, %v3424_v46, %v3420_v41  ;;  %v9685_v35 = vadd.f32 %v9208_v51, %v3325_v52  ;;  %v3346_v12 = vand.u32 2147483647, %v9184_v4  ;;  %2787 = vmatpush.msra.mxu2 %v1497_v62  ;;  %vm9746_vm8 = vmor %vm3342_vm3, %vm3343_vm6  ;;  %v13638_v27 = vld [vmem:[#allocation34_spill] sm:$0xff] }
 0x351   : > { %13583 = vst [vmem:[#allocation65_spill] sm:$0xff] %v9672_v28  ;;  %v6538_v9 = vpop.eup %6537  ;;  %v6261_v6 = vmul.f32 -1.442695, %v1808_v10  ;;  %v1811_v46 = vadd.f32 %v13587_v33, %v1698_v1  ;;  %v1701_v52 = vadd.f32 %v8754_v8, %v9005_v53  ;;  %v9701_v45 = vsel %vm9641_vm1, %v3439_v14, %v3435_v26  ;;  %v13592_v14 = vld [vmem:[#allocation71_spill] sm:$0xff]  ;;  %v1496_v26 = vld [vmem:[%s13165_s4 + $0x1a0] sm:$0xff] }
 0x352   : > { %v9646_v55 = vadd.f32 %v2087_v32, %v1975_v61  ;;  %13584 = vst [vmem:[#allocation64_spill] sm:$0xff] %v9674_v31  ;;  %v3340_v61 = vmul.f32 %v9245_v25, %v3339_v22  ;;  %v3473_v32 = vmul.f32 %v9478_v17, %v9376_v54  ;;  %v1593_v22 = vld [vmem:[%s13165_s4 + $0x4a8] sm:$0xff]  ;;  %vm9703_vm4 = vcmp.eq.f32.partialorder %v3331_v5, 8.507059e+37  ;;  %2561 = vmatpush.msra.mxu0 %v1496_v26  ;;  %v1484_v28 = vld [vmem:[%s13165_s4 + $0x140] sm:$0xff] }
 0x353   : > { %v9709_v43 = vadd.f32 1.0, %v6538_v9  ;;  %v1927_v10 = vadd.f32 %v8771_v57, %v9020_v11  ;;  %v3334_v1 = vor.u32 1.1754944e-38, %v3333_v49  ;;  %v3348_v8 = vand.u32 2147483648, %v9184_v4  ;;  %2900 = vmatpush.msra.mxu3 %v1593_v22 }
 0x354   : > { %13578 = vst [vmem:[#allocation62_spill] sm:$0xff] %v9646_v55  ;;  %v6262_v16 = vmul.f32 -1.442695, %v2034_v58  ;;  %v2037_v5 = vadd.f32 %v13592_v14, %v1924_v7  ;;  %v3341_v57 = vadd.f32 %v9245_v25, %v3340_v61  ;;  %v3330_v49 = vsel %vm9721_vm5, %v9208_v51, %v9685_v35  ;;  %v13597_v51 = vld [vmem:[#allocation72_spill] sm:$0xff] }
 0x355   : > { %2154 = vmatmul.f32.gmra.mxu0 %v13590_v59  ;;  %2267 = vmatmul.f32.gmra.mxu1 %v13591_v37  ;;  %vm9731_vm7 = vcmp.eq.f32.partialorder %v3346_v12, 8.507059e+37  ;;  %v3474_v19 = vsub.f32 1.0, %v3473_v32  ;;  %v3488_v58 = vmul.f32 %v9514_v44, %v9423_v13  ;;  %v6540_v7 = vpop.eup %6539  ;;  %6541 = vpow2.f32 %v6261_v6 }
 0x356   : > { %2380 = vmatmul.f32.gmra.mxu2 %v13590_v59  ;;  %2493 = vmatmul.f32.gmra.mxu3 %v13591_v37  ;;  %v6263_v61 = vmul.f32 -1.442695, %v1811_v46  ;;  %v1814_v33 = vadd.f32 %v8757_v20, %v1701_v52  ;;  %v1704_v62 = vadd.f32 %v8778_v3, %v9005_v53  ;;  %6543 = vrcp.f32 %v9709_v43  ;;  %v13602_v52 = vld [vmem:[#allocation76_spill] sm:$0xff] }
 0x357   : > { %v1977_v22 = vpop.f32.mrf.mxu2  ;;  %v2090_v14 = vpop.f32.mrf.mxu3  ;;  %v2040_v35 = vadd.f32 %v13597_v51, %v1927_v10  ;;  %v3349_v32 = vor.u32 1.1754944e-38, %v3348_v8  ;;  %6545 = vpow2.f32 %v6262_v16  ;;  %v6264_v46 = vmul.f32 -1.442695, %v2037_v5  ;;  %v1592_v8 = vld [vmem:[%s13165_s4 + $0x4a0] sm:$0xff]  ;;  %v13606_v59 = vld [vmem:[#allocation28_spill] sm:$0xff] }
 0x358   : > { %v1978_v20 = vadd.f32 %v1977_v22, %v9020_v11  ;;  %v9751_v6 = vpop.f32.mrf.mxu0  ;;  %v9753_v3 = vpop.f32.mrf.mxu1  ;;  %v1930_v10 = vadd.f32 %v13602_v52, %v9020_v11  ;;  %v3345_v4 = vsel %vm9746_vm8, %v9245_v25, %v3341_v57  ;;  %v9766_v22 = vadd.f32 1.0, %v6540_v7  ;;  %2674 = vmatpush.msra.mxu1 %v1592_v8  ;;  %v13604_v25 = vld [vmem:[#allocation75_spill] sm:$0xff]  ;;  %v13605_v52 = vld [vmem:[#allocation80_spill] sm:$0xff]  ;;  %v1491_v8 = vld [vmem:[%s13165_s4 + $0x178] sm:$0xff] }
 0x359   : > { %13600 = vst [vmem:[#allocation66_spill] sm:$0xff] %v9751_v6  ;;  %v3475_v16 = vmul.f32 %v9478_v17, %v3474_v19  ;;  %v3489_v5 = vsub.f32 1.0, %v3488_v58  ;;  %6547 = vpow2.f32 %v6263_v61  ;;  %v6265_v12 = vmul.f32 -1.442695, %v1814_v33  ;;  %v13608_v33 = vld [vmem:[#allocation77_spill] sm:$0xff]  ;;  %2788 = vmatpush.msra.mxu2 %v1491_v8 }
 0x35a   : > { %13601 = vst [vmem:[#allocation70_spill] sm:$0xff] %v9753_v3  ;;  %v9769_v51 = vadd.f32 %v2090_v14, %v1978_v20  ;;  %v1817_v57 = vadd.f32 %v13604_v25, %v1704_v62  ;;  %v1707_v37 = vadd.f32 %v13605_v52, %v9005_v53  ;;  %v13607_v3 = vld [vmem:[#allocation29_spill] sm:$0xff]  ;;  %v6266_v7 = vmul.f32 -1.442695, %v2040_v35 }
 0x35b   : > { %v9778_v19 = vsel %vm9703_vm4, %v3334_v1, %v3330_v49  ;;  %vm3477_vm9 = vweird.f32 %v9376_v54  ;;  %v3481_v58 = vand.u32 2147483647, %v9376_v54  ;;  %v6542_v61 = vpop.eup %6541  ;;  %6549 = vpow2.f32 %v6264_v46 }
 0x35c   : > { %13603 = vst [vmem:[#allocation67_spill] sm:$0xff] %v9769_v51  ;;  %v2043_v62 = vadd.f32 %v13608_v33, %v1930_v10  ;;  %v9787_v14 = vsel %vm9731_vm7, %v3349_v32, %v3345_v4  ;;  %v3483_v41 = vand.u32 2147483648, %v9376_v54  ;;  %v9790_v1 = vpop.eup %6543  ;;  %6551 = vrcp.f32 %v9766_v22  ;;  %v13609_v10 = vld [vmem:[#allocation81_spill] sm:$0xff]  ;;  %v13616_v51 = vld [vmem:[#allocation31_spill] sm:$0xff] }
 0x35d   : > { %2157 = vmatmul.f32.gmra.mxu0 %v13606_v59  ;;  %2270 = vmatmul.f32.gmra.mxu1 %v13607_v3  ;;  %v3476_v49 = vadd.f32 %v9478_v17, %v3475_v16  ;;  %vm3478_vm10 = vweird.f32 %v9478_v17  ;;  %v3490_v35 = vmul.f32 %v9514_v44, %v3489_v5  ;;  %v6546_v20 = vpop.eup %6545  ;;  %6553 = vpow2.f32 %v6265_v12  ;;  %v1587_v16 = vld [vmem:[%s13165_s4 + $0x478] sm:$0xff] }
 0x35e   : > { %2383 = vmatmul.f32.gmra.mxu2 %v13606_v59  ;;  %2496 = vmatmul.f32.gmra.mxu3 %v13607_v3  ;;  %v6267_v46 = vmul.f32 -1.442695, %v1817_v57  ;;  %v1820_v26 = vadd.f32 %v13609_v10, %v1707_v37  ;;  %v1933_v9 = vadd.f32 %v8856_v0, %v9020_v11  ;;  %v9805_v25 = vadd.f32 1.0, %v6542_v61  ;;  %vm9819_vm11 = vmor %vm3477_vm9, %vm3478_vm10  ;;  %v1490_v10 = vld [vmem:[%s13165_s4 + $0x170] sm:$0xff] }
 0x35f   : > { %v1980_v32 = vpop.f32.mrf.mxu2  ;;  %v2093_v4 = vpop.f32.mrf.mxu3  ;;  %6555 = vpow2.f32 %v6266_v7  ;;  %v3496_v5 = vand.u32 2147483647, %v9423_v13  ;;  %2901 = vmatpush.msra.mxu3 %v1587_v16  ;;  %v6268_v52 = vmul.f32 -1.442695, %v2043_v62  ;;  %v3503_v33 = vmul.f32 %v9790_v1, %v9709_v43  ;;  %v1586_v62 = vld [vmem:[%s13165_s4 + $0x470] sm:$0xff]  ;;  %2562 = vmatpush.msra.mxu0 %v1490_v10 }
 0x360   : > { %v1981_v37 = vadd.f32 %v1980_v32, %v9020_v11  ;;  %v9809_v12 = vpop.f32.mrf.mxu0  ;;  %v9811_v0 = vpop.f32.mrf.mxu1  ;;  %vm3493_vm12 = vweird.f32 %v9514_v44  ;;  %v3498_v61 = vand.u32 2147483648, %v9423_v13  ;;  %v9831_v32 = vadd.f32 1.0, %v6546_v20  ;;  %2675 = vmatpush.msra.mxu1 %v1586_v62  ;;  %v13615_v20 = vld [vmem:[#allocation30_spill] sm:$0xff]  ;;  %v1485_v62 = vld [vmem:[%s13165_s4 + $0x148] sm:$0xff] }
 0x361   : > { %13610 = vst [vmem:[#allocation71_spill] sm:$0xff] %v9809_v12  ;;  %v6548_v57 = vpop.eup %6547  ;;  %v3480_v54 = vsel %vm9819_vm11, %v9478_v17, %v3476_v49  ;;  %v3491_v8 = vadd.f32 %v9514_v44, %v3490_v35  ;;  %6557 = vpow2.f32 %v6267_v46  ;;  %v6269_v59 = vmul.f32 -1.442695, %v1820_v26  ;;  %2789 = vmatpush.msra.mxu2 %v1485_v62  ;;  %v13631_v62 = vld [vmem:[#allocation84_spill] sm:$0xff]  ;;  %2563 = vmatpush.msra.mxu0 %v1484_v28 }
 0x362   : > { %13611 = vst [vmem:[#allocation72_spill] sm:$0xff] %v9811_v0  ;;  %v9837_v16 = vadd.f32 %v2093_v4, %v1981_v37  ;;  %v6550_v3 = vpop.eup %6549  ;;  %v2046_v0 = vadd.f32 %v8858_v21, %v1933_v9  ;;  %v1710_v12 = vadd.f32 %v8878_v2, %v9005_v53  ;;  %6559 = vrcp.f32 %v9805_v25 }
 0x363   : > { %v9844_v7 = vpop.eup %6551  ;;  %v9847_v17 = vadd.f32 1.0, %v6548_v57  ;;  %vm3482_vm13 = vcmp.eq.f32.partialorder %v3481_v58, 8.507059e+37  ;;  %v3484_v49 = vor.u32 1.1754944e-38, %v3483_v41  ;;  %6561 = vpow2.f32 %v6268_v52 }
 0x364   : > { %13614 = vst [vmem:[#allocation76_spill] sm:$0xff] %v9837_v16  ;;  %v6554_v21 = vpop.eup %6553  ;;  %v3504_v35 = vsub.f32 1.0, %v3503_v33  ;;  %vm3492_vm14 = vweird.f32 %v9423_v13  ;;  %vm9852_vm15 = vcmp.eq.f32.partialorder %v3496_v5, 8.507059e+37  ;;  %6563 = vrcp.f32 %v9831_v32 }
 0x365   : > { %2160 = vmatmul.f32.gmra.mxu0 %v13615_v20  ;;  %2273 = vmatmul.f32.gmra.mxu1 %v13616_v51  ;;  %v6556_v46 = vpop.eup %6555  ;;  %v9857_v26 = vadd.f32 1.0, %v6550_v3  ;;  %v9859_v58 = vsel %vm3482_vm13, %v3484_v49, %v3480_v54  ;;  %vm9863_vm0 = vmor %vm3492_vm14, %vm3493_vm12  ;;  %v3499_v9 = vor.u32 1.1754944e-38, %v3498_v61  ;;  %6565 = vpow2.f32 %v6269_v59  ;;  %v1581_v54 = vld [vmem:[%s13165_s4 + $0x448] sm:$0xff] }
 0x366   : > { %2386 = vmatmul.f32.gmra.mxu2 %v13615_v20  ;;  %2499 = vmatmul.f32.gmra.mxu3 %v13616_v51  ;;  %13619 = vst [vmem:[#allocation75_spill] sm:$0xff] %v9859_v58  ;;  %v6270_v13 = vmul.f32 -1.442695, %v2046_v0  ;;  %v1823_v4 = vadd.f32 %v8880_v30, %v1710_v12  ;;  %v3495_v5 = vsel %vm9863_vm0, %v9514_v44, %v3491_v8  ;;  %6567 = vrcp.f32 %v9847_v17  ;;  %v13627_v20 = vld [vmem:[#allocation32_spill] sm:$0xff] }
 0x367   : > { %v1983_v37 = vpop.f32.mrf.mxu2  ;;  %v2096_v3 = vpop.f32.mrf.mxu3  ;;  %v9872_v57 = vadd.f32 1.0, %v6554_v21  ;;  %v3518_v52 = vmul.f32 %v9844_v7, %v9766_v22  ;;  %v9881_v12 = vadd.f32 1.0, %v6556_v46  ;;  %v3505_v44 = vmul.f32 %v9790_v1, %v3504_v35  ;;  %2902 = vmatpush.msra.mxu3 %v1581_v54 }
 0x368   : > { %v1984_v33 = vadd.f32 %v1983_v37, %v9020_v11  ;;  %v9877_v61 = vpop.f32.mrf.mxu0  ;;  %v9879_v59 = vpop.f32.mrf.mxu1  ;;  %v3511_v0 = vand.u32 2147483647, %v9709_v43  ;;  %v3513_v10 = vand.u32 2147483648, %v9709_v43  ;;  %6569 = vrcp.f32 %v9857_v26  ;;  %v13626_v37 = vld [vmem:[#allocation87_spill] sm:$0xff] }
 0x369   : > { %13622 = vst [vmem:[#allocation80_spill] sm:$0xff] %v9877_v61  ;;  %v6558_v30 = vpop.eup %6557  ;;  %v1936_v49 = vadd.f32 %v8902_v15, %v9020_v11  ;;  %v9899_v21 = vsel %vm9852_vm15, %v3499_v9, %v3495_v5  ;;  %6571 = vpow2.f32 %v6270_v13  ;;  %v6271_v41 = vmul.f32 -1.442695, %v1823_v4 }
 0x36a   : > { %13623 = vst [vmem:[#allocation77_spill] sm:$0xff] %v9879_v59  ;;  %v9892_v8 = vpop.eup %6559  ;;  %v9901_v35 = vadd.f32 %v2096_v3, %v1984_v33  ;;  %v1713_v51 = vadd.f32 %v13626_v37, %v9005_v53  ;;  %vm3507_vm1 = vweird.f32 %v9709_v43  ;;  %v13628_v59 = vld [vmem:[#allocation33_spill] sm:$0xff]  ;;  %6573 = vrcp.f32 %v9872_v57  ;;  %v9931_v37 = vpop.permute.xlu1 %4256 }
 0x36b   : > { %13624 = vst [vmem:[#allocation81_spill] sm:$0xff] %v9899_v21  ;;  %v6562_v46 = vpop.eup %6561  ;;  %v9911_v2 = vadd.f32 1.0, %v6558_v30  ;;  %vm3508_vm2 = vweird.f32 %v9790_v1  ;;  %v3519_v9 = vsub.f32 1.0, %v3518_v52  ;;  %6575 = vrcp.f32 %v9881_v12 }
 0x36c   : > { %13625 = vst [vmem:[#allocation124_spill] sm:$0xff] %v9901_v35  ;;  %v9908_v15 = vpop.eup %6563  ;;  %v9918_v4 = vadd.f32 %v9790_v1, %v3505_v44  ;;  %vm9920_vm3 = vcmp.eq.f32.partialorder %v3511_v0, 8.507059e+37  ;;  %v3514_v3 = vor.u32 1.1754944e-38, %v3513_v10  ;;  %v3533_v33 = vmul.f32 %v9892_v8, %v9805_v25  ;;  %v13632_v0 = vld [vmem:[#allocation88_spill] sm:$0xff]  ;;  %vm9951_vm5 = vmor %vm3507_vm1, %vm3508_vm2 }
 0x36d   : > { %2163 = vmatmul.f32.gmra.mxu0 %v13627_v20  ;;  %2276 = vmatmul.f32.gmra.mxu1 %v13628_v59  ;;  %v6566_v13 = vpop.eup %6565  ;;  %v9928_v52 = vadd.f32 1.0, %v6562_v46  ;;  %v2049_v54 = vadd.f32 %v13631_v62, %v1936_v49  ;;  %vm3522_vm4 = vweird.f32 %v9766_v22  ;;  %v3526_v44 = vand.u32 2147483647, %v9766_v22  ;;  %v6985_v46 = vld [vmem:[%s13166_s5] sm:$0x3f] }
 0x36e   : > { %2389 = vmatmul.f32.gmra.mxu2 %v13627_v20  ;;  %2502 = vmatmul.f32.gmra.mxu3 %v13628_v59  ;;  %v9926_v30 = vpop.eup %6567  ;;  %6577 = vpow2.f32 %v6271_v41  ;;  %v1826_v59 = vadd.f32 %v13632_v0, %v1713_v51  ;;  %v3528_v10 = vand.u32 2147483648, %v9766_v22  ;;  %v9940_v61 = vperm.slane %v6985_v46, 2 }
 0x36f   : > { %v1986_v20 = vpop.f32.mrf.mxu2  ;;  %v2099_v35 = vpop.f32.mrf.mxu3  ;;  %6579 = vrcp.f32 %v9911_v2  ;;  %v9945_v62 = vadd.f32 1.0, %v6566_v13  ;;  %v3520_v41 = vmul.f32 %v9844_v7, %v3519_v9  ;;  %v3510_v13 = vsel %vm9951_vm5, %v9790_v1, %v9918_v4 }
 0x370   : > { %v9942_v49 = vpop.eup %6569  ;;  %v1987_v0 = vadd.f32 %v1986_v20, %v9020_v11  ;;  %v2119_v16 = vpop.f32.mrf.mxu0  ;;  %vm3523_vm6 = vweird.f32 %v9844_v7  ;;  %v3534_v55 = vsub.f32 1.0, %v3533_v33  ;;  %v1580_v20 = vld [vmem:[%s13165_s4 + $0x440] sm:$0xff]  ;;  %6581 = vrcp.f32 %v9928_v52 }
 0x371   : > { %v2232_v6 = vpop.f32.mrf.mxu1  ;;  %v6572_v31 = vpop.eup %6571  ;;  %v2120_v43 = vadd.f32 %v2119_v16, %v9940_v61  ;;  %v6272_v39 = vmul.f32 -1.442695, %v2049_v54  ;;  %v1939_v1 = vadd.f32 %v8941_v23, %v9020_v11  ;;  %vm9974_vm7 = vcmp.eq.f32.partialorder %v3526_v44, 8.507059e+37  ;;  %2676 = vmatpush.msra.mxu1 %v1580_v20  ;;  %v13639_v23 = vld [vmem:[#allocation35_spill] sm:$0xff]  ;;  %vm10016_vm8 = vmor %vm3522_vm4, %vm3523_vm6 }
 0x372   : > { %v9969_v9 = vpop.eup %6573  ;;  %v9978_v16 = vadd.f32 %v2099_v35, %v1987_v0  ;;  %v6273_v51 = vmul.f32 -1.442695, %v1826_v59  ;;  %v4414_v21 = vmul.f32 %v9931_v37, %v9291_v38  ;;  %v3548_v54 = vmul.f32 %v9908_v15, %v9831_v32 }
 0x373   : > { %v9980_v33 = vpop.eup %6575  ;;  %v2233_v58 = vadd.f32 %v2232_v6, %v2120_v43  ;;  %6583 = vrcp.f32 %v9945_v62  ;;  %v9989_v35 = vadd.f32 1.0, %v6572_v31  ;;  %v3521_v28 = vadd.f32 %v9844_v7, %v3520_v41  ;;  %v1479_v31 = vld [vmem:[%s13165_s4 + $0x118] sm:$0xff] }
 0x374   : > { %13637 = vst [vmem:[#allocation87_spill] sm:$0xff] %v9978_v16  ;;  %v9994_v59 = vperm.slane %v6985_v46, 3  ;;  %v6578_v38 = vpop.eup %6577  ;;  %v3535_v44 = vmul.f32 %v9892_v8, %v3534_v55  ;;  %v3541_v6 = vand.u32 2147483647, %v9805_v25  ;;  %v3543_v0 = vand.u32 2147483648, %v9805_v25  ;;  %v1575_v41 = vld [vmem:[%s13165_s4 + $0x418] sm:$0xff]  ;;  %2790 = vmatpush.msra.mxu2 %v1479_v31 }
 0x375   : > { %2166 = vmatmul.f32.gmra.mxu0 %v13638_v27  ;;  %2279 = vmatmul.f32.gmra.mxu1 %v13639_v23  ;;  %v4478_v43 = vmul.f32 %v4414_v21, %v2233_v58  ;;  %v10005_v20 = vpop.eup %6579  ;;  %6585 = vpow2.f32 %v6272_v39  ;;  %v2052_v46 = vadd.f32 %v8943_v56, %v1939_v1  ;;  %v10010_v55 = vsel %vm9920_vm3, %v3514_v3, %v3510_v13  ;;  %v4262_v1 = vpop.permute.xlu2 %4261  ;;  %v13645_v16 = vld [vmem:[#allocation36_spill] sm:$0xff] }
 0x376   : > { %2392 = vmatmul.f32.gmra.mxu2 %v13638_v27  ;;  %2505 = vmatmul.f32.gmra.mxu3 %v13639_v23  ;;  %13640 = vst [vmem:[#allocation84_spill] sm:$0xff] %v10010_v55  ;;  %v3529_v23 = vor.u32 1.1754944e-38, %v3528_v10  ;;  %6587 = vpow2.f32 %v6273_v51  ;;  %vm3537_vm9 = vweird.f32 %v9805_v25  ;;  %vm3538_vm10 = vweird.f32 %v9892_v8  ;;  %v10022_v5 = vpop.eup %6581  ;;  %v13646_v55 = vld [vmem:[#allocation37_spill] sm:$0xff] }
 0x377   : > { %2903 = vmatpush.msra.mxu3 %v1575_v41  ;;  %v3549_v56 = vsub.f32 1.0, %v3548_v54  ;;  %v2345_v39 = vpop.f32.mrf.mxu2  ;;  %v2458_v21 = vpop.f32.mrf.mxu3  ;;  %4542 = vxpose.xlu1.b32.start [1/16] %v4478_v43, 128  ;;  %6589 = vrcp.f32 %v9989_v35  ;;  %v10025_v3 = vadd.f32 1.0, %v6578_v38  ;;  %v3525_v22 = vsel %vm10016_vm8, %v9844_v7, %v3521_v28  ;;  %vm10058_vm12 = vmor %vm3537_vm9, %vm3538_vm10 }
 0x378   : > { %v2346_v10 = vadd.f32 %v2345_v39, %v9994_v59  ;;  %v2122_v13 = vpop.f32.mrf.mxu0  ;;  %v3536_v51 = vadd.f32 %v9892_v8, %v3535_v44  ;;  %vm10032_vm11 = vcmp.eq.f32.partialorder %v3541_v6, 8.507059e+37  ;;  %v3544_v43 = vor.u32 1.1754944e-38, %v3543_v0 }
 0x379   : > { %v3563_v31 = vmul.f32 %v9926_v30, %v9847_v17  ;;  %v2235_v38 = vpop.f32.mrf.mxu1  ;;  %v10038_v41 = vpop.eup %6583  ;;  %v6274_v27 = vmul.f32 -1.442695, %v2052_v46  ;;  %v4415_v7 = vmul.f32 %v9931_v37, %v9338_v50  ;;  %v2123_v58 = vadd.f32 %v2122_v13, %v9940_v61 }
 0x37a   : > { %v2459_v28 = vadd.f32 %v2458_v21, %v2346_v10  ;;  %v10045_v44 = vsel %vm9974_vm7, %v3529_v23, %v3525_v22  ;;  %v3550_v6 = vmul.f32 %v9908_v15, %v3549_v56  ;;  %v3556_v0 = vand.u32 2147483647, %v9831_v32  ;;  %v1478_v22 = vld [vmem:[%s13165_s4 + $0x110] sm:$0xff] }
 0x37b   : > { %v3558_v39 = vand.u32 2147483648, %v9831_v32  ;;  %v6586_v46 = vpop.eup %6585  ;;  %6591 = vrcp.f32 %v10025_v3  ;;  %v4416_v50 = vmul.f32 %v4262_v1, %v9390_v29  ;;  %v2236_v23 = vadd.f32 %v2235_v38, %v2123_v58  ;;  %v1574_v10 = vld [vmem:[%s13165_s4 + $0x410] sm:$0xff]  ;;  %2564 = vmatpush.msra.mxu0 %v1478_v22 }
 0x37c   : > { %v4479_v4 = vmul.f32 %v4415_v7, %v2459_v28  ;;  %v6588_v56 = vpop.eup %6587  ;;  %v3540_v21 = vsel %vm10058_vm12, %v9892_v8, %v3536_v51  ;;  %vm3552_vm13 = vweird.f32 %v9831_v32  ;;  %v3603_v29 = vand.u32 2147483648, %v9872_v57  ;;  %2677 = vmatpush.msra.mxu1 %v1574_v10 }
 0x37d   : > { %2169 = vmatmul.f32.gmra.mxu0 %v13645_v16  ;;  %2282 = vmatmul.f32.gmra.mxu1 %v13646_v55  ;;  %v3564_v25 = vsub.f32 1.0, %v3563_v31  ;;  %v10075_v13 = vpop.eup %6589  ;;  %6593 = vpow2.f32 %v6274_v27  ;;  %vm3553_vm14 = vweird.f32 %v9908_v15  ;;  %v3593_v8 = vmul.f32 %v9969_v9, %v9872_v57 }
 0x37e   : > { %2395 = vmatmul.f32.gmra.mxu2 %v13645_v16  ;;  %2508 = vmatmul.f32.gmra.mxu3 %v13646_v55  ;;  %v4480_v51 = vmul.f32 %v4416_v50, %v2236_v23  ;;  %v10080_v31 = vadd.f32 1.0, %v6586_v46  ;;  %vm10082_vm15 = vcmp.eq.f32.partialorder %v3556_v0, 8.507059e+37  ;;  %v3559_v7 = vor.u32 1.1754944e-38, %v3558_v39  ;;  %v10089_v55 = vpop.permute.xlu0 %4266  ;;  %vm10114_vm1 = vmor %vm3552_vm13, %vm3553_vm14 }
 0x37f   : > { %4574 = vxpose.xlu0.b32.start [1/16] %v4479_v4, 128  ;;  %v2348_v58 = vpop.f32.mrf.mxu2  ;;  %v2461_v37 = vpop.f32.mrf.mxu3  ;;  %v10087_v27 = vadd.f32 1.0, %v6588_v56  ;;  %v10093_v50 = vsel %vm10032_vm11, %v3544_v43, %v3540_v21  ;;  %v3551_v46 = vadd.f32 %v9908_v15, %v3550_v6  ;;  %v10097_v39 = vor.u32 1.1754944e-38, %v3603_v29 }
 0x380   : > { %v2349_v0 = vadd.f32 %v2348_v58, %v9994_v59  ;;  %4543 = vxpose.xlu1.b32.cont [2/16] %v4480_v51, 128  ;;  %v2125_v4 = vpop.f32.mrf.mxu0  ;;  %v3565_v23 = vmul.f32 %v9926_v30, %v3564_v25  ;;  %v3578_v56 = vmul.f32 %v9942_v49, %v9857_v26  ;;  %v4417_v54 = vmul.f32 %v4262_v1, %v9433_v47  ;;  %v13653_v1 = vld [vmem:[#allocation38_spill] sm:$0xff] }
 0x381   : > { %v2126_v22 = vadd.f32 %v2125_v4, %v9940_v61  ;;  %v2238_v10 = vpop.f32.mrf.mxu1  ;;  %v10103_v28 = vpop.eup %6591  ;;  %v3594_v43 = vsub.f32 1.0, %v3593_v8  ;;  %vm3567_vm0 = vweird.f32 %v9847_v17  ;;  %6595 = vrcp.f32 %v10080_v31  ;;  %v13654_v8 = vld [vmem:[#allocation39_spill] sm:$0xff] }
 0x382   : > { %v2462_v6 = vadd.f32 %v2461_v37, %v2349_v0  ;;  %v4418_v21 = vmul.f32 %v10089_v55, %v9778_v19  ;;  %v3618_v25 = vand.u32 2147483648, %v9881_v12  ;;  %v3555_v19 = vsel %vm10114_vm1, %v9908_v15, %v3551_v46  ;;  %v1473_v15 = vld [vmem:[%s13165_s4 + $0xe8] sm:$0xff] }
 0x383   : > { %v2239_v47 = vadd.f32 %v2238_v10, %v2126_v22  ;;  %v6594_v51 = vpop.eup %6593  ;;  %vm3597_vm2 = vweird.f32 %v9872_v57  ;;  %v3608_v32 = vmul.f32 %v9980_v33, %v9881_v12  ;;  %v3571_v58 = vand.u32 2147483647, %v9847_v17  ;;  %v1569_v46 = vld [vmem:[%s13165_s4 + $0x3e8] sm:$0xff]  ;;  %2791 = vmatpush.msra.mxu2 %v1473_v15 }
 0x384   : > { %v4481_v37 = vmul.f32 %v4417_v54, %v2462_v6  ;;  %v10131_v0 = vadd.f32 %v9926_v30, %v3565_v23  ;;  %vm3568_vm3 = vweird.f32 %v9926_v30  ;;  %v3579_v4 = vsub.f32 1.0, %v3578_v56  ;;  %2904 = vmatpush.msra.mxu3 %v1569_v46  ;;  %v4272_v46 = vpop.permute.xlu2 %4271 }
 0x385   : > { %2172 = vmatmul.f32.gmra.mxu0 %v13653_v1  ;;  %2285 = vmatmul.f32.gmra.mxu1 %v13654_v8  ;;  %v4482_v22 = vmul.f32 %v4418_v21, %v2239_v47  ;;  %6597 = vrcp.f32 %v10087_v27  ;;  %v3595_v10 = vmul.f32 %v9969_v9, %v3594_v43  ;;  %v3616_v54 = vand.u32 2147483647, %v9881_v12  ;;  %vm10158_vm5 = vmor %vm3567_vm0, %vm3568_vm3 }
 0x386   : > { %2398 = vmatmul.f32.gmra.mxu2 %v13653_v1  ;;  %2511 = vmatmul.f32.gmra.mxu3 %v13654_v8  ;;  %v3623_v23 = vmul.f32 %v10005_v20, %v9911_v2  ;;  %v10145_v56 = vadd.f32 1.0, %v6594_v51  ;;  %v10149_v6 = vsel %vm10082_vm15, %v3559_v7, %v3555_v19  ;;  %vm3598_vm4 = vweird.f32 %v9969_v9  ;;  %v13663_v1 = vld [vmem:[#allocation41_spill] sm:$0xff] }
 0x387   : > { %4575 = vxpose.xlu0.b32.cont [2/16] %v4481_v37, 128  ;;  %v10152_v21 = vor.u32 1.1754944e-38, %v3618_v25  ;;  %v2351_v29 = vpop.f32.mrf.mxu2  ;;  %v2464_v47 = vpop.f32.mrf.mxu3  ;;  %v3609_v43 = vsub.f32 1.0, %v3608_v32  ;;  %vm10162_vm6 = vcmp.eq.f32.partialorder %v3571_v58, 8.507059e+37  ;;  %v3573_v7 = vand.u32 2147483648, %v9847_v17  ;;  %vm10207_vm11 = vmor %vm3597_vm2, %vm3598_vm4 }
 0x388   : > { %v2352_v25 = vadd.f32 %v2351_v29, %v9994_v59  ;;  %4544 = vxpose.xlu1.b32.cont [3/16] %v4482_v22, 128  ;;  %v2128_v51 = vpop.f32.mrf.mxu0  ;;  %v10168_v19 = vpop.eup %6595  ;;  %v3570_v32 = vsel %vm10158_vm5, %v9926_v30, %v10131_v0  ;;  %v3580_v15 = vmul.f32 %v9942_v49, %v3579_v4  ;;  %vm3582_vm7 = vweird.f32 %v9857_v26  ;;  %v1563_v0 = vld [vmem:[%s13165_s4 + $0x3b8] sm:$0xff] }
 0x389   : > { %vm3583_vm8 = vweird.f32 %v9942_v49  ;;  %v2241_v58 = vpop.f32.mrf.mxu1  ;;  %v4419_v17 = vmul.f32 %v10089_v55, %v9787_v14  ;;  %v10180_v22 = vadd.f32 %v9969_v9, %v3595_v10  ;;  %vm3612_vm9 = vweird.f32 %v9881_v12  ;;  %v13662_v10 = vld [vmem:[#allocation40_spill] sm:$0xff]  ;;  %2905 = vmatpush.msra.mxu3 %v1563_v0 }
 0x38a   : > { %v3624_v29 = vsub.f32 1.0, %v3623_v23  ;;  %v2465_v8 = vadd.f32 %v2464_v47, %v2352_v25  ;;  %v13659_v30 = vand.u32 2147483647, %v9872_v57  ;;  %v3586_v4 = vand.u32 2147483647, %v9857_v26  ;;  %vm10244_vm0 = vmor %vm3582_vm7, %vm3583_vm8 }
 0x38b   : > { %v3588_v37 = vand.u32 2147483648, %v9857_v26  ;;  %v3638_v14 = vmul.f32 %v10022_v5, %v9928_v52  ;;  %v2129_v55 = vadd.f32 %v2128_v51, %v9940_v61  ;;  %v10196_v23 = vpop.eup %6597  ;;  %6599 = vrcp.f32 %v10145_v56 }
 0x38c   : > { %vm10185_vm10 = vcmp.eq.f32.partialorder %v13659_v30, 8.507059e+37  ;;  %v3610_v47 = vmul.f32 %v9980_v33, %v3609_v43  ;;  %v3574_v25 = vor.u32 1.1754944e-38, %v3573_v7  ;;  %v4483_v30 = vmul.f32 %v4419_v17, %v2465_v8  ;;  %v1472_v8 = vld [vmem:[%s13165_s4 + $0xe0] sm:$0xff] }
 0x38d   : > { %2175 = vmatmul.f32.gmra.mxu0 %v13662_v10  ;;  %2288 = vmatmul.f32.gmra.mxu1 %v13663_v1  ;;  %v4420_v16 = vmul.f32 %v4272_v46, %v9524_v18  ;;  %vm3613_vm12 = vweird.f32 %v9980_v33  ;;  %v3581_v43 = vadd.f32 %v9942_v49, %v3580_v15  ;;  %v2242_v7 = vadd.f32 %v2241_v58, %v2129_v55  ;;  %v1568_v18 = vld [vmem:[%s13165_s4 + $0x3e0] sm:$0xff] }
 0x38e   : > { %2401 = vmatmul.f32.gmra.mxu2 %v13662_v10  ;;  %2514 = vmatmul.f32.gmra.mxu3 %v13663_v1  ;;  %v3600_v57 = vsel %vm10207_vm11, %v9969_v9, %v10180_v22  ;;  %vm10223_vm13 = vcmp.eq.f32.partialorder %v3616_v54, 8.507059e+37  ;;  %v10229_v15 = vsel %vm10162_vm6, %v3574_v25, %v3570_v32  ;;  %v3625_v58 = vmul.f32 %v10005_v20, %v3624_v29  ;;  %v10237_v10 = vpop.permute.xlu1 %4276  ;;  %vm10269_vm1 = vmor %vm3612_vm9, %vm3613_vm12 }
 0x38f   : > { %13668 = vst [vmem:[#allocation88_spill] sm:$0xff] %v10229_v15  ;;  %vm3627_vm14 = vweird.f32 %v9911_v2  ;;  %4576 = vxpose.xlu0.b32.cont [3/16] %v4483_v30, 128  ;;  %2565 = vmatpush.msra.mxu0 %v1472_v8  ;;  %vm10233_vm15 = vcmp.eq.f32.partialorder %v3586_v4, 8.507059e+37  ;;  %v3589_v51 = vor.u32 1.1754944e-38, %v3588_v37  ;;  %v3639_v9 = vsub.f32 1.0, %v3638_v14  ;;  %v2354_v22 = vpop.f32.mrf.mxu2  ;;  %v2467_v1 = vpop.f32.mrf.mxu3 }
 0x390   : > { %v4484_v54 = vmul.f32 %v4420_v16, %v2242_v7  ;;  %2678 = vmatpush.msra.mxu1 %v1568_v18  ;;  %v3611_v38 = vadd.f32 %v9980_v33, %v3610_v47  ;;  %v3631_v29 = vand.u32 2147483647, %v9911_v2  ;;  %v3653_v16 = vmul.f32 %v10038_v41, %v9945_v62  ;;  %v2131_v37 = vpop.f32.mrf.mxu0 }
 0x391   : > { %v2355_v4 = vadd.f32 %v2354_v22, %v9994_v59  ;;  %v3585_v14 = vsel %vm10244_vm0, %v9942_v49, %v3581_v43  ;;  %v3633_v47 = vand.u32 2147483648, %v9911_v2  ;;  %v3646_v26 = vand.u32 2147483647, %v9928_v52  ;;  %v2244_v30 = vpop.f32.mrf.mxu1  ;;  %v10258_v7 = vpop.eup %6599 }
 0x392   : > { %4545 = vxpose.xlu1.b32.cont [4/16] %v4484_v54, 128  ;;  %v2132_v25 = vadd.f32 %v2131_v37, %v9940_v61  ;;  %v4421_v8 = vmul.f32 %v4272_v46, %v9568_v34  ;;  %v3626_v18 = vadd.f32 %v10005_v20, %v3625_v58  ;;  %v3648_v22 = vand.u32 2147483648, %v9928_v52  ;;  %v13675_v58 = vld [vmem:[#allocation42_spill] sm:$0xff]  ;;  %v13676_v54 = vld [vmem:[#allocation43_spill] sm:$0xff] }
 0x393   : > { %v2468_v15 = vadd.f32 %v2467_v1, %v2355_v4  ;;  %v4422_v49 = vmul.f32 %v10237_v10, %v9448_v24  ;;  %vm3628_vm2 = vweird.f32 %v10005_v20  ;;  %v3640_v34 = vmul.f32 %v10022_v5, %v3639_v9 }
 0x394   : > { %v2245_v46 = vadd.f32 %v2244_v30, %v2132_v25  ;;  %v10280_v24 = vsel %vm10185_vm10, %v10097_v39, %v3600_v57  ;;  %v3615_v12 = vsel %vm10269_vm1, %v9980_v33, %v3611_v38  ;;  %v3654_v1 = vsub.f32 1.0, %v3653_v16  ;;  %v1467_v33 = vld [vmem:[%s13165_s4 + $0xb8] sm:$0xff]  ;;  %vm10306_vm5 = vmor %vm3627_vm14, %vm3628_vm2 }
 0x395   : > { %2178 = vmatmul.f32.gmra.mxu0 %v13675_v58  ;;  %2291 = vmatmul.f32.gmra.mxu1 %v13676_v54  ;;  %v4485_v32 = vmul.f32 %v4421_v8, %v2468_v15  ;;  %v10289_v9 = vsel %vm10233_vm15, %v3589_v51, %v3585_v14  ;;  %vm10291_vm3 = vcmp.eq.f32.partialorder %v3631_v29, 8.507059e+37  ;;  %vm3642_vm4 = vweird.f32 %v9928_v52  ;;  %v10325_v14 = vpop.permute.xlu2 %4281  ;;  %v13686_v52 = vld [vmem:[#allocation45_spill] sm:$0xff] }
 0x396   : > { %2404 = vmatmul.f32.gmra.mxu2 %v13675_v58  ;;  %2517 = vmatmul.f32.gmra.mxu3 %v13676_v54  ;;  %v4486_v39 = vmul.f32 %v4422_v49, %v2245_v46  ;;  %v3634_v15 = vor.u32 1.1754944e-38, %v3633_v47  ;;  %vm10310_vm6 = vcmp.eq.f32.partialorder %v3646_v26, 8.507059e+37  ;;  %v3649_v51 = vor.u32 1.1754944e-38, %v3648_v22 }
 0x397   : > { %vm3657_vm7 = vweird.f32 %v9945_v62  ;;  %4577 = vxpose.xlu0.b32.cont [4/16] %v4485_v32, 128  ;;  %2792 = vmatpush.msra.mxu2 %v1467_v33  ;;  %v10318_v38 = vsel %vm10223_vm13, %v10152_v21, %v3615_v12  ;;  %v3630_v2 = vsel %vm10306_vm5, %v10005_v20, %v3626_v18  ;;  %v3641_v29 = vadd.f32 %v10022_v5, %v3640_v34  ;;  %v2357_v16 = vpop.f32.mrf.mxu2  ;;  %v2470_v37 = vpop.f32.mrf.mxu3  ;;  %v13685_v32 = vld [vmem:[#allocation44_spill] sm:$0xff] }
 0x398   : > { %vm3643_vm8 = vweird.f32 %v10022_v5  ;;  %v3655_v47 = vmul.f32 %v10038_v41, %v3654_v1  ;;  %v3661_v26 = vand.u32 2147483647, %v9945_v62  ;;  %v3663_v21 = vand.u32 2147483648, %v9945_v62  ;;  %v2134_v25 = vpop.f32.mrf.mxu0 }
 0x399   : > { %v2358_v17 = vadd.f32 %v2357_v16, %v9994_v59  ;;  %v1719_v20 = vadd.f32 %v8984_v60, %v9005_v53  ;;  %v3683_v30 = vmul.f32 %v10103_v28, %v10025_v3  ;;  %v3668_v8 = vmul.f32 %v10075_v13, %v9989_v35  ;;  %v2247_v22 = vpop.f32.mrf.mxu1  ;;  %vm10348_vm9 = vmor %vm3642_vm4, %vm3643_vm8  ;;  %v13702_v16 = vld [vmem:[#allocation102_spill] sm:$0xff] }
 0x39a   : > { %4546 = vxpose.xlu1.b32.cont [5/16] %v4486_v39, 128  ;;  %v2135_v18 = vadd.f32 %v2134_v25, %v9940_v61  ;;  %v4423_v49 = vmul.f32 %v10237_v10, %v9472_v40  ;;  %v10342_v43 = vsel %vm10291_vm3, %v3634_v15, %v3630_v2  ;;  %v3693_v34 = vand.u32 2147483648, %v10025_v3  ;;  %v1466_v15 = vld [vmem:[%s13165_s4 + $0xb0] sm:$0xff] }
 0x39b   : > { %v2471_v46 = vadd.f32 %v2470_v37, %v2358_v17  ;;  %v4424_v12 = vmul.f32 %v10325_v14, %v9682_v42  ;;  %v3645_v40 = vsel %vm10348_vm9, %v10022_v5, %v3641_v29  ;;  %v3678_v10 = vand.u32 2147483648, %v9989_v35  ;;  %2566 = vmatpush.msra.mxu0 %v1466_v15 }
 0x39c   : > { %v2248_v1 = vadd.f32 %v2247_v22, %v2135_v18  ;;  %v1716_v4 = vadd.f32 %v8947_v63, %v9005_v53  ;;  %v10364_v39 = vadd.f32 %v10038_v41, %v3655_v47  ;;  %vm3658_vm10 = vweird.f32 %v10038_v41  ;;  %v1562_v63 = vld [vmem:[%s13165_s4 + $0x3b0] sm:$0xff] }
 0x39d   : > { %2181 = vmatmul.f32.gmra.mxu0 %v13685_v32  ;;  %2294 = vmatmul.f32.gmra.mxu1 %v13686_v52  ;;  %v4487_v42 = vmul.f32 %v4423_v49, %v2471_v46  ;;  %v1832_v5 = vadd.f32 %v8986_v36, %v1719_v20  ;;  %v3684_v33 = vsub.f32 1.0, %v3683_v30  ;;  %v3669_v0 = vsub.f32 1.0, %v3668_v8  ;;  %vm10391_vm12 = vmor %vm3657_vm7, %vm3658_vm10  ;;  %v4287_v20 = vpop.permute.xlu1 %4286 }
 0x39e   : > { %2407 = vmatmul.f32.gmra.mxu2 %v13685_v32  ;;  %2520 = vmatmul.f32.gmra.mxu3 %v13686_v52  ;;  %v4488_v57 = vmul.f32 %v4424_v12, %v2248_v1  ;;  %v3691_v2 = vand.u32 2147483647, %v10025_v3  ;;  %v10377_v29 = vor.u32 1.1754944e-38, %v3693_v34  ;;  %vm10379_vm11 = vcmp.eq.f32.partialorder %v3661_v26, 8.507059e+37  ;;  %v13692_v12 = vld [vmem:[#allocation94_spill] sm:$0xff] }
 0x39f   : > { %v3664_v36 = vor.u32 1.1754944e-38, %v3663_v21  ;;  %4578 = vxpose.xlu0.b32.cont [5/16] %v4487_v42, 128  ;;  %v10385_v37 = vsel %vm10310_vm6, %v3649_v51, %v3645_v40  ;;  %vm3672_vm13 = vweird.f32 %v9989_v35  ;;  %vm3673_vm14 = vweird.f32 %v10075_v13  ;;  %v2360_v17 = vpop.f32.mrf.mxu2  ;;  %v2473_v55 = vpop.f32.mrf.mxu3  ;;  %2679 = vmatpush.msra.mxu1 %v1562_v63  ;;  %v13691_v51 = vld [vmem:[#allocation91_spill] sm:$0xff]  ;;  %v13696_v63 = vld [vmem:[#allocation100_spill] sm:$0xff] }
 0x3a0   : > { %v3676_v26 = vand.u32 2147483647, %v9989_v35  ;;  %v10398_v21 = vor.u32 1.1754944e-38, %v3678_v10  ;;  %v1829_v25 = vadd.f32 %v13691_v51, %v1716_v4  ;;  %v3708_v62 = vand.u32 2147483648, %v10080_v31  ;;  %v2137_v18 = vpop.f32.mrf.mxu0  ;;  %v13693_v4 = vld [vmem:[#allocation98_spill] sm:$0xff]  ;;  %v1557_v51 = vld [vmem:[%s13165_s4 + $0x388] sm:$0xff]  ;;  %vm10463_vm2 = vmor %vm3672_vm13, %vm3673_vm14 }
 0x3a1   : > { %v3660_v30 = vsel %vm10391_vm12, %v10038_v41, %v10364_v39  ;;  %v2361_v8 = vadd.f32 %v2360_v17, %v9994_v59  ;;  %v6277_v22 = vmul.f32 -1.442695, %v1832_v5  ;;  %v3685_v49 = vmul.f32 %v10103_v28, %v3684_v33  ;;  %v2250_v46 = vpop.f32.mrf.mxu1  ;;  %2906 = vmatpush.msra.mxu3 %v1557_v51 }
 0x3a2   : > { %v3670_v60 = vmul.f32 %v10075_v13, %v3669_v0  ;;  %4547 = vxpose.xlu1.b32.cont [6/16] %v4488_v57, 128  ;;  %v2138_v34 = vadd.f32 %v2137_v18, %v9940_v61  ;;  %v1942_v40 = vadd.f32 %v13692_v12, %v9020_v11  ;;  %v4425_v10 = vmul.f32 %v10325_v14, %v9701_v45  ;;  %v13694_v0 = vld [vmem:[#allocation46_spill] sm:$0xff]  ;;  %v13695_v57 = vld [vmem:[#allocation47_spill] sm:$0xff] }
 0x3a3   : > { %v3698_v41 = vmul.f32 %v10168_v19, %v10080_v31  ;;  %v2474_v1 = vadd.f32 %v2473_v55, %v2361_v8  ;;  %v1945_v39 = vadd.f32 %v13693_v4, %v9020_v11  ;;  %v4426_v42 = vmul.f32 %v4287_v20, %v9587_v48 }
 0x3a4   : > { %v3723_v5 = vand.u32 2147483648, %v10087_v27  ;;  %v2251_v33 = vadd.f32 %v2250_v46, %v2138_v34  ;;  %v6275_v15 = vmul.f32 -1.442695, %v1829_v25  ;;  %v1722_v45 = vadd.f32 %v13696_v63, %v9005_v53  ;;  %v13699_v25 = vld [vmem:[#allocation95_spill] sm:$0xff] }
 0x3a5   : > { %2184 = vmatmul.f32.gmra.mxu0 %v13694_v0  ;;  %2297 = vmatmul.f32.gmra.mxu1 %v13695_v57  ;;  %vm10425_vm15 = vcmp.eq.f32.partialorder %v3676_v26, 8.507059e+37  ;;  %v4489_v17 = vmul.f32 %v4425_v10, %v2474_v1  ;;  %6601 = vpow2.f32 %v6277_v22  ;;  %vm3687_vm0 = vweird.f32 %v10025_v3  ;;  %v1461_v26 = vld [vmem:[%s13165_s4 + $0x88] sm:$0xff]  ;;  %v13708_v10 = vld [vmem:[#allocation48_spill] sm:$0xff] }
 0x3a6   : > { %2410 = vmatmul.f32.gmra.mxu2 %v13694_v0  ;;  %2523 = vmatmul.f32.gmra.mxu3 %v13695_v57  ;;  %vm3688_vm1 = vweird.f32 %v10103_v28  ;;  %v3671_v48 = vadd.f32 %v10075_v13, %v3670_v60  ;;  %v4490_v55 = vmul.f32 %v4426_v42, %v2251_v33  ;;  %v2055_v8 = vadd.f32 %v13699_v25, %v1942_v40  ;;  %v13700_v60 = vld [vmem:[#allocation99_spill] sm:$0xff] }
 0x3a7   : > { %v3699_v18 = vsub.f32 1.0, %v3698_v41  ;;  %v10441_v34 = vor.u32 1.1754944e-38, %v3708_v62  ;;  %v10445_v22 = vsel %vm10379_vm11, %v3664_v36, %v3660_v30  ;;  %4579 = vxpose.xlu0.b32.cont [6/16] %v4489_v17, 128  ;;  %2793 = vmatpush.msra.mxu2 %v1461_v26  ;;  %v2058_v46 = vadd.f32 %v13700_v60, %v1945_v39  ;;  %v2363_v4 = vpop.f32.mrf.mxu2  ;;  %v2476_v40 = vpop.f32.mrf.mxu3  ;;  %v13701_v62 = vld [vmem:[#allocation101_spill] sm:$0xff]  ;;  %v13705_v17 = vld [vmem:[#allocation63_spill] sm:$0xff]  ;;  %vm10514_vm6 = vmor %vm3687_vm0, %vm3688_vm1 }
 0x3a8   : > { %v10449_v12 = vadd.f32 %v10103_v28, %v3685_v49  ;;  %v10452_v1 = vor.u32 1.1754944e-38, %v3723_v5  ;;  %6603 = vpow2.f32 %v6275_v15  ;;  %v1835_v41 = vadd.f32 %v13701_v62, %v1722_v45  ;;  %v10457_v30 = vpop.permute.xlu2 %4291  ;;  %v2140_v42 = vpop.f32.mrf.mxu0  ;;  %v13707_v62 = vld [vmem:[#allocation75_spill] sm:$0xff] }
 0x3a9   : > { %v1948_v36 = vadd.f32 %v13702_v16, %v9020_v11  ;;  %v2364_v39 = vadd.f32 %v2363_v4, %v9994_v59  ;;  %v3675_v5 = vsel %vm10463_vm2, %v10075_v13, %v3671_v48  ;;  %v3713_v33 = vmul.f32 %v10196_v23, %v10087_v27  ;;  %v2253_v63 = vpop.f32.mrf.mxu1  ;;  %v13706_v13 = vld [vmem:[#allocation104_spill] sm:$0xff] }
 0x3aa   : > { %v3728_v15 = vmul.f32 %v10258_v7, %v10145_v56  ;;  %4548 = vxpose.xlu1.b32.cont [7/16] %v4490_v55, 128  ;;  %v2141_v35 = vadd.f32 %v2140_v42, %v9940_v61  ;;  %v6276_v45 = vmul.f32 -1.442695, %v2055_v8  ;;  %v4427_v26 = vmul.f32 %v4287_v20, %v13705_v17  ;;  %v13709_v55 = vld [vmem:[#allocation49_spill] sm:$0xff]  ;;  %v13710_v8 = vld [vmem:[#allocation103_spill] sm:$0xff]  ;;  %v13713_v17 = vld [vmem:[#allocation106_spill] sm:$0xff] }
 0x3ab   : > { %v3700_v51 = vmul.f32 %v10168_v19, %v3699_v18  ;;  %v2477_v25 = vadd.f32 %v2476_v40, %v2364_v39  ;;  %v6602_v60 = vpop.eup %6601  ;;  %v6278_v4 = vmul.f32 -1.442695, %v2058_v46  ;;  %v1725_v48 = vadd.f32 %v13706_v13, %v9005_v53  ;;  %v1556_v39 = vld [vmem:[%s13165_s4 + $0x380] sm:$0xff]  ;;  %v13717_v13 = vld [vmem:[#allocation108_spill] sm:$0xff]  ;;  %v1551_v20 = vld [vmem:[%s13165_s4 + $0x358] sm:$0xff] }
 0x3ac   : > { %v4428_v16 = vmul.f32 %v10457_v30, %v13707_v62  ;;  %v2254_v49 = vadd.f32 %v2253_v63, %v2141_v35  ;;  %v6279_v42 = vmul.f32 -1.442695, %v1835_v41  ;;  %v2061_v14 = vadd.f32 %v13710_v8, %v1948_v36  ;;  %v1460_v36 = vld [vmem:[%s13165_s4 + $0x80] sm:$0xff]  ;;  %2680 = vmatpush.msra.mxu1 %v1556_v39  ;;  %2907 = vmatpush.msra.mxu3 %v1551_v20 }
 0x3ad   : > { %2187 = vmatmul.f32.gmra.mxu0 %v13708_v10  ;;  %2300 = vmatmul.f32.gmra.mxu1 %v13709_v55  ;;  %vm10487_vm3 = vcmp.eq.f32.partialorder %v3691_v2, 8.507059e+37  ;;  %vm3702_vm4 = vweird.f32 %v10080_v31  ;;  %vm3703_vm5 = vweird.f32 %v10168_v19  ;;  %v4491_v18 = vmul.f32 %v4427_v26, %v2477_v25 }
 0x3ae   : > { %2413 = vmatmul.f32.gmra.mxu2 %v13708_v10  ;;  %2526 = vmatmul.f32.gmra.mxu3 %v13709_v55  ;;  %v10498_v46 = vsel %vm10425_vm15, %v10398_v21, %v3675_v5  ;;  %v3714_v40 = vsub.f32 1.0, %v3713_v33  ;;  %v3729_v41 = vsub.f32 1.0, %v3728_v15  ;;  %v4492_v2 = vmul.f32 %v4428_v16, %v2254_v49  ;;  %v6604_v35 = vpop.eup %6603  ;;  %v13716_v33 = vld [vmem:[#allocation105_spill] sm:$0xff]  ;;  %v10529_v16 = vpop.permute.xlu1 %4296  ;;  %vm10561_vm7 = vmor %vm3702_vm4, %vm3703_vm5 }
 0x3af   : > { %6605 = vpow2.f32 %v6276_v45  ;;  %v10506_v63 = vadd.f32 1.0, %v6602_v60  ;;  %v1951_v47 = vadd.f32 %v13713_v17, %v9020_v11  ;;  %4580 = vxpose.xlu0.b32.cont [7/16] %v4491_v18, 128  ;;  %2567 = vmatpush.msra.mxu0 %v1460_v36  ;;  %v1838_v15 = vadd.f32 %v13716_v33, %v1725_v48  ;;  %v2366_v3 = vpop.f32.mrf.mxu2  ;;  %v2479_v25 = vpop.f32.mrf.mxu3  ;;  %v13719_v18 = vld [vmem:[#allocation81_spill] sm:$0xff]  ;;  %v13721_v33 = vld [vmem:[#allocation84_spill] sm:$0xff] }
 0x3b0   : > { %6607 = vpow2.f32 %v6278_v4  ;;  %v3690_v45 = vsel %vm10514_vm6, %v10103_v28, %v10449_v12  ;;  %v10525_v26 = vadd.f32 %v10168_v19, %v3700_v51  ;;  %v6280_v60 = vmul.f32 -1.442695, %v2061_v14  ;;  %v13718_v14 = vld [vmem:[#allocation107_spill] sm:$0xff] }
 0x3b1   : > { %6609 = vpow2.f32 %v6279_v42  ;;  %v1728_v62 = vadd.f32 %v13717_v13, %v9005_v53  ;;  %v2367_v4 = vadd.f32 %v2366_v3, %v9994_v59  ;;  %v2143_v48 = vpop.f32.mrf.mxu0  ;;  %v10532_v49 = vadd.f32 1.0, %v6604_v35  ;;  %v2256_v8 = vpop.f32.mrf.mxu1  ;;  %v13720_v35 = vld [vmem:[#allocation110_spill] sm:$0xff]  ;;  %v13723_v3 = vld [vmem:[#allocation69_spill] sm:$0xff] }
 0x3b2   : > { %v3715_v28 = vmul.f32 %v10196_v23, %v3714_v40  ;;  %v3730_v12 = vmul.f32 %v10258_v7, %v3729_v41  ;;  %4549 = vxpose.xlu1.b32.cont [8/16] %v4492_v2, 128  ;;  %v2144_v51 = vadd.f32 %v2143_v48, %v9940_v61  ;;  %6611 = vrcp.f32 %v10506_v63  ;;  %v13722_v2 = vld [vmem:[#allocation68_spill] sm:$0xff]  ;;  %v13724_v48 = vld [vmem:[#allocation109_spill] sm:$0xff] }
 0x3b3   : > { %v2064_v42 = vadd.f32 %v13718_v14, %v1951_v47  ;;  %v4429_v36 = vmul.f32 %v10457_v30, %v13719_v18  ;;  %v2480_v39 = vadd.f32 %v2479_v25, %v2367_v4  ;;  %v6281_v17 = vmul.f32 -1.442695, %v1838_v15  ;;  %v13725_v14 = vld [vmem:[#allocation112_spill] sm:$0xff] }
 0x3b4   : > { %v1954_v21 = vadd.f32 %v13720_v35, %v9020_v11  ;;  %v4430_v40 = vmul.f32 %v10529_v16, %v13721_v33  ;;  %v2257_v41 = vadd.f32 %v2256_v8, %v2144_v51  ;;  %6613 = vpow2.f32 %v6280_v60  ;;  %v10674_v60 = vpop.permute.xlu2 %4306 }
 0x3b5   : > { %2190 = vmatmul.f32.gmra.mxu0 %v13722_v2  ;;  %2303 = vmatmul.f32.gmra.mxu1 %v13723_v3  ;;  %v6606_v13 = vpop.eup %6605  ;;  %v1841_v47 = vadd.f32 %v13724_v48, %v1728_v62  ;;  %v1731_v30 = vadd.f32 %v13725_v14, %v9005_v53  ;;  %v4493_v25 = vmul.f32 %v4429_v36, %v2480_v39  ;;  %vm3717_vm8 = vweird.f32 %v10087_v27 }
 0x3b6   : > { %2416 = vmatmul.f32.gmra.mxu2 %v13722_v2  ;;  %2529 = vmatmul.f32.gmra.mxu3 %v13723_v3  ;;  %v6608_v15 = vpop.eup %6607  ;;  %v10555_v4 = vsel %vm10487_vm3, %v10377_v29, %v3690_v45  ;;  %vm3718_vm9 = vweird.f32 %v10196_v23  ;;  %v3738_v62 = vand.u32 2147483648, %v10145_v56  ;;  %v4494_v51 = vmul.f32 %v4430_v40, %v2257_v41  ;;  %v1455_v29 = vld [vmem:[%s13165_s4 + $0x58] sm:$0xff]  ;;  %v13755_v2 = vld [vmem:[#allocation79_spill] sm:$0xff] }
 0x3b7   : > { %v6610_v45 = vpop.eup %6609  ;;  %v6282_v8 = vmul.f32 -1.442695, %v2064_v42  ;;  %v13728_v36 = vand.u32 2147483647, %v10080_v31  ;;  %v10585_v35 = vadd.f32 %v10196_v23, %v3715_v28  ;;  %vm3733_vm11 = vweird.f32 %v10258_v7  ;;  %4581 = vxpose.xlu0.b32.cont [8/16] %v4493_v25, 128  ;;  %2794 = vmatpush.msra.mxu2 %v1455_v29  ;;  %v13731_v42 = vld [vmem:[#allocation111_spill] sm:$0xff]  ;;  %v2369_v31 = vpop.f32.mrf.mxu2  ;;  %v13732_v25 = vld [vmem:[#allocation113_spill] sm:$0xff]  ;;  %vm10646_vm14 = vmor %vm3717_vm8, %vm3718_vm9 }
 0x3b8   : > { %v10588_v33 = vadd.f32 1.0, %v6606_v13  ;;  %6615 = vpow2.f32 %v6281_v17  ;;  %v2067_v40 = vadd.f32 %v13731_v42, %v1954_v21  ;;  %v10592_v41 = vadd.f32 %v10258_v7, %v3730_v12  ;;  %v2482_v48 = vpop.f32.mrf.mxu3  ;;  %v10595_v14 = vpop.eup %6611  ;;  %v13733_v42 = vld [vmem:[#allocation114_spill] sm:$0xff] }
 0x3b9   : > { %vm10580_vm10 = vcmp.eq.f32.partialorder %v13728_v36, 8.507059e+37  ;;  %vm3732_vm12 = vweird.f32 %v10145_v56  ;;  %6617 = vrcp.f32 %v10532_v49  ;;  %v6283_v28 = vmul.f32 -1.442695, %v1841_v47  ;;  %v10599_v13 = vpop.permute.xlu0 %4301  ;;  %v2146_v21 = vpop.f32.mrf.mxu0 }
 0x3ba   : > { %v1844_v29 = vadd.f32 %v13732_v25, %v1731_v30  ;;  %v2370_v17 = vadd.f32 %v2369_v31, %v9994_v59  ;;  %v10602_v36 = vadd.f32 1.0, %v6608_v15  ;;  %v10604_v12 = vadd.f32 1.0, %v6610_v45  ;;  %4550 = vxpose.xlu1.b32.cont [9/16] %v4494_v51, 128  ;;  %v2259_v5 = vpop.f32.mrf.mxu1  ;;  %v6614_v3 = vpop.eup %6613  ;;  %v13734_v30 = vld [vmem:[#allocation50_spill] sm:$0xff]  ;;  %vm10680_vm0 = vmor %vm3732_vm12, %vm3733_vm11 }
 0x3bb   : > { %v1957_v18 = vadd.f32 %v13733_v42, %v9020_v11  ;;  %v2147_v20 = vadd.f32 %v2146_v21, %v9940_v61  ;;  %6619 = vpow2.f32 %v6282_v8  ;;  %v4431_v47 = vmul.f32 %v10529_v16, %v10045_v44  ;;  %v13738_v42 = vld [vmem:[#allocation73_spill] sm:$0xff]  ;;  %v13739_v44 = vld [vmem:[#allocation74_spill] sm:$0xff]  ;;  %v1545_v21 = vld [vmem:[%s13165_s4 + $0x328] sm:$0xff] }
 0x3bc   : > { %v1734_v31 = vadd.f32 %v13734_v30, %v9005_v53  ;;  %v2483_v25 = vadd.f32 %v2482_v48, %v2370_v17  ;;  %6621 = vrcp.f32 %v10588_v33  ;;  %v6284_v15 = vmul.f32 -1.442695, %v2067_v40  ;;  %2908 = vmatpush.msra.mxu3 %v1545_v21 }
 0x3bd   : > { %v4432_v45 = vmul.f32 %v10599_v13, %v10093_v50  ;;  %v13735_v51 = vand.u32 2147483647, %v10087_v27  ;;  %v2260_v8 = vadd.f32 %v2259_v5, %v2147_v20  ;;  %2193 = vmatmul.f32.gmra.mxu0 %v13738_v42  ;;  %2306 = vmatmul.f32.gmra.mxu1 %v13739_v44  ;;  %6623 = vpow2.f32 %v6283_v28  ;;  %v13740_v5 = vld [vmem:[#allocation115_spill] sm:$0xff]  ;;  %v1454_v28 = vld [vmem:[%s13165_s4 + $0x50] sm:$0xff] }
 0x3be   : > { %v6285_v16 = vmul.f32 -1.442695, %v1844_v29  ;;  %v3773_v48 = vmul.f32 %v10595_v14, %v10506_v63  ;;  %v4495_v40 = vmul.f32 %v4431_v47, %v2483_v25  ;;  %2419 = vmatmul.f32.gmra.mxu2 %v13738_v42  ;;  %2532 = vmatmul.f32.gmra.mxu3 %v13739_v44  ;;  %v6616_v50 = vpop.eup %6615  ;;  %6625 = vrcp.f32 %v10602_v36  ;;  %v1550_v29 = vld [vmem:[%s13165_s4 + $0x350] sm:$0xff] }
 0x3bf   : > { %vm10618_vm13 = vcmp.eq.f32.partialorder %v13735_v51, 8.507059e+37  ;;  %v10629_v17 = vadd.f32 1.0, %v6614_v3  ;;  %v2070_v20 = vadd.f32 %v13740_v5, %v1957_v18  ;;  %v4496_v30 = vmul.f32 %v4432_v45, %v2260_v8  ;;  %v10638_v47 = vpop.eup %6617  ;;  %v13741_v25 = vld [vmem:[#allocation52_spill] sm:$0xff]  ;;  %2568 = vmatpush.msra.mxu0 %v1454_v28  ;;  %2681 = vmatpush.msra.mxu1 %v1550_v29 }
 0x3c0   : > { %6627 = vrcp.f32 %v10604_v12  ;;  %v1847_v51 = vadd.f32 %v13741_v25, %v1734_v31  ;;  %v13744_v18 = vand.u32 2147483647, %v10145_v56  ;;  %v3739_v8 = vor.u32 1.1754944e-38, %v3738_v62  ;;  %4582 = vxpose.xlu0.b32.cont [9/16] %v4495_v40, 128  ;;  %v13747_v31 = vld [vmem:[#allocation51_spill] sm:$0xff]  ;;  %v2372_v40 = vpop.f32.mrf.mxu2  ;;  %v13752_v42 = vld [vmem:[#allocation88_spill] sm:$0xff] }
 0x3c1   : > { %6629 = vpow2.f32 %v6284_v15  ;;  %v1960_v5 = vadd.f32 %v13747_v31, %v9020_v11  ;;  %v13748_v27 = vsel %vm10561_vm7, %v10168_v19, %v10525_v26  ;;  %v3720_v62 = vsel %vm10646_vm14, %v10196_v23, %v10585_v35  ;;  %v2485_v15 = vpop.f32.mrf.mxu3  ;;  %v6620_v28 = vpop.eup %6619  ;;  %v13751_v31 = vld [vmem:[#allocation54_spill] sm:$0xff] }
 0x3c2   : > { %vm10652_vm15 = vcmp.eq.f32.partialorder %v13744_v18, 8.507059e+37  ;;  %v10666_v25 = vsel %vm10580_vm10, %v10441_v34, %v13748_v27  ;;  %v10672_v18 = vadd.f32 1.0, %v6616_v50  ;;  %6631 = vpow2.f32 %v6285_v16  ;;  %v2149_v26 = vpop.f32.mrf.mxu0  ;;  %v10685_v39 = vpop.eup %6621  ;;  %4551 = vxpose.xlu1.b32.cont [10/16] %v4496_v30, 128 }
 0x3c3   : > { %v3774_v34 = vsub.f32 1.0, %v3773_v48  ;;  %v2373_v23 = vadd.f32 %v2372_v40, %v9994_v59  ;;  %6633 = vrcp.f32 %v10629_v17  ;;  %v6286_v35 = vmul.f32 -1.442695, %v2070_v20  ;;  %v2262_v50 = vpop.f32.mrf.mxu1  ;;  %v6624_v29 = vpop.eup %6623 }
 0x3c4   : > { %v3735_v16 = vsel %vm10680_vm0, %v10258_v7, %v10592_v41  ;;  %v2150_v56 = vadd.f32 %v2149_v26, %v9940_v61  ;;  %v4433_v48 = vmul.f32 %v10599_v13, %v10149_v6  ;;  %v6287_v3 = vmul.f32 -1.442695, %v1847_v51  ;;  %v10697_v44 = vpop.eup %6625  ;;  %v13753_v41 = vld [vmem:[#allocation53_spill] sm:$0xff]  ;;  %v13754_v26 = vld [vmem:[#allocation78_spill] sm:$0xff] }
 0x3c5   : > { %v1737_v27 = vadd.f32 %v13751_v31, %v9005_v53  ;;  %v2486_v40 = vadd.f32 %v2485_v15, %v2373_v23  ;;  %v10699_v20 = vadd.f32 1.0, %v6620_v28  ;;  %v4434_v7 = vmul.f32 %v10674_v60, %v13752_v42  ;;  %2196 = vmatmul.f32.gmra.mxu0 %v13754_v26  ;;  %2309 = vmatmul.f32.gmra.mxu1 %v13755_v2  ;;  %v4312_v31 = vpop.permute.xlu1 %4311 }
 0x3c6   : > { %v2073_v30 = vadd.f32 %v13753_v41, %v1960_v5  ;;  %v2263_v19 = vadd.f32 %v2262_v50, %v2150_v56  ;;  %v10706_v6 = vpop.eup %6627  ;;  %6635 = vrcp.f32 %v10672_v18  ;;  %v10712_v13 = vsel %vm10618_vm13, %v10452_v1, %v3720_v62  ;;  %2422 = vmatmul.f32.gmra.mxu2 %v13754_v26  ;;  %2535 = vmatmul.f32.gmra.mxu3 %v13755_v2  ;;  %v1449_v1 = vld [vmem:[%s13165_s4 + $0x28] sm:$0xff]  ;;  %v13768_v2 = vld [vmem:[#allocation86_spill] sm:$0xff] }
 0x3c7   : > { %v3775_v51 = vmul.f32 %v10595_v14, %v3774_v34  ;;  %v4497_v15 = vmul.f32 %v4433_v48, %v2486_v40  ;;  %v6630_v42 = vpop.eup %6629  ;;  %v10717_v5 = vadd.f32 1.0, %v6624_v29  ;;  %6637 = vpow2.f32 %v6286_v35  ;;  %v13756_v34 = vld [vmem:[#allocation55_spill] sm:$0xff]  ;;  %2795 = vmatpush.msra.mxu2 %v1449_v1 }
 0x3c8   : > { %v10721_v28 = vsel %vm10652_vm15, %v3739_v8, %v3735_v16  ;;  %v4498_v23 = vmul.f32 %v4434_v7, %v2263_v19  ;;  %v6632_v62 = vpop.eup %6631  ;;  %6639 = vpow2.f32 %v6287_v3  ;;  %v1850_v56 = vadd.f32 %v13756_v34, %v1737_v27 }
 0x3c9   : > { %4583 = vxpose.xlu0.b32.cont [10/16] %v4497_v15, 128  ;;  %v10732_v45 = vpop.eup %6633  ;;  %6641 = vrcp.f32 %v10699_v20  ;;  %v6288_v8 = vmul.f32 -1.442695, %v2073_v30  ;;  %vm3778_vm1 = vweird.f32 %v10595_v14  ;;  %v3781_v16 = vand.u32 2147483647, %v10506_v63  ;;  %v2375_v29 = vpop.f32.mrf.mxu2 }
 0x3ca   : > { %v2488_v48 = vpop.f32.mrf.mxu3  ;;  %v10737_v3 = vadd.f32 1.0, %v6630_v42  ;;  %v3776_v27 = vadd.f32 %v10595_v14, %v3775_v51  ;;  %v3788_v40 = vmul.f32 %v10697_v44, %v10602_v36  ;;  %v2376_v7 = vadd.f32 %v2375_v29, %v9994_v59  ;;  %v2152_v41 = vpop.f32.mrf.mxu0  ;;  %4552 = vxpose.xlu1.b32.cont [11/16] %v4498_v23, 128  ;;  %v1448_v23 = vld [vmem:[%s13165_s4 + $0x20] sm:$0xff] }
 0x3cb   : > { %6643 = vrcp.f32 %v10717_v5  ;;  %v10744_v30 = vadd.f32 1.0, %v6632_v62  ;;  %v3783_v19 = vand.u32 2147483648, %v10506_v63  ;;  %v2153_v15 = vadd.f32 %v2152_v41, %v9940_v61  ;;  %v2265_v42 = vpop.f32.mrf.mxu1  ;;  %2569 = vmatpush.msra.mxu0 %v1448_v23 }
 0x3cc   : > { %v10748_v1 = vpop.eup %6635  ;;  %v4435_v51 = vmul.f32 %v10674_v60, %v10289_v9  ;;  %v6289_v21 = vmul.f32 -1.442695, %v1850_v56  ;;  %vm3777_vm2 = vweird.f32 %v10506_v63  ;;  %v2489_v34 = vadd.f32 %v2488_v48, %v2376_v7  ;;  %v13761_v9 = vld [vmem:[#allocation82_spill] sm:$0xff]  ;;  %v13762_v60 = vld [vmem:[#allocation83_spill] sm:$0xff] }
 0x3cd   : > { %v6638_v29 = vpop.eup %6637  ;;  %v4436_v50 = vmul.f32 %v4312_v31, %v10280_v24  ;;  %6645 = vpow2.f32 %v6288_v8  ;;  %vm10756_vm3 = vmor %vm3777_vm2, %vm3778_vm1  ;;  %vm10760_vm4 = vcmp.eq.f32.partialorder %v3781_v16, 8.507059e+37  ;;  %v2266_v41 = vadd.f32 %v2265_v42, %v2153_v15  ;;  %2199 = vmatmul.f32.gmra.mxu0 %v13761_v9  ;;  %2312 = vmatmul.f32.gmra.mxu1 %v13762_v60  ;;  %v4317_v24 = vpop.permute.xlu0 %4316 }
 0x3ce   : > { %v6640_v63 = vpop.eup %6639  ;;  %6647 = vrcp.f32 %v10737_v3  ;;  %v3780_v56 = vsel %vm10756_vm3, %v10595_v14, %v3776_v27  ;;  %v3789_v8 = vsub.f32 1.0, %v3788_v40  ;;  %v4499_v48 = vmul.f32 %v4435_v51, %v2489_v34  ;;  %2425 = vmatmul.f32.gmra.mxu2 %v13761_v9  ;;  %2538 = vmatmul.f32.gmra.mxu3 %v13762_v60  ;;  %v1544_v14 = vld [vmem:[%s13165_s4 + $0x320] sm:$0xff]  ;;  %v13763_v51 = vld [vmem:[#allocation57_spill] sm:$0xff] }
 0x3cf   : > { %v10772_v16 = vpop.eup %6641  ;;  %6649 = vrcp.f32 %v10744_v30  ;;  %v3784_v7 = vor.u32 1.1754944e-38, %v3783_v19  ;;  %v3743_v15 = vmul.f32 %v10638_v47, %v10532_v49  ;;  %v4500_v42 = vmul.f32 %v4436_v50, %v2266_v41  ;;  %2682 = vmatpush.msra.mxu1 %v1544_v14 }
 0x3d0   : > { %v10783_v27 = vadd.f32 1.0, %v6638_v29  ;;  %v4437_v40 = vmul.f32 %v4312_v31, %v10318_v38  ;;  %6651 = vpow2.f32 %v6289_v21  ;;  %v1963_v19 = vadd.f32 %v13763_v51, %v9020_v11 }
 0x3d1   : > { %4584 = vxpose.xlu0.b32.cont [11/16] %v4499_v48, 128  ;;  %v10788_v34 = vpop.eup %6643  ;;  %v10790_v50 = vadd.f32 1.0, %v6640_v63  ;;  %v4438_v41 = vmul.f32 %v4317_v24, %v10342_v43  ;;  %v10795_v35 = vsel %vm10760_vm4, %v3784_v7, %v3780_v56  ;;  %v3796_v29 = vand.u32 2147483647, %v10602_v36  ;;  %v2378_v60 = vpop.f32.mrf.mxu2 }
 0x3d2   : > { %v2491_v38 = vpop.f32.mrf.mxu3  ;;  %v10799_v31 = vmul.f32 %v4317_v24, %v10385_v37  ;;  %v3790_v21 = vmul.f32 %v10697_v44, %v3789_v8  ;;  %vm3792_vm5 = vweird.f32 %v10602_v36  ;;  %v2379_v63 = vadd.f32 %v2378_v60, %v9994_v59  ;;  %v2155_v48 = vpop.f32.mrf.mxu0  ;;  %4553 = vxpose.xlu1.b32.cont [12/16] %v4500_v42, 128  ;;  %v13764_v8 = vld [vmem:[#allocation56_spill] sm:$0xff] }
 0x3d3   : > { %v6646_v43 = vpop.eup %6645  ;;  %v3798_v62 = vand.u32 2147483648, %v10602_v36  ;;  %v3744_v56 = vsub.f32 1.0, %v3743_v15  ;;  %v3758_v7 = vmul.f32 %v10685_v39, %v10588_v33  ;;  %v2156_v23 = vadd.f32 %v2155_v48, %v9940_v61  ;;  %v2268_v14 = vpop.f32.mrf.mxu1  ;;  %v13767_v48 = vld [vmem:[#allocation85_spill] sm:$0xff] }
 0x3d4   : > { %v10808_v37 = vpop.eup %6647  ;;  %6653 = vrcp.f32 %v10783_v27  ;;  %v4327_v24 = vpop.permute.xlu1 %4326  ;;  %v2076_v51 = vadd.f32 %v13764_v8, %v1963_v19  ;;  %vm3793_vm6 = vweird.f32 %v10697_v44  ;;  %v2492_v60 = vadd.f32 %v2491_v38, %v2379_v63 }
 0x3d5   : > { %v10813_v9 = vpop.eup %6649  ;;  %6655 = vrcp.f32 %v10790_v50  ;;  %vm10816_vm7 = vcmp.eq.f32.partialorder %v3796_v29, 8.507059e+37  ;;  %vm3747_vm8 = vweird.f32 %v10532_v49  ;;  %vm3748_vm9 = vweird.f32 %v10638_v47  ;;  %2202 = vmatmul.f32.gmra.mxu0 %v13767_v48  ;;  %2315 = vmatmul.f32.gmra.mxu1 %v13768_v2  ;;  %v4322_v38 = vpop.permute.xlu2 %4321  ;;  %vm10850_vm10 = vmor %vm3792_vm5, %vm3793_vm6 }
 0x3d6   : > { %v2269_v42 = vadd.f32 %v2268_v14, %v2156_v23  ;;  %v6652_v19 = vpop.eup %6651  ;;  %v10824_v8 = vadd.f32 1.0, %v6646_v43  ;;  %v3791_v63 = vadd.f32 %v10697_v44, %v3790_v21  ;;  %v3803_v29 = vmul.f32 %v10706_v6, %v10604_v12  ;;  %2428 = vmatmul.f32.gmra.mxu2 %v13767_v48  ;;  %2541 = vmatmul.f32.gmra.mxu3 %v13768_v2  ;;  %v4332_v21 = vpop.permute.xlu0 %4331  ;;  %vm10891_vm13 = vmor %vm3747_vm8, %vm3748_vm9 }
 0x3d7   : > { %v4501_v26 = vmul.f32 %v4437_v40, %v2492_v60  ;;  %v3799_v55 = vor.u32 1.1754944e-38, %v3798_v62  ;;  %v3745_v23 = vmul.f32 %v10638_v47, %v3744_v56  ;;  %v3759_v14 = vsub.f32 1.0, %v3758_v7 }
 0x3d8   : > { %v4502_v10 = vmul.f32 %v4438_v41, %v2269_v42  ;;  %v10833_v57 = vmul.f32 %v4327_v24, %v10555_v4  ;;  %v10836_v43 = vmul.f32 %v4327_v24, %v10666_v25  ;;  %v6290_v0 = vmul.f32 -1.442695, %v2076_v51 }
 0x3d9   : > { %v13769_v52 = vand.u32 2147483648, %v10532_v49  ;;  %4585 = vxpose.xlu0.b32.cont [12/16] %v4501_v26, 128  ;;  %v10840_v60 = vadd.f32 1.0, %v6652_v19  ;;  %v4440_v62 = vmul.f32 %v4322_v38, %v10445_v22  ;;  %v10844_v56 = vmul.f32 %v4322_v38, %v10498_v46  ;;  %v2381_v22 = vpop.f32.mrf.mxu2 }
 0x3da   : > { %v13772_v25 = vand.u32 2147483647, %v10532_v49  ;;  %vm3762_vm12 = vweird.f32 %v10588_v33  ;;  %v2494_v26 = vpop.f32.mrf.mxu3  ;;  %v10861_v46 = vpop.eup %6653  ;;  %6657 = vrcp.f32 %v10824_v8  ;;  %v3795_v36 = vsel %vm10850_vm10, %v10697_v44, %v3791_v63  ;;  %4554 = vxpose.xlu1.b32.cont [13/16] %v4502_v10, 128  ;;  %v13775_v10 = vld [vmem:[#allocation89_spill] sm:$0xff] }
 0x3db   : > { %v3754_v40 = vor.u32 1.1754944e-38, %v13769_v52  ;;  %v3804_v41 = vsub.f32 1.0, %v3803_v29  ;;  %v2382_v7 = vadd.f32 %v2381_v22, %v9994_v59  ;;  %v2158_v24 = vpop.f32.mrf.mxu0  ;;  %v10868_v51 = vpop.eup %6655  ;;  %v10871_v42 = vmul.f32 %v4332_v21, %v10712_v13  ;;  %v13776_v22 = vld [vmem:[#allocation90_spill] sm:$0xff] }
 0x3dc   : > { %vm10856_vm11 = vcmp.eq.f32.partialorder %v13772_v25, 8.507059e+37  ;;  %v3746_v19 = vadd.f32 %v10638_v47, %v3745_v23  ;;  %v3760_v38 = vmul.f32 %v10685_v39, %v3759_v14  ;;  %v2159_v25 = vadd.f32 %v2158_v24, %v9940_v61  ;;  %v2271_v2 = vpop.f32.mrf.mxu1  ;;  %v4342_v24 = vpop.permute.xlu1 %4341 }
 0x3dd   : > { %v10877_v4 = vmul.f32 %v4332_v21, %v10721_v28  ;;  %6659 = vpow2.f32 %v6290_v0  ;;  %v3818_v44 = vmul.f32 %v10732_v45, %v10629_v17  ;;  %v2495_v63 = vadd.f32 %v2494_v26, %v2382_v7  ;;  %2205 = vmatmul.f32.gmra.mxu0 %v13775_v10  ;;  %2318 = vmatmul.f32.gmra.mxu1 %v13776_v22 }
 0x3de   : > { %v3800_v13 = vsel %vm10816_vm7, %v3799_v55, %v3795_v36  ;;  %v3766_v29 = vand.u32 2147483647, %v10588_v33  ;;  %v3768_v23 = vand.u32 2147483648, %v10588_v33  ;;  %v2272_v14 = vadd.f32 %v2271_v2, %v2159_v25  ;;  %2431 = vmatmul.f32.gmra.mxu2 %v13775_v10  ;;  %2544 = vmatmul.f32.gmra.mxu3 %v13776_v22 }
 0x3df   : > { %vm3763_vm14 = vweird.f32 %v10685_v39  ;;  %v3805_v55 = vmul.f32 %v10706_v6, %v3804_v41  ;;  %v3863_v2 = vmul.f32 %v10788_v34, %v10717_v5  ;;  %v4503_v28 = vmul.f32 %v10799_v31, %v2495_v63  ;;  %v4337_v41 = vpop.permute.xlu2 %4336 }
 0x3e0   : > { %v3750_v49 = vsel %vm10891_vm13, %v10638_v47, %v3746_v19  ;;  %v3761_v15 = vadd.f32 %v10685_v39, %v3760_v38  ;;  %v3811_v21 = vand.u32 2147483647, %v10604_v12  ;;  %v4504_v26 = vmul.f32 %v4440_v62, %v2272_v14  ;;  %v10907_v36 = vpop.eup %6657  ;;  %vm10927_vm2 = vmor %vm3762_vm12, %vm3763_vm14 }
 0x3e1   : > { %6661 = vrcp.f32 %v10840_v60  ;;  %vm3807_vm15 = vweird.f32 %v10604_v12  ;;  %vm3808_vm0 = vweird.f32 %v10706_v6  ;;  %v3819_v31 = vsub.f32 1.0, %v3818_v44  ;;  %4586 = vxpose.xlu0.b32.cont [13/16] %v4503_v28, 128  ;;  %v2384_v38 = vpop.f32.mrf.mxu2 }
 0x3e2   : > { %v10913_v7 = vmul.f32 %v4342_v24, %v10795_v35  ;;  %v10915_v47 = vmul.f32 %v4342_v24, %v3800_v13  ;;  %vm10917_vm1 = vcmp.eq.f32.partialorder %v3766_v29, 8.507059e+37  ;;  %v3769_v62 = vor.u32 1.1754944e-38, %v3768_v23  ;;  %v2497_v25 = vpop.f32.mrf.mxu3  ;;  %4555 = vxpose.xlu1.b32.cont [14/16] %v4504_v26, 128  ;;  %vm10953_vm4 = vmor %vm3807_vm15, %vm3808_vm0 }
 0x3e3   : > { %v6660_v63 = vpop.eup %6659  ;;  %v3755_v14 = vsel %vm10856_vm11, %v3754_v40, %v3750_v49  ;;  %v3806_v44 = vadd.f32 %v10706_v6, %v3805_v55  ;;  %v3864_v13 = vsub.f32 1.0, %v3863_v2  ;;  %v2385_v29 = vadd.f32 %v2384_v38, %v9994_v59  ;;  %v2161_v23 = vpop.f32.mrf.mxu0 }
 0x3e4   : > { %v3765_v24 = vsel %vm10927_vm2, %v10685_v39, %v3761_v15  ;;  %vm10936_vm3 = vcmp.eq.f32.partialorder %v3811_v21, 8.507059e+37  ;;  %v3813_v33 = vand.u32 2147483648, %v10604_v12  ;;  %v2162_v52 = vadd.f32 %v2161_v23, %v9940_v61  ;;  %v2274_v0 = vpop.f32.mrf.mxu1 }
 0x3e5   : > { %v10942_v28 = vmul.f32 %v4337_v41, %v3755_v14  ;;  %v3820_v55 = vmul.f32 %v10732_v45, %v3819_v31  ;;  %v3878_v2 = vmul.f32 %v10808_v37, %v10737_v3  ;;  %v2498_v49 = vadd.f32 %v2497_v25, %v2385_v29  ;;  %v13787_v31 = vld [vmem:[#allocation92_spill] sm:$0xff]  ;;  %v13788_v14 = vld [vmem:[#allocation93_spill] sm:$0xff] }
 0x3e6   : > { %v10947_v38 = vadd.f32 1.0, %v6660_v63  ;;  %v3826_v15 = vand.u32 2147483647, %v10629_v17  ;;  %v3828_v21 = vand.u32 2147483648, %v10629_v17  ;;  %v2275_v26 = vadd.f32 %v2274_v0, %v2162_v52  ;;  %2208 = vmatmul.f32.gmra.mxu0 %v13787_v31  ;;  %2321 = vmatmul.f32.gmra.mxu1 %v13788_v14 }
 0x3e7   : > { %v10961_v25 = vpop.eup %6661  ;;  %v3810_v63 = vsel %vm10953_vm4, %v10706_v6, %v3806_v44  ;;  %vm3822_vm5 = vweird.f32 %v10629_v17  ;;  %v3865_v12 = vmul.f32 %v10788_v34, %v3864_v13  ;;  %v4505_v35 = vmul.f32 %v10844_v56, %v2498_v49  ;;  %2434 = vmatmul.f32.gmra.mxu2 %v13787_v31  ;;  %2547 = vmatmul.f32.gmra.mxu3 %v13788_v14  ;;  %v4347_v44 = vpop.permute.xlu0 %4346 }
 0x3e8   : > { %v3770_v29 = vsel %vm10917_vm1, %v3769_v62, %v3765_v24  ;;  %v3814_v23 = vor.u32 1.1754944e-38, %v3813_v33  ;;  %vm3823_vm6 = vweird.f32 %v10732_v45  ;;  %v4506_v52 = vmul.f32 %v10833_v57, %v2275_v26  ;;  %v13799_v62 = vld [vmem:[#allocation58_spill] sm:$0xff] }
 0x3e9   : > { %v10975_v0 = vmul.f32 %v4337_v41, %v3770_v29  ;;  %v3821_v6 = vadd.f32 %v10732_v45, %v3820_v55  ;;  %vm3867_vm7 = vweird.f32 %v10717_v5  ;;  %v3879_v56 = vsub.f32 1.0, %v3878_v2  ;;  %4587 = vxpose.xlu0.b32.cont [14/16] %v4505_v35, 128  ;;  %v2387_v57 = vpop.f32.mrf.mxu2  ;;  %vm10995_vm10 = vmor %vm3822_vm5, %vm3823_vm6 }
 0x3ea   : > { %6663 = vrcp.f32 %v10947_v38  ;;  %v3815_v19 = vsel %vm10936_vm3, %v3814_v23, %v3810_v63  ;;  %vm10982_vm8 = vcmp.eq.f32.partialorder %v3826_v15, 8.507059e+37  ;;  %v3829_v13 = vor.u32 1.1754944e-38, %v3828_v21  ;;  %v2500_v41 = vpop.f32.mrf.mxu3  ;;  %4556 = vxpose.xlu1.b32.cont [15/16] %v4506_v52, 128  ;;  %v13795_v52 = vld [vmem:[#allocation96_spill] sm:$0xff] }
 0x3eb   : > { %v3866_v24 = vadd.f32 %v10788_v34, %v3865_v12  ;;  %vm3868_vm9 = vweird.f32 %v10788_v34  ;;  %v3833_v33 = vmul.f32 %v10748_v1, %v10672_v18  ;;  %v2388_v55 = vadd.f32 %v2387_v57, %v9994_v59  ;;  %v2164_v2 = vpop.f32.mrf.mxu0 }
 0x3ec   : > { %v10999_v49 = vmul.f32 %v4347_v44, %v3815_v19  ;;  %v3871_v39 = vand.u32 2147483647, %v10717_v5  ;;  %v3873_v15 = vand.u32 2147483648, %v10717_v5  ;;  %v2165_v21 = vadd.f32 %v2164_v2, %v9940_v61  ;;  %v2277_v26 = vpop.f32.mrf.mxu1  ;;  %vm11013_vm11 = vmor %vm3867_vm7, %vm3868_vm9 }
 0x3ed   : > { %v3825_v63 = vsel %vm10995_vm10, %v10732_v45, %v3821_v6  ;;  %v3880_v17 = vmul.f32 %v10808_v37, %v3879_v56  ;;  %v3886_v12 = vand.u32 2147483647, %v10737_v3  ;;  %v2501_v35 = vadd.f32 %v2500_v41, %v2388_v55  ;;  %v13796_v6 = vld [vmem:[#allocation97_spill] sm:$0xff] }
 0x3ee   : > { %vm3882_vm12 = vweird.f32 %v10737_v3  ;;  %vm3883_vm13 = vweird.f32 %v10808_v37  ;;  %v3888_v23 = vand.u32 2147483648, %v10737_v3  ;;  %v2278_v45 = vadd.f32 %v2277_v26, %v2165_v21  ;;  %2211 = vmatmul.f32.gmra.mxu0 %v13795_v52  ;;  %2324 = vmatmul.f32.gmra.mxu1 %v13796_v6 }
 0x3ef   : > { %v3870_v56 = vsel %vm11013_vm11, %v10788_v34, %v3866_v24  ;;  %v3834_v5 = vsub.f32 1.0, %v3833_v33  ;;  %v3848_v19 = vmul.f32 %v10772_v16, %v10699_v20  ;;  %v4507_v57 = vmul.f32 %v10836_v43, %v2501_v35  ;;  %2437 = vmatmul.f32.gmra.mxu2 %v13795_v52  ;;  %2550 = vmatmul.f32.gmra.mxu3 %v13796_v6  ;;  %v4357_v24 = vpop.permute.xlu1 %4356  ;;  %vm11054_vm1 = vmor %vm3882_vm12, %vm3883_vm13  ;;  %v13806_v6 = vld [vmem:[#allocation3_spill] sm:$0xff]  ;;  %v13807_v52 = vld [vmem:[#allocation4_spill] sm:$0xff] }
 0x3f0   : > { %v11030_v41 = vpop.eup %6663  ;;  %v3830_v55 = vsel %vm10982_vm8, %v3829_v13, %v3825_v63  ;;  %vm3872_vm14 = vcmp.eq.f32.partialorder %v3871_v39, 8.507059e+37  ;;  %v3874_v2 = vor.u32 1.1754944e-38, %v3873_v15  ;;  %v4508_v40 = vmul.f32 %v10871_v42, %v2278_v45 }
 0x3f1   : > { %v11035_v34 = vmul.f32 %v4347_v44, %v3830_v55  ;;  %v3881_v33 = vadd.f32 %v10808_v37, %v3880_v17  ;;  %vm11038_vm15 = vcmp.eq.f32.partialorder %v3886_v12, 8.507059e+37  ;;  %v3841_v21 = vand.u32 2147483647, %v10672_v18  ;;  %4588 = vxpose.xlu0.b32.cont [15/16] %v4507_v57, 128  ;;  %v2390_v42 = vpop.f32.mrf.mxu2  ;;  %v13804_v57 = vld [vmem:[#allocation117_spill] sm:$0xff] }
 0x3f2   : > { %v3875_v26 = vsel %vm3872_vm14, %v3874_v2, %v3870_v56  ;;  %v3889_v35 = vor.u32 1.1754944e-38, %v3888_v23  ;;  %vm3837_vm0 = vweird.f32 %v10672_v18  ;;  %v1740_v13 = vadd.f32 %v13799_v62, %v9005_v53  ;;  %v2503_v44 = vpop.f32.mrf.mxu3  ;;  %4557 = vxpose.xlu1.b32.end [16/16] %v4508_v40, 128  ;;  %v13805_v40 = vld [vmem:[#allocation116_spill] sm:$0xff] }
 0x3f3   : > { %v3835_v39 = vmul.f32 %v10748_v1, %v3834_v5  ;;  %v3849_v15 = vsub.f32 1.0, %v3848_v19  ;;  %v3893_v63 = vmul.f32 %v10813_v9, %v10744_v30  ;;  %v2391_v17 = vadd.f32 %v2390_v42, %v9994_v59  ;;  %v2167_v12 = vpop.f32.mrf.mxu0 }
 0x3f4   : > { %v11058_v23 = vmul.f32 %v4357_v24, %v3875_v26  ;;  %vm3838_vm2 = vweird.f32 %v10748_v1  ;;  %v3843_v45 = vand.u32 2147483648, %v10672_v18  ;;  %v2168_v56 = vadd.f32 %v2167_v12, %v9940_v61  ;;  %v2280_v5 = vpop.f32.mrf.mxu1 }
 0x3f5   : > { %v3885_v19 = vsel %vm11054_vm1, %v10808_v37, %v3881_v33  ;;  %vm11066_vm3 = vcmp.eq.f32.partialorder %v3841_v21, 8.507059e+37  ;;  %v1966_v55 = vadd.f32 %v13804_v57, %v9020_v11  ;;  %v2504_v2 = vadd.f32 %v2503_v44, %v2391_v17  ;;  %vm11096_vm6 = vmor %vm3837_vm0, %vm3838_vm2 }
 0x3f6   : > { %v3856_v26 = vand.u32 2147483647, %v10699_v20  ;;  %v3858_v62 = vand.u32 2147483648, %v10699_v20  ;;  %v1853_v42 = vadd.f32 %v13805_v40, %v1740_v13  ;;  %v2281_v12 = vadd.f32 %v2280_v5, %v2168_v56  ;;  %2570 = vmatmul.f32.vlgmr.msra.gmra.mxu0 %v13806_v6  ;;  %2683 = vmatmul.f32.vlgmr.msra.gmra.mxu1 %v13807_v52 }
 0x3f7   : > { %v3836_v37 = vadd.f32 %v10748_v1, %v3835_v39  ;;  %v3850_v33 = vmul.f32 %v10772_v16, %v3849_v15  ;;  %v3894_v21 = vsub.f32 1.0, %v3893_v63  ;;  %v4509_v29 = vmul.f32 %v10877_v4, %v2504_v2  ;;  %2796 = vmatmul.f32.vlgmr.msra.gmra.mxu2 %v13806_v6  ;;  %2909 = vmatmul.f32.vlgmr.msra.gmra.mxu3 %v13807_v52  ;;  %v13808_v4 = vld [vmem:[#allocation118_spill] sm:$0xff] }
 0x3f8   : > { %v3890_v11 = vsel %vm11038_vm15, %v3889_v35, %v3885_v19  ;;  %vm3852_vm4 = vweird.f32 %v10699_v20  ;;  %v3908_v13 = vmul.f32 %v10861_v46, %v10783_v27  ;;  %v4510_v44 = vmul.f32 %v10942_v28, %v2281_v12 }
 0x3f9   : > { %v11088_v39 = vmul.f32 %v4357_v24, %v3890_v11  ;;  %v3844_v15 = vor.u32 1.1754944e-38, %v3843_v45  ;;  %vm3853_vm5 = vweird.f32 %v10772_v16  ;;  %v2079_v63 = vadd.f32 %v13808_v4, %v1966_v55  ;;  %4589 = vxpose.xlu0.b32.end [16/16] %v4509_v29, 128  ;;  %v2393_v43 = vpop.f32.mrf.mxu2  ;;  %v13816_v11 = vld [vmem:[#allocation7_spill] sm:$0xff] }
 0x3fa   : > { %vm11100_vm7 = vcmp.eq.f32.partialorder %v3856_v26, 8.507059e+37  ;;  %v3859_v28 = vor.u32 1.1754944e-38, %v3858_v62  ;;  %vm3897_vm8 = vweird.f32 %v10744_v30  ;;  %v6291_v24 = vmul.f32 -1.442695, %v1853_v42  ;;  %v2506_v35 = vpop.f32.mrf.mxu3  ;;  %4606 = vxpose.xlu2.b32.start [1/16] %v4510_v44, 128  ;;  %v4352_v26 = vpop.permute.xlu2 %4351  ;;  %vm11123_vm10 = vmor %vm3852_vm4, %vm3853_vm5 }
 0x3fb   : > { %v3840_v17 = vsel %vm11096_vm6, %v10748_v1, %v3836_v37  ;;  %v3851_v18 = vadd.f32 %v10772_v16, %v3850_v33  ;;  %v3895_v45 = vmul.f32 %v10813_v9, %v3894_v21  ;;  %v2394_v56 = vadd.f32 %v2393_v43, %v9994_v59  ;;  %v2170_v5 = vpop.f32.mrf.mxu0  ;;  %v13815_v33 = vld [vmem:[#allocation119_spill] sm:$0xff] }
 0x3fc   : > { %vm3898_vm9 = vweird.f32 %v10813_v9  ;;  %v3901_v19 = vand.u32 2147483647, %v10744_v30  ;;  %v3909_v57 = vsub.f32 1.0, %v3908_v13  ;;  %v2171_v55 = vadd.f32 %v2170_v5, %v9940_v61  ;;  %v2283_v2 = vpop.f32.mrf.mxu1  ;;  %v13817_v13 = vld [vmem:[#allocation8_spill] sm:$0xff] }
 0x3fd   : > { %v3903_v62 = vand.u32 2147483648, %v10744_v30  ;;  %v3923_v1 = vmul.f32 %v10868_v51, %v10790_v50  ;;  %v6292_v40 = vmul.f32 -1.442695, %v2079_v63  ;;  %v2507_v42 = vadd.f32 %v2506_v35, %v2394_v56  ;;  %vm11156_vm13 = vmor %vm3897_vm8, %vm3898_vm9 }
 0x3fe   : > { %v3845_v12 = vsel %vm11066_vm3, %v3844_v15, %v3840_v17  ;;  %6665 = vpow2.f32 %v6291_v24  ;;  %v1743_v21 = vadd.f32 %v13815_v33, %v9005_v53  ;;  %v2284_v29 = vadd.f32 %v2283_v2, %v2171_v55  ;;  %2573 = vmatmul.f32.gmra.mxu0 %v13816_v11  ;;  %2686 = vmatmul.f32.gmra.mxu1 %v13817_v13 }
 0x3ff   : > { %v3855_v3 = vsel %vm11123_vm10, %v10772_v16, %v3851_v18  ;;  %v3896_v44 = vadd.f32 %v10813_v9, %v3895_v45  ;;  %vm3912_vm11 = vweird.f32 %v10783_v27  ;;  %v4511_v20 = vmul.f32 %v10975_v0, %v2507_v42  ;;  %2799 = vmatmul.f32.gmra.mxu2 %v13816_v11  ;;  %2912 = vmatmul.f32.gmra.mxu3 %v13817_v13  ;;  %v13822_v18 = vld [vmem:[#allocation120_spill] sm:$0xff] }
 0x400   : > { %v11139_v15 = vmul.f32 %v4352_v26, %v3845_v12  ;;  %v3910_v4 = vmul.f32 %v10861_v46, %v3909_v57  ;;  %v3918_v63 = vand.u32 2147483648, %v10783_v27  ;;  %v4512_v52 = vmul.f32 %v10913_v7, %v2284_v29  ;;  %v13825_v29 = vld [vmem:[#allocation121_spill] sm:$0xff] }
 0x401   : > { %vm11144_vm12 = vcmp.eq.f32.partialorder %v3901_v19, 8.507059e+37  ;;  %v3924_v24 = vsub.f32 1.0, %v3923_v1  ;;  %v3938_v0 = vmul.f32 %v10907_v36, %v10824_v8  ;;  %6667 = vpow2.f32 %v6292_v40  ;;  %4638 = vxpose.xlu0.b32.start [1/16] %v4511_v20, 128  ;;  %v2396_v56 = vpop.f32.mrf.mxu2  ;;  %v11174_v1 = vpop.permute.xlu0 %4361 }
 0x402   : > { %v3860_v43 = vsel %vm11100_vm7, %v3859_v28, %v3855_v3  ;;  %v3904_v7 = vor.u32 1.1754944e-38, %v3903_v62  ;;  %v3916_v17 = vand.u32 2147483647, %v10783_v27  ;;  %v1856_v45 = vadd.f32 %v13822_v18, %v1743_v21  ;;  %v2509_v5 = vpop.f32.mrf.mxu3  ;;  %4607 = vxpose.xlu2.b32.cont [2/16] %v4512_v52, 128  ;;  %v13826_v3 = vld [vmem:[#allocation9_spill] sm:$0xff] }
 0x403   : > { %v11162_v19 = vmul.f32 %v4352_v26, %v3860_v43  ;;  %v3900_v6 = vsel %vm11156_vm13, %v10813_v9, %v3896_v44  ;;  %vm3913_vm14 = vweird.f32 %v10861_v46  ;;  %v2397_v30 = vadd.f32 %v2396_v56, %v9994_v59  ;;  %v2173_v28 = vpop.f32.mrf.mxu0  ;;  %v13827_v44 = vld [vmem:[#allocation10_spill] sm:$0xff] }
 0x404   : > { %v6666_v57 = vpop.eup %6665  ;;  %v11170_v55 = vadd.f32 %v10861_v46, %v3910_v4  ;;  %v3919_v2 = vor.u32 1.1754944e-38, %v3918_v63  ;;  %vm3927_vm15 = vweird.f32 %v10790_v50  ;;  %v2174_v62 = vadd.f32 %v2173_v28, %v9940_v61  ;;  %v2286_v26 = vpop.f32.mrf.mxu1  ;;  %vm11200_vm1 = vmor %vm3912_vm11, %vm3913_vm14 }
 0x405   : > { %v3925_v40 = vmul.f32 %v10868_v51, %v3924_v24  ;;  %v3939_v9 = vsub.f32 1.0, %v3938_v0  ;;  %v3953_v42 = vmul.f32 %v10961_v25, %v10840_v60  ;;  %v2510_v12 = vadd.f32 %v2509_v5, %v2397_v30 }
 0x406   : > { %v3905_v37 = vsel %vm11144_vm12, %v3904_v7, %v3900_v6  ;;  %vm11181_vm0 = vcmp.eq.f32.partialorder %v3916_v17, 8.507059e+37  ;;  %v6293_v21 = vmul.f32 -1.442695, %v1856_v45  ;;  %v1746_v11 = vadd.f32 %v13825_v29, %v9005_v53  ;;  %2576 = vmatmul.f32.gmra.mxu0 %v13826_v3  ;;  %2689 = vmatmul.f32.gmra.mxu1 %v13827_v44  ;;  %v13830_v45 = vld [vmem:[#allocation122_spill] sm:$0xff] }
 0x407   : > { %v2287_v13 = vadd.f32 %v2286_v26, %v2174_v62  ;;  %v6668_v20 = vpop.eup %6667  ;;  %v3931_v4 = vand.u32 2147483647, %v10790_v50  ;;  %v3933_v63 = vand.u32 2147483648, %v10790_v50  ;;  %v11191_v52 = vadd.f32 1.0, %v6666_v57  ;;  %2802 = vmatmul.f32.gmra.mxu2 %v13826_v3  ;;  %2915 = vmatmul.f32.gmra.mxu3 %v13827_v44  ;;  %v13835_v62 = vld [vmem:[#allocation123_spill] sm:$0xff]  ;;  %v13837_v3 = vld [vmem:[#allocation12_spill] sm:$0xff] }
 0x408   : > { %v4513_v16 = vmul.f32 %v10915_v47, %v2510_v12  ;;  %v11205_v0 = vmul.f32 %v11174_v1, %v3905_v37  ;;  %vm3928_vm2 = vweird.f32 %v10868_v51  ;;  %vm3942_vm3 = vweird.f32 %v10824_v8 }
 0x409   : > { %v4514_v47 = vmul.f32 %v10999_v49, %v2287_v13  ;;  %v3915_v43 = vsel %vm11200_vm1, %v10861_v46, %v11170_v55  ;;  %v3926_v27 = vadd.f32 %v10868_v51, %v3925_v40  ;;  %v3940_v35 = vmul.f32 %v10907_v36, %v3939_v9  ;;  %v2399_v49 = vpop.f32.mrf.mxu2  ;;  %vm11231_vm5 = vmor %vm3927_vm15, %vm3928_vm2  ;;  %v13836_v13 = vld [vmem:[#allocation11_spill] sm:$0xff] }
 0x40a   : > { %v3954_v7 = vsub.f32 1.0, %v3953_v42  ;;  %4639 = vxpose.xlu0.b32.cont [2/16] %v4513_v16, 128  ;;  %v3968_v17 = vmul.f32 %v11030_v41, %v10947_v38  ;;  %v11218_v18 = vadd.f32 1.0, %v6668_v20  ;;  %6669 = vpow2.f32 %v6293_v21  ;;  %v2512_v5 = vpop.f32.mrf.mxu3 }
 0x40b   : > { %v1859_v56 = vadd.f32 %v13830_v45, %v1746_v11  ;;  %4608 = vxpose.xlu2.b32.cont [3/16] %v4514_v47, 128  ;;  %vm11221_vm4 = vcmp.eq.f32.partialorder %v3931_v4, 8.507059e+37  ;;  %v3934_v46 = vor.u32 1.1754944e-38, %v3933_v63  ;;  %6671 = vrcp.f32 %v11191_v52  ;;  %v2176_v28 = vpop.f32.mrf.mxu0 }
 0x40c   : > { %v2400_v30 = vadd.f32 %v2399_v49, %v9994_v59  ;;  %vm3943_vm6 = vweird.f32 %v10907_v36  ;;  %v3946_v55 = vand.u32 2147483647, %v10824_v8  ;;  %v6294_v26 = vmul.f32 -1.442695, %v13835_v62  ;;  %v2289_v9 = vpop.f32.mrf.mxu1 }
 0x40d   : > { %v2177_v40 = vadd.f32 %v2176_v28, %v9940_v61  ;;  %v3930_v42 = vsel %vm11231_vm5, %v10868_v51, %v3926_v27  ;;  %v3941_v12 = vadd.f32 %v10907_v36, %v3940_v35  ;;  %v3955_v50 = vmul.f32 %v10961_v25, %v3954_v7  ;;  %vm11268_vm9 = vmor %vm3942_vm3, %vm3943_vm6 }
 0x40e   : > { %v2513_v37 = vadd.f32 %v2512_v5, %v2400_v30  ;;  %v3969_v21 = vsub.f32 1.0, %v3968_v17  ;;  %6673 = vrcp.f32 %v11218_v18  ;;  %v6295_v29 = vmul.f32 -1.442695, %v1859_v56  ;;  %2579 = vmatmul.f32.gmra.mxu0 %v13836_v13  ;;  %2692 = vmatmul.f32.gmra.mxu1 %v13837_v3  ;;  %v13847_v30 = vld [vmem:[#allocation59_spill] sm:$0xff] }
 0x40f   : > { %v2290_v11 = vadd.f32 %v2289_v9, %v2177_v40  ;;  %v3920_v44 = vsel %vm11181_vm0, %v3919_v2, %v3915_v43  ;;  %v3948_v20 = vand.u32 2147483648, %v10824_v8  ;;  %v3961_v51 = vand.u32 2147483647, %v10840_v60  ;;  %2805 = vmatmul.f32.gmra.mxu2 %v13836_v13  ;;  %2918 = vmatmul.f32.gmra.mxu3 %v13837_v3  ;;  %v13842_v8 = vld [vmem:[#allocation60_spill] sm:$0xff]  ;;  %v13850_v13 = vld [vmem:[#allocation14_spill] sm:$0xff] }
 0x410   : > { %v4515_v4 = vmul.f32 %v11035_v34, %v2513_v37  ;;  %v6670_v63 = vpop.eup %6669  ;;  %vm11254_vm7 = vcmp.eq.f32.partialorder %v3946_v55, 8.507059e+37  ;;  %vm3957_vm8 = vweird.f32 %v10840_v60  ;;  %6675 = vpow2.f32 %v6294_v26  ;;  %v13848_v37 = vld [vmem:[#allocation61_spill] sm:$0xff] }
 0x411   : > { %v4516_v2 = vmul.f32 %v11139_v15, %v2290_v11  ;;  %v11260_v33 = vpop.eup %6671  ;;  %v3935_v24 = vsel %vm11221_vm4, %v3934_v46, %v3930_v42  ;;  %v3956_v47 = vadd.f32 %v10961_v25, %v3955_v50  ;;  %vm3958_vm10 = vweird.f32 %v10961_v25  ;;  %v2402_v7 = vpop.f32.mrf.mxu2  ;;  %v13849_v11 = vld [vmem:[#allocation13_spill] sm:$0xff] }
 0x412   : > { %v3963_v43 = vand.u32 2147483648, %v10840_v60  ;;  %4640 = vxpose.xlu0.b32.cont [3/16] %v4515_v4, 128  ;;  %v3945_v15 = vsel %vm11268_vm9, %v10907_v36, %v3941_v12  ;;  %v3970_v27 = vmul.f32 %v11030_v41, %v3969_v21  ;;  %6677 = vpow2.f32 %v6295_v29  ;;  %v2515_v17 = vpop.f32.mrf.mxu3  ;;  %vm11294_vm12 = vmor %vm3957_vm8, %vm3958_vm10  ;;  %v4367_v42 = vpop.permute.xlu2 %4366 }
 0x413   : > { %v1749_v35 = vadd.f32 %v13842_v8, %v9005_v53  ;;  %4609 = vxpose.xlu2.b32.cont [4/16] %v4516_v2, 128  ;;  %v3949_v45 = vor.u32 1.1754944e-38, %v3948_v20  ;;  %vm11281_vm11 = vcmp.eq.f32.partialorder %v3961_v51, 8.507059e+37  ;;  %v11285_v49 = vadd.f32 1.0, %v6670_v63  ;;  %v2179_v6 = vpop.f32.mrf.mxu0 }
 0x414   : > { %v2403_v5 = vadd.f32 %v2402_v7, %v9994_v59  ;;  %v11288_v36 = vpop.eup %6673  ;;  %vm3972_vm13 = vweird.f32 %v10947_v38  ;;  %v6296_v28 = vmul.f32 -1.442695, %v13847_v30  ;;  %v3983_v57 = vmul.f32 %v11260_v33, %v11191_v52  ;;  %v2292_v62 = vpop.f32.mrf.mxu1 }
 0x415   : > { %v2180_v55 = vadd.f32 %v2179_v6, %v9940_v61  ;;  %v3950_v26 = vsel %vm11254_vm7, %v3949_v45, %v3945_v15  ;;  %v3960_v60 = vsel %vm11294_vm12, %v10961_v25, %v3956_v47  ;;  %vm3973_vm14 = vweird.f32 %v11030_v41  ;;  %v11327_v47 = vpop.permute.xlu1 %4371 }
 0x416   : > { %v2516_v40 = vadd.f32 %v2515_v17, %v2403_v5  ;;  %v6676_v9 = vpop.eup %6675  ;;  %v3964_v12 = vor.u32 1.1754944e-38, %v3963_v43  ;;  %v3971_v50 = vadd.f32 %v11030_v41, %v3970_v27  ;;  %v1862_v21 = vadd.f32 %v13848_v37, %v1749_v35  ;;  %2582 = vmatmul.f32.gmra.mxu0 %v13849_v11  ;;  %2695 = vmatmul.f32.gmra.mxu1 %v13850_v13  ;;  %vm11335_vm15 = vmor %vm3972_vm13, %vm3973_vm14 }
 0x417   : > { %v2293_v29 = vadd.f32 %v2292_v62, %v2180_v55  ;;  %v3978_v3 = vand.u32 2147483648, %v10947_v38  ;;  %6679 = vrcp.f32 %v11285_v49  ;;  %v3998_v25 = vmul.f32 %v11288_v36, %v11218_v18  ;;  %2808 = vmatmul.f32.gmra.mxu2 %v13849_v11  ;;  %2921 = vmatmul.f32.gmra.mxu3 %v13850_v13 }
 0x418   : > { %v4517_v20 = vmul.f32 %v11162_v19, %v2516_v40  ;;  %v6678_v51 = vpop.eup %6677  ;;  %v3976_v4 = vand.u32 2147483647, %v10947_v38  ;;  %6681 = vpow2.f32 %v6296_v28  ;;  %v3984_v63 = vsub.f32 1.0, %v3983_v57  ;;  %v13855_v40 = vld [vmem:[#allocation64_spill] sm:$0xff] }
 0x419   : > { %v4518_v16 = vmul.f32 %v11058_v23, %v2293_v29  ;;  %v11323_v2 = vmul.f32 %v11174_v1, %v3920_v44  ;;  %v11325_v34 = vmul.f32 %v4367_v42, %v3935_v24  ;;  %v3965_v19 = vsel %vm11281_vm11, %v3964_v12, %v3960_v60  ;;  %v13853_v24 = vld [vmem:[#allocation65_spill] sm:$0xff]  ;;  %v2405_v8 = vpop.f32.mrf.mxu2  ;;  %v13856_v12 = vld [vmem:[#allocation15_spill] sm:$0xff] }
 0x41a   : > { %v11339_v15 = vadd.f32 1.0, %v6676_v9  ;;  %4641 = vxpose.xlu0.b32.cont [4/16] %v4517_v20, 128  ;;  %v11341_v23 = vmul.f32 %v4367_v42, %v3950_v26  ;;  %v3975_v1 = vsel %vm11335_vm15, %v11030_v41, %v3971_v50  ;;  %v6297_v44 = vmul.f32 -1.442695, %v1862_v21  ;;  %v2518_v35 = vpop.f32.mrf.mxu3  ;;  %v13854_v26 = vld [vmem:[#allocation62_spill] sm:$0xff]  ;;  %v13857_v50 = vld [vmem:[#allocation16_spill] sm:$0xff] }
 0x41b   : > { %v1752_v27 = vadd.f32 %v13853_v24, %v9005_v53  ;;  %4610 = vxpose.xlu2.b32.cont [5/16] %v4518_v16, 128  ;;  %v3979_v38 = vor.u32 1.1754944e-38, %v3978_v3  ;;  %v11348_v7 = vadd.f32 1.0, %v6678_v51  ;;  %v3999_v17 = vsub.f32 1.0, %v3998_v25  ;;  %v2182_v56 = vpop.f32.mrf.mxu0 }
 0x41c   : > { %v2406_v45 = vadd.f32 %v2405_v8, %v9994_v59  ;;  %vm3977_vm0 = vcmp.eq.f32.partialorder %v3976_v4, 8.507059e+37  ;;  %v11352_v5 = vmul.f32 %v11327_v47, %v3965_v19  ;;  %v3985_v41 = vmul.f32 %v11260_v33, %v3984_v63  ;;  %v2295_v46 = vpop.f32.mrf.mxu1 }
 0x41d   : > { %v2183_v6 = vadd.f32 %v2182_v56, %v9940_v61  ;;  %v11356_v30 = vpop.eup %6679  ;;  %v11358_v28 = vsel %vm3977_vm0, %v3979_v38, %v3975_v1  ;;  %6683 = vrcp.f32 %v11339_v15  ;;  %v3991_v57 = vand.u32 2147483647, %v11191_v52 }
 0x41e   : > { %v2519_v55 = vadd.f32 %v2518_v35, %v2406_v45  ;;  %v6682_v62 = vpop.eup %6681  ;;  %6685 = vpow2.f32 %v6297_v44  ;;  %v6298_v60 = vmul.f32 -1.442695, %v13854_v26  ;;  %v1865_v9 = vadd.f32 %v13855_v40, %v1752_v27  ;;  %2585 = vmatmul.f32.gmra.mxu0 %v13856_v12  ;;  %2698 = vmatmul.f32.gmra.mxu1 %v13857_v50  ;;  %v13862_v35 = vld [vmem:[#allocation66_spill] sm:$0xff]  ;;  %v13865_v26 = vld [vmem:[#allocation17_spill] sm:$0xff] }
 0x41f   : > { %v2296_v42 = vadd.f32 %v2295_v46, %v2183_v6  ;;  %6687 = vrcp.f32 %v11348_v7  ;;  %v3993_v37 = vand.u32 2147483648, %v11191_v52  ;;  %v4000_v21 = vmul.f32 %v11288_v36, %v3999_v17  ;;  %2811 = vmatmul.f32.gmra.mxu2 %v13856_v12  ;;  %2924 = vmatmul.f32.gmra.mxu3 %v13857_v50 }
 0x420   : > { %v4519_v29 = vmul.f32 %v11088_v39, %v2519_v55  ;;  %v3986_v11 = vadd.f32 %v11260_v33, %v3985_v41  ;;  %vm3988_vm1 = vweird.f32 %v11260_v33  ;;  %v4008_v13 = vand.u32 2147483648, %v11218_v18 }
 0x421   : > { %v4520_v3 = vmul.f32 %v11205_v0, %v2296_v42  ;;  %v11376_v25 = vadd.f32 1.0, %v6682_v62  ;;  %vm3987_vm2 = vweird.f32 %v11191_v52  ;;  %vm4002_vm3 = vweird.f32 %v11218_v18  ;;  %v2408_v4 = vpop.f32.mrf.mxu2  ;;  %v4377_v42 = vpop.permute.xlu0 %4376 }
 0x422   : > { %v4013_v39 = vmul.f32 %v11356_v30, %v11285_v49  ;;  %4642 = vxpose.xlu0.b32.cont [5/16] %v4519_v29, 128  ;;  %6689 = vpow2.f32 %v6298_v60  ;;  %v6299_v20 = vmul.f32 -1.442695, %v1865_v9  ;;  %vm11382_vm4 = vcmp.eq.f32.partialorder %v3991_v57, 8.507059e+37  ;;  %v2521_v0 = vpop.f32.mrf.mxu3  ;;  %vm11391_vm6 = vmor %vm3987_vm2, %vm3988_vm1  ;;  %v13866_v60 = vld [vmem:[#allocation18_spill] sm:$0xff] }
 0x423   : > { %vm4003_vm5 = vweird.f32 %v11288_v36  ;;  %4611 = vxpose.xlu2.b32.cont [6/16] %v4520_v3, 128  ;;  %v11387_v63 = vpop.eup %6683  ;;  %v3994_v16 = vor.u32 1.1754944e-38, %v3993_v37  ;;  %v4001_v19 = vadd.f32 %v11288_v36, %v4000_v21  ;;  %v4006_v43 = vand.u32 2147483647, %v11218_v18  ;;  %v2185_v44 = vpop.f32.mrf.mxu0  ;;  %v13867_v37 = vld [vmem:[#allocation67_spill] sm:$0xff]  ;;  %v13868_v29 = vld [vmem:[#allocation70_spill] sm:$0xff] }
 0x424   : > { %v2409_v1 = vadd.f32 %v2408_v4, %v9994_v59  ;;  %v6686_v24 = vpop.eup %6685  ;;  %v3990_v27 = vsel %vm11391_vm6, %v11260_v33, %v3986_v11  ;;  %v4009_v8 = vor.u32 1.1754944e-38, %v4008_v13  ;;  %v1755_v38 = vadd.f32 %v13862_v35, %v9005_v53  ;;  %v2298_v45 = vpop.f32.mrf.mxu1  ;;  %vm11412_vm7 = vmor %vm4002_vm3, %vm4003_vm5 }
 0x425   : > { %v2186_v17 = vadd.f32 %v2185_v44, %v9940_v61  ;;  %v11404_v56 = vpop.eup %6687  ;;  %6691 = vrcp.f32 %v11376_v25  ;;  %v4014_v41 = vsub.f32 1.0, %v4013_v39  ;;  %v4021_v6 = vand.u32 2147483647, %v11285_v49 }
 0x426   : > { %v2522_v46 = vadd.f32 %v2521_v0, %v2409_v1  ;;  %6693 = vpow2.f32 %v6299_v20  ;;  %v4023_v57 = vand.u32 2147483648, %v11285_v49  ;;  %v4028_v55 = vmul.f32 %v11387_v63, %v11339_v15  ;;  %2588 = vmatmul.f32.gmra.mxu0 %v13865_v26  ;;  %2701 = vmatmul.f32.gmra.mxu1 %v13866_v60 }
 0x427   : > { %v2299_v62 = vadd.f32 %v2298_v45, %v2186_v17  ;;  %v11421_v40 = vadd.f32 1.0, %v6686_v24  ;;  %v3995_v9 = vsel %vm11382_vm4, %v3994_v16, %v3990_v27  ;;  %v4005_v18 = vsel %vm11412_vm7, %v11288_v36, %v4001_v19  ;;  %2814 = vmatmul.f32.gmra.mxu2 %v13865_v26  ;;  %2927 = vmatmul.f32.gmra.mxu3 %v13866_v60 }
 0x428   : > { %v4521_v12 = vmul.f32 %v11323_v2, %v2522_v46  ;;  %v6690_v50 = vpop.eup %6689  ;;  %v6300_v21 = vmul.f32 -1.442695, %v13867_v37  ;;  %v1868_v11 = vadd.f32 %v13868_v29, %v1755_v38  ;;  %v4043_v13 = vmul.f32 %v11404_v56, %v11348_v7 }
 0x429   : > { %v4522_v3 = vmul.f32 %v11325_v34, %v2299_v62  ;;  %v11438_v36 = vmul.f32 %v11327_v47, %v11358_v28  ;;  %vm4007_vm8 = vcmp.eq.f32.partialorder %v4006_v43, 8.507059e+37  ;;  %v4015_v2 = vmul.f32 %v11356_v30, %v4014_v41  ;;  %v2411_v0 = vpop.f32.mrf.mxu2 }
 0x42a   : > { %vm4017_vm9 = vweird.f32 %v11285_v49  ;;  %4643 = vxpose.xlu0.b32.cont [6/16] %v4521_v12, 128  ;;  %v4010_v39 = vsel %vm4007_vm8, %v4009_v8, %v4005_v18  ;;  %v11442_v20 = vmul.f32 %v4377_v42, %v3995_v9  ;;  %v11444_v51 = vor.u32 1.1754944e-38, %v4023_v57  ;;  %v2524_v52 = vpop.f32.mrf.mxu3  ;;  %v13872_v57 = vld [vmem:[#allocation19_spill] sm:$0xff]  ;;  %v13874_v9 = vld [vmem:[#allocation76_spill] sm:$0xff] }
 0x42b   : > { %v4029_v4 = vsub.f32 1.0, %v4028_v55  ;;  %4612 = vxpose.xlu2.b32.cont [7/16] %v4522_v3, 128  ;;  %v11446_v34 = vpop.eup %6691  ;;  %6695 = vrcp.f32 %v11421_v40  ;;  %v11449_v47 = vadd.f32 1.0, %v6690_v50  ;;  %vm4018_vm10 = vweird.f32 %v11356_v30  ;;  %v2188_v16 = vpop.f32.mrf.mxu0  ;;  %v13873_v55 = vld [vmem:[#allocation20_spill] sm:$0xff] }
 0x42c   : > { %v2412_v28 = vadd.f32 %v2411_v0, %v9994_v59  ;;  %v6694_v19 = vpop.eup %6693  ;;  %6697 = vpow2.f32 %v6300_v21  ;;  %vm11453_vm11 = vcmp.eq.f32.partialorder %v4021_v6, 8.507059e+37  ;;  %v6301_v1 = vmul.f32 -1.442695, %v1868_v11  ;;  %v2301_v27 = vpop.f32.mrf.mxu1  ;;  %v13871_v6 = vld [vmem:[#allocation71_spill] sm:$0xff]  ;;  %vm11487_vm13 = vmor %vm4017_vm9, %vm4018_vm10  ;;  %v13881_v3 = vld [vmem:[#allocation72_spill] sm:$0xff] }
 0x42d   : > { %v4044_v44 = vsub.f32 1.0, %v4043_v13  ;;  %v2189_v24 = vadd.f32 %v2188_v16, %v9940_v61  ;;  %v4016_v8 = vadd.f32 %v11356_v30, %v4015_v2  ;;  %vm4032_vm12 = vweird.f32 %v11339_v15 }
 0x42e   : > { %v4036_v35 = vand.u32 2147483647, %v11339_v15  ;;  %v4038_v38 = vand.u32 2147483648, %v11339_v15  ;;  %v2525_v17 = vadd.f32 %v2524_v52, %v2412_v28  ;;  %v4030_v45 = vmul.f32 %v11387_v63, %v4029_v4  ;;  %2591 = vmatmul.f32.gmra.mxu0 %v13872_v57  ;;  %2704 = vmatmul.f32.gmra.mxu1 %v13873_v55 }
 0x42f   : > { %v4051_v41 = vand.u32 2147483647, %v11348_v7  ;;  %v1758_v46 = vadd.f32 %v13871_v6, %v9005_v53  ;;  %v2302_v33 = vadd.f32 %v2301_v27, %v2189_v24  ;;  %6699 = vrcp.f32 %v11449_v47  ;;  %2817 = vmatmul.f32.gmra.mxu2 %v13872_v57  ;;  %2930 = vmatmul.f32.gmra.mxu3 %v13873_v55  ;;  %v13885_v57 = vld [vmem:[#allocation21_spill] sm:$0xff]  ;;  %v13886_v55 = vld [vmem:[#allocation22_spill] sm:$0xff] }
 0x430   : > { %v11469_v62 = vadd.f32 1.0, %v6694_v19  ;;  %v4058_v26 = vmul.f32 %v11446_v34, %v11376_v25  ;;  %v4523_v60 = vmul.f32 %v11341_v23, %v2525_v17  ;;  %6701 = vpow2.f32 %v6301_v1 }
 0x431   : > { %v6302_v18 = vmul.f32 -1.442695, %v13874_v9  ;;  %v4045_v12 = vmul.f32 %v11404_v56, %v4044_v44  ;;  %v4524_v50 = vmul.f32 %v11352_v5, %v2302_v33  ;;  %v11479_v37 = vpop.eup %6695  ;;  %v11481_v21 = vmul.f32 %v4377_v42, %v4010_v39  ;;  %v2414_v39 = vpop.f32.mrf.mxu2  ;;  %v13884_v33 = vld [vmem:[#allocation80_spill] sm:$0xff] }
 0x432   : > { %v11491_v29 = vor.u32 1.1754944e-38, %v4038_v38  ;;  %vm4047_vm14 = vweird.f32 %v11348_v7  ;;  %v4053_v11 = vand.u32 2147483648, %v11348_v7  ;;  %4644 = vxpose.xlu0.b32.cont [7/16] %v4523_v60, 128  ;;  %v6698_v5 = vpop.eup %6697  ;;  %v4020_v42 = vsel %vm11487_vm13, %v11356_v30, %v4016_v8  ;;  %v2527_v4 = vpop.f32.mrf.mxu3 }
 0x433   : > { %vm4033_vm15 = vweird.f32 %v11387_v63  ;;  %vm11499_vm0 = vcmp.eq.f32.partialorder %v4036_v35, 8.507059e+37  ;;  %vm4048_vm1 = vweird.f32 %v11404_v56  ;;  %vm11504_vm2 = vcmp.eq.f32.partialorder %v4051_v41, 8.507059e+37  ;;  %4613 = vxpose.xlu2.b32.cont [8/16] %v4524_v50, 128  ;;  %v2191_v28 = vpop.f32.mrf.mxu0 }
 0x434   : > { %v1871_v2 = vadd.f32 %v13881_v3, %v1758_v46  ;;  %6703 = vrcp.f32 %v11469_v62  ;;  %v4031_v30 = vadd.f32 %v11387_v63, %v4030_v45  ;;  %v4059_v0 = vsub.f32 1.0, %v4058_v26  ;;  %v2304_v44 = vpop.f32.mrf.mxu1  ;;  %v4382_v45 = vpop.permute.xlu2 %4381  ;;  %vm11528_vm3 = vmor %vm4032_vm12, %vm4033_vm15 }
 0x435   : > { %v2415_v52 = vadd.f32 %v2414_v39, %v9994_v59  ;;  %6705 = vpow2.f32 %v6302_v18  ;;  %v4046_v16 = vadd.f32 %v11404_v56, %v4045_v12  ;;  %v4073_v19 = vmul.f32 %v11479_v37, %v11421_v40  ;;  %v11516_v24 = vpop.eup %6699  ;;  %vm11544_vm4 = vmor %vm4047_vm14, %vm4048_vm1 }
 0x436   : > { %v2192_v1 = vadd.f32 %v2191_v28, %v9940_v61  ;;  %v11518_v27 = vadd.f32 1.0, %v6698_v5  ;;  %v4025_v8 = vsel %vm11453_vm11, %v11444_v51, %v4020_v42  ;;  %v4066_v35 = vand.u32 2147483647, %v11376_v25  ;;  %v6702_v17 = vpop.eup %6701  ;;  %2594 = vmatmul.f32.gmra.mxu0 %v13885_v57  ;;  %2707 = vmatmul.f32.gmra.mxu1 %v13886_v55  ;;  %v11577_v28 = vpop.permute.xlu1 %4386 }
 0x437   : > { %v2528_v38 = vadd.f32 %v2527_v4, %v2415_v52  ;;  %v4068_v6 = vand.u32 2147483648, %v11376_v25  ;;  %v6303_v46 = vmul.f32 -1.442695, %v1871_v2  ;;  %v1761_v43 = vadd.f32 %v13884_v33, %v9005_v53  ;;  %2820 = vmatmul.f32.gmra.mxu2 %v13885_v57  ;;  %2933 = vmatmul.f32.gmra.mxu3 %v13886_v55  ;;  %v13894_v33 = vld [vmem:[#allocation24_spill] sm:$0xff] }
 0x438   : > { %v2305_v51 = vadd.f32 %v2304_v44, %v2192_v1  ;;  %v4035_v26 = vsel %vm11528_vm3, %v11387_v63, %v4031_v30  ;;  %v4054_v60 = vor.u32 1.1754944e-38, %v4053_v11  ;;  %v4060_v53 = vmul.f32 %v11446_v34, %v4059_v0 }
 0x439   : > { %v4525_v9 = vmul.f32 %v11438_v36, %v2528_v38  ;;  %v4050_v63 = vsel %vm11544_vm4, %v11404_v56, %v4046_v16  ;;  %v4074_v18 = vsub.f32 1.0, %v4073_v19  ;;  %v4088_v7 = vmul.f32 %v11516_v24, %v11449_v47  ;;  %v2417_v3 = vpop.f32.mrf.mxu2  ;;  %v13892_v16 = vld [vmem:[#allocation124_spill] sm:$0xff] }
 0x43a   : > { %v4526_v12 = vmul.f32 %v11442_v20, %v2305_v51  ;;  %v11558_v50 = vpop.eup %6703  ;;  %6707 = vrcp.f32 %v11518_v27  ;;  %v4464_v23 = vmul.f32 %v4382_v45, %v4025_v8  ;;  %v11561_v36 = vadd.f32 1.0, %v6702_v17  ;;  %v13891_v20 = vld [vmem:[#allocation77_spill] sm:$0xff]  ;;  %v2530_v2 = vpop.f32.mrf.mxu3 }
 0x43b   : > { %vm4062_vm5 = vweird.f32 %v11376_v25  ;;  %4645 = vxpose.xlu0.b32.cont [8/16] %v4525_v9, 128  ;;  %v6706_v11 = vpop.eup %6705  ;;  %vm4063_vm6 = vweird.f32 %v11446_v34  ;;  %vm11565_vm7 = vcmp.eq.f32.partialorder %v4066_v35, 8.507059e+37  ;;  %v4069_v5 = vor.u32 1.1754944e-38, %v4068_v6  ;;  %v2194_v52 = vpop.f32.mrf.mxu0 }
 0x43c   : > { %6709 = vpow2.f32 %v6303_v46  ;;  %v1874_v42 = vadd.f32 %v13891_v20, %v1761_v43  ;;  %4614 = vxpose.xlu2.b32.cont [9/16] %v4526_v12, 128  ;;  %v4040_v39 = vsel %vm11499_vm0, %v11491_v29, %v4035_v26  ;;  %v4055_v4 = vsel %vm11504_vm2, %v4054_v60, %v4050_v63  ;;  %v2307_v35 = vpop.f32.mrf.mxu1  ;;  %v13893_v46 = vld [vmem:[#allocation23_spill] sm:$0xff]  ;;  %vm11596_vm8 = vmor %vm4062_vm5, %vm4063_vm6 }
 0x43d   : > { %v4061_v30 = vadd.f32 %v11446_v34, %v4060_v53  ;;  %v2418_v0 = vadd.f32 %v2417_v3, %v9994_v59  ;;  %v6304_v19 = vmul.f32 -1.442695, %v13892_v16  ;;  %v4075_v1 = vmul.f32 %v11479_v37, %v4074_v18 }
 0x43e   : > { %v4089_v44 = vsub.f32 1.0, %v4088_v7  ;;  %v2195_v8 = vadd.f32 %v2194_v52, %v9940_v61  ;;  %6711 = vrcp.f32 %v11561_v36  ;;  %v11583_v29 = vadd.f32 1.0, %v6706_v11  ;;  %2597 = vmatmul.f32.gmra.mxu0 %v13893_v46  ;;  %2710 = vmatmul.f32.gmra.mxu1 %v13894_v33 }
 0x43f   : > { %v4103_v49 = vmul.f32 %v11558_v50, %v11469_v62  ;;  %v2531_v13 = vadd.f32 %v2530_v2, %v2418_v0  ;;  %v4465_v38 = vmul.f32 %v4382_v45, %v4040_v39  ;;  %v6305_v17 = vmul.f32 -1.442695, %v1874_v42  ;;  %2823 = vmatmul.f32.gmra.mxu2 %v13893_v46  ;;  %2936 = vmatmul.f32.gmra.mxu3 %v13894_v33 }
 0x440   : > { %v4083_v41 = vand.u32 2147483648, %v11421_v40  ;;  %v2308_v6 = vadd.f32 %v2307_v35, %v2195_v8  ;;  %v11590_v43 = vpop.eup %6707  ;;  %v4466_v45 = vmul.f32 %v11577_v28, %v4055_v4  ;;  %vm4077_vm9 = vweird.f32 %v11421_v40  ;;  %v13899_v4 = vld [vmem:[#allocation87_spill] sm:$0xff]  ;;  %v13901_v8 = vld [vmem:[#allocation25_spill] sm:$0xff] }
 0x441   : > { %vm4078_vm10 = vweird.f32 %v11479_v37  ;;  %v4527_v57 = vmul.f32 %v11481_v21, %v2531_v13  ;;  %v4065_v25 = vsel %vm11596_vm8, %v11446_v34, %v4061_v30  ;;  %6713 = vpow2.f32 %v6304_v19  ;;  %v2420_v34 = vpop.f32.mrf.mxu2 }
 0x442   : > { %v6710_v55 = vpop.eup %6709  ;;  %v4076_v26 = vadd.f32 %v11479_v37, %v4075_v1  ;;  %v4528_v15 = vmul.f32 %v4464_v23, %v2308_v6  ;;  %6715 = vrcp.f32 %v11583_v29  ;;  %v4081_v60 = vand.u32 2147483647, %v11421_v40  ;;  %v2533_v18 = vpop.f32.mrf.mxu3  ;;  %vm11626_vm12 = vmor %vm4077_vm9, %vm4078_vm10 }
 0x443   : > { %v4090_v53 = vmul.f32 %v11516_v24, %v4089_v44  ;;  %v4104_v21 = vsub.f32 1.0, %v4103_v49  ;;  %4646 = vxpose.xlu0.b32.cont [9/16] %v4527_v57, 128  ;;  %6717 = vpow2.f32 %v6305_v17  ;;  %v4084_v9 = vor.u32 1.1754944e-38, %v4083_v41  ;;  %v2197_v42 = vpop.f32.mrf.mxu0  ;;  %v13900_v44 = vld [vmem:[#allocation2_spill] sm:$0xff]  ;;  %v4392_v17 = vpop.permute.xlu0 %4391 }
 0x444   : > { %vm4092_vm11 = vweird.f32 %v11449_v47  ;;  %v4118_v63 = vmul.f32 %v11590_v43, %v11518_v27  ;;  %4615 = vxpose.xlu2.b32.cont [10/16] %v4528_v15, 128  ;;  %v11616_v7 = vpop.eup %6711  ;;  %v4070_v12 = vsel %vm11565_vm7, %v4069_v5, %v4065_v25  ;;  %v11620_v23 = vadd.f32 1.0, %v6710_v55  ;;  %v2310_v40 = vpop.f32.mrf.mxu1 }
 0x445   : > { %vm4093_vm13 = vweird.f32 %v11516_v24  ;;  %v2421_v20 = vadd.f32 %v2420_v34, %v9994_v59  ;;  %v4080_v56 = vsel %vm11626_vm12, %v11479_v37, %v4076_v26  ;;  %v4096_v5 = vand.u32 2147483647, %v11449_v47  ;;  %v13915_v34 = vld [vmem:[#allocation6_spill] sm:$0xff] }
 0x446   : > { %v4098_v3 = vand.u32 2147483648, %v11449_v47  ;;  %v2198_v2 = vadd.f32 %v2197_v42, %v9940_v61  ;;  %v4091_v39 = vadd.f32 %v11516_v24, %v4090_v53  ;;  %v6306_v30 = vmul.f32 -1.442695, %v13899_v4  ;;  %2600 = vmatmul.f32.gmra.mxu0 %v13900_v44  ;;  %2713 = vmatmul.f32.gmra.mxu1 %v13901_v8  ;;  %vm11655_vm15 = vmor %vm4092_vm11, %vm4093_vm13  ;;  %v13909_v4 = vld [vmem:[#allocation27_spill] sm:$0xff] }
 0x447   : > { %v4105_v0 = vmul.f32 %v11558_v50, %v4104_v21  ;;  %v2534_v52 = vadd.f32 %v2533_v18, %v2421_v20  ;;  %v6714_v16 = vpop.eup %6713  ;;  %vm4082_vm14 = vcmp.eq.f32.partialorder %v4081_v60, 8.507059e+37  ;;  %v4119_v19 = vsub.f32 1.0, %v4118_v63  ;;  %2826 = vmatmul.f32.gmra.mxu2 %v13900_v44  ;;  %2939 = vmatmul.f32.gmra.mxu3 %v13901_v8 }
 0x448   : > { %v4133_v37 = vmul.f32 %v11616_v7, %v11561_v36  ;;  %v2311_v1 = vadd.f32 %v2310_v40, %v2198_v2  ;;  %v11645_v35 = vpop.eup %6715  ;;  %v4467_v49 = vmul.f32 %v11577_v28, %v4070_v12  ;;  %6719 = vrcp.f32 %v11620_v23 }
 0x449   : > { %v4085_v13 = vsel %vm4082_vm14, %v4084_v9, %v4080_v56  ;;  %v4529_v41 = vmul.f32 %v4465_v38, %v2534_v52  ;;  %v6718_v6 = vpop.eup %6717  ;;  %vm11659_vm0 = vcmp.eq.f32.partialorder %v4096_v5, 8.507059e+37  ;;  %v4099_v33 = vor.u32 1.1754944e-38, %v4098_v3  ;;  %v2423_v60 = vpop.f32.mrf.mxu2 }
 0x44a   : > { %v4113_v38 = vand.u32 2147483648, %v11469_v62  ;;  %v4530_v51 = vmul.f32 %v4466_v45, %v2311_v1  ;;  %v4095_v57 = vsel %vm11655_vm15, %v11516_v24, %v4091_v39  ;;  %6721 = vpow2.f32 %v6306_v30  ;;  %v2536_v53 = vpop.f32.mrf.mxu3  ;;  %v13908_v39 = vld [vmem:[#allocation26_spill] sm:$0xff]  ;;  %v4397_v1 = vpop.permute.xlu2 %4396 }
 0x44b   : > { %v4106_v55 = vadd.f32 %v11558_v50, %v4105_v0  ;;  %vm4108_vm1 = vweird.f32 %v11558_v50  ;;  %4647 = vxpose.xlu0.b32.cont [10/16] %v4529_v41, 128  ;;  %v11669_v47 = vadd.f32 1.0, %v6714_v16  ;;  %v4468_v25 = vmul.f32 %v4392_v17, %v4085_v13  ;;  %v2200_v9 = vpop.f32.mrf.mxu0 }
 0x44c   : > { %v4120_v26 = vmul.f32 %v11590_v43, %v4119_v19  ;;  %v4134_v15 = vsub.f32 1.0, %v4133_v37  ;;  %4616 = vxpose.xlu2.b32.cont [11/16] %v4530_v51, 128  ;;  %v11672_v45 = vadd.f32 1.0, %v6718_v6  ;;  %vm4107_vm2 = vweird.f32 %v11469_v62  ;;  %v2313_v20 = vpop.f32.mrf.mxu1 }
 0x44d   : > { %v4148_v24 = vmul.f32 %v11645_v35, %v11583_v29  ;;  %v2424_v21 = vadd.f32 %v2423_v60, %v9994_v59  ;;  %v4100_v63 = vsel %vm11659_vm0, %v4099_v33, %v4095_v57  ;;  %vm11682_vm3 = vmor %vm4107_vm2, %vm4108_vm1  ;;  %v4111_v18 = vand.u32 2147483647, %v11469_v62 }
 0x44e   : > { %v4114_v12 = vor.u32 1.1754944e-38, %v4113_v38  ;;  %v2201_v11 = vadd.f32 %v2200_v9, %v9940_v61  ;;  %v11688_v42 = vpop.eup %6719  ;;  %v4110_v56 = vsel %vm11682_vm3, %v11558_v50, %v4106_v55  ;;  %vm4123_vm4 = vweird.f32 %v11590_v43  ;;  %2603 = vmatmul.f32.gmra.mxu0 %v13908_v39  ;;  %2716 = vmatmul.f32.gmra.mxu1 %v13909_v4 }
 0x44f   : > { %v4126_v5 = vand.u32 2147483647, %v11518_v27  ;;  %v2537_v3 = vadd.f32 %v2536_v53, %v2424_v21  ;;  %6723 = vrcp.f32 %v11669_v47  ;;  %v4121_v2 = vadd.f32 %v11590_v43, %v4120_v26  ;;  %2829 = vmatmul.f32.gmra.mxu2 %v13908_v39  ;;  %2942 = vmatmul.f32.gmra.mxu3 %v13909_v4  ;;  %v13924_v39 = vld [vmem:[#allocation30_spill] sm:$0xff] }
 0x450   : > { %v4135_v62 = vmul.f32 %v11616_v7, %v4134_v15  ;;  %v2314_v40 = vadd.f32 %v2313_v20, %v2201_v11  ;;  %v6722_v30 = vpop.eup %6721  ;;  %6725 = vrcp.f32 %v11672_v45  ;;  %v4128_v50 = vand.u32 2147483648, %v11518_v27 }
 0x451   : > { %v4149_v0 = vsub.f32 1.0, %v4148_v24  ;;  %v4531_v52 = vmul.f32 %v4467_v49, %v2537_v3  ;;  %vm4112_vm5 = vcmp.eq.f32.partialorder %v4111_v18, 8.507059e+37  ;;  %vm4122_vm6 = vweird.f32 %v11518_v27  ;;  %v4402_v3 = vpop.permute.xlu1 %4401 }
 0x452   : > { %v4163_v16 = vmul.f32 %v11688_v42, %v11620_v23  ;;  %v4532_v19 = vmul.f32 %v4468_v25, %v2314_v40  ;;  %v4469_v37 = vmul.f32 %v4392_v17, %v4100_v63  ;;  %v4115_v44 = vsel %vm4112_vm5, %v4114_v12, %v4110_v56  ;;  %vm11709_vm7 = vmor %vm4122_vm6, %vm4123_vm4  ;;  %v2426_v17 = vpop.f32.mrf.mxu2  ;;  %v2539_v41 = vpop.f32.mrf.mxu3  ;;  %v13914_v63 = vld [vmem:[#allocation5_spill] sm:$0xff] }
 0x453   : > { %4648 = vxpose.xlu0.b32.cont [11/16] %v4531_v52, 128  ;;  %v11713_v49 = vadd.f32 1.0, %v6722_v30  ;;  %v4125_v27 = vsel %vm11709_vm7, %v11590_v43, %v4121_v2  ;;  %v4136_v13 = vadd.f32 %v11616_v7, %v4135_v62  ;;  %vm4138_vm8 = vweird.f32 %v11616_v7  ;;  %v2203_v33 = vpop.f32.mrf.mxu0 }
 0x454   : > { %4617 = vxpose.xlu2.b32.cont [12/16] %v4532_v19, 128  ;;  %vm4127_vm9 = vcmp.eq.f32.partialorder %v4126_v5, 8.507059e+37  ;;  %v4129_v6 = vor.u32 1.1754944e-38, %v4128_v50  ;;  %v4150_v46 = vmul.f32 %v11645_v35, %v4149_v0  ;;  %v2427_v28 = vadd.f32 %v2426_v17, %v9994_v59  ;;  %v2316_v55 = vpop.f32.mrf.mxu1 }
 0x455   : > { %v11722_v38 = vpop.eup %6723  ;;  %vm4137_vm10 = vweird.f32 %v11561_v36  ;;  %v4143_v43 = vand.u32 2147483648, %v11561_v36  ;;  %v4164_v51 = vsub.f32 1.0, %v4163_v16  ;;  %v2204_v57 = vadd.f32 %v2203_v33, %v9940_v61 }
 0x456   : > { %v11727_v25 = vpop.eup %6725  ;;  %v4130_v26 = vsel %vm4127_vm9, %v4129_v6, %v4125_v27  ;;  %v4470_v15 = vmul.f32 %v4397_v1, %v4115_v44  ;;  %vm11731_vm11 = vmor %vm4137_vm10, %vm4138_vm8  ;;  %v4141_v53 = vand.u32 2147483647, %v11561_v36  ;;  %v2540_v24 = vadd.f32 %v2539_v41, %v2427_v28  ;;  %2606 = vmatmul.f32.gmra.mxu0 %v13914_v63  ;;  %2719 = vmatmul.f32.gmra.mxu1 %v13915_v34  ;;  %v13919_v28 = vld [vmem:[#allocation29_spill] sm:$0xff] }
 0x457   : > { %6727 = vrcp.f32 %v11713_v49  ;;  %v4140_v21 = vsel %vm11731_vm11, %v11616_v7, %v4136_v13  ;;  %vm4153_vm12 = vweird.f32 %v11645_v35  ;;  %v2317_v9 = vadd.f32 %v2316_v55, %v2204_v57  ;;  %2832 = vmatmul.f32.gmra.mxu2 %v13914_v63  ;;  %2945 = vmatmul.f32.gmra.mxu3 %v13915_v34  ;;  %v4407_v63 = vpop.permute.xlu0 %4406 }
 0x458   : > { %v4151_v18 = vadd.f32 %v11645_v35, %v4150_v46  ;;  %v4158_v12 = vand.u32 2147483648, %v11583_v29  ;;  %v4178_v36 = vmul.f32 %v11722_v38, %v11669_v47  ;;  %v4533_v11 = vmul.f32 %v4469_v37, %v2540_v24  ;;  %v13918_v46 = vld [vmem:[#allocation28_spill] sm:$0xff] }
 0x459   : > { %v4144_v7 = vor.u32 1.1754944e-38, %v4143_v43  ;;  %v4165_v20 = vmul.f32 %v11688_v42, %v4164_v51  ;;  %v4193_v56 = vmul.f32 %v11727_v25, %v11672_v45  ;;  %v4534_v5 = vmul.f32 %v4470_v15, %v2317_v9 }
 0x45a   : > { %vm4142_vm13 = vcmp.eq.f32.partialorder %v4141_v53, 8.507059e+37  ;;  %vm4152_vm14 = vweird.f32 %v11583_v29  ;;  %v4156_v2 = vand.u32 2147483647, %v11583_v29  ;;  %v4471_v62 = vmul.f32 %v4397_v1, %v4130_v26  ;;  %v2429_v4 = vpop.f32.mrf.mxu2  ;;  %v2542_v30 = vpop.f32.mrf.mxu3 }
 0x45b   : > { %4649 = vxpose.xlu0.b32.cont [12/16] %v4533_v11, 128  ;;  %v4145_v40 = vsel %vm4142_vm13, %v4144_v7, %v4140_v21  ;;  %vm11756_vm15 = vmor %vm4152_vm14, %vm4153_vm12  ;;  %v4159_v0 = vor.u32 1.1754944e-38, %v4158_v12  ;;  %v4179_v52 = vsub.f32 1.0, %v4178_v36  ;;  %v2430_v29 = vadd.f32 %v2429_v4, %v9994_v59  ;;  %v2206_v16 = vpop.f32.mrf.mxu0  ;;  %v13925_v4 = vld [vmem:[#allocation31_spill] sm:$0xff] }
 0x45c   : > { %4618 = vxpose.xlu2.b32.cont [13/16] %v4534_v5, 128  ;;  %v4155_v50 = vsel %vm11756_vm15, %v11645_v35, %v4151_v18  ;;  %v4166_v37 = vadd.f32 %v11688_v42, %v4165_v20  ;;  %vm4168_vm0 = vweird.f32 %v11688_v42  ;;  %v4194_v1 = vsub.f32 1.0, %v4193_v56  ;;  %v2319_v8 = vpop.f32.mrf.mxu1 }
 0x45d   : > { %v11764_v19 = vpop.eup %6727  ;;  %v2207_v44 = vadd.f32 %v2206_v16, %v9940_v61  ;;  %vm4157_vm1 = vcmp.eq.f32.partialorder %v4156_v2, 8.507059e+37  ;;  %v4472_v27 = vmul.f32 %v4402_v3, %v4145_v40  ;;  %v4173_v13 = vand.u32 2147483648, %v11620_v23 }
 0x45e   : > { %v2543_v35 = vadd.f32 %v2542_v30, %v2430_v29  ;;  %v4160_v17 = vsel %vm4157_vm1, %v4159_v0, %v4155_v50  ;;  %vm4167_vm2 = vweird.f32 %v11620_v23  ;;  %v4171_v41 = vand.u32 2147483647, %v11620_v23  ;;  %2609 = vmatmul.f32.gmra.mxu0 %v13918_v46  ;;  %2722 = vmatmul.f32.gmra.mxu1 %v13919_v28  ;;  %v13935_v30 = vld [vmem:[#allocation37_spill] sm:$0xff] }
 0x45f   : > { %v2320_v6 = vadd.f32 %v2319_v8, %v2207_v44  ;;  %vm11774_vm3 = vmor %vm4167_vm2, %vm4168_vm0  ;;  %v4180_v43 = vmul.f32 %v11722_v38, %v4179_v52  ;;  %v4208_v51 = vmul.f32 %v11764_v19, %v11713_v49  ;;  %2835 = vmatmul.f32.gmra.mxu2 %v13918_v46  ;;  %2948 = vmatmul.f32.gmra.mxu3 %v13919_v28  ;;  %v4174_v15 = vor.u32 1.1754944e-38, %v4173_v13  ;;  %v4412_v44 = vpop.permute.xlu2 %4411 }
 0x460   : > { %v4535_v57 = vmul.f32 %v4471_v62, %v2543_v35  ;;  %v4170_v23 = vsel %vm11774_vm3, %v11688_v42, %v4166_v37  ;;  %v4195_v55 = vmul.f32 %v11727_v25, %v4194_v1  ;;  %v4473_v60 = vmul.f32 %v4402_v3, %v4160_v17 }
 0x461   : > { %v4536_v26 = vmul.f32 %v4472_v27, %v2320_v6  ;;  %vm4172_vm4 = vcmp.eq.f32.partialorder %v4171_v41, 8.507059e+37  ;;  %vm4183_vm5 = vweird.f32 %v11722_v38  ;;  %v4181_v9 = vadd.f32 %v11722_v38, %v4180_v43 }
 0x462   : > { %v2432_v53 = vpop.f32.mrf.mxu2  ;;  %v2545_v24 = vpop.f32.mrf.mxu3  ;;  %v4175_v21 = vsel %vm4172_vm4, %v4174_v15, %v4170_v23  ;;  %v4209_v34 = vsub.f32 1.0, %v4208_v51  ;;  %v4188_v12 = vand.u32 2147483648, %v11669_v47  ;;  %v4196_v36 = vadd.f32 %v11727_v25, %v4195_v55  ;;  %v13931_v23 = vld [vmem:[#allocation33_spill] sm:$0xff]  ;;  %v6986_v15 = vld [vmem:[%s13166_s5] sm:$0x3f] }
 0x463   : > { %4650 = vxpose.xlu0.b32.cont [13/16] %v4535_v57, 128  ;;  %v2433_v18 = vadd.f32 %v2432_v53, %v9994_v59  ;;  %v2209_v42 = vpop.f32.mrf.mxu0  ;;  %vm4198_vm6 = vweird.f32 %v11727_v25  ;;  %vm4182_vm7 = vweird.f32 %v11669_v47  ;;  %v4186_v20 = vand.u32 2147483647, %v11669_v47  ;;  %v13930_v57 = vld [vmem:[#allocation32_spill] sm:$0xff] }
 0x464   : > { %4619 = vxpose.xlu2.b32.cont [14/16] %v4536_v26, 128  ;;  %v2210_v11 = vadd.f32 %v2209_v42, %v9940_v61  ;;  %v2322_v7 = vpop.f32.mrf.mxu1  ;;  %v4203_v56 = vand.u32 2147483648, %v11672_v45  ;;  %vm11799_vm8 = vmor %vm4182_vm7, %vm4183_vm5  ;;  %v4474_v2 = vmul.f32 %v4407_v63, %v4175_v21  ;;  %vm4197_vm9 = vweird.f32 %v11672_v45 }
 0x465   : > { %v2546_v5 = vadd.f32 %v2545_v24, %v2433_v18  ;;  %v4201_v62 = vand.u32 2147483647, %v11672_v45  ;;  %v4185_v47 = vsel %vm11799_vm8, %v11722_v38, %v4181_v9  ;;  %vm11812_vm10 = vmor %vm4197_vm9, %vm4198_vm6  ;;  %v4210_v50 = vmul.f32 %v11764_v19, %v4209_v34 }
 0x466   : > { %v2323_v40 = vadd.f32 %v2322_v7, %v2210_v11  ;;  %2612 = vmatmul.f32.gmra.mxu0 %v13924_v39  ;;  %2725 = vmatmul.f32.gmra.mxu1 %v13925_v4  ;;  %v4189_v45 = vor.u32 1.1754944e-38, %v4188_v12  ;;  %v4200_v52 = vsel %vm11812_vm10, %v11727_v25, %v4196_v36  ;;  %vm4187_vm11 = vcmp.eq.f32.partialorder %v4186_v20, 8.507059e+37  ;;  %v13932_v36 = vld [vmem:[#allocation34_spill] sm:$0xff]  ;;  %v13933_v11 = vld [vmem:[#allocation35_spill] sm:$0xff] }
 0x467   : > { %v4537_v0 = vmul.f32 %v4473_v60, %v2546_v5  ;;  %2838 = vmatmul.f32.gmra.mxu2 %v13924_v39  ;;  %2951 = vmatmul.f32.gmra.mxu3 %v13925_v4  ;;  %v4204_v38 = vor.u32 1.1754944e-38, %v4203_v56  ;;  %vm4202_vm12 = vcmp.eq.f32.partialorder %v4201_v62, 8.507059e+37  ;;  %v4211_v27 = vadd.f32 %v11764_v19, %v4210_v50 }
 0x468   : > { %v4538_v29 = vmul.f32 %v4474_v2, %v2323_v40  ;;  %v4190_v16 = vsel %vm4187_vm11, %v4189_v45, %v4185_v47  ;;  %vm4213_vm13 = vweird.f32 %v11764_v19  ;;  %v4218_v25 = vand.u32 2147483648, %v11713_v49  ;;  %v13934_v47 = vld [vmem:[#allocation36_spill] sm:$0xff] }
 0x469   : > { %v4205_v8 = vsel %vm4202_vm12, %v4204_v38, %v4200_v52  ;;  %v4475_v6 = vmul.f32 %v4407_v63, %v4190_v16  ;;  %vm4212_vm14 = vweird.f32 %v11713_v49  ;;  %v4216_v46 = vand.u32 2147483647, %v11713_v49 }
 0x46a   : > { %v2435_v37 = vpop.f32.mrf.mxu2  ;;  %v2548_v1 = vpop.f32.mrf.mxu3  ;;  %vm11829_vm15 = vmor %vm4212_vm14, %vm4213_vm13  ;;  %v4476_v43 = vmul.f32 %v4412_v44, %v4205_v8  ;;  %v4219_v49 = vor.u32 1.1754944e-38, %v4218_v25  ;;  %v11843_v60 = vperm.slane %v6986_v15, 4  ;;  %v11851_v20 = vperm.slane %v6986_v15, 5  ;;  %v13936_v8 = vld [vmem:[#allocation38_spill] sm:$0xff] }
 0x46b   : > { %4651 = vxpose.xlu0.b32.cont [14/16] %v4537_v0, 128  ;;  %v2436_v13 = vadd.f32 %v2435_v37, %v9994_v59  ;;  %v2212_v35 = vpop.f32.mrf.mxu0  ;;  %vm4217_vm0 = vcmp.eq.f32.partialorder %v4216_v46, 8.507059e+37 }
 0x46c   : > { %4620 = vxpose.xlu2.b32.cont [15/16] %v4538_v29, 128  ;;  %v2213_v17 = vadd.f32 %v2212_v35, %v9940_v61  ;;  %v2325_v41 = vpop.f32.mrf.mxu1  ;;  %v4215_v61 = vsel %vm11829_vm15, %v11764_v19, %v4211_v27  ;;  %v13937_v27 = vld [vmem:[#allocation39_spill] sm:$0xff] }
 0x46d   : > { %v2549_v28 = vadd.f32 %v2548_v1, %v2436_v13  ;;  %v4220_v53 = vsel %vm4217_vm0, %v4219_v49, %v4215_v61 }
 0x46e   : > { %v2326_v51 = vadd.f32 %v2325_v41, %v2213_v17  ;;  %2615 = vmatmul.f32.gmra.mxu0 %v13930_v57  ;;  %2728 = vmatmul.f32.gmra.mxu1 %v13931_v23  ;;  %v4477_v18 = vmul.f32 %v4412_v44, %v4220_v53  ;;  %v13938_v53 = vld [vmem:[#allocation40_spill] sm:$0xff] }
 0x46f   : > { %v4539_v55 = vmul.f32 %v4475_v6, %v2549_v28  ;;  %2841 = vmatmul.f32.gmra.mxu2 %v13930_v57  ;;  %2954 = vmatmul.f32.gmra.mxu3 %v13931_v23 }
 0x470   : > { %v4540_v26 = vmul.f32 %v4476_v43, %v2326_v51 }
 0x472   : > { %v2438_v24 = vpop.f32.mrf.mxu2  ;;  %v2551_v21 = vpop.f32.mrf.mxu3 }
 0x473   : > { %4652 = vxpose.xlu0.b32.cont [15/16] %v4539_v55, 128  ;;  %v2439_v19 = vadd.f32 %v2438_v24, %v9994_v59  ;;  %v2571_v9 = vpop.f32.mrf.mxu0  ;;  %v13939_v24 = vld [vmem:[#allocation41_spill] sm:$0xff] }
 0x474   : > { %4621 = vxpose.xlu2.b32.end [16/16] %v4540_v26, 128  ;;  %v2572_v63 = vadd.f32 %v2571_v9, %v11843_v60  ;;  %v2684_v34 = vpop.f32.mrf.mxu1 }
 0x475   : > { %v2552_v42 = vadd.f32 %v2551_v21, %v2439_v19 }
 0x476   : > { %v2685_v12 = vadd.f32 %v2684_v34, %v2572_v63  ;;  %2618 = vmatmul.f32.gmra.mxu0 %v13932_v36  ;;  %2731 = vmatmul.f32.gmra.mxu1 %v13933_v11 }
 0x477   : > { %v4541_v7 = vmul.f32 %v4477_v18, %v2552_v42  ;;  %2844 = vmatmul.f32.gmra.mxu2 %v13932_v36  ;;  %2957 = vmatmul.f32.gmra.mxu3 %v13933_v11 }
 0x478   : > { %v6307_v56 = vmul.f32 -1.442695, %v2685_v12 }
 0x47a   : > { %6729 = vpow2.f32 %v6307_v56  ;;  %v2797_v59 = vpop.f32.mrf.mxu2  ;;  %v2910_v5 = vpop.f32.mrf.mxu3 }
 0x47b   : > { %4653 = vxpose.xlu0.b32.end [16/16] %v4541_v7, 128  ;;  %v2798_v3 = vadd.f32 %v2797_v59, %v11851_v20  ;;  %v2574_v2 = vpop.f32.mrf.mxu0 }
 0x47c   : > { %v2575_v62 = vadd.f32 %v2574_v2, %v11843_v60  ;;  %v2687_v40 = vpop.f32.mrf.mxu1 }
 0x47d   : > { %v2911_v39 = vadd.f32 %v2910_v5, %v2798_v3 }
 0x47e   : > { %v2688_v4 = vadd.f32 %v2687_v40, %v2575_v62  ;;  %2621 = vmatmul.f32.gmra.mxu0 %v13934_v47  ;;  %2734 = vmatmul.f32.gmra.mxu1 %v13935_v30 }
 0x47f   : > { %v6308_v50 = vmul.f32 -1.442695, %v2911_v39  ;;  %2847 = vmatmul.f32.gmra.mxu2 %v13934_v47  ;;  %2960 = vmatmul.f32.gmra.mxu3 %v13935_v30 }
 0x480   : > { %v6730_v0 = vpop.eup %6729  ;;  %v6309_v45 = vmul.f32 -1.442695, %v2688_v4 }
 0x481   : > { %v4926_v52 = vadd.f32 1.0, %v6730_v0  ;;  %6731 = vpow2.f32 %v6308_v50 }
 0x482   : > { %6733 = vpow2.f32 %v6309_v45  ;;  %v2800_v29 = vpop.f32.mrf.mxu2  ;;  %v2913_v38 = vpop.f32.mrf.mxu3 }
 0x483   : > { %6735 = vrcp.f32 %v4926_v52  ;;  %v2801_v16 = vadd.f32 %v2800_v29, %v11851_v20  ;;  %v2577_v1 = vpop.f32.mrf.mxu0  ;;  %v4999_v23 = vand.u32 2147483647, %v4926_v52  ;;  %v5001_v61 = vand.u32 2147483648, %v4926_v52 }
 0x484   : > { %v2690_v44 = vpop.f32.mrf.mxu1  ;;  %v2578_v35 = vadd.f32 %v2577_v1, %v11843_v60  ;;  %vm4995_vm2 = vweird.f32 %v4926_v52 }
 0x485   : > { %v2914_v37 = vadd.f32 %v2913_v38, %v2801_v16  ;;  %vm5000_vm3 = vcmp.eq.f32.partialorder %v4999_v23, 8.507059e+37  ;;  %v5002_v18 = vor.u32 1.1754944e-38, %v5001_v61 }
 0x486   : > { %2624 = vmatmul.f32.gmra.mxu0 %v13936_v8  ;;  %2737 = vmatmul.f32.gmra.mxu1 %v13937_v27  ;;  %v2691_v28 = vadd.f32 %v2690_v44, %v2578_v35 }
 0x487   : > { %v6732_v13 = vpop.eup %6731  ;;  %2850 = vmatmul.f32.gmra.mxu2 %v13936_v8  ;;  %2963 = vmatmul.f32.gmra.mxu3 %v13937_v27  ;;  %v6310_v41 = vmul.f32 -1.442695, %v2914_v37 }
 0x488   : > { %v6734_v25 = vpop.eup %6733  ;;  %v11865_v17 = vadd.f32 1.0, %v6732_v13  ;;  %v6311_v55 = vmul.f32 -1.442695, %v2691_v28 }
 0x489   : > { %v6736_v6 = vpop.eup %6735  ;;  %v11867_v46 = vadd.f32 1.0, %v6734_v25 }
 0x48a   : > { %v4991_v33 = vmul.f32 %v6736_v6, %v4926_v52  ;;  %6737 = vrcp.f32 %v11865_v17  ;;  %v2803_v43 = vpop.f32.mrf.mxu2  ;;  %v2916_v51 = vpop.f32.mrf.mxu3  ;;  %vm4996_vm1 = vweird.f32 %v6736_v6  ;;  %vm5010_vm5 = vweird.f32 %v11865_v17 }
 0x48b   : > { %6739 = vrcp.f32 %v11867_v46  ;;  %v2804_v49 = vadd.f32 %v2803_v43, %v11851_v20  ;;  %v2580_v15 = vpop.f32.mrf.mxu0  ;;  %vm4997_vm4 = vmor %vm4995_vm2, %vm4996_vm1  ;;  %v5014_v59 = vand.u32 2147483647, %v11865_v17  ;;  %v5016_v5 = vand.u32 2147483648, %v11865_v17 }
 0x48c   : > { %v4992_v57 = vsub.f32 1.0, %v4991_v33  ;;  %6741 = vpow2.f32 %v6310_v41  ;;  %v2581_v19 = vadd.f32 %v2580_v15, %v11843_v60  ;;  %v2693_v9 = vpop.f32.mrf.mxu1  ;;  %v5029_v47 = vand.u32 2147483647, %v11867_v46 }
 0x48d   : > { %6743 = vpow2.f32 %v6311_v55  ;;  %v2917_v21 = vadd.f32 %v2916_v51, %v2804_v49  ;;  %v5031_v29 = vand.u32 2147483648, %v11867_v46  ;;  %vm5025_vm8 = vweird.f32 %v11867_v46 }
 0x48e   : > { %v4993_v26 = vmul.f32 %v6736_v6, %v4992_v57  ;;  %2627 = vmatmul.f32.gmra.mxu0 %v13938_v53  ;;  %2740 = vmatmul.f32.gmra.mxu1 %v13939_v24  ;;  %v2694_v11 = vadd.f32 %v2693_v9, %v2581_v19  ;;  %vm5015_vm10 = vcmp.eq.f32.partialorder %v5014_v59, 8.507059e+37  ;;  %v5017_v27 = vor.u32 1.1754944e-38, %v5016_v5  ;;  %v13940_v19 = vld [vmem:[#allocation45_spill] sm:$0xff]  ;;  %v4590_v5 = vpop.trf.xlu0 }
 0x48f   : > { %2853 = vmatmul.f32.gmra.mxu2 %v13938_v53  ;;  %2966 = vmatmul.f32.gmra.mxu3 %v13939_v24  ;;  %v6312_v36 = vmul.f32 -1.442695, %v2917_v21  ;;  %vm5030_vm12 = vcmp.eq.f32.partialorder %v5029_v47, 8.507059e+37  ;;  %v5032_v41 = vor.u32 1.1754944e-38, %v5031_v29  ;;  %4702 = vst [vmem:[%s11934_s12] sm:$0xff] %v4590_v5 }
 0x490   : > { %v6738_v63 = vpop.eup %6737  ;;  %v4994_v34 = vadd.f32 %v6736_v6, %v4993_v26  ;;  %v6313_v30 = vmul.f32 -1.442695, %v2694_v11 }
 0x491   : > { %v6740_v42 = vpop.eup %6739  ;;  %v5006_v12 = vmul.f32 %v6738_v63, %v11865_v17  ;;  %6745 = vpow2.f32 %v6312_v36  ;;  %vm5011_vm6 = vweird.f32 %v6738_v63 }
 0x492   : > { %v6742_v7 = vpop.eup %6741  ;;  %v4998_v56 = vsel %vm4997_vm4, %v6736_v6, %v4994_v34  ;;  %v5021_v3 = vmul.f32 %v6740_v42, %v11867_v46  ;;  %v2806_v2 = vpop.f32.mrf.mxu2  ;;  %vm5026_vm7 = vweird.f32 %v6740_v42  ;;  %vm5012_vm9 = vmor %vm5010_vm5, %vm5011_vm6 }
 0x493   : > { %v5003_v62 = vsel %vm5000_vm3, %v5002_v18, %v4998_v56  ;;  %v5007_v40 = vsub.f32 1.0, %v5006_v12  ;;  %v11890_v39 = vadd.f32 1.0, %v6742_v7  ;;  %v2807_v50 = vadd.f32 %v2806_v2, %v11851_v20  ;;  %v2919_v0 = vpop.f32.mrf.mxu3  ;;  %v6744_v45 = vpop.eup %6743  ;;  %vm5027_vm11 = vmor %vm5025_vm8, %vm5026_vm7 }
 0x494   : > { %5950 = vst [vmem:[%s11882_s16] sm:$0xff] %v5003_v62  ;;  %v5022_v4 = vsub.f32 1.0, %v5021_v3  ;;  %v11897_v16 = vadd.f32 1.0, %v6744_v45  ;;  %v2583_v37 = vpop.f32.mrf.mxu0  ;;  %v2696_v6 = vpop.f32.mrf.mxu1 }
 0x495   : > { %v5008_v52 = vmul.f32 %v6738_v63, %v5007_v40  ;;  %6747 = vrcp.f32 %v11890_v39  ;;  %v2920_v44 = vadd.f32 %v2919_v0, %v2807_v50  ;;  %v2584_v8 = vadd.f32 %v2583_v37, %v11843_v60 }
 0x496   : > { %v5023_v38 = vmul.f32 %v6740_v42, %v5022_v4  ;;  %6749 = vpow2.f32 %v6313_v30  ;;  %2630 = vmatmul.f32.gmra.mxu0 %v13675_v58  ;;  %2743 = vmatmul.f32.gmra.mxu1 %v13676_v54  ;;  %v5044_v61 = vand.u32 2147483647, %v11890_v39  ;;  %v5046_v55 = vand.u32 2147483648, %v11890_v39 }
 0x497   : > { %v5009_v1 = vadd.f32 %v6738_v63, %v5008_v52  ;;  %2856 = vmatmul.f32.gmra.mxu2 %v13675_v58  ;;  %2969 = vmatmul.f32.gmra.mxu3 %v13676_v54  ;;  %6751 = vrcp.f32 %v11897_v16  ;;  %v6746_v35 = vpop.eup %6745  ;;  %v6314_v58 = vmul.f32 -1.442695, %v2920_v44  ;;  %v2697_v17 = vadd.f32 %v2696_v6, %v2584_v8  ;;  %v13945_v44 = vld [vmem:[#allocation46_spill] sm:$0xff]  ;;  %v13946_v8 = vld [vmem:[#allocation47_spill] sm:$0xff] }
 0x498   : > { %v5024_v13 = vadd.f32 %v6740_v42, %v5023_v38  ;;  %v11910_v28 = vadd.f32 1.0, %v6746_v35  ;;  %vm5040_vm13 = vweird.f32 %v11890_v39  ;;  %v5061_v18 = vand.u32 2147483648, %v11897_v16 }
 0x499   : > { %v5013_v25 = vsel %vm5012_vm9, %v6738_v63, %v5009_v1  ;;  %6753 = vpow2.f32 %v6314_v58  ;;  %v6315_v26 = vmul.f32 -1.442695, %v2697_v17  ;;  %v5059_v63 = vand.u32 2147483647, %v11897_v16 }
 0x49a   : > { %v5018_v54 = vsel %vm5015_vm10, %v5017_v27, %v5013_v25  ;;  %v5028_v46 = vsel %vm5027_vm11, %v6740_v42, %v5024_v13  ;;  %v2809_v51 = vpop.f32.mrf.mxu2  ;;  %6755 = vrcp.f32 %v11910_v28  ;;  %vm11936_vm15 = vcmp.eq.f32.partialorder %v5044_v61, 8.507059e+37 }
 0x49b   : > { %v6748_v33 = vpop.eup %6747  ;;  %5951 = vst [vmem:[%s11882_s16 + $0x8] sm:$0xff] %v5018_v54  ;;  %v5033_v43 = vsel %vm5030_vm12, %v5032_v41, %v5028_v46  ;;  %v2810_v24 = vadd.f32 %v2809_v51, %v11851_v20  ;;  %v2922_v21 = vpop.f32.mrf.mxu3  ;;  %vm5055_vm0 = vweird.f32 %v11897_v16  ;;  %vm11946_vm3 = vcmp.eq.f32.partialorder %v5059_v63, 8.507059e+37 }
 0x49c   : > { %v6750_v57 = vpop.eup %6749  ;;  %5952 = vst [vmem:[%s11882_s16 + $0x10] sm:$0xff] %v5033_v43  ;;  %v5036_v23 = vmul.f32 %v6748_v33, %v11890_v39  ;;  %vm5041_vm14 = vweird.f32 %v6748_v33  ;;  %v2586_v3 = vpop.f32.mrf.mxu0  ;;  %v5062_v30 = vor.u32 1.1754944e-38, %v5061_v18  ;;  %vm5070_vm4 = vweird.f32 %v11910_v28 }
 0x49d   : > { %v11918_v49 = vadd.f32 1.0, %v6750_v57  ;;  %v6752_v15 = vpop.eup %6751  ;;  %v2923_v59 = vadd.f32 %v2922_v21, %v2810_v24  ;;  %vm5042_vm1 = vmor %vm5040_vm13, %vm5041_vm14  ;;  %v2699_v4 = vpop.f32.mrf.mxu1  ;;  %v5074_v45 = vand.u32 2147483647, %v11910_v28  ;;  %v5076_v29 = vand.u32 2147483648, %v11910_v28 }
 0x49e   : > { %v5037_v53 = vsub.f32 1.0, %v5036_v23  ;;  %2633 = vmatmul.f32.gmra.mxu0 %v13685_v32  ;;  %2746 = vmatmul.f32.gmra.mxu1 %v13940_v19  ;;  %v5051_v9 = vmul.f32 %v6752_v15, %v11897_v16  ;;  %vm5056_vm2 = vweird.f32 %v6752_v15  ;;  %v2587_v1 = vadd.f32 %v2586_v3, %v11843_v60  ;;  %v4591_v24 = vpop.trf.xlu0 }
 0x49f   : > { %2859 = vmatmul.f32.gmra.mxu2 %v13685_v32  ;;  %2972 = vmatmul.f32.gmra.mxu3 %v13940_v19  ;;  %6757 = vrcp.f32 %v11918_v49  ;;  %v6754_v42 = vpop.eup %6753  ;;  %v5047_v32 = vor.u32 1.1754944e-38, %v5046_v55  ;;  %vm5057_vm5 = vmor %vm5055_vm0, %vm5056_vm2  ;;  %v5089_v38 = vand.u32 2147483647, %v11918_v49  ;;  %v6316_v37 = vmul.f32 -1.442695, %v2923_v59  ;;  %4704 = vst [vmem:[%s11934_s12 + $0x10] sm:$0xff] %v4591_v24 }
 0x4a0   : > { %v5038_v34 = vmul.f32 %v6748_v33, %v5037_v53  ;;  %v5052_v36 = vsub.f32 1.0, %v5051_v9  ;;  %6759 = vpow2.f32 %v6315_v26  ;;  %v6756_v11 = vpop.eup %6755  ;;  %v11941_v56 = vadd.f32 1.0, %v6754_v42 }
 0x4a1   : > { %v5066_v40 = vmul.f32 %v6756_v11, %v11910_v28  ;;  %vm5071_vm6 = vweird.f32 %v6756_v11  ;;  %v5091_v41 = vand.u32 2147483648, %v11918_v49  ;;  %vm5075_vm8 = vcmp.eq.f32.partialorder %v5074_v45, 8.507059e+37 }
 0x4a2   : > { %v5039_v7 = vadd.f32 %v6748_v33, %v5038_v34  ;;  %v5053_v2 = vmul.f32 %v6752_v15, %v5052_v36  ;;  %6761 = vrcp.f32 %v11941_v56  ;;  %v2812_v6 = vpop.f32.mrf.mxu2  ;;  %vm5072_vm7 = vmor %vm5070_vm4, %vm5071_vm6  ;;  %v5077_v57 = vor.u32 1.1754944e-38, %v5076_v29 }
 0x4a3   : > { %v5067_v0 = vsub.f32 1.0, %v5066_v40  ;;  %6763 = vpow2.f32 %v6316_v37  ;;  %v2925_v54 = vpop.f32.mrf.mxu3  ;;  %v2813_v43 = vadd.f32 %v2812_v6, %v11851_v20  ;;  %vm5085_vm9 = vweird.f32 %v11918_v49  ;;  %v13954_v6 = vld [vmem:[#allocation69_spill] sm:$0xff] }
 0x4a4   : > { %v5043_v47 = vsel %vm5042_vm1, %v6748_v33, %v5039_v7  ;;  %v5054_v50 = vadd.f32 %v6752_v15, %v5053_v2  ;;  %v2700_v33 = vadd.f32 %v2699_v4, %v2587_v1  ;;  %vm11987_vm11 = vcmp.eq.f32.partialorder %v5089_v38, 8.507059e+37  ;;  %v2589_v21 = vpop.f32.mrf.mxu0  ;;  %v13952_v7 = vld [vmem:[#allocation49_spill] sm:$0xff] }
 0x4a5   : > { %v5048_v39 = vsel %vm11936_vm15, %v5047_v32, %v5043_v47  ;;  %v11957_v52 = vpop.eup %6757  ;;  %v5068_v35 = vmul.f32 %v6756_v11, %v5067_v0  ;;  %v5092_v28 = vor.u32 1.1754944e-38, %v5091_v41  ;;  %v2926_v63 = vadd.f32 %v2925_v54, %v2813_v43  ;;  %v2702_v18 = vpop.f32.mrf.mxu1  ;;  %v13953_v41 = vld [vmem:[#allocation68_spill] sm:$0xff] }
 0x4a6   : > { %5953 = vst [vmem:[%s11882_s16 + $0x18] sm:$0xff] %v5048_v39  ;;  %2636 = vmatmul.f32.gmra.mxu0 %v13945_v44  ;;  %2749 = vmatmul.f32.gmra.mxu1 %v13946_v8  ;;  %v6760_v27 = vpop.eup %6759  ;;  %v5058_v13 = vsel %vm5057_vm5, %v6752_v15, %v5054_v50  ;;  %v5081_v16 = vmul.f32 %v11957_v52, %v11918_v49  ;;  %vm5086_vm10 = vweird.f32 %v11957_v52  ;;  %v6317_v53 = vmul.f32 -1.442695, %v2700_v33 }
 0x4a7   : > { %2862 = vmatmul.f32.gmra.mxu2 %v13945_v44  ;;  %2975 = vmatmul.f32.gmra.mxu3 %v13946_v8  ;;  %v5063_v25 = vsel %vm11946_vm3, %v5062_v30, %v5058_v13  ;;  %v11975_v58 = vadd.f32 1.0, %v6760_v27  ;;  %v5069_v46 = vadd.f32 %v6756_v11, %v5068_v35  ;;  %v2590_v34 = vadd.f32 %v2589_v21, %v11843_v60  ;;  %vm11998_vm12 = vmor %vm5085_vm9, %vm5086_vm10  ;;  %v4592_v44 = vpop.trf.xlu0 }
 0x4a8   : > { %5954 = vst [vmem:[%s11882_s16 + $0x20] sm:$0xff] %v5063_v25  ;;  %v5082_v17 = vsub.f32 1.0, %v5081_v16  ;;  %v6762_v51 = vpop.eup %6761  ;;  %v5104_v32 = vand.u32 2147483647, %v11941_v56  ;;  %v5106_v36 = vand.u32 2147483648, %v11941_v56  ;;  %vm5100_vm14 = vweird.f32 %v11941_v56 }
 0x4a9   : > { %6765 = vrcp.f32 %v11975_v58  ;;  %v5073_v23 = vsel %vm5072_vm7, %v6756_v11, %v5069_v46  ;;  %v5096_v55 = vmul.f32 %v6762_v51, %v11941_v56  ;;  %v6764_v42 = vpop.eup %6763  ;;  %vm5101_vm13 = vweird.f32 %v6762_v51  ;;  %v13951_v11 = vld [vmem:[#allocation48_spill] sm:$0xff]  ;;  %4706 = vst [vmem:[%s11934_s12 + $0x20] sm:$0xff] %v4592_v44 }
 0x4aa   : > { %v5083_v61 = vmul.f32 %v11957_v52, %v5082_v17  ;;  %v5078_v26 = vsel %vm5075_vm8, %v5077_v57, %v5073_v23  ;;  %6767 = vpow2.f32 %v6317_v53  ;;  %v12010_v5 = vadd.f32 1.0, %v6764_v42  ;;  %v2815_v4 = vpop.f32.mrf.mxu2  ;;  %vm5102_vm15 = vmor %vm5100_vm14, %vm5101_vm13 }
 0x4ab   : > { %5955 = vst [vmem:[%s11882_s16 + $0x28] sm:$0xff] %v5078_v26  ;;  %v5097_v9 = vsub.f32 1.0, %v5096_v55  ;;  %v6318_v3 = vmul.f32 -1.442695, %v2926_v63  ;;  %v2703_v40 = vadd.f32 %v2702_v18, %v2590_v34  ;;  %v2928_v47 = vpop.f32.mrf.mxu3  ;;  %vm5105_vm0 = vcmp.eq.f32.partialorder %v5104_v32, 8.507059e+37 }
 0x4ac   : > { %v5084_v19 = vadd.f32 %v11957_v52, %v5083_v61  ;;  %6769 = vrcp.f32 %v12010_v5  ;;  %v5107_v50 = vor.u32 1.1754944e-38, %v5106_v36  ;;  %v2816_v29 = vadd.f32 %v2815_v4, %v11851_v20  ;;  %v2592_v8 = vpop.f32.mrf.mxu0 }
 0x4ad   : > { %v5098_v59 = vmul.f32 %v6762_v51, %v5097_v9  ;;  %6771 = vpow2.f32 %v6318_v3  ;;  %v5119_v56 = vand.u32 2147483647, %v11975_v58  ;;  %v5121_v1 = vand.u32 2147483648, %v11975_v58  ;;  %v2705_v16 = vpop.f32.mrf.mxu1 }
 0x4ae   : > { %2639 = vmatmul.f32.gmra.mxu0 %v13951_v11  ;;  %2752 = vmatmul.f32.gmra.mxu1 %v13952_v7  ;;  %v5088_v49 = vsel %vm11998_vm12, %v11957_v52, %v5084_v19  ;;  %v6319_v52 = vmul.f32 -1.442695, %v2703_v40  ;;  %v2929_v35 = vadd.f32 %v2928_v47, %v2816_v29  ;;  %v2593_v25 = vadd.f32 %v2592_v8, %v11843_v60 }
 0x4af   : > { %2865 = vmatmul.f32.gmra.mxu2 %v13951_v11  ;;  %2978 = vmatmul.f32.gmra.mxu3 %v13952_v7  ;;  %v6766_v2 = vpop.eup %6765  ;;  %v5093_v62 = vsel %vm11987_vm11, %v5092_v28, %v5088_v49  ;;  %v5099_v30 = vadd.f32 %v6762_v51, %v5098_v59  ;;  %vm5115_vm2 = vweird.f32 %v11975_v58  ;;  %v5122_v33 = vor.u32 1.1754944e-38, %v5121_v1  ;;  %v4593_v32 = vpop.trf.xlu0  ;;  %v13957_v11 = vld [vmem:[#allocation73_spill] sm:$0xff]  ;;  %v13958_v7 = vld [vmem:[#allocation74_spill] sm:$0xff] }
 0x4b0   : > { %5956 = vst [vmem:[%s11882_s16 + $0x30] sm:$0xff] %v5093_v62  ;;  %v5111_v39 = vmul.f32 %v6766_v2, %v11975_v58  ;;  %v6768_v38 = vpop.eup %6767  ;;  %vm5116_vm1 = vweird.f32 %v6766_v2  ;;  %6773 = vpow2.f32 %v6319_v52  ;;  %vm5120_vm4 = vcmp.eq.f32.partialorder %v5119_v56, 8.507059e+37 }
 0x4b1   : > { %v5103_v0 = vsel %vm5102_vm15, %v6762_v51, %v5099_v30  ;;  %v12025_v13 = vadd.f32 1.0, %v6768_v38  ;;  %vm5117_vm3 = vmor %vm5115_vm2, %vm5116_vm1  ;;  %v6320_v51 = vmul.f32 -1.442695, %v2929_v35  ;;  %v2706_v61 = vadd.f32 %v2705_v16, %v2593_v25  ;;  %4708 = vst [vmem:[%s11934_s12 + $0x30] sm:$0xff] %v4593_v32 }
 0x4b2   : > { %v5112_v45 = vsub.f32 1.0, %v5111_v39  ;;  %v5108_v37 = vsel %vm5105_vm0, %v5107_v50, %v5103_v0  ;;  %v6770_v54 = vpop.eup %6769  ;;  %v2818_v58 = vpop.f32.mrf.mxu2  ;;  %v5134_v28 = vand.u32 2147483647, %v12010_v5  ;;  %v5136_v24 = vand.u32 2147483648, %v12010_v5 }
 0x4b3   : > { %5957 = vst [vmem:[%s11882_s16 + $0x38] sm:$0xff] %v5108_v37  ;;  %6775 = vrcp.f32 %v12025_v13  ;;  %v6772_v17 = vpop.eup %6771  ;;  %v5126_v43 = vmul.f32 %v6770_v54, %v12010_v5  ;;  %v2931_v55 = vpop.f32.mrf.mxu3  ;;  %vm5131_vm5 = vweird.f32 %v6770_v54  ;;  %v6321_v9 = vmul.f32 -1.442695, %v2706_v61 }
 0x4b4   : > { %v5113_v27 = vmul.f32 %v6766_v2, %v5112_v45  ;;  %v12037_v23 = vadd.f32 1.0, %v6772_v17  ;;  %6777 = vpow2.f32 %v6320_v51  ;;  %v2819_v63 = vadd.f32 %v2818_v58, %v11851_v20  ;;  %v2595_v36 = vpop.f32.mrf.mxu0  ;;  %v13964_v51 = vld [vmem:[#allocation79_spill] sm:$0xff] }
 0x4b5   : > { %v5127_v15 = vsub.f32 1.0, %v5126_v43  ;;  %vm5130_vm6 = vweird.f32 %v12010_v5  ;;  %vm12047_vm7 = vcmp.eq.f32.partialorder %v5134_v28, 8.507059e+37  ;;  %v5137_v59 = vor.u32 1.1754944e-38, %v5136_v24  ;;  %v13963_v43 = vld [vmem:[#allocation78_spill] sm:$0xff] }
 0x4b6   : > { %2642 = vmatmul.f32.gmra.mxu0 %v13953_v41  ;;  %2755 = vmatmul.f32.gmra.mxu1 %v13954_v6  ;;  %v5114_v46 = vadd.f32 %v6766_v2, %v5113_v27  ;;  %v6774_v53 = vpop.eup %6773  ;;  %6779 = vrcp.f32 %v12037_v23  ;;  %vm12056_vm8 = vmor %vm5130_vm6, %vm5131_vm5  ;;  %v5149_v5 = vand.u32 2147483647, %v12025_v13  ;;  %v5151_v3 = vand.u32 2147483648, %v12025_v13 }
 0x4b7   : > { %2868 = vmatmul.f32.gmra.mxu2 %v13953_v41  ;;  %2981 = vmatmul.f32.gmra.mxu3 %v13954_v6  ;;  %v5128_v21 = vmul.f32 %v6770_v54, %v5127_v15  ;;  %v12043_v19 = vadd.f32 1.0, %v6774_v53  ;;  %v2932_v47 = vadd.f32 %v2931_v55, %v2819_v63  ;;  %v2596_v30 = vadd.f32 %v2595_v36, %v11843_v60  ;;  %v4594_v28 = vpop.trf.xlu0 }
 0x4b8   : > { %v5118_v57 = vsel %vm5117_vm3, %v6766_v2, %v5114_v46  ;;  %v2708_v2 = vpop.f32.mrf.mxu1  ;;  %vm5145_vm9 = vweird.f32 %v12025_v13  ;;  %vm12075_vm11 = vcmp.eq.f32.partialorder %v5149_v5, 8.507059e+37  ;;  %v5152_v37 = vor.u32 1.1754944e-38, %v5151_v3  ;;  %4710 = vst [vmem:[%s11934_s12 + $0x40] sm:$0xff] %v4594_v28 }
 0x4b9   : > { %v5123_v26 = vsel %vm5120_vm4, %v5122_v33, %v5118_v57  ;;  %v6776_v34 = vpop.eup %6775  ;;  %v5129_v18 = vadd.f32 %v6770_v54, %v5128_v21  ;;  %6781 = vrcp.f32 %v12043_v19  ;;  %v6322_v29 = vmul.f32 -1.442695, %v2932_v47  ;;  %v13965_v47 = vld [vmem:[#allocation82_spill] sm:$0xff] }
 0x4ba   : > { %5958 = vst [vmem:[%s11882_s16 + $0x40] sm:$0xff] %v5123_v26  ;;  %v5141_v12 = vmul.f32 %v6776_v34, %v12025_v13  ;;  %6783 = vpow2.f32 %v6321_v9  ;;  %v6778_v62 = vpop.eup %6777  ;;  %vm5146_vm10 = vweird.f32 %v6776_v34  ;;  %v5166_v56 = vand.u32 2147483648, %v12037_v23  ;;  %v2821_v1 = vpop.f32.mrf.mxu2 }
 0x4bb   : > { %v5133_v40 = vsel %vm12056_vm8, %v6770_v54, %v5129_v18  ;;  %v12071_v0 = vadd.f32 1.0, %v6778_v62  ;;  %v2934_v44 = vpop.f32.mrf.mxu3  ;;  %v2709_v16 = vadd.f32 %v2708_v2, %v2596_v30  ;;  %vm5147_vm12 = vmor %vm5145_vm9, %vm5146_vm10  ;;  %vm5160_vm13 = vweird.f32 %v12037_v23  ;;  %v13966_v30 = vld [vmem:[#allocation83_spill] sm:$0xff] }
 0x4bc   : > { %v5142_v4 = vsub.f32 1.0, %v5141_v12  ;;  %v6780_v39 = vpop.eup %6779  ;;  %v5138_v50 = vsel %vm12047_vm7, %v5137_v59, %v5133_v40  ;;  %v5164_v41 = vand.u32 2147483647, %v12037_v23  ;;  %v5179_v61 = vand.u32 2147483647, %v12043_v19  ;;  %v2598_v53 = vpop.f32.mrf.mxu0 }
 0x4bd   : > { %5959 = vst [vmem:[%s11882_s16 + $0x48] sm:$0xff] %v5138_v50  ;;  %v5156_v52 = vmul.f32 %v6780_v39, %v12037_v23  ;;  %6785 = vrcp.f32 %v12071_v0  ;;  %vm5161_vm14 = vweird.f32 %v6780_v39  ;;  %v6323_v33 = vmul.f32 -1.442695, %v2709_v16 }
 0x4be   : > { %2645 = vmatmul.f32.gmra.mxu0 %v13957_v11  ;;  %2758 = vmatmul.f32.gmra.mxu1 %v13958_v7  ;;  %v5143_v45 = vmul.f32 %v6776_v34, %v5142_v4  ;;  %6787 = vpow2.f32 %v6322_v29  ;;  %v2822_v58 = vadd.f32 %v2821_v1, %v11851_v20  ;;  %v5167_v26 = vor.u32 1.1754944e-38, %v5166_v56  ;;  %vm5162_vm15 = vmor %vm5160_vm13, %vm5161_vm14 }
 0x4bf   : > { %2871 = vmatmul.f32.gmra.mxu2 %v13957_v11  ;;  %2984 = vmatmul.f32.gmra.mxu3 %v13958_v7  ;;  %v6782_v8 = vpop.eup %6781  ;;  %v5157_v35 = vsub.f32 1.0, %v5156_v52  ;;  %v5181_v15 = vand.u32 2147483648, %v12043_v19  ;;  %vm5165_vm1 = vcmp.eq.f32.partialorder %v5164_v41, 8.507059e+37  ;;  %vm5175_vm2 = vweird.f32 %v12043_v19 }
 0x4c0   : > { %v5144_v27 = vadd.f32 %v6776_v34, %v5143_v45  ;;  %v6784_v25 = vpop.eup %6783  ;;  %v5171_v6 = vmul.f32 %v6782_v8, %v12043_v19  ;;  %vm5176_vm0 = vweird.f32 %v6782_v8  ;;  %v2935_v9 = vadd.f32 %v2934_v44, %v2822_v58  ;;  %v2711_v63 = vpop.f32.mrf.mxu1 }
 0x4c1   : > { %v5158_v46 = vmul.f32 %v6780_v39, %v5157_v35  ;;  %v12087_v17 = vadd.f32 1.0, %v6784_v25  ;;  %vm5180_vm3 = vcmp.eq.f32.partialorder %v5179_v61, 8.507059e+37  ;;  %vm5177_vm4 = vmor %vm5175_vm2, %vm5176_vm0  ;;  %v5182_v23 = vor.u32 1.1754944e-38, %v5181_v15  ;;  %v4595_v35 = vpop.trf.xlu0 }
 0x4c2   : > { %v5148_v54 = vsel %vm5147_vm12, %v6776_v34, %v5144_v27  ;;  %v5172_v57 = vsub.f32 1.0, %v5171_v6  ;;  %v6324_v7 = vmul.f32 -1.442695, %v2935_v9  ;;  %v2599_v49 = vadd.f32 %v2598_v53, %v11843_v60  ;;  %v2824_v3 = vpop.f32.mrf.mxu2  ;;  %4712 = vst [vmem:[%s11934_s12 + $0x50] sm:$0xff] %v4595_v35 }
 0x4c3   : > { %v5153_v13 = vsel %vm12075_vm11, %v5152_v37, %v5148_v54  ;;  %v5159_v55 = vadd.f32 %v6780_v39, %v5158_v46  ;;  %6789 = vrcp.f32 %v12087_v17  ;;  %v6786_v24 = vpop.eup %6785  ;;  %v5194_v5 = vand.u32 2147483647, %v12071_v0  ;;  %v2937_v2 = vpop.f32.mrf.mxu3 }
 0x4c4   : > { %5960 = vst [vmem:[%s11882_s16 + $0x50] sm:$0xff] %v5153_v13  ;;  %v5173_v21 = vmul.f32 %v6782_v8, %v5172_v57  ;;  %6791 = vpow2.f32 %v6323_v33  ;;  %v6788_v34 = vpop.eup %6787  ;;  %v5186_v42 = vmul.f32 %v6786_v24, %v12071_v0  ;;  %v5196_v19 = vand.u32 2147483648, %v12071_v0 }
 0x4c5   : > { %v5163_v18 = vsel %vm5162_vm15, %v6780_v39, %v5159_v55  ;;  %v12106_v36 = vadd.f32 1.0, %v6788_v34  ;;  %vm5191_vm5 = vweird.f32 %v6786_v24  ;;  %v2712_v45 = vadd.f32 %v2711_v63, %v2599_v49 }
 0x4c6   : > { %2648 = vmatmul.f32.gmra.mxu0 %v13963_v43  ;;  %2761 = vmatmul.f32.gmra.mxu1 %v13964_v51  ;;  %v5168_v12 = vsel %vm5165_vm1, %v5167_v26, %v5163_v18  ;;  %v5174_v32 = vadd.f32 %v6782_v8, %v5173_v21  ;;  %v5187_v11 = vsub.f32 1.0, %v5186_v42  ;;  %vm5190_vm6 = vweird.f32 %v12071_v0  ;;  %v2601_v0 = vpop.f32.mrf.mxu0  ;;  %v13969_v26 = vld [vmem:[#allocation86_spill] sm:$0xff] }
 0x4c7   : > { %2874 = vmatmul.f32.gmra.mxu2 %v13963_v43  ;;  %2987 = vmatmul.f32.gmra.mxu3 %v13964_v51  ;;  %5961 = vst [vmem:[%s11882_s16 + $0x58] sm:$0xff] %v5168_v12  ;;  %6793 = vrcp.f32 %v12106_v36  ;;  %v2825_v38 = vadd.f32 %v2824_v3, %v11851_v20  ;;  %vm5192_vm7 = vmor %vm5190_vm6, %vm5191_vm5  ;;  %vm5195_vm8 = vcmp.eq.f32.partialorder %v5194_v5, 8.507059e+37  ;;  %v5197_v37 = vor.u32 1.1754944e-38, %v5196_v19 }
 0x4c8   : > { %v5178_v59 = vsel %vm5177_vm4, %v6782_v8, %v5174_v32  ;;  %v5188_v4 = vmul.f32 %v6786_v24, %v5187_v11  ;;  %6795 = vpow2.f32 %v6324_v7  ;;  %v6325_v1 = vmul.f32 -1.442695, %v2712_v45  ;;  %v2714_v6 = vpop.f32.mrf.mxu1 }
 0x4c9   : > { %v6790_v62 = vpop.eup %6789  ;;  %v5183_v40 = vsel %vm5180_vm3, %v5182_v23, %v5178_v59  ;;  %v5209_v8 = vand.u32 2147483647, %v12087_v17  ;;  %v5211_v27 = vand.u32 2147483648, %v12087_v17  ;;  %v2938_v33 = vadd.f32 %v2937_v2, %v2825_v38  ;;  %v4596_v19 = vpop.trf.xlu0 }
 0x4ca   : > { %v6792_v39 = vpop.eup %6791  ;;  %5962 = vst [vmem:[%s11882_s16 + $0x60] sm:$0xff] %v5183_v40  ;;  %v5201_v50 = vmul.f32 %v6790_v62, %v12087_v17  ;;  %v5189_v52 = vadd.f32 %v6786_v24, %v5188_v4  ;;  %vm5206_vm9 = vweird.f32 %v6790_v62  ;;  %vm5205_vm10 = vweird.f32 %v12087_v17  ;;  %v2827_v53 = vpop.f32.mrf.mxu2 }
 0x4cb   : > { %v12121_v29 = vadd.f32 1.0, %v6792_v39  ;;  %v2602_v13 = vadd.f32 %v2601_v0, %v11843_v60  ;;  %vm12134_vm11 = vmor %vm5205_vm10, %vm5206_vm9  ;;  %vm5210_vm12 = vcmp.eq.f32.partialorder %v5209_v8, 8.507059e+37  ;;  %v5212_v61 = vor.u32 1.1754944e-38, %v5211_v27  ;;  %4714 = vst [vmem:[%s11934_s12 + $0x60] sm:$0xff] %v4596_v19 }
 0x4cc   : > { %v5202_v56 = vsub.f32 1.0, %v5201_v50  ;;  %v5193_v44 = vsel %vm5192_vm7, %v6786_v24, %v5189_v52  ;;  %v6326_v55 = vmul.f32 -1.442695, %v2938_v33  ;;  %v5224_v15 = vand.u32 2147483647, %v12106_v36  ;;  %v2940_v24 = vpop.f32.mrf.mxu3 }
 0x4cd   : > { %6797 = vrcp.f32 %v12121_v29  ;;  %v6794_v16 = vpop.eup %6793  ;;  %v5198_v25 = vsel %vm5195_vm8, %v5197_v37, %v5193_v44  ;;  %v5226_v28 = vand.u32 2147483648, %v12106_v36  ;;  %v2715_v42 = vadd.f32 %v2714_v6, %v2602_v13 }
 0x4ce   : > { %2651 = vmatmul.f32.gmra.mxu0 %v13965_v47  ;;  %2764 = vmatmul.f32.gmra.mxu1 %v13966_v30  ;;  %v5203_v41 = vmul.f32 %v6790_v62, %v5202_v56  ;;  %6799 = vpow2.f32 %v6325_v1  ;;  %v6796_v54 = vpop.eup %6795  ;;  %5963 = vst [vmem:[%s11882_s16 + $0x68] sm:$0xff] %v5198_v25  ;;  %v5216_v46 = vmul.f32 %v6794_v16, %v12106_v36  ;;  %vm5221_vm13 = vweird.f32 %v6794_v16 }
 0x4cf   : > { %2877 = vmatmul.f32.gmra.mxu2 %v13965_v47  ;;  %2990 = vmatmul.f32.gmra.mxu3 %v13966_v30  ;;  %v12131_v51 = vadd.f32 1.0, %v6796_v54  ;;  %vm5220_vm14 = vweird.f32 %v12106_v36  ;;  %v2828_v23 = vadd.f32 %v2827_v53, %v11851_v20  ;;  %vm5225_vm0 = vcmp.eq.f32.partialorder %v5224_v15, 8.507059e+37  ;;  %v2604_v36 = vpop.f32.mrf.mxu0 }
 0x4d0   : > { %v5204_v43 = vadd.f32 %v6790_v62, %v5203_v41  ;;  %v5217_v58 = vsub.f32 1.0, %v5216_v46  ;;  %vm5222_vm15 = vmor %vm5220_vm14, %vm5221_vm13  ;;  %v6327_v7 = vmul.f32 -1.442695, %v2715_v42  ;;  %v5239_v59 = vand.u32 2147483647, %v12121_v29  ;;  %v2717_v40 = vpop.f32.mrf.mxu1 }
 0x4d1   : > { %6801 = vrcp.f32 %v12131_v51  ;;  %v5241_v5 = vand.u32 2147483648, %v12121_v29  ;;  %v2941_v30 = vadd.f32 %v2940_v24, %v2828_v23  ;;  %vm5235_vm2 = vweird.f32 %v12121_v29 }
 0x4d2   : > { %v5208_v17 = vsel %vm12134_vm11, %v6790_v62, %v5204_v43  ;;  %v5218_v63 = vmul.f32 %v6794_v16, %v5217_v58  ;;  %6803 = vpow2.f32 %v6326_v55  ;;  %v2605_v45 = vadd.f32 %v2604_v36, %v11843_v60  ;;  %v2830_v44 = vpop.f32.mrf.mxu2 }
 0x4d3   : > { %v6798_v21 = vpop.eup %6797  ;;  %v5213_v9 = vsel %vm5210_vm12, %v5212_v61, %v5208_v17  ;;  %vm5240_vm4 = vcmp.eq.f32.partialorder %v5239_v59, 8.507059e+37  ;;  %v5242_v52 = vor.u32 1.1754944e-38, %v5241_v5  ;;  %v6328_v37 = vmul.f32 -1.442695, %v2941_v30  ;;  %v4597_v61 = vpop.trf.xlu0 }
 0x4d4   : > { %v6800_v34 = vpop.eup %6799  ;;  %5964 = vst [vmem:[%s11882_s16 + $0x70] sm:$0xff] %v5213_v9  ;;  %v5231_v18 = vmul.f32 %v6798_v21, %v12121_v29  ;;  %v5219_v12 = vadd.f32 %v6794_v16, %v5218_v63  ;;  %vm5236_vm1 = vweird.f32 %v6798_v21  ;;  %v5254_v1 = vand.u32 2147483647, %v12131_v51  ;;  %v2943_v8 = vpop.f32.mrf.mxu3 }
 0x4d5   : > { %v12150_v32 = vadd.f32 1.0, %v6800_v34  ;;  %vm5237_vm3 = vmor %vm5235_vm2, %vm5236_vm1  ;;  %v5256_v29 = vand.u32 2147483648, %v12131_v51  ;;  %vm5250_vm6 = vweird.f32 %v12131_v51  ;;  %v2831_v6 = vadd.f32 %v2830_v44, %v11851_v20  ;;  %4716 = vst [vmem:[%s11934_s12 + $0x70] sm:$0xff] %v4597_v61 }
 0x4d6   : > { %2654 = vmatmul.f32.gmra.mxu0 %v13767_v48  ;;  %2767 = vmatmul.f32.gmra.mxu1 %v13969_v26  ;;  %v5232_v11 = vsub.f32 1.0, %v5231_v18  ;;  %v5223_v49 = vsel %vm5222_vm15, %v6794_v16, %v5219_v12  ;;  %v2718_v16 = vadd.f32 %v2717_v40, %v2605_v45  ;;  %vm5255_vm8 = vcmp.eq.f32.partialorder %v5254_v1, 8.507059e+37 }
 0x4d7   : > { %2880 = vmatmul.f32.gmra.mxu2 %v13767_v48  ;;  %2993 = vmatmul.f32.gmra.mxu3 %v13969_v26  ;;  %v5227_v48 = vor.u32 1.1754944e-38, %v5226_v28  ;;  %6805 = vrcp.f32 %v12150_v32  ;;  %v6802_v3 = vpop.eup %6801  ;;  %v5257_v54 = vor.u32 1.1754944e-38, %v5256_v29  ;;  %v5269_v13 = vand.u32 2147483647, %v12150_v32 }
 0x4d8   : > { %v5233_v62 = vmul.f32 %v6798_v21, %v5232_v11  ;;  %6807 = vpow2.f32 %v6327_v7  ;;  %v6804_v4 = vpop.eup %6803  ;;  %v5246_v47 = vmul.f32 %v6802_v3, %v12131_v51  ;;  %vm5251_vm5 = vweird.f32 %v6802_v3  ;;  %v2607_v51 = vpop.f32.mrf.mxu0 }
 0x4d9   : > { %v5228_v2 = vsel %vm5225_vm0, %v5227_v48, %v5223_v49  ;;  %v12162_v50 = vadd.f32 1.0, %v6804_v4  ;;  %vm5252_vm7 = vmor %vm5250_vm6, %vm5251_vm5  ;;  %v6329_v33 = vmul.f32 -1.442695, %v2718_v16  ;;  %v5271_v57 = vand.u32 2147483648, %v12150_v32  ;;  %v2720_v17 = vpop.f32.mrf.mxu1 }
 0x4da   : > { %5965 = vst [vmem:[%s11882_s16 + $0x78] sm:$0xff] %v5228_v2  ;;  %v5234_v39 = vadd.f32 %v6798_v21, %v5233_v62  ;;  %v5247_v38 = vsub.f32 1.0, %v5246_v47  ;;  %v2944_v53 = vadd.f32 %v2943_v8, %v2831_v6  ;;  %vm5265_vm10 = vweird.f32 %v12150_v32  ;;  %v2833_v12 = vpop.f32.mrf.mxu2  ;;  %v13971_v2 = vld [vmem:[#allocation97_spill] sm:$0xff] }
 0x4db   : > { %6809 = vrcp.f32 %v12162_v50  ;;  %v2608_v9 = vadd.f32 %v2607_v51, %v11843_v60  ;;  %vm5270_vm12 = vcmp.eq.f32.partialorder %v5269_v13, 8.507059e+37  ;;  %v5272_v63 = vor.u32 1.1754944e-38, %v5271_v57 }
 0x4dc   : > { %v5238_v56 = vsel %vm5237_vm3, %v6798_v21, %v5234_v39  ;;  %v5248_v35 = vmul.f32 %v6802_v3, %v5247_v38  ;;  %6811 = vpow2.f32 %v6328_v37  ;;  %v5286_v42 = vand.u32 2147483648, %v12162_v50  ;;  %v2946_v23 = vpop.f32.mrf.mxu3 }
 0x4dd   : > { %v6806_v27 = vpop.eup %6805  ;;  %v2721_v59 = vadd.f32 %v2720_v17, %v2608_v9  ;;  %vm5280_vm14 = vweird.f32 %v12162_v50  ;;  %v2834_v36 = vadd.f32 %v2833_v12, %v11851_v20 }
 0x4de   : > { %2657 = vmatmul.f32.gmra.mxu0 %v13775_v10  ;;  %2770 = vmatmul.f32.gmra.mxu1 %v13776_v22  ;;  %v5261_v0 = vmul.f32 %v6806_v27, %v12150_v32  ;;  %v5249_v25 = vadd.f32 %v6802_v3, %v5248_v35  ;;  %vm5266_vm9 = vweird.f32 %v6806_v27  ;;  %v5287_v62 = vor.u32 1.1754944e-38, %v5286_v42 }
 0x4df   : > { %2883 = vmatmul.f32.gmra.mxu2 %v13775_v10  ;;  %2996 = vmatmul.f32.gmra.mxu3 %v13776_v22  ;;  %v5243_v10 = vsel %vm5240_vm4, %v5242_v52, %v5238_v56  ;;  %v6808_v22 = vpop.eup %6807  ;;  %vm5267_vm11 = vmor %vm5265_vm10, %vm5266_vm9  ;;  %v6331_v4 = vmul.f32 -1.442695, %v2721_v59  ;;  %v2947_v44 = vadd.f32 %v2946_v23, %v2834_v36 }
 0x4e0   : > { %5966 = vst [vmem:[%s11882_s16 + $0x80] sm:$0xff] %v5243_v10  ;;  %v12174_v41 = vadd.f32 1.0, %v6808_v22  ;;  %v5262_v46 = vsub.f32 1.0, %v5261_v0  ;;  %v5253_v43 = vsel %vm5252_vm7, %v6802_v3, %v5249_v25  ;;  %v13970_v3 = vld [vmem:[#allocation96_spill] sm:$0xff]  ;;  %v2610_v45 = vpop.f32.mrf.mxu0 }
 0x4e1   : > { %v6810_v58 = vpop.eup %6809  ;;  %v5258_v55 = vsel %vm5255_vm8, %v5257_v54, %v5253_v43  ;;  %v2723_v56 = vpop.f32.mrf.mxu1  ;;  %v2611_v10 = vadd.f32 %v2610_v45, %v11843_v60  ;;  %v6332_v0 = vmul.f32 -1.442695, %v2947_v44 }
 0x4e2   : > { %6813 = vrcp.f32 %v12174_v41  ;;  %v5263_v26 = vmul.f32 %v6806_v27, %v5262_v46  ;;  %v6812_v15 = vpop.eup %6811  ;;  %5967 = vst [vmem:[%s11882_s16 + $0x88] sm:$0xff] %v5258_v55  ;;  %v5276_v28 = vmul.f32 %v6810_v58, %v12162_v50  ;;  %vm5281_vm13 = vweird.f32 %v6810_v58  ;;  %v2836_v54 = vpop.f32.mrf.mxu2 }
 0x4e3   : > { %6815 = vpow2.f32 %v6329_v33  ;;  %v12188_v21 = vadd.f32 1.0, %v6812_v15  ;;  %vm5282_vm15 = vmor %vm5280_vm14, %vm5281_vm13  ;;  %v5299_v30 = vand.u32 2147483647, %v12174_v41  ;;  %v5301_v39 = vand.u32 2147483648, %v12174_v41 }
 0x4e4   : > { %v5264_v24 = vadd.f32 %v6806_v27, %v5263_v26  ;;  %v5277_v34 = vsub.f32 1.0, %v5276_v28  ;;  %vm5295_vm2 = vweird.f32 %v12174_v41  ;;  %v2949_v46 = vpop.f32.mrf.mxu3  ;;  %v2724_v61 = vadd.f32 %v2723_v56, %v2611_v10 }
 0x4e5   : > { %6817 = vrcp.f32 %v12188_v21  ;;  %vm5300_vm4 = vcmp.eq.f32.partialorder %v5299_v30, 8.507059e+37  ;;  %v5302_v35 = vor.u32 1.1754944e-38, %v5301_v39  ;;  %v5314_v25 = vand.u32 2147483647, %v12188_v21 }
 0x4e6   : > { %2660 = vmatmul.f32.gmra.mxu0 %v13787_v31  ;;  %2773 = vmatmul.f32.gmra.mxu1 %v13788_v14  ;;  %v5268_v18 = vsel %vm5267_vm11, %v6806_v27, %v5264_v24  ;;  %v5278_v11 = vmul.f32 %v6810_v58, %v5277_v34  ;;  %v5316_v6 = vand.u32 2147483648, %v12188_v21  ;;  %vm5310_vm6 = vweird.f32 %v12188_v21 }
 0x4e7   : > { %2886 = vmatmul.f32.gmra.mxu2 %v13787_v31  ;;  %2999 = vmatmul.f32.gmra.mxu3 %v13788_v14  ;;  %v6330_v31 = vmul.f32 -1.442695, %v2944_v53  ;;  %v5284_v14 = vand.u32 2147483647, %v12162_v50  ;;  %v5273_v48 = vsel %vm5270_vm12, %v5272_v63, %v5268_v18  ;;  %v4598_v50 = vpop.trf.xlu0  ;;  %v2837_v55 = vadd.f32 %v2836_v54, %v11851_v20 }
 0x4e8   : > { %v6814_v32 = vpop.eup %6813  ;;  %5968 = vst [vmem:[%s11882_s16 + $0x90] sm:$0xff] %v5273_v48  ;;  %v5279_v5 = vadd.f32 %v6810_v58, %v5278_v11  ;;  %vm5315_vm8 = vcmp.eq.f32.partialorder %v5314_v25, 8.507059e+37  ;;  %v5317_v17 = vor.u32 1.1754944e-38, %v5316_v6  ;;  %v6333_v28 = vmul.f32 -1.442695, %v2724_v61 }
 0x4e9   : > { %6819 = vpow2.f32 %v6330_v31  ;;  %v6816_v7 = vpop.eup %6815  ;;  %v5291_v49 = vmul.f32 %v6814_v32, %v12174_v41  ;;  %vm5285_vm0 = vcmp.eq.f32.partialorder %v5284_v14, 8.507059e+37  ;;  %vm5296_vm1 = vweird.f32 %v6814_v32  ;;  %4718 = vst [vmem:[%s11934_s12 + $0x80] sm:$0xff] %v4598_v50  ;;  %v2726_v63 = vpop.f32.mrf.mxu1 }
 0x4ea   : > { %v12197_v19 = vadd.f32 1.0, %v6816_v7  ;;  %v5283_v47 = vsel %vm5282_vm15, %v6810_v58, %v5279_v5  ;;  %vm5297_vm3 = vmor %vm5295_vm2, %vm5296_vm1  ;;  %v2950_v12 = vadd.f32 %v2949_v46, %v2837_v55 }
 0x4eb   : > { %v5292_v40 = vsub.f32 1.0, %v5291_v49  ;;  %v6818_v52 = vpop.eup %6817  ;;  %v5288_v38 = vsel %vm5285_vm0, %v5287_v62, %v5283_v47 }
 0x4ec   : > { %6821 = vrcp.f32 %v12197_v19  ;;  %5969 = vst [vmem:[%s11882_s16 + $0x98] sm:$0xff] %v5288_v38  ;;  %v5306_v29 = vmul.f32 %v6818_v52, %v12188_v21  ;;  %vm5311_vm5 = vweird.f32 %v6818_v52  ;;  %v5329_v24 = vand.u32 2147483647, %v12197_v19  ;;  %v2613_v21 = vpop.f32.mrf.mxu0 }
 0x4ed   : > { %v5293_v37 = vmul.f32 %v6814_v32, %v5292_v40  ;;  %6823 = vpow2.f32 %v6331_v4  ;;  %vm5312_vm7 = vmor %vm5310_vm6, %vm5311_vm5  ;;  %v5331_v9 = vand.u32 2147483648, %v12197_v19  ;;  %vm5325_vm10 = vweird.f32 %v12197_v19 }
 0x4ee   : > { %2663 = vmatmul.f32.gmra.mxu0 %v13970_v3  ;;  %2776 = vmatmul.f32.gmra.mxu1 %v13971_v2  ;;  %v5307_v22 = vsub.f32 1.0, %v5306_v29  ;;  %v2614_v48 = vadd.f32 %v2613_v21, %v11843_v60  ;;  %v6334_v59 = vmul.f32 -1.442695, %v2950_v12  ;;  %vm5330_vm12 = vcmp.eq.f32.partialorder %v5329_v24, 8.507059e+37 }
 0x4ef   : > { %2889 = vmatmul.f32.gmra.mxu2 %v13970_v3  ;;  %3002 = vmatmul.f32.gmra.mxu3 %v13971_v2  ;;  %v6820_v1 = vpop.eup %6819  ;;  %v5294_v8 = vadd.f32 %v6814_v32, %v5293_v37  ;;  %v4599_v26 = vpop.trf.xlu0  ;;  %v5332_v11 = vor.u32 1.1754944e-38, %v5331_v9 }
 0x4f0   : > { %v12211_v27 = vadd.f32 1.0, %v6820_v1  ;;  %v5308_v43 = vmul.f32 %v6818_v52, %v5307_v22  ;;  %4720 = vst [vmem:[%s11934_s12 + $0x90] sm:$0xff] %v4599_v26  ;;  %v2839_v3 = vpop.f32.mrf.mxu2  ;;  %v2952_v2 = vpop.f32.mrf.mxu3  ;;  %v2727_v39 = vadd.f32 %v2726_v63, %v2614_v48 }
 0x4f1   : > { %v5298_v16 = vsel %vm5297_vm3, %v6814_v32, %v5294_v8  ;;  %v2840_v38 = vadd.f32 %v2839_v3, %v11851_v20  ;;  %v2729_v56 = vpop.f32.mrf.mxu1 }
 0x4f2   : > { %6825 = vrcp.f32 %v12211_v27  ;;  %v6822_v41 = vpop.eup %6821  ;;  %v5303_v33 = vsel %vm5300_vm4, %v5302_v35, %v5298_v16  ;;  %v5309_v51 = vadd.f32 %v6818_v52, %v5308_v43  ;;  %v5346_v49 = vand.u32 2147483648, %v12211_v27 }
 0x4f3   : > { %6827 = vpow2.f32 %v6332_v0  ;;  %v6824_v13 = vpop.eup %6823  ;;  %5970 = vst [vmem:[%s11882_s16 + $0xa0] sm:$0xff] %v5303_v33  ;;  %v5321_v57 = vmul.f32 %v6822_v41, %v12197_v19  ;;  %vm5326_vm9 = vweird.f32 %v6822_v41  ;;  %v5344_v36 = vand.u32 2147483647, %v12211_v27 }
 0x4f4   : > { %v12220_v58 = vadd.f32 1.0, %v6824_v13  ;;  %v5313_v53 = vsel %vm5312_vm7, %v6818_v52, %v5309_v51  ;;  %vm5327_vm11 = vmor %vm5325_vm10, %vm5326_vm9  ;;  %vm5340_vm14 = vweird.f32 %v12211_v27  ;;  %v5347_v45 = vor.u32 1.1754944e-38, %v5346_v49  ;;  %v2616_v37 = vpop.f32.mrf.mxu0 }
 0x4f5   : > { %v5322_v15 = vsub.f32 1.0, %v5321_v57  ;;  %v5318_v31 = vsel %vm5315_vm8, %v5317_v17, %v5313_v53  ;;  %v6335_v44 = vmul.f32 -1.442695, %v2727_v39  ;;  %v2617_v8 = vadd.f32 %v2616_v37, %v11843_v60 }
 0x4f6   : > { %6829 = vrcp.f32 %v12220_v58  ;;  %5971 = vst [vmem:[%s11882_s16 + $0xa8] sm:$0xff] %v5318_v31  ;;  %v5359_v29 = vand.u32 2147483647, %v12220_v58  ;;  %vm5345_vm0 = vcmp.eq.f32.partialorder %v5344_v36, 8.507059e+37  ;;  %v5361_v10 = vand.u32 2147483648, %v12220_v58 }
 0x4f7   : > { %v5323_v18 = vmul.f32 %v6822_v41, %v5322_v15  ;;  %6831 = vpow2.f32 %v6333_v28  ;;  %v4600_v4 = vpop.trf.xlu0  ;;  %vm5355_vm2 = vweird.f32 %v12220_v58  ;;  %v2953_v6 = vadd.f32 %v2952_v2, %v2840_v38 }
 0x4f8   : > { %v6826_v34 = vpop.eup %6825  ;;  %4722 = vst [vmem:[%s11934_s12 + $0xa0] sm:$0xff] %v4600_v4  ;;  %vm12251_vm3 = vcmp.eq.f32.partialorder %v5359_v29, 8.507059e+37  ;;  %v2730_v33 = vadd.f32 %v2729_v56, %v2617_v8  ;;  %v2842_v43 = vpop.f32.mrf.mxu2  ;;  %v5362_v57 = vor.u32 1.1754944e-38, %v5361_v10 }
 0x4f9   : > { %v6828_v14 = vpop.eup %6827  ;;  %v5336_v42 = vmul.f32 %v6826_v34, %v12211_v27  ;;  %v5324_v23 = vadd.f32 %v6822_v41, %v5323_v18  ;;  %vm5341_vm13 = vweird.f32 %v6826_v34  ;;  %v2955_v13 = vpop.f32.mrf.mxu3  ;;  %v6336_v51 = vmul.f32 -1.442695, %v2953_v6 }
 0x4fa   : > { %v12230_v32 = vadd.f32 1.0, %v6828_v14  ;;  %vm5342_vm15 = vmor %vm5340_vm14, %vm5341_vm13  ;;  %v2732_v21 = vpop.f32.mrf.mxu1  ;;  %v6337_v31 = vmul.f32 -1.442695, %v2730_v33 }
 0x4fb   : > { %v5337_v7 = vsub.f32 1.0, %v5336_v42  ;;  %v5328_v5 = vsel %vm5327_vm11, %v6822_v41, %v5324_v23 }
 0x4fc   : > { %6833 = vrcp.f32 %v12230_v32  ;;  %v6830_v19 = vpop.eup %6829  ;;  %v5333_v62 = vsel %vm5330_vm12, %v5332_v11, %v5328_v5  ;;  %v5374_v17 = vand.u32 2147483647, %v12230_v32  ;;  %v5376_v15 = vand.u32 2147483648, %v12230_v32  ;;  %v2619_v9 = vpop.f32.mrf.mxu0 }
 0x4fd   : > { %v5338_v40 = vmul.f32 %v6826_v34, %v5337_v7  ;;  %6835 = vpow2.f32 %v6334_v59  ;;  %v6832_v47 = vpop.eup %6831  ;;  %5972 = vst [vmem:[%s11882_s16 + $0xb0] sm:$0xff] %v5333_v62  ;;  %v5351_v30 = vmul.f32 %v6830_v19, %v12220_v58  ;;  %vm5356_vm1 = vweird.f32 %v6830_v19 }
 0x4fe   : > { %v12239_v52 = vadd.f32 1.0, %v6832_v47  ;;  %vm5357_vm4 = vmor %vm5355_vm2, %vm5356_vm1  ;;  %v2843_v58 = vadd.f32 %v2842_v43, %v11851_v20  ;;  %vm5370_vm6 = vweird.f32 %v12230_v32  ;;  %v5377_v23 = vor.u32 1.1754944e-38, %v5376_v15 }
 0x4ff   : > { %v5339_v50 = vadd.f32 %v6826_v34, %v5338_v40  ;;  %v5352_v1 = vsub.f32 1.0, %v5351_v30  ;;  %v4601_v55 = vpop.trf.xlu0  ;;  %v2620_v11 = vadd.f32 %v2619_v9, %v11843_v60  ;;  %vm5375_vm8 = vcmp.eq.f32.partialorder %v5374_v17, 8.507059e+37 }
 0x500   : > { %6837 = vrcp.f32 %v12239_v52  ;;  %4724 = vst [vmem:[%s11934_s12 + $0xb0] sm:$0xff] %v4601_v55  ;;  %v5389_v14 = vand.u32 2147483647, %v12239_v52  ;;  %v2956_v12 = vadd.f32 %v2955_v13, %v2843_v58  ;;  %v2845_v3 = vpop.f32.mrf.mxu2  ;;  %vm5385_vm10 = vweird.f32 %v12239_v52 }
 0x501   : > { %v5343_v27 = vsel %vm5342_vm15, %v6826_v34, %v5339_v50  ;;  %v5353_v0 = vmul.f32 %v6830_v19, %v5352_v1  ;;  %6839 = vpow2.f32 %v6335_v44  ;;  %v2958_v2 = vpop.f32.mrf.mxu3  ;;  %v2733_v4 = vadd.f32 %v2732_v21, %v2620_v11 }
 0x502   : > { %v6834_v35 = vpop.eup %6833  ;;  %v5348_v22 = vsel %vm5345_vm0, %v5347_v45, %v5343_v27  ;;  %v6338_v36 = vmul.f32 -1.442695, %v2956_v12  ;;  %vm12275_vm11 = vcmp.eq.f32.partialorder %v5389_v14, 8.507059e+37  ;;  %v2735_v1 = vpop.f32.mrf.mxu1  ;;  %v2846_v27 = vadd.f32 %v2845_v3, %v11851_v20 }
 0x503   : > { %v6836_v16 = vpop.eup %6835  ;;  %5973 = vst [vmem:[%s11882_s16 + $0xb8] sm:$0xff] %v5348_v22  ;;  %v5366_v25 = vmul.f32 %v6834_v35, %v12230_v32  ;;  %v5354_v54 = vadd.f32 %v6830_v19, %v5353_v0  ;;  %vm5371_vm5 = vweird.f32 %v6834_v35  ;;  %v5391_v32 = vand.u32 2147483648, %v12239_v52 }
 0x504   : > { %v12255_v41 = vadd.f32 1.0, %v6836_v16  ;;  %vm5372_vm7 = vmor %vm5370_vm6, %vm5371_vm5  ;;  %v6339_v37 = vmul.f32 -1.442695, %v2733_v4  ;;  %v2622_v56 = vpop.f32.mrf.mxu0  ;;  %v2959_v13 = vadd.f32 %v2958_v2, %v2846_v27 }
 0x505   : > { %v5367_v61 = vsub.f32 1.0, %v5366_v25  ;;  %v5358_v26 = vsel %vm5357_vm4, %v6830_v19, %v5354_v54  ;;  %v5392_v45 = vor.u32 1.1754944e-38, %v5391_v32  ;;  %v2623_v58 = vadd.f32 %v2622_v56, %v11843_v60 }
 0x506   : > { %6841 = vrcp.f32 %v12255_v41  ;;  %v6838_v28 = vpop.eup %6837  ;;  %v5363_v53 = vsel %vm12251_vm3, %v5362_v57, %v5358_v26  ;;  %v5404_v39 = vand.u32 2147483647, %v12255_v41  ;;  %v5406_v38 = vand.u32 2147483648, %v12255_v41 }
 0x507   : > { %v5368_v24 = vmul.f32 %v6834_v35, %v5367_v61  ;;  %6843 = vpow2.f32 %v6336_v51  ;;  %v6840_v63 = vpop.eup %6839  ;;  %5974 = vst [vmem:[%s11882_s16 + $0xc0] sm:$0xff] %v5363_v53  ;;  %v5381_v34 = vmul.f32 %v6838_v28, %v12239_v52  ;;  %vm5386_vm9 = vweird.f32 %v6838_v28  ;;  %v4602_v47 = vpop.trf.xlu0 }
 0x508   : > { %v12268_v42 = vadd.f32 1.0, %v6840_v63  ;;  %6845 = vpow2.f32 %v6337_v31  ;;  %4726 = vst [vmem:[%s11934_s12 + $0xc0] sm:$0xff] %v4602_v47  ;;  %vm5387_vm12 = vmor %vm5385_vm10, %vm5386_vm9  ;;  %vm5400_vm14 = vweird.f32 %v12255_v41  ;;  %vm12295_vm15 = vcmp.eq.f32.partialorder %v5404_v39, 8.507059e+37  ;;  %v2848_v55 = vpop.f32.mrf.mxu2 }
 0x509   : > { %v5369_v18 = vadd.f32 %v6834_v35, %v5368_v24  ;;  %v5382_v48 = vsub.f32 1.0, %v5381_v34  ;;  %v5407_v54 = vor.u32 1.1754944e-38, %v5406_v38  ;;  %v2961_v26 = vpop.f32.mrf.mxu3  ;;  %v2736_v32 = vadd.f32 %v2735_v1, %v2623_v58 }
 0x50a   : > { %6847 = vrcp.f32 %v12268_v42  ;;  %v5419_v8 = vand.u32 2147483647, %v12268_v42  ;;  %v5421_v46 = vand.u32 2147483648, %v12268_v42  ;;  %vm5415_vm1 = vweird.f32 %v12268_v42  ;;  %v12318_v34 = vpop.f32.mrf.mxu1 }
 0x50b   : > { %v5373_v7 = vsel %vm5372_vm7, %v6834_v35, %v5369_v18  ;;  %v5383_v5 = vmul.f32 %v6838_v28, %v5382_v48  ;;  %6849 = vpow2.f32 %v6338_v36 }
 0x50c   : > { %v6842_v49 = vpop.eup %6841  ;;  %v5378_v59 = vsel %vm5375_vm8, %v5377_v23, %v5373_v7  ;;  %vm12303_vm2 = vcmp.eq.f32.partialorder %v5419_v8, 8.507059e+37  ;;  %v5422_v9 = vor.u32 1.1754944e-38, %v5421_v46  ;;  %v2625_v63 = vpop.f32.mrf.mxu0  ;;  %v6340_v23 = vmul.f32 -1.442695, %v2959_v13 }
 0x50d   : > { %v6844_v19 = vpop.eup %6843  ;;  %5975 = vst [vmem:[%s11882_s16 + $0xc8] sm:$0xff] %v5378_v59  ;;  %v5396_v40 = vmul.f32 %v6842_v49, %v12255_v41  ;;  %v5384_v30 = vadd.f32 %v6838_v28, %v5383_v5  ;;  %vm5401_vm13 = vweird.f32 %v6842_v49  ;;  %v2626_v16 = vadd.f32 %v2625_v63, %v11843_v60 }
 0x50e   : > { %v12281_v50 = vadd.f32 1.0, %v6844_v19  ;;  %v6846_v29 = vpop.eup %6845  ;;  %vm5402_vm0 = vmor %vm5400_vm14, %vm5401_vm13 }
 0x50f   : > { %v5397_v52 = vsub.f32 1.0, %v5396_v40  ;;  %v5388_v44 = vsel %vm5387_vm12, %v6838_v28, %v5384_v30  ;;  %v12291_v0 = vadd.f32 1.0, %v6846_v29  ;;  %v4603_v24 = vpop.trf.xlu0  ;;  %v6341_v30 = vmul.f32 -1.442695, %v2736_v32 }
 0x510   : > { %6851 = vrcp.f32 %v12281_v50  ;;  %v6848_v10 = vpop.eup %6847  ;;  %v5393_v35 = vsel %vm12275_vm11, %v5392_v45, %v5388_v44  ;;  %v5434_v61 = vand.u32 2147483647, %v12281_v50  ;;  %v5436_v53 = vand.u32 2147483648, %v12281_v50  ;;  %4728 = vst [vmem:[%s11934_s12 + $0xd0] sm:$0xff] %v4603_v24  ;;  %v2851_v45 = vpop.f32.mrf.mxu2 }
 0x511   : > { %v5398_v22 = vmul.f32 %v6842_v49, %v5397_v52  ;;  %5976 = vst [vmem:[%s11882_s16 + $0xd0] sm:$0xff] %v5393_v35  ;;  %v5411_v25 = vmul.f32 %v6848_v10, %v12268_v42  ;;  %6853 = vpow2.f32 %v6339_v37  ;;  %v6850_v33 = vpop.eup %6849  ;;  %vm5416_vm3 = vweird.f32 %v6848_v10  ;;  %v2964_v52 = vpop.f32.mrf.mxu3 }
 0x512   : > { %6855 = vrcp.f32 %v12291_v0  ;;  %v12308_v51 = vadd.f32 1.0, %v6850_v33  ;;  %vm5430_vm4 = vweird.f32 %v12281_v50  ;;  %v5449_v14 = vand.u32 2147483647, %v12291_v0  ;;  %vm5417_vm5 = vmor %vm5415_vm1, %vm5416_vm3 }
 0x513   : > { %v5399_v6 = vadd.f32 %v6842_v49, %v5398_v22  ;;  %v5412_v43 = vsub.f32 1.0, %v5411_v25  ;;  %v5451_v12 = vand.u32 2147483648, %v12291_v0  ;;  %vm12329_vm6 = vcmp.eq.f32.partialorder %v5434_v61, 8.507059e+37 }
 0x514   : > { %6857 = vrcp.f32 %v12308_v51  ;;  %v5437_v36 = vor.u32 1.1754944e-38, %v5436_v53  ;;  %vm5445_vm8 = vweird.f32 %v12291_v0  ;;  %vm12339_vm9 = vcmp.eq.f32.partialorder %v5449_v14, 8.507059e+37  ;;  %v2628_v27 = vpop.f32.mrf.mxu0 }
 0x515   : > { %v5403_v57 = vsel %vm5402_vm0, %v6842_v49, %v5399_v6  ;;  %v5413_v28 = vmul.f32 %v6848_v10, %v5412_v43  ;;  %v2849_v49 = vadd.f32 %v2848_v55, %v11851_v20  ;;  %v5452_v40 = vor.u32 1.1754944e-38, %v5451_v12 }
 0x516   : > { %v6852_v17 = vpop.eup %6851  ;;  %v5408_v15 = vsel %vm12295_vm15, %v5407_v54, %v5403_v57  ;;  %v5464_v56 = vand.u32 2147483647, %v12308_v51  ;;  %v5466_v44 = vand.u32 2147483648, %v12308_v51  ;;  %vm5460_vm13 = vweird.f32 %v12308_v51 }
 0x517   : > { %5977 = vst [vmem:[%s11882_s16 + $0xd8] sm:$0xff] %v5408_v15  ;;  %v5426_v21 = vmul.f32 %v6852_v17, %v12281_v50  ;;  %v6854_v31 = vpop.eup %6853  ;;  %v5414_v18 = vadd.f32 %v6848_v10, %v5413_v28  ;;  %vm5431_vm7 = vweird.f32 %v6852_v17  ;;  %v2962_v39 = vadd.f32 %v2961_v26, %v2849_v49  ;;  %v4604_v1 = vpop.trf.xlu0 }
 0x518   : > { %v6856_v48 = vpop.eup %6855  ;;  %v12326_v7 = vadd.f32 1.0, %v6854_v31  ;;  %vm5432_vm10 = vmor %vm5430_vm4, %vm5431_vm7  ;;  %4730 = vst [vmem:[%s11934_s12 + $0xe0] sm:$0xff] %v4604_v1  ;;  %v2852_v6 = vadd.f32 %v2851_v45, %v11851_v20  ;;  %v2629_v43 = vadd.f32 %v2628_v27, %v11843_v60  ;;  %vm12362_vm15 = vcmp.eq.f32.partialorder %v5464_v56, 8.507059e+37 }
 0x519   : > { %v5427_v11 = vsub.f32 1.0, %v5426_v21  ;;  %v5418_v59 = vsel %vm5417_vm5, %v6848_v10, %v5414_v18  ;;  %v5441_v3 = vmul.f32 %v6856_v48, %v12291_v0  ;;  %vm5446_vm11 = vweird.f32 %v6856_v48  ;;  %v2741_v10 = vpop.f32.mrf.mxu1  ;;  %v2967_v21 = vpop.f32.mrf.mxu3 }
 0x51a   : > { %v5423_v2 = vsel %vm12303_vm2, %v5422_v9, %v5418_v59  ;;  %6859 = vrcp.f32 %v12326_v7  ;;  %v6858_v4 = vpop.eup %6857  ;;  %v6342_v8 = vmul.f32 -1.442695, %v2962_v39  ;;  %vm5447_vm12 = vmor %vm5445_vm8, %vm5446_vm11  ;;  %v2739_v0 = vadd.f32 %v12318_v34, %v2626_v16  ;;  %v2854_v9 = vpop.f32.mrf.mxu2 }
 0x51b   : > { %v5428_v19 = vmul.f32 %v6852_v17, %v5427_v11  ;;  %5978 = vst [vmem:[%s11882_s16 + $0xe0] sm:$0xff] %v5423_v2  ;;  %v5442_v42 = vsub.f32 1.0, %v5441_v3  ;;  %6861 = vpow2.f32 %v6340_v23  ;;  %v5456_v37 = vmul.f32 %v6858_v4, %v12308_v51 }
 0x51c   : > { %6863 = vpow2.f32 %v6341_v30  ;;  %vm5461_vm14 = vweird.f32 %v6858_v4  ;;  %v2965_v61 = vadd.f32 %v2964_v52, %v2852_v6  ;;  %v5467_v55 = vor.u32 1.1754944e-38, %v5466_v44  ;;  %v4622_v44 = vpop.trf.xlu2 }
 0x51d   : > { %v5429_v47 = vadd.f32 %v6852_v17, %v5428_v19  ;;  %v5443_v38 = vmul.f32 %v6856_v48, %v5442_v42  ;;  %v5457_v22 = vsub.f32 1.0, %v5456_v37  ;;  %6865 = vpow2.f32 %v6342_v8  ;;  %vm5462_vm0 = vmor %vm5460_vm13, %vm5461_vm14  ;;  %4671 = vst [vmem:[%s12399_s19 + $0x8] sm:$0xff] %v4622_v44 }
 0x51e   : > { %v5479_v28 = vand.u32 2147483647, %v12326_v7  ;;  %v5481_v53 = vand.u32 2147483648, %v12326_v7  ;;  %v6343_v24 = vmul.f32 -1.442695, %v2739_v0  ;;  %v2742_v31 = vadd.f32 %v2741_v10, %v2629_v43 }
 0x51f   : > { %v5433_v29 = vsel %vm5432_vm10, %v6852_v17, %v5429_v47  ;;  %v5444_v35 = vadd.f32 %v6856_v48, %v5443_v38  ;;  %v5458_v46 = vmul.f32 %v6858_v4, %v5457_v22  ;;  %v4605_v18 = vpop.trf.xlu0  ;;  %vm5475_vm2 = vweird.f32 %v12326_v7 }
 0x520   : > { %v5438_v50 = vsel %vm12329_vm6, %v5437_v36, %v5433_v29  ;;  %v6860_v25 = vpop.eup %6859  ;;  %v6344_v23 = vmul.f32 -1.442695, %v2965_v61  ;;  %4732 = vst [vmem:[%s11934_s12 + $0xf0] sm:$0xff] %v4605_v18  ;;  %v2855_v59 = vadd.f32 %v2854_v9, %v11851_v20  ;;  %v5482_v5 = vor.u32 1.1754944e-38, %v5481_v53  ;;  %v4558_v29 = vpop.trf.xlu1 }
 0x521   : > { %5979 = vst [vmem:[%s11882_s16 + $0xe8] sm:$0xff] %v5438_v50  ;;  %v5448_v54 = vsel %vm5447_vm12, %v6856_v48, %v5444_v35  ;;  %v5471_v33 = vmul.f32 %v6860_v25, %v12326_v7  ;;  %v6862_v41 = vpop.eup %6861  ;;  %v5459_v58 = vadd.f32 %v6858_v4, %v5458_v46  ;;  %vm5476_vm1 = vweird.f32 %v6860_v25  ;;  %v2631_v48 = vpop.f32.mrf.mxu0 }
 0x522   : > { %v5453_v13 = vsel %vm12339_vm9, %v5452_v40, %v5448_v54  ;;  %v12368_v17 = vadd.f32 1.0, %v6862_v41  ;;  %v6864_v15 = vpop.eup %6863  ;;  %v2744_v11 = vpop.f32.mrf.mxu1  ;;  %vm5477_vm3 = vmor %vm5475_vm2, %vm5476_vm1  ;;  %vm5480_vm4 = vcmp.eq.f32.partialorder %v5479_v28, 8.507059e+37  ;;  %v6345_v2 = vmul.f32 -1.442695, %v2742_v31  ;;  %4670 = vst [vmem:[%s12399_s19] sm:$0xff] %v4558_v29 }
 0x523   : > { %5980 = vst [vmem:[%s11882_s16 + $0xf0] sm:$0xff] %v5453_v13  ;;  %v5472_v26 = vsub.f32 1.0, %v5471_v33  ;;  %v5463_v63 = vsel %vm5462_vm0, %v6858_v4, %v5459_v58  ;;  %v6866_v14 = vpop.eup %6865  ;;  %v12379_v12 = vadd.f32 1.0, %v6864_v15  ;;  %v2968_v62 = vadd.f32 %v2967_v21, %v2855_v59  ;;  %v2857_v45 = vpop.f32.mrf.mxu2 }
 0x524   : > { %6867 = vrcp.f32 %v12368_v17  ;;  %v5468_v51 = vsel %vm12362_vm15, %v5467_v55, %v5463_v63  ;;  %v12383_v49 = vadd.f32 1.0, %v6866_v14  ;;  %v5494_v7 = vand.u32 2147483647, %v12368_v17  ;;  %v12409_v52 = vpop.f32.mrf.mxu3 }
 0x525   : > { %v5473_v34 = vmul.f32 %v6860_v25, %v5472_v26  ;;  %5981 = vst [vmem:[%s11882_s16 + $0xf8] sm:$0xff] %v5468_v51  ;;  %6869 = vpow2.f32 %v6343_v24  ;;  %v5496_v36 = vand.u32 2147483648, %v12368_v17  ;;  %vm5490_vm5 = vweird.f32 %v12368_v17 }
 0x526   : > { %6871 = vrcp.f32 %v12379_v12  ;;  %vm12403_vm6 = vcmp.eq.f32.partialorder %v5494_v7, 8.507059e+37  ;;  %v5509_v30 = vand.u32 2147483647, %v12379_v12  ;;  %v5511_v39 = vand.u32 2147483648, %v12379_v12 }
 0x527   : > { %v5474_v32 = vadd.f32 %v6860_v25, %v5473_v34  ;;  %6873 = vrcp.f32 %v12383_v49  ;;  %v5497_v47 = vor.u32 1.1754944e-38, %v5496_v36  ;;  %v5524_v37 = vand.u32 2147483647, %v12383_v49  ;;  %v4654_v50 = vpop.trf.xlu0 }
 0x528   : > { %6875 = vpow2.f32 %v6344_v23  ;;  %v6346_v56 = vmul.f32 -1.442695, %v2968_v62  ;;  %v2632_v1 = vadd.f32 %v2631_v48, %v11843_v60  ;;  %vm5505_vm7 = vweird.f32 %v12379_v12  ;;  %4703 = vst [vmem:[%s11934_s12 + $0x8] sm:$0xff] %v4654_v50  ;;  %v4559_v23 = vpop.trf.xlu1  ;;  %v4623_v48 = vpop.trf.xlu2 }
 0x529   : > { %v5478_v3 = vsel %vm5477_vm3, %v6860_v25, %v5474_v32  ;;  %6877 = vpow2.f32 %v6345_v2  ;;  %vm5520_vm8 = vweird.f32 %v12383_v49  ;;  %v12420_v35 = vpop.f32.mrf.mxu0  ;;  %v5526_v25 = vand.u32 2147483648, %v12383_v49  ;;  %4672 = vst [vmem:[%s12399_s19 + $0x10] sm:$0xff] %v4559_v23 }
 0x52a   : > { %v5483_v19 = vsel %vm5480_vm4, %v5482_v5, %v5478_v3  ;;  %v12391_v42 = vpop.eup %6867  ;;  %6879 = vpow2.f32 %v6346_v56  ;;  %v2745_v6 = vadd.f32 %v2744_v11, %v2632_v1  ;;  %v12428_v54 = vpop.f32.mrf.mxu1  ;;  %vm12436_vm10 = vcmp.eq.f32.partialorder %v5509_v30, 8.507059e+37  ;;  %4673 = vst [vmem:[%s12399_s19 + $0x18] sm:$0xff] %v4623_v48 }
 0x52b   : > { %5982 = vst [vmem:[%s11882_s16 + $0x100] sm:$0xff] %v5483_v19  ;;  %v5486_v40 = vmul.f32 %v12391_v42, %v12368_v17  ;;  %v6870_v38 = vpop.eup %6869  ;;  %vm5491_vm9 = vweird.f32 %v12391_v42  ;;  %v5512_v57 = vor.u32 1.1754944e-38, %v5511_v39  ;;  %vm12440_vm11 = vcmp.eq.f32.partialorder %v5524_v37, 8.507059e+37  ;;  %v12456_v63 = vpop.f32.mrf.mxu2 }
 0x52c   : > { %v12413_v8 = vpop.eup %6871  ;;  %v12417_v10 = vadd.f32 1.0, %v6870_v38  ;;  %v6347_v26 = vmul.f32 -1.442695, %v2745_v6  ;;  %vm5492_vm12 = vmor %vm5490_vm5, %vm5491_vm9  ;;  %v5527_v53 = vor.u32 1.1754944e-38, %v5526_v25  ;;  %v2858_v24 = vadd.f32 %v2857_v45, %v11851_v20  ;;  %v12458_v17 = vpop.f32.mrf.mxu3 }
 0x52d   : > { %v5487_v27 = vsub.f32 1.0, %v5486_v40  ;;  %v12422_v22 = vpop.eup %6873  ;;  %v5501_v16 = vmul.f32 %v12413_v8, %v12379_v12  ;;  %vm5506_vm13 = vweird.f32 %v12413_v8  ;;  %v2861_v13 = vadd.f32 %v12456_v63, %v11851_v20 }
 0x52e   : > { %v5516_v33 = vmul.f32 %v12422_v22, %v12383_v49  ;;  %6881 = vrcp.f32 %v12417_v10  ;;  %v6876_v43 = vpop.eup %6875  ;;  %vm5521_vm14 = vweird.f32 %v12422_v22  ;;  %v5539_v14 = vand.u32 2147483647, %v12417_v10  ;;  %vm5507_vm15 = vmor %vm5505_vm7, %vm5506_vm13 }
 0x52f   : > { %v5488_v46 = vmul.f32 %v12391_v42, %v5487_v27  ;;  %v5502_v41 = vsub.f32 1.0, %v5501_v16  ;;  %v12445_v55 = vadd.f32 1.0, %v6876_v43  ;;  %v6878_v15 = vpop.eup %6877  ;;  %v5541_v51 = vand.u32 2147483648, %v12417_v10  ;;  %v4655_v7 = vpop.trf.xlu0  ;;  %vm5522_vm0 = vmor %vm5520_vm8, %vm5521_vm14 }
 0x530   : > { %v5517_v58 = vsub.f32 1.0, %v5516_v33  ;;  %v6880_v34 = vpop.eup %6879  ;;  %v12473_v59 = vadd.f32 1.0, %v6878_v15  ;;  %v2971_v19 = vadd.f32 %v12409_v52, %v2858_v24  ;;  %vm5535_vm1 = vweird.f32 %v12417_v10  ;;  %4705 = vst [vmem:[%s11934_s12 + $0x18] sm:$0xff] %v4655_v7  ;;  %v4560_v6 = vpop.trf.xlu1 }
 0x531   : > { %v5489_v61 = vadd.f32 %v12391_v42, %v5488_v46  ;;  %v5503_v28 = vmul.f32 %v12413_v8, %v5502_v41  ;;  %6883 = vrcp.f32 %v12445_v55  ;;  %v12475_v5 = vadd.f32 1.0, %v6880_v34  ;;  %v2637_v36 = vpop.f32.mrf.mxu0  ;;  %v4624_v46 = vpop.trf.xlu2  ;;  %4674 = vst [vmem:[%s12399_s19 + $0x20] sm:$0xff] %v4560_v6 }
 0x532   : > { %v5518_v21 = vmul.f32 %v12422_v22, %v5517_v58  ;;  %6885 = vpow2.f32 %v6347_v26  ;;  %v5554_v2 = vand.u32 2147483647, %v12445_v55  ;;  %v5556_v4 = vand.u32 2147483648, %v12445_v55  ;;  %4675 = vst [vmem:[%s12399_s19 + $0x28] sm:$0xff] %v4624_v46 }
 0x533   : > { %v5493_v9 = vsel %vm5492_vm12, %v12391_v42, %v5489_v61  ;;  %v5504_v18 = vadd.f32 %v12413_v8, %v5503_v28  ;;  %v12487_v42 = vpop.f32.mrf.mxu1  ;;  %6887 = vrcp.f32 %v12473_v59  ;;  %vm12502_vm2 = vcmp.eq.f32.partialorder %v5539_v14, 8.507059e+37 }
 0x534   : > { %v5498_v31 = vsel %vm12403_vm6, %v5497_v47, %v5493_v9  ;;  %v12465_v11 = vpop.eup %6881  ;;  %v5519_v32 = vadd.f32 %v12422_v22, %v5518_v21  ;;  %v5542_v45 = vor.u32 1.1754944e-38, %v5541_v51  ;;  %6889 = vrcp.f32 %v12475_v5  ;;  %v12518_v27 = vpop.f32.mrf.mxu3 }
 0x535   : > { %5983 = vst [vmem:[%s11882_s16 + $0x108] sm:$0xff] %v5498_v31  ;;  %v5508_v3 = vsel %vm5507_vm15, %v12413_v8, %v5504_v18  ;;  %v5531_v12 = vmul.f32 %v12465_v11, %v12417_v10  ;;  %vm5536_vm3 = vweird.f32 %v12465_v11  ;;  %vm5550_vm4 = vweird.f32 %v12445_v55  ;;  %v2863_v8 = vpop.f32.mrf.mxu2 }
 0x536   : > { %v5513_v62 = vsel %vm12436_vm10, %v5512_v57, %v5508_v3  ;;  %v5523_v40 = vsel %vm5522_vm0, %v12422_v22, %v5519_v32  ;;  %vm12513_vm5 = vcmp.eq.f32.partialorder %v5554_v2, 8.507059e+37  ;;  %v5557_v1 = vor.u32 1.1754944e-38, %v5556_v4  ;;  %vm12531_vm7 = vmor %vm5535_vm1, %vm5536_vm3 }
 0x537   : > { %5984 = vst [vmem:[%s11882_s16 + $0x110] sm:$0xff] %v5513_v62  ;;  %v5528_v49 = vsel %vm12440_vm11, %v5527_v53, %v5523_v40  ;;  %v5532_v47 = vsub.f32 1.0, %v5531_v12  ;;  %v12498_v30 = vpop.eup %6883  ;;  %v5569_v29 = vand.u32 2147483647, %v12473_v59  ;;  %v6348_v44 = vmul.f32 -1.442695, %v2971_v19  ;;  %v4656_v57 = vpop.trf.xlu0 }
 0x538   : > { %5985 = vst [vmem:[%s11882_s16 + $0x118] sm:$0xff] %v5528_v49  ;;  %v5546_v38 = vmul.f32 %v12498_v30, %v12445_v55  ;;  %v6886_v37 = vpop.eup %6885  ;;  %vm5565_vm6 = vweird.f32 %v12473_v59  ;;  %v5571_v16 = vand.u32 2147483648, %v12473_v59  ;;  %vm5551_vm8 = vweird.f32 %v12498_v30  ;;  %v4561_v19 = vpop.trf.xlu1 }
 0x539   : > { %v5533_v52 = vmul.f32 %v12465_v11, %v5532_v47  ;;  %v12523_v25 = vadd.f32 1.0, %v6886_v37  ;;  %v12525_v33 = vpop.eup %6887  ;;  %6891 = vpow2.f32 %v6348_v44  ;;  %v2635_v41 = vadd.f32 %v12420_v35, %v11843_v60  ;;  %v2640_v0 = vpop.f32.mrf.mxu0  ;;  %4707 = vst [vmem:[%s11934_s12 + $0x28] sm:$0xff] %v4656_v57  ;;  %vm5552_vm11 = vmor %vm5550_vm4, %vm5551_vm8 }
 0x53a   : > { %v5547_v22 = vsub.f32 1.0, %v5546_v38  ;;  %v5561_v58 = vmul.f32 %v12525_v33, %v12473_v59  ;;  %v2638_v26 = vadd.f32 %v2637_v36, %v11843_v60  ;;  %v6890_v15 = vpop.eup %6889  ;;  %vm5580_vm9 = vweird.f32 %v12475_v5  ;;  %4676 = vst [vmem:[%s12399_s19 + $0x30] sm:$0xff] %v4561_v19 }
 0x53b   : > { %v5534_v50 = vadd.f32 %v12465_v11, %v5533_v52  ;;  %v12549_v35 = vpop.f32.mrf.mxu1  ;;  %v5584_v53 = vand.u32 2147483647, %v12475_v5  ;;  %6893 = vrcp.f32 %v12523_v25  ;;  %vm12559_vm10 = vcmp.eq.f32.partialorder %v5569_v29, 8.507059e+37 }
 0x53c   : > { %v5548_v61 = vmul.f32 %v12498_v30, %v5547_v22  ;;  %v5562_v9 = vsub.f32 1.0, %v5561_v58  ;;  %v5576_v63 = vmul.f32 %v6890_v15, %v12475_v5  ;;  %vm5566_vm12 = vweird.f32 %v12525_v33 }
 0x53d   : > { %v5538_v10 = vsel %vm12531_vm7, %v12465_v11, %v5534_v50  ;;  %v5572_v34 = vor.u32 1.1754944e-38, %v5571_v16  ;;  %v2748_v31 = vadd.f32 %v12428_v54, %v2635_v41  ;;  %v2974_v18 = vadd.f32 %v12458_v17, %v2861_v13  ;;  %v2866_v36 = vpop.f32.mrf.mxu2  ;;  %v2979_v54 = vpop.f32.mrf.mxu3  ;;  %vm5567_vm14 = vmor %vm5565_vm6, %vm5566_vm12 }
 0x53e   : > { %v5543_v28 = vsel %vm12502_vm2, %v5542_v45, %v5538_v10  ;;  %v5549_v24 = vadd.f32 %v12498_v30, %v5548_v61  ;;  %v5563_v51 = vmul.f32 %v12525_v33, %v5562_v9  ;;  %v5577_v23 = vsub.f32 1.0, %v5576_v63 }
 0x53f   : > { %5986 = vst [vmem:[%s11882_s16 + $0x120] sm:$0xff] %v5543_v28  ;;  %v2751_v48 = vadd.f32 %v12487_v42, %v2638_v26  ;;  %v6892_v11 = vpop.eup %6891  ;;  %vm5581_vm13 = vweird.f32 %v6890_v15  ;;  %v5586_v32 = vand.u32 2147483648, %v12475_v5  ;;  %v6349_v7 = vmul.f32 -1.442695, %v2748_v31  ;;  %v4625_v42 = vpop.trf.xlu2 }
 0x540   : > { %v5553_v14 = vsel %vm5552_vm11, %v12498_v30, %v5549_v24  ;;  %v5564_v17 = vadd.f32 %v12525_v33, %v5563_v51  ;;  %v5578_v3 = vmul.f32 %v6890_v15, %v5577_v23  ;;  %v12579_v12 = vadd.f32 1.0, %v6892_v11  ;;  %v4657_v47 = vpop.trf.xlu0  ;;  %4677 = vst [vmem:[%s12399_s19 + $0x38] sm:$0xff] %v4625_v42  ;;  %vm5582_vm15 = vmor %vm5580_vm9, %vm5581_vm13  ;;  %v4562_v10 = vpop.trf.xlu1 }
 0x541   : > { %v5558_v55 = vsel %vm12513_vm5, %v5557_v1, %v5553_v14  ;;  %v6350_v2 = vmul.f32 -1.442695, %v2974_v18  ;;  %v12581_v62 = vpop.eup %6893  ;;  %6895 = vpow2.f32 %v6349_v7  ;;  %v6351_v40 = vmul.f32 -1.442695, %v2751_v48  ;;  %v2643_v30 = vpop.f32.mrf.mxu0  ;;  %4709 = vst [vmem:[%s11934_s12 + $0x38] sm:$0xff] %v4657_v47 }
 0x542   : > { %5987 = vst [vmem:[%s11882_s16 + $0x128] sm:$0xff] %v5558_v55  ;;  %v2864_v4 = vadd.f32 %v2863_v8, %v11851_v20  ;;  %v2641_v49 = vadd.f32 %v2640_v0, %v11843_v60  ;;  %v5568_v39 = vsel %vm5567_vm14, %v12525_v33, %v5564_v17  ;;  %v5579_v45 = vadd.f32 %v6890_v15, %v5578_v3 }
 0x543   : > { %v5591_v52 = vmul.f32 %v12581_v62, %v12523_v25  ;;  %v2867_v59 = vadd.f32 %v2866_v36, %v11851_v20  ;;  %v5573_v38 = vsel %vm12559_vm10, %v5572_v34, %v5568_v39  ;;  %vm5585_vm0 = vcmp.eq.f32.partialorder %v5584_v53, 8.507059e+37  ;;  %v2756_v56 = vpop.f32.mrf.mxu1  ;;  %4678 = vst [vmem:[%s12399_s19 + $0x40] sm:$0xff] %v4562_v10 }
 0x544   : > { %v5587_v37 = vor.u32 1.1754944e-38, %v5586_v32  ;;  %6897 = vrcp.f32 %v12579_v12  ;;  %5988 = vst [vmem:[%s11882_s16 + $0x130] sm:$0xff] %v5573_v38  ;;  %v5583_v1 = vsel %vm5582_vm15, %v6890_v15, %v5579_v45  ;;  %v5599_v44 = vand.u32 2147483647, %v12523_v25 }
 0x545   : > { %v5592_v29 = vsub.f32 1.0, %v5591_v52  ;;  %6899 = vpow2.f32 %v6350_v2  ;;  %v5601_v50 = vand.u32 2147483648, %v12523_v25  ;;  %v2977_v5 = vadd.f32 %v12518_v27, %v2864_v4  ;;  %v2869_v41 = vpop.f32.mrf.mxu2  ;;  %v12611_v13 = vpop.f32.mrf.mxu3 }
 0x546   : > { %v5588_v8 = vsel %vm5585_vm0, %v5587_v37, %v5583_v1  ;;  %6901 = vpow2.f32 %v6351_v40  ;;  %vm5596_vm1 = vweird.f32 %v12581_v62  ;;  %v2754_v16 = vadd.f32 %v12549_v35, %v2641_v49 }
 0x547   : > { %5989 = vst [vmem:[%s11882_s16 + $0x138] sm:$0xff] %v5588_v8  ;;  %v5593_v22 = vmul.f32 %v12581_v62, %v5592_v29  ;;  %v2980_v6 = vadd.f32 %v2979_v54, %v2867_v59  ;;  %v6896_v46 = vpop.eup %6895  ;;  %v6352_v33 = vmul.f32 -1.442695, %v2977_v5  ;;  %v2644_v43 = vadd.f32 %v2643_v30, %v11843_v60  ;;  %v4626_v61 = vpop.trf.xlu2 }
 0x548   : > { %vm5595_vm2 = vweird.f32 %v12523_v25  ;;  %v12615_v27 = vadd.f32 1.0, %v6896_v46  ;;  %v6353_v0 = vmul.f32 -1.442695, %v2754_v16  ;;  %v5602_v26 = vor.u32 1.1754944e-38, %v5601_v50  ;;  %v4658_v15 = vpop.trf.xlu0  ;;  %4679 = vst [vmem:[%s12399_s19 + $0x48] sm:$0xff] %v4626_v61 }
 0x549   : > { %v5594_v57 = vadd.f32 %v12581_v62, %v5593_v22  ;;  %vm5597_vm3 = vmor %vm5595_vm2, %vm5596_vm1  ;;  %6903 = vpow2.f32 %v6352_v33  ;;  %v6354_v35 = vmul.f32 -1.442695, %v2980_v6  ;;  %v12622_v28 = vpop.f32.mrf.mxu0  ;;  %vm5600_vm4 = vcmp.eq.f32.partialorder %v5599_v44, 8.507059e+37  ;;  %4711 = vst [vmem:[%s11934_s12 + $0x48] sm:$0xff] %v4658_v15 }
 0x54a   : > { %v12617_v58 = vpop.eup %6897  ;;  %6905 = vrcp.f32 %v12615_v27  ;;  %v5614_v63 = vand.u32 2147483647, %v12579_v12  ;;  %v5616_v34 = vand.u32 2147483648, %v12579_v12  ;;  %v2757_v31 = vadd.f32 %v2756_v56, %v2644_v43 }
 0x54b   : > { %v6900_v25 = vpop.eup %6899  ;;  %v5598_v53 = vsel %vm5597_vm3, %v12581_v62, %v5594_v57  ;;  %v5606_v24 = vmul.f32 %v12617_v58, %v12579_v12  ;;  %6907 = vpow2.f32 %v6353_v0  ;;  %vm5610_vm5 = vweird.f32 %v12579_v12  ;;  %v12639_v48 = vpop.f32.mrf.mxu1 }
 0x54c   : > { %v6902_v9 = vpop.eup %6901  ;;  %v5603_v21 = vsel %vm5600_vm4, %v5602_v26, %v5598_v53  ;;  %v12633_v14 = vadd.f32 1.0, %v6900_v25  ;;  %v5629_v23 = vand.u32 2147483647, %v12615_v27  ;;  %6909 = vpow2.f32 %v6354_v35  ;;  %v4563_v62 = vpop.trf.xlu1 }
 0x54d   : > { %5990 = vst [vmem:[%s11882_s16 + $0x140] sm:$0xff] %v5603_v21  ;;  %v5607_v18 = vsub.f32 1.0, %v5606_v24  ;;  %v12635_v51 = vadd.f32 1.0, %v6902_v9  ;;  %vm5611_vm6 = vweird.f32 %v12617_v58  ;;  %v5631_v55 = vand.u32 2147483648, %v12615_v27  ;;  %v12651_v17 = vpop.f32.mrf.mxu2  ;;  %v12675_v45 = vpop.f32.mrf.mxu3 }
 0x54e   : > { %6911 = vrcp.f32 %v12633_v14  ;;  %vm12645_vm7 = vcmp.eq.f32.partialorder %v5614_v63, 8.507059e+37  ;;  %v5617_v36 = vor.u32 1.1754944e-38, %v5616_v34  ;;  %v2870_v54 = vadd.f32 %v2869_v41, %v11851_v20  ;;  %vm12663_vm9 = vmor %vm5610_vm5, %vm5611_vm6  ;;  %4680 = vst [vmem:[%s12399_s19 + $0x50] sm:$0xff] %v4563_v62 }
 0x54f   : > { %v5608_v11 = vmul.f32 %v12617_v58, %v5607_v18  ;;  %v6904_v32 = vpop.eup %6903  ;;  %6913 = vrcp.f32 %v12635_v51  ;;  %vm5625_vm8 = vweird.f32 %v12615_v27  ;;  %v6355_v42 = vmul.f32 -1.442695, %v2757_v31  ;;  %v4627_v40 = vpop.trf.xlu2 }
 0x550   : > { %v12653_v3 = vpop.eup %6905  ;;  %v12657_v19 = vadd.f32 1.0, %v6904_v32  ;;  %vm12669_vm10 = vcmp.eq.f32.partialorder %v5629_v23, 8.507059e+37  ;;  %v5644_v30 = vand.u32 2147483647, %v12633_v14  ;;  %v5646_v39 = vand.u32 2147483648, %v12633_v14  ;;  %v4659_v12 = vpop.trf.xlu0  ;;  %4681 = vst [vmem:[%s12399_s19 + $0x58] sm:$0xff] %v4627_v40 }
 0x551   : > { %v5609_v2 = vadd.f32 %v12617_v58, %v5608_v11  ;;  %v5621_v49 = vmul.f32 %v12653_v3, %v12615_v27  ;;  %v6908_v52 = vpop.eup %6907  ;;  %v5632_v38 = vor.u32 1.1754944e-38, %v5631_v55  ;;  %v5659_v37 = vand.u32 2147483647, %v12635_v51  ;;  %4713 = vst [vmem:[%s11934_s12 + $0x58] sm:$0xff] %v4659_v12  ;;  %v12689_v8 = vpop.f32.mrf.mxu0 }
 0x552   : > { %6915 = vrcp.f32 %v12657_v19  ;;  %v6910_v56 = vpop.eup %6909  ;;  %vm5640_vm11 = vweird.f32 %v12633_v14  ;;  %v5661_v44 = vand.u32 2147483648, %v12635_v51  ;;  %vm5626_vm12 = vweird.f32 %v12653_v3 }
 0x553   : > { %v5613_v59 = vsel %vm12663_vm9, %v12617_v58, %v5609_v2  ;;  %v5622_v29 = vsub.f32 1.0, %v5621_v49  ;;  %vm5655_vm13 = vweird.f32 %v12635_v51  ;;  %v12696_v5 = vadd.f32 1.0, %v6908_v52  ;;  %v12720_v35 = vpop.f32.mrf.mxu1  ;;  %vm5627_vm1 = vmor %vm5625_vm8, %vm5626_vm12 }
 0x554   : > { %v5618_v1 = vsel %vm12645_vm7, %v5617_v36, %v5613_v59  ;;  %v12691_v50 = vpop.eup %6911  ;;  %v12698_v22 = vadd.f32 1.0, %v6910_v56  ;;  %6917 = vpow2.f32 %v6355_v42  ;;  %vm12705_vm14 = vcmp.eq.f32.partialorder %v5644_v30, 8.507059e+37  ;;  %v4564_v9 = vpop.trf.xlu1 }
 0x555   : > { %5991 = vst [vmem:[%s11882_s16 + $0x148] sm:$0xff] %v5618_v1  ;;  %v12700_v16 = vpop.eup %6913  ;;  %v5623_v6 = vmul.f32 %v12653_v3, %v5622_v29  ;;  %v5636_v46 = vmul.f32 %v12691_v50, %v12633_v14  ;;  %v5647_v43 = vor.u32 1.1754944e-38, %v5646_v39  ;;  %v5674_v41 = vand.u32 2147483647, %v12657_v19  ;;  %v12722_v15 = vpop.f32.mrf.mxu2 }
 0x556   : > { %v5651_v57 = vmul.f32 %v12700_v16, %v12635_v51  ;;  %vm12712_vm15 = vcmp.eq.f32.partialorder %v5659_v37, 8.507059e+37  ;;  %v5676_v10 = vand.u32 2147483648, %v12657_v19  ;;  %6919 = vrcp.f32 %v12696_v5  ;;  %4682 = vst [vmem:[%s12399_s19 + $0x60] sm:$0xff] %v4564_v9 }
 0x557   : > { %v5624_v61 = vadd.f32 %v12653_v3, %v5623_v6  ;;  %v5637_v58 = vsub.f32 1.0, %v5636_v46  ;;  %v5662_v26 = vor.u32 1.1754944e-38, %v5661_v44  ;;  %vm5670_vm0 = vweird.f32 %v12657_v19  ;;  %v4628_v21 = vpop.trf.xlu2 }
 0x558   : > { %v12724_v25 = vpop.eup %6915  ;;  %vm5641_vm2 = vweird.f32 %v12691_v50  ;;  %v5652_v53 = vsub.f32 1.0, %v5651_v57  ;;  %6921 = vrcp.f32 %v12698_v22  ;;  %v2983_v24 = vadd.f32 %v12611_v13, %v2870_v54  ;;  %v4660_v18 = vpop.trf.xlu0  ;;  %4683 = vst [vmem:[%s12399_s19 + $0x68] sm:$0xff] %v4628_v21 }
 0x559   : > { %v5628_v63 = vsel %vm5627_vm1, %v12653_v3, %v5624_v61  ;;  %v5638_v34 = vmul.f32 %v12691_v50, %v5637_v58  ;;  %v5666_v31 = vmul.f32 %v12724_v25, %v12657_v19  ;;  %vm12737_vm3 = vcmp.eq.f32.partialorder %v5674_v41, 8.507059e+37  ;;  %v12752_v3 = vpop.f32.mrf.mxu3  ;;  %vm5642_vm6 = vmor %vm5640_vm11, %vm5641_vm2  ;;  %4715 = vst [vmem:[%s11934_s12 + $0x68] sm:$0xff] %v4660_v18  ;;  %v2652_v30 = vpop.f32.mrf.mxu0 }
 0x55a   : > { %v6918_v23 = vpop.eup %6917  ;;  %v5633_v11 = vsel %vm12669_vm10, %v5632_v38, %v5628_v63  ;;  %v5653_v13 = vmul.f32 %v12700_v16, %v5652_v53  ;;  %vm5656_vm4 = vweird.f32 %v12700_v16  ;;  %v5677_v55 = vor.u32 1.1754944e-38, %v5676_v10 }
 0x55b   : > { %5992 = vst [vmem:[%s11882_s16 + $0x150] sm:$0xff] %v5633_v11  ;;  %v5639_v32 = vadd.f32 %v12691_v50, %v5638_v34  ;;  %v5667_v7 = vsub.f32 1.0, %v5666_v31  ;;  %vm5685_vm5 = vweird.f32 %v12696_v5  ;;  %v5689_v36 = vand.u32 2147483647, %v12696_v5  ;;  %vm5657_vm8 = vmor %vm5655_vm13, %vm5656_vm4 }
 0x55c   : > { %v5691_v54 = vand.u32 2147483648, %v12696_v5  ;;  %v12754_v2 = vpop.eup %6919  ;;  %v5654_v42 = vadd.f32 %v12700_v16, %v5653_v13  ;;  %vm5671_vm7 = vweird.f32 %v12724_v25  ;;  %v5704_v62 = vand.u32 2147483647, %v12698_v22 }
 0x55d   : > { %v12763_v40 = vadd.f32 1.0, %v6918_v23  ;;  %v5643_v4 = vsel %vm5642_vm6, %v12691_v50, %v5639_v32  ;;  %v5668_v14 = vmul.f32 %v12724_v25, %v5667_v7  ;;  %v5681_v49 = vmul.f32 %v12754_v2, %v12696_v5  ;;  %v2878_v29 = vpop.f32.mrf.mxu2  ;;  %vm5672_vm10 = vmor %vm5670_vm0, %vm5671_vm7  ;;  %v4565_v50 = vpop.trf.xlu1 }
 0x55e   : > { %vm5700_vm9 = vweird.f32 %v12698_v22  ;;  %v5706_v47 = vand.u32 2147483648, %v12698_v22  ;;  %v6922_v39 = vpop.eup %6921  ;;  %v5648_v12 = vsel %vm12705_vm14, %v5647_v43, %v5643_v4  ;;  %v5658_v52 = vsel %vm5657_vm8, %v12700_v16, %v5654_v42  ;;  %v2765_v43 = vpop.f32.mrf.mxu1  ;;  %4684 = vst [vmem:[%s12399_s19 + $0x70] sm:$0xff] %v4565_v50 }
 0x55f   : > { %v6356_v59 = vmul.f32 -1.442695, %v2983_v24  ;;  %v2647_v51 = vadd.f32 %v12622_v28, %v11843_v60  ;;  %5993 = vst [vmem:[%s11882_s16 + $0x158] sm:$0xff] %v5648_v12  ;;  %v5663_v38 = vsel %vm12712_vm15, %v5662_v26, %v5658_v52  ;;  %v5669_v37 = vadd.f32 %v12724_v25, %v5668_v14  ;;  %v4629_v16 = vpop.trf.xlu2 }
 0x560   : > { %v5682_v56 = vsub.f32 1.0, %v5681_v49  ;;  %v5696_v1 = vmul.f32 %v6922_v39, %v12698_v22  ;;  %5994 = vst [vmem:[%s11882_s16 + $0x160] sm:$0xff] %v5663_v38  ;;  %vm5686_vm11 = vweird.f32 %v12754_v2  ;;  %vm12792_vm12 = vcmp.eq.f32.partialorder %v5689_v36, 8.507059e+37  ;;  %v4661_v41 = vpop.trf.xlu0 }
 0x561   : > { %v5692_v44 = vor.u32 1.1754944e-38, %v5691_v54  ;;  %6923 = vrcp.f32 %v12763_v40  ;;  %v5673_v6 = vsel %vm5672_vm10, %v12724_v25, %v5669_v37  ;;  %vm12799_vm13 = vcmp.eq.f32.partialorder %v5704_v62, 8.507059e+37  ;;  %4685 = vst [vmem:[%s12399_s19 + $0x78] sm:$0xff] %v4629_v16  ;;  %vm5687_vm15 = vmor %vm5685_vm5, %vm5686_vm11  ;;  %v2991_v5 = vpop.f32.mrf.mxu3  ;;  %v2655_v11 = vpop.f32.mrf.mxu0 }
 0x562   : > { %v5683_v46 = vmul.f32 %v12754_v2, %v5682_v56  ;;  %v5697_v33 = vsub.f32 1.0, %v5696_v1  ;;  %v5678_v57 = vsel %vm12737_vm3, %v5677_v55, %v5673_v6  ;;  %v5707_v0 = vor.u32 1.1754944e-38, %v5706_v47  ;;  %4717 = vst [vmem:[%s11934_s12 + $0x78] sm:$0xff] %v4661_v41 }
 0x563   : > { %6925 = vpow2.f32 %v6356_v59  ;;  %v2760_v10 = vadd.f32 %v12639_v48, %v2647_v51  ;;  %5995 = vst [vmem:[%s11882_s16 + $0x168] sm:$0xff] %v5678_v57  ;;  %vm5701_vm14 = vweird.f32 %v6922_v39  ;;  %v2873_v26 = vadd.f32 %v12651_v17, %v11851_v20 }
 0x564   : > { %v5684_v61 = vadd.f32 %v12754_v2, %v5683_v46  ;;  %v5698_v58 = vmul.f32 %v6922_v39, %v5697_v33  ;;  %v2650_v53 = vadd.f32 %v12689_v8, %v11843_v60  ;;  %v2876_v48 = vadd.f32 %v12722_v15, %v11851_v20  ;;  %vm5702_vm0 = vmor %vm5700_vm9, %vm5701_vm14 }
 0x565   : > { %v6357_v25 = vmul.f32 -1.442695, %v2760_v10  ;;  %v2653_v24 = vadd.f32 %v2652_v30, %v11843_v60  ;;  %v2986_v17 = vadd.f32 %v12675_v45, %v2873_v26  ;;  %v2879_v63 = vadd.f32 %v2878_v29, %v11851_v20  ;;  %v4566_v36 = vpop.trf.xlu1  ;;  %v2881_v42 = vpop.f32.mrf.mxu2 }
 0x566   : > { %v5688_v9 = vsel %vm5687_vm15, %v12754_v2, %v5684_v61  ;;  %v5699_v21 = vadd.f32 %v6922_v39, %v5698_v58  ;;  %v2763_v8 = vadd.f32 %v12720_v35, %v2650_v53  ;;  %v2989_v15 = vadd.f32 %v12752_v3, %v2876_v48  ;;  %4686 = vst [vmem:[%s12399_s19 + $0x80] sm:$0xff] %v4566_v36  ;;  %v2768_v30 = vpop.f32.mrf.mxu1 }
 0x567   : > { %v6924_v34 = vpop.eup %6923  ;;  %v5693_v31 = vsel %vm12792_vm12, %v5692_v44, %v5688_v9  ;;  %6927 = vpow2.f32 %v6357_v25  ;;  %v5719_v18 = vand.u32 2147483647, %v12763_v40  ;;  %v6358_v23 = vmul.f32 -1.442695, %v2986_v17  ;;  %v4630_v35 = vpop.trf.xlu2 }
 0x568   : > { %5996 = vst [vmem:[%s11882_s16 + $0x170] sm:$0xff] %v5693_v31  ;;  %v5703_v27 = vsel %vm5702_vm0, %v6922_v39, %v5699_v21  ;;  %v5711_v45 = vmul.f32 %v6924_v34, %v12763_v40  ;;  %v6359_v22 = vmul.f32 -1.442695, %v2763_v8  ;;  %v6360_v32 = vmul.f32 -1.442695, %v2989_v15  ;;  %v4662_v62 = vpop.trf.xlu0 }
 0x569   : > { %v6926_v13 = vpop.eup %6925  ;;  %v5708_v55 = vsel %vm12799_vm13, %v5707_v0, %v5703_v27  ;;  %v2766_v7 = vadd.f32 %v2765_v43, %v2653_v24  ;;  %6929 = vpow2.f32 %v6358_v23  ;;  %v2992_v2 = vadd.f32 %v2991_v5, %v2879_v63  ;;  %4687 = vst [vmem:[%s12399_s19 + $0x88] sm:$0xff] %v4630_v35  ;;  %v2994_v28 = vpop.f32.mrf.mxu3 }
 0x56a   : > { %5997 = vst [vmem:[%s11882_s16 + $0x178] sm:$0xff] %v5708_v55  ;;  %v5712_v54 = vsub.f32 1.0, %v5711_v45  ;;  %v12838_v3 = vadd.f32 1.0, %v6926_v13  ;;  %v5721_v4 = vand.u32 2147483648, %v12763_v40  ;;  %6931 = vpow2.f32 %v6359_v22  ;;  %v2658_v57 = vpop.f32.mrf.mxu0 }
 0x56b   : > { %v6361_v14 = vmul.f32 -1.442695, %v2766_v7  ;;  %v2656_v49 = vadd.f32 %v2655_v11, %v11843_v60  ;;  %vm5716_vm1 = vweird.f32 %v6924_v34  ;;  %vm5715_vm2 = vweird.f32 %v12763_v40  ;;  %4719 = vst [vmem:[%s11934_s12 + $0x88] sm:$0xff] %v4662_v62 }
 0x56c   : > { %v5713_v47 = vmul.f32 %v6924_v34, %v5712_v54  ;;  %6933 = vrcp.f32 %v12838_v3  ;;  %v2882_v52 = vadd.f32 %v2881_v42, %v11851_v20  ;;  %v6362_v38 = vmul.f32 -1.442695, %v2992_v2  ;;  %vm5717_vm3 = vmor %vm5715_vm2, %vm5716_vm1 }
 0x56d   : > { %v6928_v39 = vpop.eup %6927  ;;  %6935 = vpow2.f32 %v6360_v32  ;;  %v2769_v12 = vadd.f32 %v2768_v30, %v2656_v49  ;;  %vm5720_vm4 = vcmp.eq.f32.partialorder %v5719_v18, 8.507059e+37  ;;  %v5722_v37 = vor.u32 1.1754944e-38, %v5721_v4  ;;  %v4567_v33 = vpop.trf.xlu1 }
 0x56e   : > { %v5714_v59 = vadd.f32 %v6924_v34, %v5713_v47  ;;  %v12848_v51 = vadd.f32 1.0, %v6928_v39  ;;  %6937 = vpow2.f32 %v6361_v14  ;;  %v5734_v29 = vand.u32 2147483647, %v12838_v3  ;;  %4688 = vst [vmem:[%s12399_s19 + $0x90] sm:$0xff] %v4567_v33  ;;  %v12886_v8 = vpop.f32.mrf.mxu2  ;;  %v12924_v30 = vpop.f32.mrf.mxu1 }
 0x56f   : > { %v6930_v56 = vpop.eup %6929  ;;  %v5736_v40 = vand.u32 2147483648, %v12838_v3  ;;  %v6363_v6 = vmul.f32 -1.442695, %v2769_v12  ;;  %v2995_v46 = vadd.f32 %v2994_v28, %v2882_v52  ;;  %v4631_v19 = vpop.trf.xlu2  ;;  %vm5730_vm5 = vweird.f32 %v12838_v3 }
 0x570   : > { %v5718_v1 = vsel %vm5717_vm3, %v6924_v34, %v5714_v59  ;;  %6939 = vrcp.f32 %v12848_v51  ;;  %v6932_v44 = vpop.eup %6931  ;;  %v12853_v16 = vadd.f32 1.0, %v6930_v56  ;;  %v4663_v0 = vpop.trf.xlu0  ;;  %v5749_v58 = vand.u32 2147483647, %v12848_v51  ;;  %4689 = vst [vmem:[%s12399_s19 + $0x98] sm:$0xff] %v4631_v19 }
 0x571   : > { %v5723_v50 = vsel %vm5720_vm4, %v5722_v37, %v5718_v1  ;;  %v12858_v41 = vadd.f32 1.0, %v6932_v44  ;;  %6941 = vpow2.f32 %v6362_v38  ;;  %v5751_v26 = vand.u32 2147483648, %v12848_v51  ;;  %4721 = vst [vmem:[%s11934_s12 + $0x98] sm:$0xff] %v4663_v0  ;;  %v12933_v38 = vpop.f32.mrf.mxu3 }
 0x572   : > { %v12855_v43 = vpop.eup %6933  ;;  %5998 = vst [vmem:[%s11882_s16 + $0x180] sm:$0xff] %v5723_v50  ;;  %6943 = vrcp.f32 %v12853_v16  ;;  %vm12867_vm6 = vcmp.eq.f32.partialorder %v5734_v29, 8.507059e+37  ;;  %v5737_v48 = vor.u32 1.1754944e-38, %v5736_v40  ;;  %vm5745_vm7 = vweird.f32 %v12848_v51  ;;  %v2661_v0 = vpop.f32.mrf.mxu0 }
 0x573   : > { %v6936_v10 = vpop.eup %6935  ;;  %v5726_v61 = vmul.f32 %v12855_v43, %v12838_v3  ;;  %6945 = vrcp.f32 %v12858_v41  ;;  %v6364_v9 = vmul.f32 -1.442695, %v2995_v46  ;;  %v12875_v21 = vadd.f32 %v2658_v57, %v11843_v60 }
 0x574   : > { %v6938_v25 = vpop.eup %6937  ;;  %6947 = vpow2.f32 %v6363_v6  ;;  %v5764_v63 = vand.u32 2147483647, %v12853_v16  ;;  %v5766_v5 = vand.u32 2147483648, %v12853_v16  ;;  %v12882_v34 = vadd.f32 1.0, %v6936_v10 }
 0x575   : > { %v5727_v24 = vsub.f32 1.0, %v5726_v61  ;;  %v12884_v31 = vadd.f32 1.0, %v6938_v25  ;;  %vm5731_vm8 = vweird.f32 %v12855_v43  ;;  %vm12892_vm9 = vcmp.eq.f32.partialorder %v5749_v58, 8.507059e+37  ;;  %v4568_v7 = vpop.trf.xlu1 }
 0x576   : > { %v12878_v17 = vpop.eup %6939  ;;  %v5752_v18 = vor.u32 1.1754944e-38, %v5751_v26  ;;  %vm5760_vm10 = vweird.f32 %v12853_v16  ;;  %v5779_v11 = vand.u32 2147483647, %v12858_v41  ;;  %v5781_v13 = vand.u32 2147483648, %v12858_v41  ;;  %vm5732_vm12 = vmor %vm5730_vm5, %vm5731_vm8  ;;  %4690 = vst [vmem:[%s12399_s19 + $0xa0] sm:$0xff] %v4568_v7  ;;  %v12968_v10 = vpop.f32.mrf.mxu2 }
 0x577   : > { %v5728_v15 = vmul.f32 %v12855_v43, %v5727_v24  ;;  %v5741_v27 = vmul.f32 %v12878_v17, %v12848_v51  ;;  %v6942_v23 = vpop.eup %6941  ;;  %6949 = vrcp.f32 %v12882_v34  ;;  %vm5775_vm11 = vweird.f32 %v12858_v41  ;;  %v4632_v36 = vpop.trf.xlu2 }
 0x578   : > { %v12900_v55 = vpop.eup %6943  ;;  %6951 = vrcp.f32 %v12884_v31  ;;  %vm5746_vm13 = vweird.f32 %v12878_v17  ;;  %vm12914_vm14 = vcmp.eq.f32.partialorder %v5764_v63, 8.507059e+37  ;;  %v5767_v42 = vor.u32 1.1754944e-38, %v5766_v5  ;;  %v4664_v62 = vpop.trf.xlu0  ;;  %4691 = vst [vmem:[%s12399_s19 + $0xa8] sm:$0xff] %v4632_v36 }
 0x579   : > { %v5729_v22 = vadd.f32 %v12855_v43, %v5728_v15  ;;  %v5742_v32 = vsub.f32 1.0, %v5741_v27  ;;  %v12905_v35 = vpop.eup %6945  ;;  %v5756_v54 = vmul.f32 %v12900_v55, %v12853_v16  ;;  %v5794_v47 = vand.u32 2147483647, %v12882_v34  ;;  %4723 = vst [vmem:[%s11934_s12 + $0xa8] sm:$0xff] %v4664_v62  ;;  %vm5747_vm1 = vmor %vm5745_vm7, %vm5746_vm13  ;;  %v3000_v36 = vpop.f32.mrf.mxu3 }
 0x57a   : > { %v6948_v4 = vpop.eup %6947  ;;  %v5771_v49 = vmul.f32 %v12905_v35, %v12858_v41  ;;  %vm12929_vm15 = vcmp.eq.f32.partialorder %v5779_v11, 8.507059e+37  ;;  %v5782_v59 = vor.u32 1.1754944e-38, %v5781_v13  ;;  %vm5790_vm0 = vweird.f32 %v12882_v34  ;;  %v2774_v13 = vpop.f32.mrf.mxu1 }
 0x57b   : > { %v5733_v14 = vsel %vm5732_vm12, %v12855_v43, %v5729_v22  ;;  %v5743_v3 = vmul.f32 %v12878_v17, %v5742_v32  ;;  %v5757_v12 = vsub.f32 1.0, %v5756_v54  ;;  %v12939_v1 = vadd.f32 1.0, %v6942_v23 }
 0x57c   : > { %v5738_v39 = vsel %vm12867_vm6, %v5737_v48, %v5733_v14  ;;  %v5772_v56 = vsub.f32 1.0, %v5771_v49  ;;  %vm5761_vm2 = vweird.f32 %v12900_v55  ;;  %v5796_v28 = vand.u32 2147483648, %v12882_v34 }
 0x57d   : > { %5999 = vst [vmem:[%s11882_s16 + $0x188] sm:$0xff] %v5738_v39  ;;  %v5744_v37 = vadd.f32 %v12878_v17, %v5743_v3  ;;  %v12941_v29 = vpop.eup %6949  ;;  %v5758_v40 = vmul.f32 %v12900_v55, %v5757_v12  ;;  %6953 = vpow2.f32 %v6364_v9  ;;  %vm5776_vm3 = vweird.f32 %v12905_v35  ;;  %vm5762_vm5 = vmor %vm5760_vm10, %vm5761_vm2  ;;  %v4569_v25 = vpop.trf.xlu1 }
 0x57e   : > { %v12950_v44 = vpop.eup %6951  ;;  %v5773_v6 = vmul.f32 %v12905_v35, %v5772_v56  ;;  %v5786_v51 = vmul.f32 %v12941_v29, %v12882_v34  ;;  %vm12957_vm4 = vcmp.eq.f32.partialorder %v5794_v47, 8.507059e+37  ;;  %v12966_v57 = vadd.f32 1.0, %v6948_v4  ;;  %vm5777_vm6 = vmor %vm5775_vm11, %vm5776_vm3  ;;  %4692 = vst [vmem:[%s12399_s19 + $0xb0] sm:$0xff] %v4569_v25 }
 0x57f   : > { %v5748_v50 = vsel %vm5747_vm1, %v12878_v17, %v5744_v37  ;;  %v5759_v19 = vadd.f32 %v12900_v55, %v5758_v40  ;;  %v5801_v43 = vmul.f32 %v12950_v44, %v12884_v31  ;;  %v5809_v26 = vand.u32 2147483647, %v12884_v31  ;;  %v4633_v53 = vpop.trf.xlu2  ;;  %v2664_v40 = vpop.f32.mrf.mxu0 }
 0x580   : > { %v5753_v33 = vsel %vm12892_vm9, %v5752_v18, %v5748_v50  ;;  %v5774_v61 = vadd.f32 %v12905_v35, %v5773_v6  ;;  %v5787_v58 = vsub.f32 1.0, %v5786_v51  ;;  %6955 = vrcp.f32 %v12939_v1  ;;  %v4665_v9 = vpop.trf.xlu0  ;;  %4693 = vst [vmem:[%s12399_s19 + $0xb8] sm:$0xff] %v4633_v53 }
 0x581   : > { %6000 = vst [vmem:[%s11882_s16 + $0x190] sm:$0xff] %v5753_v33  ;;  %v5763_v48 = vsel %vm5762_vm5, %v12900_v55, %v5759_v19  ;;  %v5802_v16 = vsub.f32 1.0, %v5801_v43  ;;  %vm5805_vm7 = vweird.f32 %v12884_v31  ;;  %v5811_v24 = vand.u32 2147483648, %v12884_v31 }
 0x582   : > { %v5768_v17 = vsel %vm12914_vm14, %v5767_v42, %v5763_v48  ;;  %v5778_v63 = vsel %vm5777_vm6, %v12905_v35, %v5774_v61  ;;  %v5788_v5 = vmul.f32 %v12941_v29, %v5787_v58  ;;  %vm5791_vm8 = vweird.f32 %v12941_v29  ;;  %4725 = vst [vmem:[%s11934_s12 + $0xb8] sm:$0xff] %v4665_v9 }
 0x583   : > { %v6954_v41 = vpop.eup %6953  ;;  %6001 = vst [vmem:[%s11882_s16 + $0x198] sm:$0xff] %v5768_v17  ;;  %v5783_v15 = vsel %vm12929_vm15, %v5782_v59, %v5778_v63  ;;  %v5803_v27 = vmul.f32 %v12950_v44, %v5802_v16  ;;  %vm5806_vm9 = vweird.f32 %v12950_v44  ;;  %6957 = vrcp.f32 %v12966_v57  ;;  %vm5792_vm11 = vmor %vm5790_vm0, %vm5791_vm8  ;;  %v3003_v16 = vpop.f32.mrf.mxu3 }
 0x584   : > { %6002 = vst [vmem:[%s11882_s16 + $0x1a0] sm:$0xff] %v5783_v15  ;;  %v5789_v45 = vadd.f32 %v12941_v29, %v5788_v5  ;;  %v5797_v18 = vor.u32 1.1754944e-38, %v5796_v28  ;;  %vm13000_vm10 = vcmp.eq.f32.partialorder %v5809_v26, 8.507059e+37  ;;  %v5824_v11 = vand.u32 2147483647, %v12939_v1  ;;  %vm5807_vm12 = vmor %vm5805_vm7, %vm5806_vm9  ;;  %v2890_v28 = vpop.f32.mrf.mxu2  ;;  %v2777_v26 = vpop.f32.mrf.mxu1 }
 0x585   : > { %v5804_v55 = vadd.f32 %v12950_v44, %v5803_v27  ;;  %v5812_v22 = vor.u32 1.1754944e-38, %v5811_v24  ;;  %v5826_v32 = vand.u32 2147483648, %v12939_v1  ;;  %v13009_v7 = vadd.f32 1.0, %v6954_v41 }
 0x586   : > { %v6956_v35 = vpop.eup %6955  ;;  %v5793_v54 = vsel %vm5792_vm11, %v12941_v29, %v5789_v45  ;;  %v2772_v34 = vadd.f32 %v12924_v30, %v12875_v21  ;;  %v2885_v2 = vadd.f32 %v12886_v8, %v11851_v20  ;;  %v2662_v42 = vadd.f32 %v2661_v0, %v11843_v60  ;;  %v4570_v8 = vpop.trf.xlu1 }
 0x587   : > { %v5798_v62 = vsel %vm12957_vm4, %v5797_v18, %v5793_v54  ;;  %v5808_v4 = vsel %vm5807_vm12, %v12950_v44, %v5804_v55  ;;  %v5816_v14 = vmul.f32 %v6956_v35, %v12939_v1  ;;  %v5839_v3 = vand.u32 2147483647, %v12966_v57  ;;  %v4634_v49 = vpop.trf.xlu2  ;;  %4694 = vst [vmem:[%s12399_s19 + $0xc0] sm:$0xff] %v4570_v8 }
 0x588   : > { %6003 = vst [vmem:[%s11882_s16 + $0x1a8] sm:$0xff] %v5798_v62  ;;  %v5813_v31 = vsel %vm13000_vm10, %v5812_v22, %v5808_v4  ;;  %vm5820_vm13 = vweird.f32 %v12939_v1  ;;  %vm13031_vm14 = vcmp.eq.f32.partialorder %v5824_v11, 8.507059e+37  ;;  %6959 = vrcp.f32 %v13009_v7  ;;  %v4666_v52 = vpop.trf.xlu0 }
 0x589   : > { %v6958_v47 = vpop.eup %6957  ;;  %6004 = vst [vmem:[%s11882_s16 + $0x1b0] sm:$0xff] %v5813_v31  ;;  %v5817_v30 = vsub.f32 1.0, %v5816_v14  ;;  %v5827_v39 = vor.u32 1.1754944e-38, %v5826_v32  ;;  %vm5835_vm15 = vweird.f32 %v12966_v57  ;;  %v2998_v12 = vadd.f32 %v12933_v38, %v2885_v2 }
 0x58a   : > { %v5831_v59 = vmul.f32 %v6958_v47, %v12966_v57  ;;  %v5841_v37 = vand.u32 2147483648, %v12966_v57  ;;  %v6365_v56 = vmul.f32 -1.442695, %v2772_v34  ;;  %v2775_v29 = vadd.f32 %v2774_v13, %v2662_v42  ;;  %4695 = vst [vmem:[%s12399_s19 + $0xc8] sm:$0xff] %v4634_v49 }
 0x58b   : > { %v5818_v44 = vmul.f32 %v6956_v35, %v5817_v30  ;;  %vm5821_vm0 = vweird.f32 %v6956_v35  ;;  %vm13042_vm1 = vcmp.eq.f32.partialorder %v5839_v3, 8.507059e+37  ;;  %v6366_v6 = vmul.f32 -1.442695, %v2998_v12  ;;  %4727 = vst [vmem:[%s11934_s12 + $0xc8] sm:$0xff] %v4666_v52 }
 0x58c   : > { %v5832_v38 = vsub.f32 1.0, %v5831_v59  ;;  %6961 = vpow2.f32 %v6365_v56  ;;  %v6367_v51 = vmul.f32 -1.442695, %v2775_v29  ;;  %v2888_v46 = vadd.f32 %v12968_v10, %v11851_v20  ;;  %vm5822_vm2 = vmor %vm5820_vm13, %vm5821_vm0 }
 0x58d   : > { %v5819_v33 = vadd.f32 %v6956_v35, %v5818_v44  ;;  %6963 = vpow2.f32 %v6366_v6  ;;  %v2665_v19 = vadd.f32 %v2664_v40, %v11843_v60  ;;  %v2891_v43 = vadd.f32 %v2890_v28, %v11851_v20 }
 0x58e   : > { %v6960_v0 = vpop.eup %6959  ;;  %v5833_v61 = vmul.f32 %v6958_v47, %v5832_v38  ;;  %vm5836_vm3 = vweird.f32 %v6958_v47  ;;  %6965 = vpow2.f32 %v6367_v51  ;;  %v3001_v58 = vadd.f32 %v3000_v36, %v2888_v46  ;;  %v4571_v9 = vpop.trf.xlu1 }
 0x58f   : > { %v5823_v25 = vsel %vm5822_vm2, %v6956_v35, %v5819_v33  ;;  %v5846_v10 = vmul.f32 %v6960_v0, %v13009_v7  ;;  %v5854_v53 = vand.u32 2147483647, %v13009_v7  ;;  %v2778_v48 = vadd.f32 %v2777_v26, %v2665_v19  ;;  %v4635_v17 = vpop.trf.xlu2  ;;  %vm5837_vm4 = vmor %vm5835_vm15, %vm5836_vm3  ;;  %4696 = vst [vmem:[%s12399_s19 + $0xd0] sm:$0xff] %v4571_v9 }
 0x590   : > { %v5828_v60 = vsel %vm13031_vm14, %v5827_v39, %v5823_v25  ;;  %v5834_v20 = vadd.f32 %v6958_v47, %v5833_v61  ;;  %v6368_v24 = vmul.f32 -1.442695, %v3001_v58  ;;  %v3004_v1 = vadd.f32 %v3003_v16, %v2891_v43  ;;  %v4667_v27 = vpop.trf.xlu0  ;;  %4697 = vst [vmem:[%s12399_s19 + $0xd8] sm:$0xff] %v4635_v17 }
 0x591   : > { %6005 = vst [vmem:[%s11882_s16 + $0x1b8] sm:$0xff] %v5828_v60  ;;  %v5842_v63 = vor.u32 1.1754944e-38, %v5841_v37  ;;  %v5847_v5 = vsub.f32 1.0, %v5846_v10  ;;  %v5856_v41 = vand.u32 2147483648, %v13009_v7  ;;  %v6369_v15 = vmul.f32 -1.442695, %v2778_v48 }
 0x592   : > { %v6962_v45 = vpop.eup %6961  ;;  %v5838_v18 = vsel %vm5837_vm4, %v6958_v47, %v5834_v20  ;;  %vm5851_vm5 = vweird.f32 %v6960_v0  ;;  %6967 = vpow2.f32 %v6368_v24  ;;  %v6370_v23 = vmul.f32 -1.442695, %v3004_v1  ;;  %4729 = vst [vmem:[%s11934_s12 + $0xd8] sm:$0xff] %v4667_v27 }
 0x593   : > { %v6964_v11 = vpop.eup %6963  ;;  %v5843_v57 = vsel %vm13042_vm1, %v5842_v63, %v5838_v18  ;;  %v5848_v13 = vmul.f32 %v6960_v0, %v5847_v5  ;;  %v13066_v55 = vadd.f32 1.0, %v6962_v45  ;;  %6969 = vpow2.f32 %v6369_v15 }
 0x594   : > { %v6966_v22 = vpop.eup %6965  ;;  %6006 = vst [vmem:[%s11882_s16 + $0x1c0] sm:$0xff] %v5843_v57  ;;  %v13070_v32 = vadd.f32 1.0, %v6964_v11  ;;  %6971 = vpow2.f32 %v6370_v23  ;;  %vm5850_vm6 = vweird.f32 %v13009_v7  ;;  %v5857_v35 = vor.u32 1.1754944e-38, %v5856_v41 }
 0x595   : > { %v5849_v36 = vadd.f32 %v6960_v0, %v5848_v13  ;;  %6973 = vrcp.f32 %v13066_v55  ;;  %vm5852_vm7 = vmor %vm5850_vm6, %vm5851_vm5  ;;  %vm5855_vm8 = vcmp.eq.f32.partialorder %v5854_v53, 8.507059e+37  ;;  %v13077_v34 = vadd.f32 1.0, %v6966_v22 }
 0x596   : > { %6975 = vrcp.f32 %v13070_v32  ;;  %v4572_v62 = vpop.trf.xlu1  ;;  %v5869_v49 = vand.u32 2147483647, %v13066_v55  ;;  %vm5865_vm9 = vweird.f32 %v13066_v55  ;;  %v5871_v39 = vand.u32 2147483648, %v13066_v55 }
 0x597   : > { %v5853_v54 = vsel %vm5852_vm7, %v6960_v0, %v5849_v36  ;;  %v4636_v4 = vpop.trf.xlu2  ;;  %6977 = vrcp.f32 %v13077_v34  ;;  %4698 = vst [vmem:[%s12399_s19 + $0xe0] sm:$0xff] %v4572_v62  ;;  %v5884_v37 = vand.u32 2147483647, %v13070_v32  ;;  %v5886_v56 = vand.u32 2147483648, %v13070_v32 }
 0x598   : > { %v6968_v2 = vpop.eup %6967  ;;  %v5858_v42 = vsel %vm5855_vm8, %v5857_v35, %v5853_v54  ;;  %v4668_v14 = vpop.trf.xlu0  ;;  %4699 = vst [vmem:[%s12399_s19 + $0xe8] sm:$0xff] %v4636_v4  ;;  %vm13099_vm10 = vcmp.eq.f32.partialorder %v5869_v49, 8.507059e+37  ;;  %vm5880_vm11 = vweird.f32 %v13070_v32  ;;  %v5899_v44 = vand.u32 2147483647, %v13077_v34 }
 0x599   : > { %v6970_v7 = vpop.eup %6969  ;;  %6007 = vst [vmem:[%s11882_s16 + $0x1c8] sm:$0xff] %v5858_v42  ;;  %v13081_v31 = vadd.f32 1.0, %v6968_v2  ;;  %v5901_v38 = vand.u32 2147483648, %v13077_v34  ;;  %v5872_v33 = vor.u32 1.1754944e-38, %v5871_v39  ;;  %vm13109_vm14 = vcmp.eq.f32.partialorder %v5884_v37, 8.507059e+37 }
 0x59a   : > { %v6972_v3 = vpop.eup %6971  ;;  %v13083_v21 = vadd.f32 1.0, %v6970_v7  ;;  %4731 = vst [vmem:[%s11934_s12 + $0xe8] sm:$0xff] %v4668_v14  ;;  %v5887_v26 = vor.u32 1.1754944e-38, %v5886_v56  ;;  %vm5895_vm0 = vweird.f32 %v13077_v34  ;;  %vm13118_vm1 = vcmp.eq.f32.partialorder %v5899_v44, 8.507059e+37 }
 0x59b   : > { %v6974_v8 = vpop.eup %6973  ;;  %6979 = vrcp.f32 %v13081_v31  ;;  %v13094_v52 = vadd.f32 1.0, %v6972_v3  ;;  %v5902_v24 = vor.u32 1.1754944e-38, %v5901_v38  ;;  %v5914_v15 = vand.u32 2147483647, %v13081_v31 }
 0x59c   : > { %v6976_v47 = vpop.eup %6975  ;;  %v5861_v30 = vmul.f32 %v6974_v8, %v13066_v55  ;;  %6981 = vrcp.f32 %v13083_v21  ;;  %vm5866_vm12 = vweird.f32 %v6974_v8  ;;  %v5916_v27 = vand.u32 2147483648, %v13081_v31 }
 0x59d   : > { %v5876_v12 = vmul.f32 %v6976_v47, %v13070_v32  ;;  %v6978_v29 = vpop.eup %6977  ;;  %vm5881_vm13 = vweird.f32 %v6976_v47  ;;  %6983 = vrcp.f32 %v13094_v52  ;;  %vm5867_vm15 = vmor %vm5865_vm9, %vm5866_vm12  ;;  %v5931_v11 = vand.u32 2147483648, %v13083_v21 }
 0x59e   : > { %v5862_v59 = vsub.f32 1.0, %v5861_v30  ;;  %v5891_v6 = vmul.f32 %v6978_v29, %v13077_v34  ;;  %v4573_v51 = vpop.trf.xlu1  ;;  %vm5882_vm2 = vmor %vm5880_vm11, %vm5881_vm13  ;;  %vm5896_vm3 = vweird.f32 %v6978_v29  ;;  %vm5910_vm6 = vweird.f32 %v13081_v31 }
 0x59f   : > { %v5877_v28 = vsub.f32 1.0, %v5876_v12  ;;  %v4637_v46 = vpop.trf.xlu2  ;;  %4700 = vst [vmem:[%s12399_s19 + $0xf0] sm:$0xff] %v4573_v51  ;;  %vm5897_vm4 = vmor %vm5895_vm0, %vm5896_vm3  ;;  %v5929_v13 = vand.u32 2147483647, %v13083_v21  ;;  %vm5915_vm9 = vcmp.eq.f32.partialorder %v5914_v15, 8.507059e+37  ;;  %v5917_v35 = vor.u32 1.1754944e-38, %v5916_v27 }
 0x5a0   : > { %v5863_v50 = vmul.f32 %v6974_v8, %v5862_v59  ;;  %v4669_v43 = vpop.trf.xlu0  ;;  %v5892_v25 = vsub.f32 1.0, %v5891_v6  ;;  %4701 = vst [vmem:[%s12399_s19 + $0xf8] sm:$0xff] %v4637_v46  ;;  %v5932_v42 = vor.u32 1.1754944e-38, %v5931_v11  ;;  %v5946_v62 = vand.u32 2147483648, %v13094_v52 }
 0x5a1   : > { %v5878_v19 = vmul.f32 %v6976_v47, %v5877_v28  ;;  %v6980_v0 = vpop.eup %6979  ;;  %4733 = vst [vmem:[%s11934_s12 + $0xf8] sm:$0xff] %v4669_v43  ;;  %v5944_v14 = vand.u32 2147483647, %v13094_v52  ;;  %vm5930_vm13 = vcmp.eq.f32.partialorder %v5929_v13, 8.507059e+37 }
 0x5a2   : > { %v5864_v61 = vadd.f32 %v6974_v8, %v5863_v50  ;;  %v5906_v48 = vmul.f32 %v6980_v0, %v13081_v31  ;;  %v6982_v16 = vpop.eup %6981  ;;  %v5893_v20 = vmul.f32 %v6978_v29, %v5892_v25  ;;  %vm5911_vm5 = vweird.f32 %v6980_v0 }
 0x5a3   : > { %v5879_v10 = vadd.f32 %v6976_v47, %v5878_v19  ;;  %v5921_v63 = vmul.f32 %v6982_v16, %v13083_v21  ;;  %v6984_v45 = vpop.eup %6983  ;;  %vm5926_vm7 = vweird.f32 %v6982_v16  ;;  %vm5912_vm8 = vmor %vm5910_vm6, %vm5911_vm5  ;;  %vm5945_vm0 = vcmp.eq.f32.partialorder %v5944_v14, 8.507059e+37 }
 0x5a4   : > { %v5868_v60 = vsel %vm5867_vm15, %v6974_v8, %v5864_v61  ;;  %v5907_v17 = vsub.f32 1.0, %v5906_v48  ;;  %v5894_v41 = vadd.f32 %v6978_v29, %v5893_v20  ;;  %v5936_v55 = vmul.f32 %v6984_v45, %v13094_v52 }
 0x5a5   : > { %v5873_v1 = vsel %vm13099_vm10, %v5872_v33, %v5868_v60  ;;  %v5883_v9 = vsel %vm5882_vm2, %v6976_v47, %v5879_v10  ;;  %v5922_v23 = vsub.f32 1.0, %v5921_v63  ;;  %vm5925_vm10 = vweird.f32 %v13083_v21 }
 0x5a6   : > { %6008 = vst [vmem:[%s11882_s16 + $0x1d0] sm:$0xff] %v5873_v1  ;;  %v5888_v5 = vsel %vm13109_vm14, %v5887_v26, %v5883_v9  ;;  %v5908_v18 = vmul.f32 %v6980_v0, %v5907_v17  ;;  %v5898_v57 = vsel %vm5897_vm4, %v6978_v29, %v5894_v41  ;;  %v5937_v54 = vsub.f32 1.0, %v5936_v55  ;;  %vm5927_vm11 = vmor %vm5925_vm10, %vm5926_vm7 }
 0x5a7   : > { %6009 = vst [vmem:[%s11882_s16 + $0x1d8] sm:$0xff] %v5888_v5  ;;  %v5903_v22 = vsel %vm13118_vm1, %v5902_v24, %v5898_v57  ;;  %v5923_v36 = vmul.f32 %v6982_v16, %v5922_v23  ;;  %vm5941_vm12 = vweird.f32 %v6984_v45  ;;  %vm5940_vm14 = vweird.f32 %v13094_v52 }
 0x5a8   : > { %v5909_v32 = vadd.f32 %v6980_v0, %v5908_v18  ;;  %6010 = vst [vmem:[%s11882_s16 + $0x1e0] sm:$0xff] %v5903_v22  ;;  %v5938_v7 = vmul.f32 %v6984_v45, %v5937_v54  ;;  %vm5942_vm15 = vmor %vm5940_vm14, %vm5941_vm12  ;;  %v5947_v21 = vor.u32 1.1754944e-38, %v5946_v62 }
 0x5a9   : > { %v5924_v2 = vadd.f32 %v6982_v16, %v5923_v36 }
 0x5aa   : > { %v5913_v34 = vsel %vm5912_vm8, %v6980_v0, %v5909_v32  ;;  %v5939_v8 = vadd.f32 %v6984_v45, %v5938_v7 }
 0x5ab   : > { %v5918_v4 = vsel %vm5915_vm9, %v5917_v35, %v5913_v34  ;;  %v5928_v3 = vsel %vm5927_vm11, %v6982_v16, %v5924_v2 }
 0x5ac   : > { %6011 = vst [vmem:[%s11882_s16 + $0x1e8] sm:$0xff] %v5918_v4  ;;  %v5933_v31 = vsel %vm5930_vm13, %v5932_v42, %v5928_v3  ;;  %v5943_v49 = vsel %vm5942_vm15, %v6984_v45, %v5939_v8 }
 0x5ad   : > { %6012 = vst [vmem:[%s11882_s16 + $0x1f0] sm:$0xff] %v5933_v31  ;;  %v5948_v47 = vsel %vm5945_vm0, %v5947_v21, %v5943_v49 }
 0x5ae   : > { %6013 = vst [vmem:[%s11882_s16 + $0x1f8] sm:$0xff] %v5948_v47 }
 0x5af PF: > { %s19_s29 = sadd.s32 1, %s7009_s29   ;;  %s14038_s27 = smov %s7005_s28 }
 0x5b0   : > { %p16_p5 = scmp.ge.s32.totalorder %s19_s29, 4   ;;  %s14039_s28 = smov %s14041_s30 }
 0x5b2   :  { %18 = sbr.rel (!%p16_p5) target bundleno = 2 (0x2), region = 101 }

// kernel: triangle_multiplicative_update.5
= control target key start
LH: loop header
LB: loop body
LE: loop exit
PB: predicated region body
PF: predicated region fallthrough
CT: control target
= control target key end

     0   :  { %11 = vsyncpa [#allocation3], 0  ;;  %s3172_s0 = inlined_call_operand.vmem [shape: f32[2,128,256], index: 0, kind: input, shape index: {}]   ;;  %s3173_s1 = inlined_call_operand.vmem [shape: f32[2,256,256], index: 1, kind: input, shape index: {}]   ;;  %s3174_s2 = inlined_call_operand.vmem [shape: f32[1,128], index: 2, kind: input, shape index: {}]   ;;  %s3175_s3 = inlined_call_operand.vmem [shape: f32[1,128], index: 3, kind: input, shape index: {}]   ;;  %s3176_s4 = inlined_call_operand.vmem [shape: f32[128,256], index: 4, kind: input, shape index: {}]   ;;  %s3177_s5 = inlined_call_operand.vmem [shape: f32[1,256], index: 5, kind: input, shape index: {}]   ;;  %s3178_s6 = inlined_call_operand.hbm [shape: f32[2,256,256], index: 6, kind: output, shape index: {}]  }
   0x1   :  { %13 = vsyncpa [#allocation3 + $0x1], 0  ;;  %s2006_s21 = smov 0   ;;  %s2008_s22 = smov 0  }
   0x2   :  { %s2010_s23 = smov 0   ;;  %s2012_s24 = smov 0  }
   0x3   :  { %s2014_s25 = smov 0   ;;  %s2016_s26 = smov 0  }
   0x4 LB: > { %s1710_s27 = sadd.s32 4294967295, %s1966_s26   ;;  %s1711_s28 = sadd.s32 4294967294, %s1966_s26   ;;  %s1966_s26 = sphi %s2016_s26, %s19_s26   ;;  %s1962_s25 = sphi %s2014_s25, %s3211_s25   ;;  %s1958_s24 = sphi %s2012_s24, %s3210_s24   ;;  %s1954_s23 = sphi %s2010_s23, %s3209_s23   ;;  %s1950_s22 = sphi %s2008_s22, %s3208_s22   ;;  %s1946_s21 = sphi %s2006_s21, %s3207_s21  }
   0x5   : > { %s31_s29 = sadd.s32 1, %s1962_s25  ;;  %s180_s30 = sadd.s32 1, %s1954_s23 }
   0x6   : > { %p33_p0 = scmp.ge.s32.totalorder %s31_s29, 2  ;;  %p190_p1 = scmp.ne.s32.totalorder %s1954_s23, %s1950_s22 }
   0x7   : > { %p191_p2 = scmp.eq.s32.totalorder %s1710_s27, 1  ;;  %p196_p3 = scmp.ne.s32.totalorder %s1950_s22, %s1946_s21 }
   0x8   : > { %s3213_s29 = smov (%p33_p0, %s31_s29), 0  ;;  %p197_p5 = scmp.eq.s32.totalorder %s1711_s28, 1 }
   0x9   : > { %p2046_p4 = por %p191_p2, %p190_p1  ;;  %s175_s8 = ssub.s32 %s1962_s25, %s3213_s29 }
   0xa   : > { %p1714_p6 = scmp.ge.s32.totalorder %s1966_s26, 1  ;;  %p178_p7 = scmp.eq.s32.totalorder %s175_s8, 0 }
   0xb   : > { %p2053_p8 = por %p197_p5, %p196_p3  ;;  %p254_p9 = scmp.lt.s32.totalorder %s1966_s26, 3 }
   0xc   : > { %s2059_s10 = scalar_select %p178_p7, %s1954_s23, %s180_s30  }
   0xd   : > { %p255_p10 = pnand %p1714_p6, %p254_p9 }
   0xe   : > { %p299_p11 = scmp.lt.s32.totalorder (!%p255_p10), %s1958_s24, 1  ;;  %s295_s28 = sand.u32 (!%p255_p10), 1, %s1950_s22  }
   0xf   : > { %258 = sbr.rel (%p255_p10) target bundleno = 885 (0x375), region = 44  ;;  %s1727_s18 = sshll.u32 (!%p255_p10), %s1958_s24, 9 }
  0x10   : > { %s1606_s27 = scalar_lea.hbm (!%p255_p10), %s3178_s6, %s1727_s18  ;;  %s1592_s30 = scalar_lea.sflag (!%p255_p10), [#allocation3], %s295_s28 }
  0x11   : > { %s1908_s16 = scalar_lea.hbm (!%p255_p10), %s3178_s6, 1024 }
  0x14   : > { %s2063_s11 = scalar_select %p299_p11, %s1958_s24, 1  ;;  %v1968_v51 = vmov 128.0  }
  0x15   : > { %1820 = vrcp.f32 %v1968_v51 }
  0x16   : > { %s1725_s12 = sshll.u32 %s2063_s11, 8  ;;  %s1726_s19 = sshll.u32 %s2063_s11, 9 }
  0x17   : > { %s2069_s15 = scalar_lea.vmem %s3172_s0, %s1725_s12  ;;  %s2665_s8 = scalar_lea.vmem %s3173_s1, %s1726_s19 }
  0x18   : > { %v321_v0 = vld [vmem:[%s2069_s15 + $0x8] sm:$0xff]  ;;  %v320_v1 = vld [vmem:[%s2069_s15] sm:$0xff]  ;;  %v323_v2 = vld [vmem:[%s2069_s15 + $0x18] sm:$0xff]  ;;  %s2680_s12 = sshll.u32 %s295_s28, 9  ;;  %s1609_s11 = sshll.u32 %s1606_s27, 4  ;;  %s1610_s11 = int_to_ptr.hbm [resolvable:$true] %s1609_s11 }
  0x19   : > { %384 = vxpose.xlu0.b32.start [1/16] %v321_v0, 128  ;;  %352 = vxpose.xlu1.b32.start [1/16] %v320_v1, 128  ;;  %v322_v3 = vld [vmem:[%s2069_s15 + $0x10] sm:$0xff]  ;;  %v325_v4 = vld [vmem:[%s2069_s15 + $0x28] sm:$0xff]  ;;  %v324_v5 = vld [vmem:[%s2069_s15 + $0x20] sm:$0xff]  ;;  %s2710_s13 = scalar_lea.vmem [#allocation2], %s2680_s12 }
  0x1a   : > { %v327_v6 = vld [vmem:[%s2069_s15 + $0x38] sm:$0xff]  ;;  %v326_v7 = vld [vmem:[%s2069_s15 + $0x30] sm:$0xff]  ;;  %v329_v8 = vld [vmem:[%s2069_s15 + $0x48] sm:$0xff]  ;;  %s1607_s24 = sshll.u32 %s2710_s13, 4  ;;  %s1608_s24 = int_to_ptr.vmem [resolvable:$true] %s1607_s24 }
  0x1b   : > { %v328_v9 = vld [vmem:[%s2069_s15 + $0x40] sm:$0xff]  ;;  %v331_v10 = vld [vmem:[%s2069_s15 + $0x58] sm:$0xff]  ;;  %v330_v11 = vld [vmem:[%s2069_s15 + $0x50] sm:$0xff]  ;;  %v1821_v52 = vpop.eup %1820 }
  0x1c   : > { %v333_v12 = vld [vmem:[%s2069_s15 + $0x68] sm:$0xff]  ;;  %v332_v13 = vld [vmem:[%s2069_s15 + $0x60] sm:$0xff]  ;;  %v335_v14 = vld [vmem:[%s2069_s15 + $0x78] sm:$0xff]  ;;  %v481_v55 = vmul.f32 128.0, %v1821_v52  ;;  %vm485_vm0 = vweird.f32 %v1821_v52 }
  0x1d   : > { %v334_v15 = vld [vmem:[%s2069_s15 + $0x70] sm:$0xff]  ;;  %v337_v16 = vld [vmem:[%s2069_s15 + $0x88] sm:$0xff]  ;;  %v336_v17 = vld [vmem:[%s2069_s15 + $0x80] sm:$0xff] }
  0x1e   : > { %v339_v18 = vld [vmem:[%s2069_s15 + $0x98] sm:$0xff]  ;;  %v338_v19 = vld [vmem:[%s2069_s15 + $0x90] sm:$0xff]  ;;  %v341_v20 = vld [vmem:[%s2069_s15 + $0xa8] sm:$0xff]  ;;  %v482_v56 = vsub.f32 1.0, %v481_v55 }
  0x1f   : > { %v340_v21 = vld [vmem:[%s2069_s15 + $0xa0] sm:$0xff]  ;;  %v343_v22 = vld [vmem:[%s2069_s15 + $0xb8] sm:$0xff]  ;;  %v342_v23 = vld [vmem:[%s2069_s15 + $0xb0] sm:$0xff] }
  0x20   : > { %v345_v24 = vld [vmem:[%s2069_s15 + $0xc8] sm:$0xff]  ;;  %v344_v25 = vld [vmem:[%s2069_s15 + $0xc0] sm:$0xff]  ;;  %v347_v26 = vld [vmem:[%s2069_s15 + $0xd8] sm:$0xff]  ;;  %v483_v58 = vmul.f32 %v1821_v52, %v482_v56 }
  0x21   : > { %385 = vxpose.xlu0.b32.cont [2/16] %v323_v2, 128  ;;  %353 = vxpose.xlu1.b32.cont [2/16] %v322_v3, 128  ;;  %v346_v27 = vld [vmem:[%s2069_s15 + $0xd0] sm:$0xff]  ;;  %v349_v28 = vld [vmem:[%s2069_s15 + $0xe8] sm:$0xff]  ;;  %v348_v29 = vld [vmem:[%s2069_s15 + $0xe0] sm:$0xff] }
  0x22   : > { %v351_v30 = vld [vmem:[%s2069_s15 + $0xf8] sm:$0xff]  ;;  %v350_v31 = vld [vmem:[%s2069_s15 + $0xf0] sm:$0xff]  ;;  %v484_v59 = vadd.f32 %v1821_v52, %v483_v58 }
  0x23   : > { %v1161_v58 = vld [vmem:[%s3176_s4 + $0xd0] sm:$0xff] }
  0x24   : > { %v2151_v60 = vsel %vm485_vm0, %v1821_v52, %v484_v59 }
  0x29   : > { %386 = vxpose.xlu0.b32.cont [3/16] %v325_v4, 128  ;;  %354 = vxpose.xlu1.b32.cont [3/16] %v324_v5, 128 }
  0x31   : > { %387 = vxpose.xlu0.b32.cont [4/16] %v327_v6, 128  ;;  %355 = vxpose.xlu1.b32.cont [4/16] %v326_v7, 128 }
  0x39   : > { %388 = vxpose.xlu0.b32.cont [5/16] %v329_v8, 128  ;;  %356 = vxpose.xlu1.b32.cont [5/16] %v328_v9, 128 }
  0x41   : > { %389 = vxpose.xlu0.b32.cont [6/16] %v331_v10, 128  ;;  %357 = vxpose.xlu1.b32.cont [6/16] %v330_v11, 128 }
  0x49   : > { %390 = vxpose.xlu0.b32.cont [7/16] %v333_v12, 128  ;;  %358 = vxpose.xlu1.b32.cont [7/16] %v332_v13, 128 }
  0x51   : > { %391 = vxpose.xlu0.b32.cont [8/16] %v335_v14, 128  ;;  %359 = vxpose.xlu1.b32.cont [8/16] %v334_v15, 128 }
  0x59   : > { %392 = vxpose.xlu0.b32.cont [9/16] %v337_v16, 128  ;;  %360 = vxpose.xlu1.b32.cont [9/16] %v336_v17, 128 }
  0x61   : > { %393 = vxpose.xlu0.b32.cont [10/16] %v339_v18, 128  ;;  %361 = vxpose.xlu1.b32.cont [10/16] %v338_v19, 128 }
  0x69   : > { %394 = vxpose.xlu0.b32.cont [11/16] %v341_v20, 128  ;;  %362 = vxpose.xlu1.b32.cont [11/16] %v340_v21, 128 }
  0x71   : > { %395 = vxpose.xlu0.b32.cont [12/16] %v343_v22, 128  ;;  %363 = vxpose.xlu1.b32.cont [12/16] %v342_v23, 128 }
  0x79   : > { %396 = vxpose.xlu0.b32.cont [13/16] %v345_v24, 128  ;;  %364 = vxpose.xlu1.b32.cont [13/16] %v344_v25, 128 }
  0x81   : > { %397 = vxpose.xlu0.b32.cont [14/16] %v347_v26, 128  ;;  %365 = vxpose.xlu1.b32.cont [14/16] %v346_v27, 128 }
  0x89   : > { %398 = vxpose.xlu0.b32.cont [15/16] %v349_v28, 128  ;;  %366 = vxpose.xlu1.b32.cont [15/16] %v348_v29, 128 }
  0x91   : > { %399 = vxpose.xlu0.b32.end [16/16] %v351_v30, 128  ;;  %367 = vxpose.xlu1.b32.end [16/16] %v350_v31, 128 }
  0xbd   : > { %v400_v32 = vpop.trf.xlu0  ;;  %v368_v33 = vpop.trf.xlu1 }
  0xbe   : > { %448 = vadd.xlane.f32.xlu2 %v400_v32 }
  0xc5   : > { %v401_v34 = vpop.trf.xlu0  ;;  %v2105_v36 = vpop.trf.xlu1 }
  0xc6   : > { %416 = vadd.xlane.f32.xlu2 %v368_v33 }
  0xcd   : > { %v2103_v35 = vpop.trf.xlu0  ;;  %v2113_v39 = vpop.trf.xlu1 }
  0xce   : > { %450 = vadd.xlane.f32.xlu2 %v401_v34 }
  0xd5   : > { %v2107_v37 = vpop.trf.xlu0  ;;  %v2121_v42 = vpop.trf.xlu1 }
  0xd6   : > { %418 = vadd.xlane.f32.xlu2 %v2105_v36 }
  0xdd   : > { %v2110_v38 = vpop.trf.xlu0  ;;  %v372_v45 = vpop.trf.xlu1 }
  0xde   : > { %452 = vadd.xlane.f32.xlu2 %v2103_v35 }
  0xe5   : > { %v2115_v40 = vpop.trf.xlu0  ;;  %v2132_v47 = vpop.trf.xlu1 }
  0xe6   : > { %420 = vadd.xlane.f32.xlu2 %v2113_v39 }
  0xed   : > { %v2118_v41 = vpop.trf.xlu0  ;;  %v2137_v49 = vpop.trf.xlu1 }
  0xee   : > { %454 = vadd.xlane.f32.xlu2 %v2107_v37 }
  0xf5   : > { %v2123_v43 = vpop.trf.xlu0  ;;  %v2142_v53 = vpop.trf.xlu1 }
  0xf6   : > { %462 = vadd.xlane.f32.xlu1 %v2123_v43  ;;  %422 = vadd.xlane.f32.xlu2 %v2121_v42 }
  0xfd   : > { %v2127_v44 = vpop.trf.xlu0  ;;  %v2149_v57 = vpop.trf.xlu1 }
  0xfe   : > { %456 = vadd.xlane.f32.xlu2 %v2110_v38 }
 0x105   : > { %v2130_v46 = vpop.trf.xlu0  ;;  %v2153_v62 = vpop.trf.xlu1 }
 0x106   : > { %424 = vadd.xlane.f32.xlu2 %v372_v45 }
 0x10d   : > { %v2134_v48 = vpop.trf.xlu0  ;;  %v2161_v4 = vpop.trf.xlu1 }
 0x10e   : > { %458 = vadd.xlane.f32.xlu2 %v2115_v40 }
 0x115   : > { %v2139_v50 = vpop.trf.xlu0  ;;  %v2170_v10 = vpop.trf.xlu1 }
 0x116   : > { %426 = vadd.xlane.f32.xlu2 %v2132_v47 }
 0x11d   : > { %v2144_v54 = vpop.trf.xlu0  ;;  %v2175_v13 = vpop.trf.xlu1 }
 0x11e   : > { %460 = vadd.xlane.f32.xlu2 %v2118_v41  ;;  %472 = vadd.xlane.f32.xlu1 %v2144_v54 }
 0x125   : > { %v2189_v19 = vpop.trf.xlu1 }
 0x126   : > { %428 = vadd.xlane.f32.xlu2 %v2137_v49 }
 0x12d   : > { %v2198_v25 = vpop.trf.xlu1 }
 0x131   : > { %v449_v61 = vpop.xlane.xlu2 %448 }
 0x132   : > { %v503_v63 = vmul.f32 %v2151_v60, %v449_v61 }
 0x134   : > { %v2156_v0 = vsub.f32 %v400_v32, %v503_v63 }
 0x135   : > { %v2228_v52 = vpop.trf.xlu1 }
 0x136   : > { %v567_v1 = vmul.f32 %v2156_v0, %v2156_v0 }
 0x138   : > { %615 = vadd.xlane.f32.xlu2 %v567_v1  ;;  %v1160_v1 = vld [vmem:[%s3176_s4 + $0xc8] sm:$0xff] }
 0x139   : > { %v417_v2 = vpop.xlane.xlu2 %416 }
 0x13a   : > { %v487_v3 = vmul.f32 %v2151_v60, %v417_v2 }
 0x13c   : > { %v2163_v5 = vsub.f32 %v368_v33, %v487_v3  ;;  %v1165_v33 = vld [vmem:[%s3176_s4 + $0xf0] sm:$0xff] }
 0x13d   : > { %1728 = vmatpush.msra.mxu2 %v1165_v33  ;;  %1173 = vmatpush.msra.mxu0 %v1165_v33  ;;  %v1157_v3 = vld [vmem:[%s3176_s4 + $0xb0] sm:$0xff]  ;;  %v1147_v33 = vld [vmem:[%s3176_s4 + $0x60] sm:$0xff] }
 0x13e   : > { %v551_v6 = vmul.f32 %v2163_v5, %v2163_v5 }
 0x140   : > { %583 = vadd.xlane.f32.xlu2 %v551_v6  ;;  %v1158_v6 = vld [vmem:[%s3176_s4 + $0xb8] sm:$0xff] }
 0x141   : > { %v451_v7 = vpop.xlane.xlu2 %450 }
 0x142   : > { %v504_v8 = vmul.f32 %v2151_v60, %v451_v7 }
 0x144   : > { %v2168_v9 = vsub.f32 %v401_v34, %v504_v8  ;;  %v1166_v34 = vld [vmem:[%s3176_s4 + $0xf8] sm:$0xff] }
 0x145   : > { %1744 = vmatpush.msra.mxu3 %v1166_v34  ;;  %1286 = vmatpush.msra.mxu1 %v1166_v34  ;;  %v1148_v34 = vld [vmem:[%s3176_s4 + $0x68] sm:$0xff] }
 0x146   : > { %v568_v11 = vmul.f32 %v2168_v9, %v2168_v9 }
 0x148   : > { %617 = vadd.xlane.f32.xlu0 %v568_v11  ;;  %430 = vadd.xlane.f32.xlu2 %v2142_v53  ;;  %v1155_v11 = vld [vmem:[%s3176_s4 + $0xa0] sm:$0xff] }
 0x149   : > { %v419_v12 = vpop.xlane.xlu2 %418 }
 0x14a   : > { %v488_v23 = vmul.f32 %v2151_v60, %v419_v12  ;;  %v1156_v12 = vld [vmem:[%s3176_s4 + $0xa8] sm:$0xff] }
 0x14c   : > { %v2202_v27 = vsub.f32 %v2105_v36, %v488_v23  ;;  %v1163_v36 = vld [vmem:[%s3176_s4 + $0xe0] sm:$0xff] }
 0x14d   : > { %1729 = vmatpush.msra.mxu2 %v1163_v36  ;;  %1174 = vmatpush.msra.mxu0 %v1163_v36  ;;  %v2308_v36 = vpop.trf.xlu0 }
 0x14e   : > { %v552_v32 = vmul.f32 %v2202_v27, %v2202_v27 }
 0x14f   : > { %1730 = vmatpush.msra.mxu2 %v1161_v58  ;;  %1175 = vmatpush.msra.mxu0 %v1161_v58  ;;  %v1143_v58 = vld [vmem:[%s3176_s4 + $0x40] sm:$0xff] }
 0x150   : > { %464 = vadd.xlane.f32.xlu2 %v2127_v44  ;;  %440 = vadd.xlane.f32.xlu0 %v2175_v13 }
 0x151   : > { %v453_v14 = vpop.xlane.xlu2 %452 }
 0x152   : > { %v505_v30 = vmul.f32 %v2151_v60, %v453_v14 }
 0x154   : > { %v2226_v51 = vsub.f32 %v2103_v35, %v505_v30  ;;  %v1162_v35 = vld [vmem:[%s3176_s4 + $0xd8] sm:$0xff] }
 0x155   : > { %v1150_v30 = vld [vmem:[%s3176_s4 + $0x78] sm:$0xff] }
 0x156   : > { %v569_v63 = vmul.f32 %v2226_v51, %v2226_v51 }
 0x158   : > { %432 = vadd.xlane.f32.xlu2 %v2149_v57 }
 0x159   : > { %v421_v15 = vpop.xlane.xlu2 %420 }
 0x15a   : > { %v489_v59 = vmul.f32 %v2151_v60, %v421_v15 }
 0x15c   : > { %v2258_v7 = vsub.f32 %v2113_v39, %v489_v59  ;;  %v1153_v39 = vld [vmem:[%s3176_s4 + $0x90] sm:$0xff]  ;;  %v1142_v59 = vld [vmem:[%s3176_s4 + $0x38] sm:$0xff] }
 0x15e   : > { %v553_v23 = vmul.f32 %v2258_v7, %v2258_v7 }
 0x160   : > { %466 = vadd.xlane.f32.xlu2 %v2130_v46 }
 0x161   : > { %v2181_v16 = vpop.xlane.xlu2 %454 }
 0x168   : > { %434 = vadd.xlane.f32.xlu2 %v2153_v62 }
 0x169   : > { %v2184_v17 = vpop.xlane.xlu2 %422  ;;  %v463_v14 = vpop.xlane.xlu1 %462 }
 0x170   : > { %468 = vadd.xlane.f32.xlu2 %v2134_v48 }
 0x171   : > { %v2187_v18 = vpop.xlane.xlu2 %456 }
 0x178   : > { %436 = vadd.xlane.f32.xlu2 %v2161_v4 }
 0x179   : > { %v425_v20 = vpop.xlane.xlu2 %424 }
 0x17a   : > { %v491_v21 = vmul.f32 %v2151_v60, %v425_v20  ;;  %v1154_v20 = vld [vmem:[%s3176_s4 + $0x98] sm:$0xff] }
 0x17c   : > { %v2193_v22 = vsub.f32 %v372_v45, %v491_v21  ;;  %v1164_v45 = vld [vmem:[%s3176_s4 + $0xe8] sm:$0xff]  ;;  %v506_v21 = vmul.f32 %v2151_v60, %v2181_v16 }
 0x17d   : > { %1745 = vmatpush.msra.mxu3 %v1164_v45  ;;  %1287 = vmatpush.msra.mxu1 %v1164_v45  ;;  %v1152_v16 = vld [vmem:[%s3176_s4 + $0x88] sm:$0xff] }
 0x17e   : > { %v555_v24 = vmul.f32 %v2193_v22, %v2193_v22 }
 0x17f   : > { %1746 = vmatpush.msra.mxu3 %v1162_v35  ;;  %1288 = vmatpush.msra.mxu1 %v1162_v35  ;;  %v1144_v35 = vld [vmem:[%s3176_s4 + $0x48] sm:$0xff] }
 0x180   : > { %591 = vadd.xlane.f32.xlu1 %v555_v24  ;;  %470 = vadd.xlane.f32.xlu2 %v2139_v50  ;;  %v510_v24 = vmul.f32 %v2151_v60, %v463_v14 }
 0x181   : > { %v459_v26 = vpop.xlane.xlu2 %458  ;;  %1747 = vmatpush.msra.mxu3 %v1160_v1  ;;  %1289 = vmatpush.msra.mxu1 %v1160_v1  ;;  %v1140_v1 = vld [vmem:[%s3176_s4 + $0x28] sm:$0xff] }
 0x182   : > { %v508_v28 = vmul.f32 %v2151_v60, %v459_v26  ;;  %v1151_v26 = vld [vmem:[%s3176_s4 + $0x80] sm:$0xff] }
 0x183   : > { %1748 = vmatpush.msra.mxu3 %v1158_v6  ;;  %1290 = vmatpush.msra.mxu1 %v1158_v6 }
 0x184   : > { %v2206_v29 = vsub.f32 %v2115_v40, %v508_v28  ;;  %v1149_v28 = vld [vmem:[%s3176_s4 + $0x70] sm:$0xff] }
 0x185   : > { %1749 = vmatpush.msra.mxu3 %v1156_v12  ;;  %1291 = vmatpush.msra.mxu1 %v1156_v12  ;;  %v1136_v12 = vld [vmem:[%s3176_s4 + $0x8] sm:$0xff] }
 0x186   : > { %v572_v31 = vmul.f32 %v2206_v29, %v2206_v29 }
 0x187   : > { %1750 = vmatpush.msra.mxu3 %v1154_v20  ;;  %1292 = vmatpush.msra.mxu1 %v1154_v20 }
 0x188   : > { %625 = vadd.xlane.f32.xlu1 %v572_v31  ;;  %585 = vadd.xlane.f32.xlu2 %v552_v32  ;;  %v2297_v31 = vsub.f32 %v2107_v37, %v506_v21  ;;  %v2300_v32 = vsub.f32 %v2123_v43, %v510_v24  ;;  %v1145_v37 = vld [vmem:[%s3176_s4 + $0x50] sm:$0xff]  ;;  %v1146_v43 = vld [vmem:[%s3176_s4 + $0x58] sm:$0xff] }
 0x189   : > { %v427_v40 = vpop.xlane.xlu2 %426  ;;  %1751 = vmatpush.msra.mxu3 %v1152_v16  ;;  %1293 = vmatpush.msra.mxu1 %v1152_v16 }
 0x18a   : > { %v492_v55 = vmul.f32 %v2151_v60, %v427_v40  ;;  %v490_v40 = vmul.f32 %v2151_v60, %v2184_v17  ;;  %v570_v45 = vmul.f32 %v2297_v31, %v2297_v31  ;;  %v1141_v17 = vld [vmem:[%s3176_s4 + $0x30] sm:$0xff] }
 0x18b   : > { %1752 = vmatpush.msra.mxu3 %v1150_v30  ;;  %1294 = vmatpush.msra.mxu1 %v1150_v30 }
 0x18c   : > { %v2232_v56 = vsub.f32 %v2132_v47, %v492_v55  ;;  %v1159_v47 = vld [vmem:[%s3176_s4 + $0xc0] sm:$0xff]  ;;  %v574_v55 = vmul.f32 %v2300_v32, %v2300_v32 }
 0x18d   : > { %1731 = vmatpush.msra.mxu2 %v1159_v47  ;;  %1176 = vmatpush.msra.mxu0 %v1159_v47  ;;  %v1139_v47 = vld [vmem:[%s3176_s4 + $0x20] sm:$0xff] }
 0x18e   : > { %v556_v61 = vmul.f32 %v2232_v56, %v2232_v56  ;;  %1753 = vmatpush.msra.mxu3 %v1148_v34  ;;  %1295 = vmatpush.msra.mxu1 %v1148_v34 }
 0x18f   : > { %1732 = vmatpush.msra.mxu2 %v1157_v3  ;;  %1177 = vmatpush.msra.mxu0 %v1157_v3  ;;  %v507_v3 = vmul.f32 %v2151_v60, %v2187_v18 }
 0x190   : > { %593 = vadd.xlane.f32.xlu1 %v556_v61  ;;  %619 = vadd.xlane.f32.xlu2 %v569_v63  ;;  %v2335_v61 = vsub.f32 %v2121_v42, %v490_v40  ;;  %v1137_v42 = vld [vmem:[%s3176_s4 + $0x10] sm:$0xff] }
 0x191   : > { %v461_v2 = vpop.xlane.xlu2 %460  ;;  %1733 = vmatpush.msra.mxu2 %v1155_v11  ;;  %1178 = vmatpush.msra.mxu0 %v1155_v11  ;;  %v1135_v11 = vld [vmem:[%s3176_s4] sm:$0xff]  ;;  %v2362_v18 = vsub.f32 %v2110_v38, %v507_v3 }
 0x192   : > { %v509_v8 = vmul.f32 %v2151_v60, %v461_v2  ;;  %1754 = vmatpush.msra.mxu3 %v1146_v43  ;;  %1296 = vmatpush.msra.mxu1 %v1146_v43  ;;  %v1138_v2 = vld [vmem:[%s3176_s4 + $0x18] sm:$0xff]  ;;  %v554_v6 = vmul.f32 %v2335_v61, %v2335_v61  ;;  %v2392_v3 = vld [vmem:[%s3175_s3] ss:$0 sm:$0xff] }
 0x193   : > { %1734 = vmatpush.msra.mxu2 %v1153_v39  ;;  %1179 = vmatpush.msra.mxu0 %v1153_v39  ;;  %v571_v21 = vmul.f32 %v2362_v18, %v2362_v18 }
 0x194   : > { %v2268_v15 = vsub.f32 %v2118_v41, %v509_v8  ;;  %1755 = vmatpush.msra.mxu3 %v1144_v35  ;;  %v2353_v8 = vpop.trf.xlu0  ;;  %1297 = vmatpush.msra.mxu1 %v1144_v35 }
 0x195   : > { %1735 = vmatpush.msra.mxu2 %v1151_v26  ;;  %1180 = vmatpush.msra.mxu0 %v1151_v26 }
 0x196   : > { %v573_v41 = vmul.f32 %v2268_v15, %v2268_v15  ;;  %1756 = vmatpush.msra.mxu3 %v1142_v59  ;;  %1298 = vmatpush.msra.mxu1 %v1142_v59 }
 0x197   : > { %1736 = vmatpush.msra.mxu2 %v1149_v28  ;;  %1181 = vmatpush.msra.mxu0 %v1149_v28 }
 0x198   : > { %587 = vadd.xlane.f32.xlu2 %v553_v23  ;;  %627 = vadd.xlane.f32.xlu0 %v573_v41 }
 0x199   : > { %442 = vadd.xlane.f32.xlu1 %v2189_v19  ;;  %1737 = vmatpush.msra.mxu2 %v1147_v33  ;;  %v429_v63 = vpop.xlane.xlu2 %428 }
 0x19a   : > { %1182 = vmatpush.msra.mxu0 %v1147_v33  ;;  %1757 = vmatpush.msra.mxu3 %v1140_v1 }
 0x19b   : > { %1738 = vmatpush.msra.mxu2 %v1145_v37  ;;  %1299 = vmatpush.msra.mxu1 %v1140_v1  ;;  %v2383_v1 = vld [vmem:[%s3174_s2] ss:$0 sm:$0xff] }
 0x19c   : > { %1183 = vmatpush.msra.mxu0 %v1145_v37  ;;  %1758 = vmatpush.msra.mxu3 %v1138_v2  ;;  %v2367_v23 = vpop.trf.xlu0 }
 0x19d   : > { %1739 = vmatpush.msra.mxu2 %v1143_v58  ;;  %1300 = vmatpush.msra.mxu1 %v1138_v2 }
 0x19e   : > { %1184 = vmatpush.msra.mxu0 %v1143_v58  ;;  %1759 = vmatpush.msra.mxu3 %v1136_v12 }
 0x19f   : > { %1740 = vmatpush.msra.mxu2 %v1141_v17  ;;  %1301 = vmatpush.msra.mxu1 %v1136_v12 }
 0x1a0   : > { %621 = vadd.xlane.f32.xlu2 %v570_v45  ;;  %1185 = vmatpush.msra.mxu0 %v1141_v17 }
 0x1a1   : > { %629 = vadd.xlane.f32.xlu1 %v574_v55  ;;  %1741 = vmatpush.msra.mxu2 %v1139_v47  ;;  %v493_v55 = vmul.f32 %v2151_v60, %v429_v63 }
 0x1a2   : > { %1186 = vmatpush.msra.mxu0 %v1139_v47 }
 0x1a3   : > { %1742 = vmatpush.msra.mxu2 %v1137_v42 }
 0x1a4   : > { %1187 = vmatpush.msra.mxu0 %v1137_v42 }
 0x1a5   : > { %1743 = vmatpush.msra.mxu2 %v1135_v11 }
 0x1a6   : > { %1188 = vmatpush.msra.mxu0 %v1135_v11 }
 0x1a8   : > { %589 = vadd.xlane.f32.xlu2 %v554_v6 }
 0x1ab   : > { %v616_v14 = vpop.xlane.xlu2 %615 }
 0x1ac   : > { %v663_v39 = vmul.f32 %v616_v14, %v2151_v60 }
 0x1ae   : > { %v695_v20 = vadd.f32 1e-05, %v663_v39 }
 0x1b0   : > { %1822 = vrsqrt.f32 %v695_v20  ;;  %623 = vadd.xlane.f32.xlu2 %v571_v21  ;;  %vm877_vm2 = vweird.f32 %v695_v20 }
 0x1b3   : > { %v584_v38 = vpop.xlane.xlu2 %583 }
 0x1b4   : > { %v647_v41 = vmul.f32 %v584_v38, %v2151_v60 }
 0x1b6   : > { %v1823_v24 = vpop.eup %1822  ;;  %v679_v26 = vadd.f32 1e-05, %v647_v41 }
 0x1b7   : > { %v872_v16 = vmul.f32 %v1823_v24, %v695_v20  ;;  %vm878_vm1 = vweird.f32 %v1823_v24 }
 0x1b8   : > { %1824 = vrsqrt.f32 %v679_v26  ;;  %438 = vadd.xlane.f32.xlu2 %v2170_v10  ;;  %vm879_vm3 = vmor %vm877_vm2, %vm878_vm1  ;;  %vm717_vm5 = vweird.f32 %v679_v26 }
 0x1b9   : > { %v873_v28 = vmul.f32 %v1823_v24, %v872_v16 }
 0x1bb   : > { %v874_v30 = vmul.f32 0.5, %v873_v28  ;;  %v618_v33 = vpop.xlane.xlu0 %617  ;;  %v431_v34 = vpop.xlane.xlu2 %430 }
 0x1bc   : > { %v664_v37 = vmul.f32 %v618_v33, %v2151_v60  ;;  %v494_v43 = vmul.f32 %v2151_v60, %v431_v34 }
 0x1bd   : > { %v875_v40 = vsub.f32 1.5, %v874_v30 }
 0x1be   : > { %v1825_v45 = vpop.eup %1824  ;;  %v696_v58 = vadd.f32 1e-05, %v664_v37  ;;  %v2375_v35 = vsub.f32 %v2142_v53, %v494_v43  ;;  %v2386_v53 = vsub.f32 %v2137_v49, %v493_v55 }
 0x1bf   : > { %v876_v17 = vmul.f32 %v1823_v24, %v875_v40  ;;  %v712_v59 = vmul.f32 %v1825_v45, %v679_v26  ;;  %vm718_vm4 = vweird.f32 %v1825_v45 }
 0x1c0   : > { %1826 = vrsqrt.f32 %v696_v58  ;;  %474 = vadd.xlane.f32.xlu2 %v2308_v36  ;;  %v558_v47 = vmul.f32 %v2375_v35, %v2375_v35  ;;  %v557_v49 = vmul.f32 %v2386_v53, %v2386_v53  ;;  %vm719_vm6 = vmor %vm717_vm5, %vm718_vm4  ;;  %vm887_vm8 = vweird.f32 %v696_v58 }
 0x1c1   : > { %v713_v63 = vmul.f32 %v1825_v45, %v712_v59  ;;  %v880_v42 = vsel %vm879_vm3, %v1823_v24, %v876_v17 }
 0x1c2   : > { %597 = vadd.xlane.f32.xlu0 %v558_v47  ;;  %v1047_v2 = vmul.f32 %v880_v42, %v2156_v0 }
 0x1c3   : > { %v714_v6 = vmul.f32 0.5, %v713_v63  ;;  %v465_v11 = vpop.xlane.xlu2 %464 }
 0x1c4   : > { %v1083_v12 = vmul.f32 %v2383_v1, %v1047_v2  ;;  %v511_v38 = vmul.f32 %v2151_v60, %v465_v11 }
 0x1c5   : > { %v715_v14 = vsub.f32 1.5, %v714_v6 }
 0x1c6   : > { %v1827_v39 = vpop.eup %1826  ;;  %v1119_v20 = vadd.f32 %v2392_v3, %v1083_v12  ;;  %v2402_v30 = vsub.f32 %v2127_v44, %v511_v38 }
 0x1c7   : > { %v716_v21 = vmul.f32 %v1825_v45, %v715_v14  ;;  %v882_v0 = vmul.f32 %v1827_v39, %v696_v58  ;;  %vm888_vm7 = vweird.f32 %v1827_v39 }
 0x1c8   : > { %1237 = vmatmul.f32.vlgmr.msra.gmra.mxu2 %v1119_v20  ;;  %1350 = vmatmul.f32.vlgmr.msra.gmra.mxu3 %v1119_v20  ;;  %vm889_vm9 = vmor %vm887_vm8, %vm888_vm7  ;;  %v473_v20 = vpop.xlane.xlu1 %472 }
 0x1c9   : > { %v883_v41 = vmul.f32 %v1827_v39, %v882_v0  ;;  %595 = vadd.xlane.f32.xlu2 %v557_v49  ;;  %v720_v24 = vsel %vm719_vm6, %v1825_v45, %v716_v21  ;;  %v515_v0 = vmul.f32 %v2151_v60, %v473_v20 }
 0x1ca   : > { %476 = vadd.xlane.f32.xlu0 %v2353_v8  ;;  %v1031_v16 = vmul.f32 %v720_v24, %v2163_v5  ;;  %v575_v5 = vmul.f32 %v2402_v30, %v2402_v30 }
 0x1cb   : > { %v884_v28 = vmul.f32 0.5, %v883_v41  ;;  %v433_v33 = vpop.xlane.xlu2 %432  ;;  %v2446_v24 = vsub.f32 %v2144_v54, %v515_v0 }
 0x1cc   : > { %v495_v26 = vmul.f32 %v2151_v60, %v433_v33  ;;  %v1067_v34 = vmul.f32 %v2383_v1, %v1031_v16 }
 0x1cd   : > { %v885_v37 = vsub.f32 1.5, %v884_v28  ;;  %v441_v28 = vpop.xlane.xlu0 %440 }
 0x1ce   : > { %v2407_v43 = vsub.f32 %v2149_v57, %v495_v26  ;;  %v1103_v40 = vadd.f32 %v2392_v3, %v1067_v34  ;;  %v579_v34 = vmul.f32 %v2446_v24, %v2446_v24 }
 0x1cf   : > { %v886_v45 = vmul.f32 %v1827_v39, %v885_v37 }
 0x1d0   : > { %1189 = vmatmul.f32.vlgmr.msra.gmra.mxu0 %v1103_v40  ;;  %1302 = vmatmul.f32.vlgmr.msra.gmra.mxu1 %v1103_v40  ;;  %v559_v44 = vmul.f32 %v2407_v43, %v2407_v43 }
 0x1d1   : > { %631 = vadd.xlane.f32.xlu2 %v575_v5  ;;  %v890_v55 = vsel %vm889_vm9, %v1827_v39, %v886_v45 }
 0x1d2   : > { %599 = vadd.xlane.f32.xlu1 %v559_v44  ;;  %v1048_v17 = vmul.f32 %v890_v55, %v2168_v9 }
 0x1d3   : > { %v467_v57 = vpop.xlane.xlu2 %466 }
 0x1d4   : > { %v512_v59 = vmul.f32 %v2151_v60, %v467_v57  ;;  %v1084_v47 = vmul.f32 %v2383_v1, %v1048_v17 }
 0x1d6   : > { %v2418_v58 = vsub.f32 %v2130_v46, %v512_v59  ;;  %v1120_v63 = vadd.f32 %v2392_v3, %v1084_v47 }
 0x1d8   : > { %1240 = vmatmul.f32.gmra.mxu2 %v1120_v63  ;;  %1353 = vmatmul.f32.gmra.mxu3 %v1120_v63  ;;  %v576_v42 = vmul.f32 %v2418_v58, %v2418_v58 }
 0x1d9   : > { %444 = vadd.xlane.f32.xlu2 %v2198_v25 }
 0x1da   : > { %633 = vadd.xlane.f32.xlu0 %v576_v42  ;;  %478 = vadd.xlane.f32.xlu1 %v2367_v23 }
 0x1db   : > { %v435_v9 = vpop.xlane.xlu2 %434 }
 0x1dc   : > { %v496_v2 = vmul.f32 %v2151_v60, %v435_v9 }
 0x1de   : > { %v2427_v6 = vsub.f32 %v2153_v62, %v496_v2 }
 0x1e0   : > { %v560_v46 = vmul.f32 %v2427_v6, %v2427_v6 }
 0x1e2   : > { %601 = vadd.xlane.f32.xlu2 %v560_v46  ;;  %446 = vadd.xlane.f32.xlu0 %v2228_v52 }
 0x1e3   : > { %v469_v11 = vpop.xlane.xlu2 %468 }
 0x1e4   : > { %v513_v12 = vmul.f32 %v2151_v60, %v469_v11 }
 0x1e6   : > { %v2434_v14 = vsub.f32 %v2134_v48, %v513_v12 }
 0x1e8   : > { %v577_v39 = vmul.f32 %v2434_v14, %v2434_v14 }
 0x1ea   : > { %635 = vadd.xlane.f32.xlu1 %v577_v39 }
 0x1eb   : > { %v437_v49 = vpop.xlane.xlu2 %436 }
 0x1ec   : > { %v497_v62 = vmul.f32 %v2151_v60, %v437_v49 }
 0x1ee   : > { %v2440_v21 = vsub.f32 %v2161_v4, %v497_v62  ;;  %v499_v4 = vmul.f32 %v2151_v60, %v441_v28 }
 0x1f0   : > { %v561_v38 = vmul.f32 %v2440_v21, %v2440_v21  ;;  %v2458_v54 = vsub.f32 %v2175_v13, %v499_v4 }
 0x1f2   : > { %603 = vadd.xlane.f32.xlu2 %v561_v38 }
 0x1f3   : > { %v471_v41 = vpop.xlane.xlu2 %470  ;;  %v592_v48 = vpop.xlane.xlu1 %591 }
 0x1f4   : > { %v514_v16 = vmul.f32 %v2151_v60, %v471_v41  ;;  %v651_v13 = vmul.f32 %v592_v48, %v2151_v60 }
 0x1f6   : > { %v2450_v33 = vsub.f32 %v2139_v50, %v514_v16  ;;  %v563_v50 = vmul.f32 %v2458_v54, %v2458_v54  ;;  %v2467_v49 = vadd.f32 1e-05, %v651_v13 }
 0x1f8   : > { %v578_v26 = vmul.f32 %v2450_v33, %v2450_v33  ;;  %vm757_vm9 = vweird.f32 %v2467_v49 }
 0x1fa   : > { %637 = vadd.xlane.f32.xlu0 %v578_v26  ;;  %639 = vadd.xlane.f32.xlu2 %v579_v34 }
 0x1fb   : > { %v586_v37 = vpop.xlane.xlu2 %585  ;;  %v626_v40 = vpop.xlane.xlu1 %625 }
 0x1fc   : > { %v648_v45 = vmul.f32 %v586_v37, %v2151_v60  ;;  %v668_v34 = vmul.f32 %v626_v40, %v2151_v60 }
 0x1fe   : > { %v680_v5 = vadd.f32 1e-05, %v648_v45 }
 0x200   : > { %1828 = vrsqrt.f32 %v680_v5  ;;  %vm727_vm11 = vweird.f32 %v680_v5 }
 0x202   : > { %607 = vadd.xlane.f32.xlu0 %v563_v50 }
 0x203   : > { %v620_v44 = vpop.xlane.xlu2 %619  ;;  %v594_v55 = vpop.xlane.xlu1 %593 }
 0x204   : > { %v665_v17 = vmul.f32 %v620_v44, %v2151_v60  ;;  %v652_v45 = vmul.f32 %v594_v55, %v2151_v60 }
 0x206   : > { %v1829_v57 = vpop.eup %1828  ;;  %v697_v59 = vadd.f32 1e-05, %v665_v17  ;;  %v2487_v40 = vadd.f32 1e-05, %v652_v45 }
 0x207   : > { %v722_v47 = vmul.f32 %v1829_v57, %v680_v5  ;;  %vm728_vm10 = vweird.f32 %v1829_v57 }
 0x208   : > { %1830 = vrsqrt.f32 %v697_v59  ;;  %vm729_vm12 = vmor %vm727_vm11, %vm728_vm10  ;;  %vm897_vm14 = vweird.f32 %v697_v59 }
 0x209   : > { %v723_v63 = vmul.f32 %v1829_v57, %v722_v47 }
 0x20b   : > { %v724_v42 = vmul.f32 0.5, %v723_v63  ;;  %v588_v9 = vpop.xlane.xlu2 %587  ;;  %v628_v47 = vpop.xlane.xlu0 %627  ;;  %v2482_v63 = vadd.f32 1e-05, %v668_v34 }
 0x20c   : > { %v649_v2 = vmul.f32 %v588_v9, %v2151_v60  ;;  %v443_v46 = vpop.xlane.xlu1 %442  ;;  %v669_v13 = vmul.f32 %v628_v47, %v2151_v60 }
 0x20d   : > { %v725_v11 = vsub.f32 1.5, %v724_v42  ;;  %v500_v12 = vmul.f32 %v2151_v60, %v443_v46 }
 0x20e   : > { %v1831_v39 = vpop.eup %1830  ;;  %v681_v20 = vadd.f32 1e-05, %v649_v2 }
 0x20f   : > { %v726_v62 = vmul.f32 %v1829_v57, %v725_v11  ;;  %v892_v0 = vmul.f32 %v1831_v39, %v697_v59  ;;  %v2470_v38 = vsub.f32 %v2189_v19, %v500_v12  ;;  %vm898_vm13 = vweird.f32 %v1831_v39 }
 0x210   : > { %1832 = vrsqrt.f32 %v681_v20  ;;  %vm899_vm15 = vmor %vm897_vm14, %vm898_vm13  ;;  %vm737_vm1 = vweird.f32 %v681_v20 }
 0x211   : > { %v893_v41 = vmul.f32 %v1831_v39, %v892_v0  ;;  %v564_v48 = vmul.f32 %v2470_v38, %v2470_v38  ;;  %v730_v16 = vsel %vm729_vm12, %v1829_v57, %v726_v62  ;;  %1834 = vrsqrt.f32 %v2467_v49 }
 0x212   : > { %v1032_v26 = vmul.f32 %v730_v16, %v2202_v27  ;;  %vm927_vm12 = vweird.f32 %v2482_v63 }
 0x213   : > { %v894_v28 = vmul.f32 0.5, %v893_v41  ;;  %v622_v4 = vpop.xlane.xlu2 %621  ;;  %609 = vadd.xlane.f32.xlu2 %v564_v48  ;;  %v2498_v48 = vadd.f32 1e-05, %v669_v13 }
 0x214   : > { %v666_v19 = vmul.f32 %v622_v4, %v2151_v60  ;;  %v1068_v44 = vmul.f32 %v2383_v1, %v1032_v26  ;;  %v630_v12 = vpop.xlane.xlu1 %629 }
 0x215   : > { %v895_v37 = vsub.f32 1.5, %v894_v28  ;;  %v670_v4 = vmul.f32 %v630_v12, %v2151_v60 }
 0x216   : > { %v1833_v5 = vpop.eup %1832  ;;  %v2479_v50 = vadd.f32 1e-05, %v666_v19  ;;  %v1104_v42 = vadd.f32 %v2392_v3, %v1068_v44 }
 0x217   : > { %v896_v17 = vmul.f32 %v1831_v39, %v895_v37  ;;  %v732_v57 = vmul.f32 %v1833_v5, %v681_v20  ;;  %v2485_v27 = vpop.eup %1834  ;;  %vm738_vm0 = vweird.f32 %v1833_v5 }
 0x218   : > { %1836 = vrsqrt.f32 %v2479_v50  ;;  %v752_v59 = vmul.f32 %v2485_v27, %v2467_v49  ;;  %1192 = vmatmul.f32.gmra.mxu0 %v1104_v42  ;;  %1305 = vmatmul.f32.gmra.mxu1 %v1104_v42  ;;  %vm739_vm2 = vmor %vm737_vm1, %vm738_vm0  ;;  %vm907_vm4 = vweird.f32 %v2479_v50  ;;  %vm758_vm6 = vweird.f32 %v2485_v27 }
 0x219   : > { %v733_v55 = vmul.f32 %v1833_v5, %v732_v57  ;;  %v900_v9 = vsel %vm899_vm15, %v1831_v39, %v896_v17  ;;  %1838 = vrsqrt.f32 %v2482_v63  ;;  %v2513_v57 = vadd.f32 1e-05, %v670_v4  ;;  %vm2555_vm11 = vmor %vm757_vm9, %vm758_vm6 }
 0x21a   : > { %v1049_v11 = vmul.f32 %v900_v9, %v2226_v51  ;;  %1840 = vrsqrt.f32 %v2487_v40  ;;  %v753_v34 = vmul.f32 %v2485_v27, %v752_v59  ;;  %vm937_vm6 = vweird.f32 %v2498_v48 }
 0x21b   : > { %v734_v2 = vmul.f32 0.5, %v733_v55  ;;  %v590_v46 = vpop.xlane.xlu2 %589  ;;  %vm947_vm9 = vweird.f32 %v2513_v57 }
 0x21c   : > { %v650_v62 = vmul.f32 %v590_v46, %v2151_v60  ;;  %v1085_v39 = vmul.f32 %v2383_v1, %v1049_v11  ;;  %v754_v42 = vmul.f32 0.5, %v753_v34 }
 0x21d   : > { %v735_v0 = vsub.f32 1.5, %v734_v2 }
 0x21e   : > { %v1837_v41 = vpop.eup %1836  ;;  %v2500_v51 = vadd.f32 1e-05, %v650_v62  ;;  %v1121_v26 = vadd.f32 %v2392_v3, %v1085_v39 }
 0x21f   : > { %v736_v16 = vmul.f32 %v1833_v5, %v735_v0  ;;  %v902_v28 = vmul.f32 %v1837_v41, %v2479_v50  ;;  %v2507_v37 = vpop.eup %1838  ;;  %vm908_vm3 = vweird.f32 %v1837_v41 }
 0x220   : > { %1842 = vrsqrt.f32 %v2500_v51  ;;  %1243 = vmatmul.f32.gmra.mxu2 %v1121_v26  ;;  %1356 = vmatmul.f32.gmra.mxu3 %v1121_v26  ;;  %v2510_v44 = vpop.eup %1840  ;;  %v922_v2 = vmul.f32 %v2507_v37, %v2482_v63  ;;  %vm909_vm5 = vmor %vm907_vm4, %vm908_vm3  ;;  %vm747_vm8 = vweird.f32 %v2500_v51  ;;  %vm928_vm13 = vweird.f32 %v2507_v37 }
 0x221   : > { %v903_v19 = vmul.f32 %v1837_v41, %v902_v28  ;;  %v740_v20 = vsel %vm739_vm2, %v1833_v5, %v736_v16  ;;  %1844 = vrsqrt.f32 %v2498_v48  ;;  %v755_v16 = vsub.f32 1.5, %v754_v42  ;;  %vm2586_vm2 = vmor %vm927_vm12, %vm928_vm13 }
 0x222   : > { %v1033_v45 = vmul.f32 %v740_v20, %v2258_v7  ;;  %v762_v7 = vmul.f32 %v2510_v44, %v2487_v40  ;;  %1846 = vrsqrt.f32 %v2513_v57  ;;  %v923_v28 = vmul.f32 %v2507_v37, %v922_v2 }
 0x223   : > { %v904_v17 = vmul.f32 0.5, %v903_v19  ;;  %v624_v47 = vpop.xlane.xlu2 %623  ;;  %vm768_vm15 = vweird.f32 %v2510_v44  ;;  %vm767_vm3 = vweird.f32 %v2487_v40 }
 0x224   : > { %v667_v55 = vmul.f32 %v624_v47, %v2151_v60  ;;  %v1069_v13 = vmul.f32 %v2383_v1, %v1033_v45  ;;  %v763_v50 = vmul.f32 %v2510_v44, %v762_v7  ;;  %vm2592_vm4 = vmor %vm767_vm3, %vm768_vm15 }
 0x225   : > { %v905_v9 = vsub.f32 1.5, %v904_v17 }
 0x226   : > { %v1843_v5 = vpop.eup %1842  ;;  %v2521_v46 = vadd.f32 1e-05, %v667_v55  ;;  %v1105_v11 = vadd.f32 %v2392_v3, %v1069_v13  ;;  %v924_v55 = vmul.f32 0.5, %v923_v28 }
 0x227   : > { %v906_v59 = vmul.f32 %v1837_v41, %v905_v9  ;;  %v742_v12 = vmul.f32 %v1843_v5, %v2500_v51  ;;  %v2528_v62 = vpop.eup %1844  ;;  %vm748_vm7 = vweird.f32 %v1843_v5  ;;  %v764_v9 = vmul.f32 0.5, %v763_v50 }
 0x228   : > { %1848 = vrsqrt.f32 %v2521_v46  ;;  %1195 = vmatmul.f32.gmra.mxu0 %v1105_v11  ;;  %1308 = vmatmul.f32.gmra.mxu1 %v1105_v11  ;;  %v932_v19 = vmul.f32 %v2528_v62, %v2498_v48  ;;  %v2537_v17 = vpop.eup %1846  ;;  %vm749_vm10 = vmor %vm747_vm8, %vm748_vm7  ;;  %v925_v49 = vsub.f32 1.5, %v924_v55  ;;  %vm917_vm0 = vweird.f32 %v2521_v46 }
 0x229   : > { %v743_v0 = vmul.f32 %v1843_v5, %v742_v12  ;;  %v910_v39 = vsel %vm909_vm5, %v1837_v41, %v906_v59  ;;  %v942_v59 = vmul.f32 %v2537_v17, %v2513_v57  ;;  %v765_v28 = vsub.f32 1.5, %v764_v9 }
 0x22a   : > { %v1050_v4 = vmul.f32 %v910_v39, %v2297_v31  ;;  %v756_v31 = vmul.f32 %v2485_v27, %v755_v16  ;;  %v933_v11 = vmul.f32 %v2528_v62, %v932_v19  ;;  %vm938_vm5 = vweird.f32 %v2528_v62 }
 0x22b   : > { %v744_v26 = vmul.f32 0.5, %v743_v0  ;;  %v439_v34 = vpop.xlane.xlu2 %438  ;;  %vm2614_vm7 = vmor %vm937_vm6, %vm938_vm5  ;;  %vm948_vm8 = vweird.f32 %v2537_v17 }
 0x22c   : > { %v498_v20 = vmul.f32 %v2151_v60, %v439_v34  ;;  %v1086_v45 = vmul.f32 %v2383_v1, %v1050_v4  ;;  %v760_v16 = vsel %vm2555_vm11, %v2485_v27, %v756_v31  ;;  %v943_v34 = vmul.f32 %v2537_v17, %v942_v59 }
 0x22d   : > { %v745_v41 = vsub.f32 1.5, %v744_v26  ;;  %v934_v26 = vmul.f32 0.5, %v933_v11  ;;  %v926_v27 = vmul.f32 %v2507_v37, %v925_v49 }
 0x22e   : > { %v1849_v47 = vpop.eup %1848  ;;  %v2542_v13 = vsub.f32 %v2170_v10, %v498_v20  ;;  %v1122_v42 = vadd.f32 %v2392_v3, %v1086_v45  ;;  %v1035_v45 = vmul.f32 %v760_v16, %v2193_v22 }
 0x22f   : > { %v746_v2 = vmul.f32 %v1843_v5, %v745_v41  ;;  %v912_v7 = vmul.f32 %v1849_v47, %v2521_v46  ;;  %vm918_vm14 = vweird.f32 %v1849_v47  ;;  %v930_v40 = vsel %vm2586_vm2, %v2507_v37, %v926_v27 }
 0x230   : > { %1246 = vmatmul.f32.gmra.mxu2 %v1122_v42  ;;  %1359 = vmatmul.f32.gmra.mxu3 %v1122_v42  ;;  %v562_v10 = vmul.f32 %v2542_v13, %v2542_v13  ;;  %v766_v42 = vmul.f32 %v2510_v44, %v765_v28  ;;  %vm919_vm1 = vmor %vm917_vm0, %vm918_vm14  ;;  %v1071_v46 = vmul.f32 %v2383_v1, %v1035_v45 }
 0x231   : > { %v913_v51 = vmul.f32 %v1849_v47, %v912_v7  ;;  %v750_v0 = vsel %vm749_vm10, %v1843_v5, %v746_v2  ;;  %v935_v2 = vsub.f32 1.5, %v934_v26  ;;  %v944_v7 = vmul.f32 0.5, %v943_v34  ;;  %vm2638_vm10 = vmor %vm947_vm9, %vm948_vm8 }
 0x232   : > { %605 = vadd.xlane.f32.xlu1 %v562_v10  ;;  %v1034_v39 = vmul.f32 %v750_v0, %v2335_v61  ;;  %v770_v63 = vsel %vm2592_vm4, %v2510_v44, %v766_v42  ;;  %v1107_v16 = vadd.f32 %v2392_v3, %v1071_v46 }
 0x233   : > { %v914_v4 = vmul.f32 0.5, %v913_v51  ;;  %v475_v50 = vpop.xlane.xlu2 %474  ;;  %v936_v51 = vmul.f32 %v2528_v62, %v935_v2  ;;  %v1036_v37 = vmul.f32 %v770_v63, %v2232_v56 }
 0x234   : > { %v516_v19 = vmul.f32 %v2151_v60, %v475_v50  ;;  %v1070_v5 = vmul.f32 %v2383_v1, %v1034_v39 }
 0x235   : > { %v915_v20 = vsub.f32 1.5, %v914_v4  ;;  %v598_v61 = vpop.xlane.xlu0 %597  ;;  %v1052_v4 = vmul.f32 %v930_v40, %v2206_v29  ;;  %v940_v29 = vsel %vm2614_vm7, %v2528_v62, %v936_v51 }
 0x236   : > { %v2571_v41 = vsub.f32 %v2308_v36, %v516_v19  ;;  %v654_v31 = vmul.f32 %v598_v61, %v2151_v60  ;;  %v1106_v55 = vadd.f32 %v2392_v3, %v1070_v5  ;;  %v1072_v5 = vmul.f32 %v2383_v1, %v1036_v37 }
 0x237   : > { %v916_v9 = vmul.f32 %v1849_v47, %v915_v20  ;;  %v1088_v20 = vmul.f32 %v2383_v1, %v1052_v4  ;;  %v1053_v45 = vmul.f32 %v940_v29, %v2268_v15  ;;  %v1399_v29 = vld [vmem:[%s2665_s8] sm:$0xff] }
 0x238   : > { %v2578_v22 = vadd.f32 1e-05, %v654_v31  ;;  %1198 = vmatmul.f32.gmra.mxu0 %v1106_v55  ;;  %1311 = vmatmul.f32.gmra.mxu1 %v1106_v55  ;;  %v580_v36 = vmul.f32 %v2571_v41, %v2571_v41 }
 0x239   : > { %v920_v59 = vsel %vm919_vm1, %v1849_v47, %v916_v9  ;;  %v945_v47 = vsub.f32 1.5, %v944_v7  ;;  %v1167_v9 = vld [vmem:[%s3177_s5] sm:$0x3]  ;;  %v1108_v7 = vadd.f32 %v2392_v3, %v1072_v5  ;;  %v1124_v15 = vadd.f32 %v2392_v3, %v1088_v20 }
 0x23a   : > { %1850 = vrsqrt.f32 %v2578_v22  ;;  %641 = vadd.xlane.f32.xlu1 %v580_v36  ;;  %v1051_v12 = vmul.f32 %v920_v59, %v2362_v18  ;;  %v2673_v63 = vperm.slane %v1167_v9, 1  ;;  %vm787_vm14 = vweird.f32 %v2578_v22 }
 0x23b   : > { %v946_v34 = vmul.f32 %v2537_v17, %v945_v47  ;;  %v1431_v47 = vld [vmem:[%s2665_s8 + $0x100] sm:$0xff] }
 0x23c   : > { %v596_v0 = vpop.xlane.xlu2 %595  ;;  %v1087_v49 = vmul.f32 %v2383_v1, %v1051_v12  ;;  %v2671_v12 = vperm.slane %v1167_v9, 0 }
 0x23d   : > { %v653_v18 = vmul.f32 %v596_v0, %v2151_v60  ;;  %v477_v39 = vpop.xlane.xlu0 %476  ;;  %v950_v57 = vsel %vm2638_vm10, %v2537_v17, %v946_v34  ;;  %v1089_v17 = vmul.f32 %v2383_v1, %v1053_v45 }
 0x23e   : > { %v517_v44 = vmul.f32 %v2151_v60, %v477_v39  ;;  %v1123_v28 = vadd.f32 %v2392_v3, %v1087_v49  ;;  %v1054_v46 = vmul.f32 %v950_v57, %v2300_v32  ;;  %v1432_v49 = vld [vmem:[%s2665_s8 + $0x108] sm:$0xff] }
 0x23f   : > { %v2618_v26 = vadd.f32 1e-05, %v653_v18  ;;  %v1125_v18 = vadd.f32 %v2392_v3, %v1089_v17 }
 0x240   : > { %v2620_v48 = vpop.eup %1850  ;;  %v2625_v19 = vsub.f32 %v2353_v8, %v517_v44  ;;  %1201 = vmatmul.f32.gmra.mxu0 %v1107_v16  ;;  %1249 = vmatmul.f32.gmra.mxu2 %v1123_v28  ;;  %v1090_v37 = vmul.f32 %v2383_v1, %v1054_v46 }
 0x241   : > { %v782_v56 = vmul.f32 %v2620_v48, %v2578_v22  ;;  %1852 = vrsqrt.f32 %v2618_v26  ;;  %1314 = vmatmul.f32.gmra.mxu1 %v1107_v16  ;;  %1362 = vmatmul.f32.gmra.mxu3 %v1123_v28  ;;  %vm788_vm11 = vweird.f32 %v2620_v48  ;;  %vm777_vm13 = vweird.f32 %v2618_v26 }
 0x242   : > { %v581_v8 = vmul.f32 %v2625_v19, %v2625_v19  ;;  %vm2723_vm0 = vmor %vm787_vm14, %vm788_vm11 }
 0x243   : > { %v783_v62 = vmul.f32 %v2620_v48, %v782_v56 }
 0x244   : > { %v632_v27 = vpop.xlane.xlu2 %631  ;;  %643 = vadd.xlane.f32.xlu0 %v581_v8 }
 0x245   : > { %v784_v31 = vmul.f32 0.5, %v783_v62  ;;  %v671_v55 = vmul.f32 %v632_v27, %v2151_v60  ;;  %v600_v42 = vpop.xlane.xlu1 %599  ;;  %v1400_v62 = vld [vmem:[%s2665_s8 + $0x8] sm:$0xff] }
 0x246   : > { %v655_v2 = vmul.f32 %v600_v42, %v2151_v60 }
 0x247   : > { %v2655_v36 = vpop.eup %1852  ;;  %v2657_v11 = vadd.f32 1e-05, %v671_v55  ;;  %v785_v40 = vsub.f32 1.5, %v784_v31 }
 0x248   : > { %v772_v59 = vmul.f32 %v2655_v36, %v2618_v26  ;;  %v2669_v10 = vadd.f32 1e-05, %v655_v2  ;;  %1204 = vmatmul.f32.gmra.mxu0 %v1108_v7  ;;  %1252 = vmatmul.f32.gmra.mxu2 %v1124_v15  ;;  %vm778_vm12 = vweird.f32 %v2655_v36 }
 0x249   : > { %1854 = vrsqrt.f32 %v2657_v11  ;;  %1317 = vmatmul.f32.gmra.mxu1 %v1108_v7  ;;  %1365 = vmatmul.f32.gmra.mxu3 %v1124_v15  ;;  %v786_v4 = vmul.f32 %v2620_v48, %v785_v40  ;;  %vm779_vm15 = vmor %vm777_vm13, %vm778_vm12  ;;  %vm957_vm3 = vweird.f32 %v2657_v11 }
 0x24a   : > { %v773_v32 = vmul.f32 %v2655_v36, %v772_v59  ;;  %1856 = vrsqrt.f32 %v2669_v10  ;;  %vm797_vm5 = vweird.f32 %v2669_v10 }
 0x24b   : > { %v1238_v51 = vpop.f32.mrf.mxu2  ;;  %v1351_v0 = vpop.f32.mrf.mxu3 }
 0x24c   : > { %v774_v39 = vmul.f32 0.5, %v773_v32  ;;  %v1239_v16 = vadd.f32 %v1238_v51, %v2671_v12  ;;  %v1352_v44 = vadd.f32 %v1351_v0, %v2673_v63  ;;  %v445_v28 = vpop.xlane.xlu2 %444 }
 0x24d   : > { %v501_v50 = vmul.f32 %v2151_v60, %v445_v28  ;;  %v1190_v34 = vpop.f32.mrf.mxu0  ;;  %v1303_v56 = vpop.f32.mrf.mxu1 }
 0x24e   : > { %v775_v8 = vsub.f32 1.5, %v774_v39  ;;  %v1495_v5 = vmul.f32 %v1431_v47, %v1239_v16  ;;  %v1496_v20 = vmul.f32 %v1432_v49, %v1352_v44  ;;  %v1191_v61 = vadd.f32 %v1190_v34, %v2671_v12  ;;  %v634_v45 = vpop.xlane.xlu0 %633  ;;  %v479_v27 = vpop.xlane.xlu1 %478 }
 0x24f   : > { %v2695_v57 = vpop.eup %1854  ;;  %v2698_v31 = vsub.f32 %v2198_v25, %v501_v50  ;;  %v1304_v55 = vadd.f32 %v1303_v56, %v2673_v63  ;;  %v672_v42 = vmul.f32 %v634_v45, %v2151_v60  ;;  %v518_v9 = vmul.f32 %v2151_v60, %v479_v27  ;;  %v1433_v45 = vld [vmem:[%s2665_s8 + $0x110] sm:$0xff] }
 0x250   : > { %v2703_v2 = vpop.eup %1856  ;;  %v776_v7 = vmul.f32 %v2655_v36, %v775_v8  ;;  %v952_v15 = vmul.f32 %v2695_v57, %v2657_v11  ;;  %1559 = vst [vmem:[%s2710_s13 + $0x100] sm:$0xff] %v1495_v5  ;;  %v1463_v25 = vmul.f32 %v1399_v29, %v1191_v61  ;;  %1255 = vmatmul.f32.gmra.mxu2 %v1125_v18  ;;  %vm958_vm1 = vweird.f32 %v2695_v57 }
 0x251   : > { %v792_v26 = vmul.f32 %v2703_v2, %v2669_v10  ;;  %1560 = vst [vmem:[%s2710_s13 + $0x108] sm:$0xff] %v1496_v20  ;;  %v1464_v17 = vmul.f32 %v1400_v62, %v1304_v55  ;;  %v2719_v46 = vadd.f32 1e-05, %v672_v42  ;;  %1368 = vmatmul.f32.gmra.mxu3 %v1125_v18  ;;  %v2730_v22 = vsub.f32 %v2367_v23, %v518_v9  ;;  %vm2756_vm4 = vmor %vm957_vm3, %vm958_vm1  ;;  %v1434_v55 = vld [vmem:[%s2665_s8 + $0x118] sm:$0xff] }
 0x252   : > { %v953_v40 = vmul.f32 %v2695_v57, %v952_v15  ;;  %1527 = vst [vmem:[%s2710_s13] sm:$0xff] %v1463_v25  ;;  %v565_v32 = vmul.f32 %v2698_v31, %v2698_v31  ;;  %v780_v51 = vsel %vm779_vm15, %v2655_v36, %v776_v7  ;;  %v790_v49 = vsel %vm2723_vm0, %v2620_v48, %v786_v4 }
 0x253   : > { %v793_v47 = vmul.f32 %v2703_v2, %v792_v26  ;;  %1528 = vst [vmem:[%s2710_s13 + $0x8] sm:$0xff] %v1464_v17  ;;  %1858 = vrsqrt.f32 %v2719_v46  ;;  %v1037_v0 = vmul.f32 %v780_v51, %v2386_v53  ;;  %v582_v23 = vmul.f32 %v2730_v22, %v2730_v22 }
 0x254   : > { %v954_v18 = vmul.f32 0.5, %v953_v40  ;;  %611 = vadd.xlane.f32.xlu1 %v565_v32  ;;  %v1126_v44 = vadd.f32 %v2392_v3, %v1090_v37  ;;  %v1038_v48 = vmul.f32 %v790_v49, %v2375_v35  ;;  %vm798_vm2 = vweird.f32 %v2703_v2 }
 0x255   : > { %v794_v39 = vmul.f32 0.5, %v793_v47  ;;  %v602_v16 = vpop.xlane.xlu2 %601  ;;  %v1073_v36 = vmul.f32 %v2383_v1, %v1037_v0  ;;  %645 = vadd.xlane.f32.xlu2 %v582_v23  ;;  %vm2765_vm6 = vmor %vm797_vm5, %vm798_vm2  ;;  %vm967_vm8 = vweird.f32 %v2719_v46 }
 0x256   : > { %v955_v28 = vsub.f32 1.5, %v954_v18  ;;  %v656_v53 = vmul.f32 %v602_v16, %v2151_v60  ;;  %v447_v50 = vpop.xlane.xlu0 %446 }
 0x257   : > { %v795_v4 = vsub.f32 1.5, %v794_v39  ;;  %v502_v34 = vmul.f32 %v2151_v60, %v447_v50  ;;  %v1109_v29 = vadd.f32 %v2392_v3, %v1073_v36 }
 0x258   : > { %v956_v56 = vmul.f32 %v2695_v57, %v955_v28  ;;  %v2754_v37 = vadd.f32 1e-05, %v656_v53  ;;  %1258 = vmatmul.f32.gmra.mxu2 %v1126_v44 }
 0x259   : > { %v1859_v8 = vpop.eup %1858  ;;  %v796_v35 = vmul.f32 %v2703_v2, %v795_v4  ;;  %v2763_v20 = vsub.f32 %v2228_v52, %v502_v34  ;;  %1207 = vmatmul.f32.gmra.mxu0 %v1109_v29  ;;  %1320 = vmatmul.f32.gmra.mxu1 %v1109_v29  ;;  %v1074_v52 = vmul.f32 %v2383_v1, %v1038_v48 }
 0x25a   : > { %v962_v61 = vmul.f32 %v1859_v8, %v2719_v46  ;;  %1860 = vrsqrt.f32 %v2754_v37  ;;  %1371 = vmatmul.f32.gmra.mxu3 %v1126_v44  ;;  %v960_v42 = vsel %vm2756_vm4, %v2695_v57, %v956_v56  ;;  %vm968_vm7 = vweird.f32 %v1859_v8 }
 0x25b   : > { %v1241_v62 = vpop.f32.mrf.mxu2  ;;  %v1354_v27 = vpop.f32.mrf.mxu3  ;;  %v566_v10 = vmul.f32 %v2763_v20, %v2763_v20  ;;  %v800_v9 = vsel %vm2765_vm6, %v2703_v2, %v796_v35  ;;  %v1055_v26 = vmul.f32 %v960_v42, %v2402_v30  ;;  %v1110_v51 = vadd.f32 %v2392_v3, %v1074_v52  ;;  %vm969_vm9 = vmor %vm967_vm8, %vm968_vm7 }
 0x25c   : > { %v963_v7 = vmul.f32 %v1859_v8, %v962_v61  ;;  %v1242_v15 = vadd.f32 %v1241_v62, %v2671_v12  ;;  %v1355_v25 = vadd.f32 %v1354_v27, %v2673_v63  ;;  %v1039_v47 = vmul.f32 %v800_v9, %v2407_v43 }
 0x25d   : > { %613 = vadd.xlane.f32.xlu0 %v566_v10  ;;  %v636_v17 = vpop.xlane.xlu1 %635  ;;  %v1091_v2 = vmul.f32 %v2383_v1, %v1055_v26  ;;  %vm807_vm11 = vweird.f32 %v2754_v37 }
 0x25e   : > { %v964_v59 = vmul.f32 0.5, %v963_v7  ;;  %v1497_v40 = vmul.f32 %v1433_v45, %v1242_v15  ;;  %v1498_v32 = vmul.f32 %v1434_v55, %v1355_v25  ;;  %v673_v57 = vmul.f32 %v636_v17, %v2151_v60 }
 0x25f   : > { %v1127_v23 = vadd.f32 %v2392_v3, %v1091_v2  ;;  %v1075_v43 = vmul.f32 %v2383_v1, %v1039_v47 }
 0x260   : > { %v1861_v0 = vpop.eup %1860  ;;  %v965_v49 = vsub.f32 1.5, %v964_v59  ;;  %1561 = vst [vmem:[%s2710_s13 + $0x110] sm:$0xff] %v1497_v40  ;;  %v705_v18 = vadd.f32 1e-05, %v673_v57  ;;  %v2810_v59 = vld [vmem:[%s3174_s2] ss:$0 sm:$0xff] }
 0x261   : > { %v802_v30 = vmul.f32 %v1861_v0, %v2754_v37  ;;  %1562 = vst [vmem:[%s2710_s13 + $0x118] sm:$0xff] %v1498_v32  ;;  %1210 = vmatmul.f32.gmra.mxu0 %v1110_v51  ;;  %1323 = vmatmul.f32.gmra.mxu1 %v1110_v51  ;;  %vm808_vm10 = vweird.f32 %v1861_v0  ;;  %v1111_v4 = vadd.f32 %v2392_v3, %v1075_v43  ;;  %v2816_v57 = vld [vmem:[%s3175_s3] ss:$0 sm:$0xff] }
 0x262   : > { %v966_v39 = vmul.f32 %v1859_v8, %v965_v49  ;;  %1862 = vrsqrt.f32 %v705_v18  ;;  %1261 = vmatmul.f32.gmra.mxu2 %v1127_v23  ;;  %1374 = vmatmul.f32.gmra.mxu3 %v1127_v23  ;;  %vm809_vm12 = vmor %vm807_vm11, %vm808_vm10  ;;  %vm977_vm14 = vweird.f32 %v705_v18 }
 0x263   : > { %v803_v16 = vmul.f32 %v1861_v0, %v802_v30 }
 0x264   : > { %v970_v36 = vsel %vm969_vm9, %v1859_v8, %v966_v39 }
 0x265   : > { %v804_v44 = vmul.f32 0.5, %v803_v16  ;;  %v604_v28 = vpop.xlane.xlu2 %603  ;;  %v1056_v53 = vmul.f32 %v970_v36, %v2418_v58 }
 0x266   : > { %v657_v50 = vmul.f32 %v604_v28, %v2151_v60 }
 0x267   : > { %v805_v48 = vsub.f32 1.5, %v804_v44  ;;  %v1092_v46 = vmul.f32 %v2383_v1, %v1056_v53 }
 0x268   : > { %v1863_v34 = vpop.eup %1862  ;;  %v689_v29 = vadd.f32 1e-05, %v657_v50 }
 0x269   : > { %v806_v56 = vmul.f32 %v1861_v0, %v805_v48  ;;  %v972_v5 = vmul.f32 %v1863_v34, %v705_v18  ;;  %1213 = vmatmul.f32.gmra.mxu0 %v1111_v4  ;;  %1326 = vmatmul.f32.gmra.mxu1 %v1111_v4  ;;  %v1128_v8 = vadd.f32 %v2392_v3, %v1092_v46  ;;  %vm978_vm13 = vweird.f32 %v1863_v34 }
 0x26a   : > { %1864 = vrsqrt.f32 %v689_v29  ;;  %vm979_vm15 = vmor %vm977_vm14, %vm978_vm13  ;;  %vm817_vm1 = vweird.f32 %v689_v29 }
 0x26b   : > { %v973_v58 = vmul.f32 %v1863_v34, %v972_v5  ;;  %1264 = vmatmul.f32.gmra.mxu2 %v1128_v8  ;;  %1377 = vmatmul.f32.gmra.mxu3 %v1128_v8  ;;  %v810_v35 = vsel %vm809_vm12, %v1861_v0, %v806_v56 }
 0x26c   : > { %v1040_v11 = vmul.f32 %v810_v35, %v2427_v6  ;;  %v1401_v35 = vld [vmem:[%s2665_s8 + $0x10] sm:$0xff] }
 0x26d   : > { %v974_v61 = vmul.f32 0.5, %v973_v58  ;;  %v638_v62 = vpop.xlane.xlu0 %637  ;;  %v640_v45 = vpop.xlane.xlu2 %639 }
 0x26e   : > { %v674_v27 = vmul.f32 %v638_v62, %v2151_v60  ;;  %v675_v37 = vmul.f32 %v640_v45, %v2151_v60  ;;  %v1076_v55 = vmul.f32 %v2383_v1, %v1040_v11 }
 0x26f   : > { %v975_v10 = vsub.f32 1.5, %v974_v61  ;;  %v1402_v61 = vld [vmem:[%s2665_s8 + $0x18] sm:$0xff] }
 0x270   : > { %v1865_v52 = vpop.eup %1864  ;;  %v706_v42 = vadd.f32 1e-05, %v674_v27  ;;  %v707_v9 = vadd.f32 1e-05, %v675_v37  ;;  %v1112_v7 = vadd.f32 %v2392_v3, %v1076_v55 }
 0x271   : > { %v976_v15 = vmul.f32 %v1863_v34, %v975_v10  ;;  %v812_v25 = vmul.f32 %v1865_v52, %v689_v29  ;;  %vm818_vm0 = vweird.f32 %v1865_v52 }
 0x272   : > { %1866 = vrsqrt.f32 %v706_v42  ;;  %1216 = vmatmul.f32.gmra.mxu0 %v1112_v7  ;;  %1329 = vmatmul.f32.gmra.mxu1 %v1112_v7  ;;  %vm819_vm2 = vmor %vm817_vm1, %vm818_vm0  ;;  %vm987_vm4 = vweird.f32 %v706_v42  ;;  %vm997_vm7 = vweird.f32 %v707_v9 }
 0x273   : > { %v813_v6 = vmul.f32 %v1865_v52, %v812_v25  ;;  %1868 = vrsqrt.f32 %v707_v9  ;;  %v980_v26 = vsel %vm979_vm15, %v1863_v34, %v976_v15  ;;  %v1436_v15 = vld [vmem:[%s2665_s8 + $0x128] sm:$0xff] }
 0x274   : > { %v1057_v17 = vmul.f32 %v980_v26, %v2434_v14 }
 0x275   : > { %v814_v1 = vmul.f32 0.5, %v813_v6  ;;  %v608_v8 = vpop.xlane.xlu0 %607 }
 0x276   : > { %v1093_v3 = vmul.f32 %v2810_v59, %v1057_v17  ;;  %v1403_v17 = vld [vmem:[%s2665_s8 + $0x20] sm:$0xff] }
 0x277   : > { %v815_v40 = vsub.f32 1.5, %v814_v1 }
 0x278   : > { %v1867_v32 = vpop.eup %1866  ;;  %v1129_v51 = vadd.f32 %v2816_v57, %v1093_v3  ;;  %v1404_v3 = vld [vmem:[%s2665_s8 + $0x28] sm:$0xff] }
 0x279   : > { %v1869_v2 = vpop.eup %1868  ;;  %v816_v14 = vmul.f32 %v1865_v52, %v815_v40  ;;  %v982_v47 = vmul.f32 %v1867_v32, %v706_v42  ;;  %vm988_vm3 = vweird.f32 %v1867_v32 }
 0x27a   : > { %v992_v0 = vmul.f32 %v1869_v2, %v707_v9  ;;  %1267 = vmatmul.f32.gmra.mxu2 %v1129_v51  ;;  %1380 = vmatmul.f32.gmra.mxu3 %v1129_v51  ;;  %vm998_vm5 = vweird.f32 %v1869_v2  ;;  %vm989_vm6 = vmor %vm987_vm4, %vm988_vm3  ;;  %v1435_v9 = vld [vmem:[%s2665_s8 + $0x120] sm:$0xff] }
 0x27b   : > { %v983_v49 = vmul.f32 %v1867_v32, %v982_v47  ;;  %v820_v18 = vsel %vm819_vm2, %v1865_v52, %v816_v14  ;;  %vm999_vm8 = vmor %vm997_vm7, %vm998_vm5 }
 0x27c   : > { %v993_v30 = vmul.f32 %v1869_v2, %v992_v0  ;;  %v1041_v23 = vmul.f32 %v820_v18, %v2440_v21 }
 0x27d   : > { %v984_v39 = vmul.f32 0.5, %v983_v49 }
 0x27e   : > { %v994_v16 = vmul.f32 0.5, %v993_v30  ;;  %v1077_v43 = vmul.f32 %v2810_v59, %v1041_v23 }
 0x27f   : > { %v985_v36 = vsub.f32 1.5, %v984_v39 }
 0x280   : > { %v995_v44 = vsub.f32 1.5, %v994_v16  ;;  %v1113_v28 = vadd.f32 %v2816_v57, %v1077_v43 }
 0x281   : > { %v986_v53 = vmul.f32 %v1867_v32, %v985_v36 }
 0x282   : > { %v996_v50 = vmul.f32 %v1869_v2, %v995_v44  ;;  %1219 = vmatmul.f32.gmra.mxu0 %v1113_v28  ;;  %1332 = vmatmul.f32.gmra.mxu1 %v1113_v28 }
 0x283   : > { %v990_v48 = vsel %vm989_vm6, %v1867_v32, %v986_v53 }
 0x284   : > { %v1058_v21 = vmul.f32 %v990_v48, %v2450_v33  ;;  %v1000_v4 = vsel %vm999_vm8, %v1869_v2, %v996_v50  ;;  %v659_v33 = vmul.f32 %v608_v8, %v2151_v60 }
 0x285   : > { %v1059_v29 = vmul.f32 %v1000_v4, %v2446_v24  ;;  %v1437_v4 = vld [vmem:[%s2665_s8 + $0x130] sm:$0xff] }
 0x286   : > { %v1094_v46 = vmul.f32 %v2810_v59, %v1058_v21  ;;  %v2833_v45 = vadd.f32 1e-05, %v659_v33  ;;  %v610_v55 = vpop.xlane.xlu2 %609 }
 0x287   : > { %v1095_v56 = vmul.f32 %v2810_v59, %v1059_v29  ;;  %v660_v10 = vmul.f32 %v610_v55, %v2151_v60 }
 0x288   : > { %v1130_v34 = vadd.f32 %v2816_v57, %v1094_v46  ;;  %1870 = vrsqrt.f32 %v2833_v45  ;;  %vm837_vm12 = vweird.f32 %v2833_v45 }
 0x289   : > { %v1131_v5 = vadd.f32 %v2816_v57, %v1095_v56  ;;  %v2839_v52 = vadd.f32 1e-05, %v660_v10 }
 0x28a   : > { %1270 = vmatmul.f32.gmra.mxu2 %v1130_v34  ;;  %1383 = vmatmul.f32.gmra.mxu3 %v1130_v34  ;;  %v1438_v34 = vld [vmem:[%s2665_s8 + $0x138] sm:$0xff] }
 0x28b   : > { %1872 = vrsqrt.f32 %v2839_v52  ;;  %vm847_vm2 = vweird.f32 %v2839_v52 }
 0x28e   : > { %v2847_v40 = vpop.eup %1870 }
 0x28f   : > { %v832_v30 = vmul.f32 %v2847_v40, %v2833_v45  ;;  %vm838_vm10 = vweird.f32 %v2847_v40 }
 0x290   : > { %vm2889_vm14 = vmor %vm837_vm12, %vm838_vm10 }
 0x291   : > { %v833_v39 = vmul.f32 %v2847_v40, %v832_v30  ;;  %v2860_v16 = vpop.eup %1872 }
 0x292   : > { %1273 = vmatmul.f32.gmra.mxu2 %v1131_v5  ;;  %1386 = vmatmul.f32.gmra.mxu3 %v1131_v5  ;;  %v842_v53 = vmul.f32 %v2860_v16, %v2839_v52  ;;  %vm848_vm0 = vweird.f32 %v2860_v16 }
 0x293   : > { %v834_v28 = vmul.f32 0.5, %v833_v39  ;;  %v1408_v39 = vld [vmem:[%s2665_s8 + $0x48] sm:$0xff]  ;;  %vm2922_vm4 = vmor %vm847_vm2, %vm848_vm0 }
 0x294   : > { %v843_v33 = vmul.f32 %v2860_v16, %v842_v53 }
 0x295   : > { %v1193_v58 = vpop.f32.mrf.mxu0  ;;  %v1306_v11 = vpop.f32.mrf.mxu1  ;;  %v835_v8 = vsub.f32 1.5, %v834_v28 }
 0x296   : > { %v1194_v24 = vadd.f32 %v1193_v58, %v2671_v12  ;;  %v1307_v62 = vadd.f32 %v1306_v11, %v2673_v63 }
 0x298   : > { %v1465_v27 = vmul.f32 %v1401_v35, %v1194_v24  ;;  %v1466_v37 = vmul.f32 %v1402_v61, %v1307_v62  ;;  %v1405_v35 = vld [vmem:[%s2665_s8 + $0x30] sm:$0xff] }
 0x29a   : > { %1529 = vst [vmem:[%s2710_s13 + $0x10] sm:$0xff] %v1465_v27 }
 0x29b   : > { %1530 = vst [vmem:[%s2710_s13 + $0x18] sm:$0xff] %v1466_v37  ;;  %v1406_v37 = vld [vmem:[%s2665_s8 + $0x38] sm:$0xff] }
 0x2a3   : > { %v1244_v42 = vpop.f32.mrf.mxu2  ;;  %v1357_v7 = vpop.f32.mrf.mxu3 }
 0x2a4   : > { %v1245_v25 = vadd.f32 %v1244_v42, %v2671_v12  ;;  %v1358_v6 = vadd.f32 %v1357_v7, %v2673_v63 }
 0x2a5   : > { %v1196_v26 = vpop.f32.mrf.mxu0  ;;  %v1309_v1 = vpop.f32.mrf.mxu1 }
 0x2a6   : > { %v1197_v32 = vadd.f32 %v1196_v26, %v2671_v12  ;;  %v1310_v51 = vadd.f32 %v1309_v1, %v2673_v63  ;;  %v606_v2 = vpop.xlane.xlu1 %605  ;;  %v1499_v14 = vmul.f32 %v1435_v9, %v1245_v25  ;;  %v1500_v47 = vmul.f32 %v1436_v15, %v1358_v6 }
 0x2a7   : > { %v658_v0 = vmul.f32 %v606_v2, %v2151_v60  ;;  %v836_v25 = vmul.f32 %v2847_v40, %v835_v8  ;;  %v844_v6 = vmul.f32 0.5, %v843_v33 }
 0x2a8   : > { %v1467_v49 = vmul.f32 %v1403_v17, %v1197_v32  ;;  %v1468_v18 = vmul.f32 %v1404_v3, %v1310_v51  ;;  %1563 = vst [vmem:[%s2710_s13 + $0x120] sm:$0xff] %v1499_v14 }
 0x2a9   : > { %v690_v23 = vadd.f32 1e-05, %v658_v0  ;;  %1564 = vst [vmem:[%s2710_s13 + $0x128] sm:$0xff] %v1500_v47  ;;  %v845_v14 = vsub.f32 1.5, %v844_v6  ;;  %v1407_v0 = vld [vmem:[%s2665_s8 + $0x40] sm:$0xff]  ;;  %v840_v45 = vsel %vm2889_vm14, %v2847_v40, %v836_v25 }
 0x2aa   : > { %1531 = vst [vmem:[%s2710_s13 + $0x20] sm:$0xff] %v1467_v49 }
 0x2ab   : > { %1874 = vrsqrt.f32 %v690_v23  ;;  %1532 = vst [vmem:[%s2710_s13 + $0x28] sm:$0xff] %v1468_v18  ;;  %vm827_vm11 = vweird.f32 %v690_v23  ;;  %v846_v53 = vmul.f32 %v2860_v16, %v845_v14 }
 0x2ae   : > { %v642_v43 = vpop.xlane.xlu1 %641 }
 0x2af   : > { %v676_v36 = vmul.f32 %v642_v43, %v2151_v60 }
 0x2b1   : > { %v1875_v44 = vpop.eup %1874  ;;  %v2865_v50 = vadd.f32 1e-05, %v676_v36 }
 0x2b2   : > { %v822_v48 = vmul.f32 %v1875_v44, %v690_v23  ;;  %vm828_vm9 = vweird.f32 %v1875_v44 }
 0x2b3   : > { %1876 = vrsqrt.f32 %v2865_v50  ;;  %v1247_v21 = vpop.f32.mrf.mxu2  ;;  %v1360_v46 = vpop.f32.mrf.mxu3  ;;  %vm829_vm13 = vmor %vm827_vm11, %vm828_vm9  ;;  %vm1007_vm1 = vweird.f32 %v2865_v50 }
 0x2b4   : > { %v823_v29 = vmul.f32 %v1875_v44, %v822_v48  ;;  %v1248_v56 = vadd.f32 %v1247_v21, %v2671_v12  ;;  %v1361_v5 = vadd.f32 %v1360_v46, %v2673_v63 }
 0x2b5   : > { %v1199_v58 = vpop.f32.mrf.mxu0  ;;  %v1312_v11 = vpop.f32.mrf.mxu1 }
 0x2b6   : > { %v824_v61 = vmul.f32 0.5, %v823_v29  ;;  %v1501_v24 = vmul.f32 %v1437_v4, %v1248_v56  ;;  %v1502_v62 = vmul.f32 %v1438_v34, %v1361_v5  ;;  %v1200_v27 = vadd.f32 %v1199_v58, %v2671_v12  ;;  %v1439_v29 = vld [vmem:[%s2665_s8 + $0x140] sm:$0xff]  ;;  %v1440_v5 = vld [vmem:[%s2665_s8 + $0x148] sm:$0xff] }
 0x2b7   : > { %v1313_v55 = vadd.f32 %v1312_v11, %v2673_v63  ;;  %v644_v10 = vpop.xlane.xlu0 %643 }
 0x2b8   : > { %v825_v42 = vsub.f32 1.5, %v824_v61  ;;  %1565 = vst [vmem:[%s2710_s13 + $0x130] sm:$0xff] %v1501_v24  ;;  %v1469_v9 = vmul.f32 %v1405_v35, %v1200_v27  ;;  %v677_v7 = vmul.f32 %v644_v10, %v2151_v60  ;;  %v1409_v61 = vld [vmem:[%s2665_s8 + $0x50] sm:$0xff]  ;;  %v1410_v10 = vld [vmem:[%s2665_s8 + $0x58] sm:$0xff] }
 0x2b9   : > { %v1877_v15 = vpop.eup %1876  ;;  %1566 = vst [vmem:[%s2710_s13 + $0x138] sm:$0xff] %v1502_v62  ;;  %v1470_v26 = vmul.f32 %v1406_v37, %v1313_v55  ;;  %v850_v62 = vsel %vm2922_vm4, %v2860_v16, %v846_v53 }
 0x2ba   : > { %v826_v17 = vmul.f32 %v1875_v44, %v825_v42  ;;  %v1002_v1 = vmul.f32 %v1877_v15, %v2865_v50  ;;  %1533 = vst [vmem:[%s2710_s13 + $0x30] sm:$0xff] %v1469_v9  ;;  %v2884_v3 = vadd.f32 1e-05, %v677_v7  ;;  %vm1008_vm15 = vweird.f32 %v1877_v15 }
 0x2bb   : > { %1534 = vst [vmem:[%s2710_s13 + $0x38] sm:$0xff] %v1470_v26  ;;  %vm2912_vm3 = vmor %vm1007_vm1, %vm1008_vm15  ;;  %v1044_v26 = vmul.f32 %v850_v62, %v2470_v38 }
 0x2bc   : > { %v1003_v51 = vmul.f32 %v1877_v15, %v1002_v1  ;;  %1878 = vrsqrt.f32 %v2884_v3  ;;  %v830_v2 = vsel %vm829_vm13, %v1875_v44, %v826_v17  ;;  %vm1017_vm6 = vweird.f32 %v2884_v3 }
 0x2bd   : > { %v1202_v47 = vpop.f32.mrf.mxu0  ;;  %v1042_v49 = vmul.f32 %v830_v2, %v2542_v13  ;;  %v1043_v13 = vmul.f32 %v840_v45, %v2458_v54 }
 0x2be   : > { %v1004_v18 = vmul.f32 0.5, %v1003_v51  ;;  %v1203_v30 = vadd.f32 %v1202_v47, %v2671_v12  ;;  %v1315_v23 = vpop.f32.mrf.mxu1 }
 0x2bf   : > { %v1316_v43 = vadd.f32 %v1315_v23, %v2673_v63  ;;  %v1078_v36 = vmul.f32 %v2810_v59, %v1042_v49  ;;  %v1079_v8 = vmul.f32 %v2810_v59, %v1043_v13  ;;  %v1080_v23 = vmul.f32 %v2810_v59, %v1044_v26 }
 0x2c0   : > { %v1005_v44 = vsub.f32 1.5, %v1004_v18  ;;  %v1471_v28 = vmul.f32 %v1407_v0, %v1203_v30  ;;  %v1441_v0 = vld [vmem:[%s2665_s8 + $0x150] sm:$0xff] }
 0x2c1   : > { %v1472_v40 = vmul.f32 %v1408_v39, %v1316_v43  ;;  %v1114_v48 = vadd.f32 %v2816_v57, %v1078_v36  ;;  %v1115_v16 = vadd.f32 %v2816_v57, %v1079_v8 }
 0x2c2   : > { %v2907_v21 = vpop.eup %1878  ;;  %v1006_v4 = vmul.f32 %v1877_v15, %v1005_v44  ;;  %1535 = vst [vmem:[%s2710_s13 + $0x40] sm:$0xff] %v1471_v28 }
 0x2c3   : > { %v1012_v54 = vmul.f32 %v2907_v21, %v2884_v3  ;;  %1536 = vst [vmem:[%s2710_s13 + $0x48] sm:$0xff] %v1472_v40  ;;  %1222 = vmatmul.f32.gmra.mxu0 %v1114_v48  ;;  %1335 = vmatmul.f32.gmra.mxu1 %v1114_v48  ;;  %v1250_v34 = vpop.f32.mrf.mxu2  ;;  %vm1018_vm5 = vweird.f32 %v2907_v21  ;;  %v1442_v3 = vld [vmem:[%s2665_s8 + $0x158] sm:$0xff]  ;;  %v1116_v40 = vadd.f32 %v2816_v57, %v1080_v23 }
 0x2c4   : > { %v1251_v52 = vadd.f32 %v1250_v34, %v2671_v12  ;;  %v1363_v56 = vpop.f32.mrf.mxu3  ;;  %v1010_v33 = vsel %vm2912_vm3, %v1877_v15, %v1006_v4  ;;  %vm1019_vm7 = vmor %vm1017_vm6, %vm1018_vm5 }
 0x2c5   : > { %v1013_v58 = vmul.f32 %v2907_v21, %v1012_v54  ;;  %v1364_v35 = vadd.f32 %v1363_v56, %v2673_v63  ;;  %v1205_v11 = vpop.f32.mrf.mxu0  ;;  %v1060_v24 = vmul.f32 %v1010_v33, %v2571_v41  ;;  %v1443_v54 = vld [vmem:[%s2665_s8 + $0x160] sm:$0xff]  ;;  %v1444_v56 = vld [vmem:[%s2665_s8 + $0x168] sm:$0xff] }
 0x2c6   : > { %v1503_v27 = vmul.f32 %v1439_v29, %v1251_v52  ;;  %v1206_v37 = vadd.f32 %v1205_v11, %v2671_v12  ;;  %v1318_v55 = vpop.f32.mrf.mxu1  ;;  %v1412_v11 = vld [vmem:[%s2665_s8 + $0x68] sm:$0xff] }
 0x2c7   : > { %v1014_v42 = vmul.f32 0.5, %v1013_v58  ;;  %v1504_v9 = vmul.f32 %v1440_v5, %v1364_v35  ;;  %v1319_v7 = vadd.f32 %v1318_v55, %v2673_v63  ;;  %v612_v15 = vpop.xlane.xlu1 %611  ;;  %v1096_v25 = vmul.f32 %v2810_v59, %v1060_v24  ;;  %v1411_v58 = vld [vmem:[%s2665_s8 + $0x60] sm:$0xff] }
 0x2c8   : > { %1567 = vst [vmem:[%s2710_s13 + $0x140] sm:$0xff] %v1503_v27  ;;  %v1473_v41 = vmul.f32 %v1409_v61, %v1206_v37  ;;  %v661_v6 = vmul.f32 %v612_v15, %v2151_v60  ;;  %v646_v32 = vpop.xlane.xlu2 %645 }
 0x2c9   : > { %v1015_v17 = vsub.f32 1.5, %v1014_v42  ;;  %1568 = vst [vmem:[%s2710_s13 + $0x148] sm:$0xff] %v1504_v9  ;;  %v1474_v1 = vmul.f32 %v1410_v10, %v1319_v7  ;;  %v1132_v51 = vadd.f32 %v2816_v57, %v1096_v25  ;;  %v678_v14 = vmul.f32 %v646_v32, %v2151_v60 }
 0x2ca   : > { %1537 = vst [vmem:[%s2710_s13 + $0x50] sm:$0xff] %v1473_v41  ;;  %v2950_v2 = vadd.f32 1e-05, %v661_v6  ;;  %v1445_v6 = vld [vmem:[%s2665_s8 + $0x170] sm:$0xff] }
 0x2cb   : > { %v1016_v47 = vmul.f32 %v2907_v21, %v1015_v17  ;;  %1538 = vst [vmem:[%s2710_s13 + $0x58] sm:$0xff] %v1474_v1  ;;  %1225 = vmatmul.f32.gmra.mxu0 %v1115_v16  ;;  %1276 = vmatmul.f32.gmra.mxu2 %v1132_v51  ;;  %v1253_v38 = vpop.f32.mrf.mxu2  ;;  %v2960_v49 = vadd.f32 1e-05, %v678_v14  ;;  %v1452_v14 = vld [vmem:[%s2665_s8 + $0x1a8] sm:$0xff] }
 0x2cc   : > { %1880 = vrsqrt.f32 %v2950_v2  ;;  %1338 = vmatmul.f32.gmra.mxu1 %v1115_v16  ;;  %1389 = vmatmul.f32.gmra.mxu3 %v1132_v51  ;;  %v1254_v45 = vadd.f32 %v1253_v38, %v2671_v12  ;;  %v1366_v18 = vpop.f32.mrf.mxu3  ;;  %vm857_vm9 = vweird.f32 %v2950_v2  ;;  %v1446_v51 = vld [vmem:[%s2665_s8 + $0x178] sm:$0xff] }
 0x2cd   : > { %v1367_v30 = vadd.f32 %v1366_v18, %v2673_v63  ;;  %v1020_v39 = vsel %vm1019_vm7, %v2907_v21, %v1016_v47  ;;  %1882 = vrsqrt.f32 %v2960_v49  ;;  %vm1027_vm12 = vweird.f32 %v2960_v49  ;;  %v1413_v18 = vld [vmem:[%s2665_s8 + $0x70] sm:$0xff] }
 0x2ce   : > { %v1505_v43 = vmul.f32 %v1441_v0, %v1254_v45  ;;  %v1061_v36 = vmul.f32 %v1020_v39, %v2625_v19 }
 0x2cf   : > { %v1506_v44 = vmul.f32 %v1442_v3, %v1367_v30 }
 0x2d0   : > { %1569 = vst [vmem:[%s2710_s13 + $0x150] sm:$0xff] %v1505_v43  ;;  %v614_v28 = vpop.xlane.xlu0 %613  ;;  %v1097_v13 = vmul.f32 %v2810_v59, %v1061_v36 }
 0x2d1   : > { %1570 = vst [vmem:[%s2710_s13 + $0x158] sm:$0xff] %v1506_v44  ;;  %v662_v53 = vmul.f32 %v614_v28, %v2151_v60 }
 0x2d2   : > { %v1881_v48 = vpop.eup %1880  ;;  %v1133_v21 = vadd.f32 %v2816_v57, %v1097_v13 }
 0x2d3   : > { %v852_v4 = vmul.f32 %v1881_v48, %v2950_v2  ;;  %v2976_v46 = vadd.f32 1e-05, %v662_v53  ;;  %1228 = vmatmul.f32.gmra.mxu0 %v1116_v40  ;;  %v1256_v19 = vpop.f32.mrf.mxu2  ;;  %v1883_v34 = vpop.eup %1882  ;;  %vm858_vm8 = vweird.f32 %v1881_v48 }
 0x2d4   : > { %1341 = vmatmul.f32.gmra.mxu1 %v1116_v40  ;;  %v1257_v29 = vadd.f32 %v1256_v19, %v2671_v12  ;;  %v1369_v60 = vpop.f32.mrf.mxu3  ;;  %1279 = vmatmul.f32.gmra.mxu2 %v1133_v21  ;;  %v1022_v52 = vmul.f32 %v1883_v34, %v2960_v49  ;;  %vm1028_vm10 = vweird.f32 %v1883_v34  ;;  %vm2996_vm11 = vmor %vm857_vm9, %vm858_vm8  ;;  %v1414_v49 = vld [vmem:[%s2665_s8 + $0x78] sm:$0xff] }
 0x2d5   : > { %v853_v50 = vmul.f32 %v1881_v48, %v852_v4  ;;  %1884 = vrsqrt.f32 %v2976_v46  ;;  %1392 = vmatmul.f32.gmra.mxu3 %v1133_v21  ;;  %v1370_v8 = vadd.f32 %v1369_v60, %v2673_v63  ;;  %vm3008_vm13 = vmor %vm1027_vm12, %vm1028_vm10  ;;  %vm867_vm15 = vweird.f32 %v2976_v46 }
 0x2d6   : > { %v1507_v5 = vmul.f32 %v1443_v54, %v1257_v29  ;;  %v1208_v33 = vpop.f32.mrf.mxu0  ;;  %v1321_v35 = vpop.f32.mrf.mxu1  ;;  %v1023_v24 = vmul.f32 %v1883_v34, %v1022_v52  ;;  %v1447_v54 = vld [vmem:[%s2665_s8 + $0x180] sm:$0xff]  ;;  %v1448_v29 = vld [vmem:[%s2665_s8 + $0x188] sm:$0xff] }
 0x2d7   : > { %v854_v61 = vmul.f32 0.5, %v853_v50  ;;  %v1209_v62 = vadd.f32 %v1208_v33, %v2671_v12  ;;  %v1322_v27 = vadd.f32 %v1321_v35, %v2673_v63  ;;  %v1508_v37 = vmul.f32 %v1444_v56, %v1370_v8  ;;  %v1415_v56 = vld [vmem:[%s2665_s8 + $0x80] sm:$0xff]  ;;  %v1416_v8 = vld [vmem:[%s2665_s8 + $0x88] sm:$0xff] }
 0x2d8   : > { %1571 = vst [vmem:[%s2710_s13 + $0x160] sm:$0xff] %v1507_v5  ;;  %v1024_v10 = vmul.f32 0.5, %v1023_v24 }
 0x2d9   : > { %v855_v55 = vsub.f32 1.5, %v854_v61  ;;  %v1475_v42 = vmul.f32 %v1411_v58, %v1209_v62  ;;  %v1476_v9 = vmul.f32 %v1412_v11, %v1322_v27  ;;  %1572 = vst [vmem:[%s2710_s13 + $0x168] sm:$0xff] %v1508_v37 }
 0x2da   : > { %v1025_v25 = vsub.f32 1.5, %v1024_v10 }
 0x2db   : > { %v2990_v7 = vpop.eup %1884  ;;  %v856_v15 = vmul.f32 %v1881_v48, %v855_v55  ;;  %1539 = vst [vmem:[%s2710_s13 + $0x60] sm:$0xff] %v1475_v42  ;;  %v1259_v41 = vpop.f32.mrf.mxu2  ;;  %v1449_v55 = vld [vmem:[%s2665_s8 + $0x190] sm:$0xff]  ;;  %v1450_v42 = vld [vmem:[%s2665_s8 + $0x198] sm:$0xff] }
 0x2dc   : > { %v862_v26 = vmul.f32 %v2990_v7, %v2976_v46  ;;  %1540 = vst [vmem:[%s2710_s13 + $0x68] sm:$0xff] %v1476_v9  ;;  %v1260_v17 = vadd.f32 %v1259_v41, %v2671_v12  ;;  %v1026_v1 = vmul.f32 %v1883_v34, %v1025_v25  ;;  %vm868_vm14 = vweird.f32 %v2990_v7  ;;  %v1418_v25 = vld [vmem:[%s2665_s8 + $0x98] sm:$0xff] }
 0x2dd   : > { %v1372_v32 = vpop.f32.mrf.mxu3  ;;  %v860_v2 = vsel %vm2996_vm11, %v1881_v48, %v856_v15  ;;  %vm869_vm0 = vmor %vm867_vm15, %vm868_vm14 }
 0x2de   : > { %v863_v47 = vmul.f32 %v2990_v7, %v862_v26  ;;  %v1509_v38 = vmul.f32 %v1445_v6, %v1260_v17  ;;  %v1373_v0 = vadd.f32 %v1372_v32, %v2673_v63  ;;  %v1211_v45 = vpop.f32.mrf.mxu0  ;;  %v1324_v3 = vpop.f32.mrf.mxu1  ;;  %v1045_v30 = vmul.f32 %v860_v2, %v2698_v31 }
 0x2df   : > { %v1212_v23 = vadd.f32 %v1211_v45, %v2671_v12  ;;  %v1325_v39 = vadd.f32 %v1324_v3, %v2673_v63  ;;  %v1030_v43 = vsel %vm3008_vm13, %v1883_v34, %v1026_v1  ;;  %v1419_v45 = vld [vmem:[%s2665_s8 + $0xa0] sm:$0xff]  ;;  %v1420_v3 = vld [vmem:[%s2665_s8 + $0xa8] sm:$0xff] }
 0x2e0   : > { %v864_v36 = vmul.f32 0.5, %v863_v47  ;;  %1573 = vst [vmem:[%s2710_s13 + $0x170] sm:$0xff] %v1509_v38  ;;  %v1510_v44 = vmul.f32 %v1446_v51, %v1373_v0  ;;  %v1081_v28 = vmul.f32 %v2810_v59, %v1045_v30  ;;  %v1062_v13 = vmul.f32 %v1030_v43, %v2730_v22  ;;  %v1451_v51 = vld [vmem:[%s2665_s8 + $0x1a0] sm:$0xff] }
 0x2e1   : > { %v1477_v53 = vmul.f32 %v1413_v18, %v1212_v23  ;;  %v1478_v40 = vmul.f32 %v1414_v49, %v1325_v39 }
 0x2e2   : > { %v865_v31 = vsub.f32 1.5, %v864_v36  ;;  %1574 = vst [vmem:[%s2710_s13 + $0x178] sm:$0xff] %v1510_v44  ;;  %v1117_v48 = vadd.f32 %v2816_v57, %v1081_v28  ;;  %v1098_v21 = vmul.f32 %v2810_v59, %v1062_v13  ;;  %v1453_v28 = vld [vmem:[%s2665_s8 + $0x1b0] sm:$0xff] }
 0x2e3   : > { %1541 = vst [vmem:[%s2710_s13 + $0x70] sm:$0xff] %v1477_v53  ;;  %v1454_v53 = vld [vmem:[%s2665_s8 + $0x1b8] sm:$0xff] }
 0x2e4   : > { %v866_v4 = vmul.f32 %v2990_v7, %v865_v31  ;;  %1542 = vst [vmem:[%s2710_s13 + $0x78] sm:$0xff] %v1478_v40  ;;  %1231 = vmatmul.f32.gmra.mxu0 %v1117_v48  ;;  %1344 = vmatmul.f32.gmra.mxu1 %v1117_v48  ;;  %v1134_v22 = vadd.f32 %v2816_v57, %v1098_v21 }
 0x2e5   : > { %v1262_v19 = vpop.f32.mrf.mxu2  ;;  %v1375_v34 = vpop.f32.mrf.mxu3 }
 0x2e6   : > { %1282 = vmatmul.f32.gmra.mxu2 %v1134_v22  ;;  %1395 = vmatmul.f32.gmra.mxu3 %v1134_v22  ;;  %v870_v60 = vsel %vm869_vm0, %v2990_v7, %v866_v4  ;;  %v1263_v50 = vadd.f32 %v1262_v19, %v2671_v12  ;;  %v1376_v46 = vadd.f32 %v1375_v34, %v2673_v63  ;;  %v1214_v52 = vpop.f32.mrf.mxu0  ;;  %v1327_v5 = vpop.f32.mrf.mxu1  ;;  %v1455_v22 = vld [vmem:[%s2665_s8 + $0x1c0] sm:$0xff] }
 0x2e7   : > { %v1046_v33 = vmul.f32 %v870_v60, %v2763_v20  ;;  %v1215_v58 = vadd.f32 %v1214_v52, %v2671_v12  ;;  %v1328_v35 = vadd.f32 %v1327_v5, %v2673_v63  ;;  %v1421_v52 = vld [vmem:[%s2665_s8 + $0xb0] sm:$0xff]  ;;  %v1422_v5 = vld [vmem:[%s2665_s8 + $0xb8] sm:$0xff] }
 0x2e8   : > { %v1511_v11 = vmul.f32 %v1447_v54, %v1263_v50  ;;  %v1512_v61 = vmul.f32 %v1448_v29, %v1376_v46  ;;  %v1456_v54 = vld [vmem:[%s2665_s8 + $0x1c8] sm:$0xff] }
 0x2e9   : > { %v1082_v24 = vmul.f32 %v2810_v59, %v1046_v33  ;;  %v1479_v62 = vmul.f32 %v1415_v56, %v1215_v58  ;;  %v1480_v27 = vmul.f32 %v1416_v8, %v1328_v35 }
 0x2ea   : > { %1575 = vst [vmem:[%s2710_s13 + $0x180] sm:$0xff] %v1511_v11 }
 0x2eb   : > { %v1118_v37 = vadd.f32 %v2816_v57, %v1082_v24  ;;  %1576 = vst [vmem:[%s2710_s13 + $0x188] sm:$0xff] %v1512_v61  ;;  %v1417_v57 = vld [vmem:[%s2665_s8 + $0x90] sm:$0xff]  ;;  %v1423_v61 = vld [vmem:[%s2665_s8 + $0xc0] sm:$0xff] }
 0x2ec   : > { %1543 = vst [vmem:[%s2710_s13 + $0x80] sm:$0xff] %v1479_v62 }
 0x2ed   : > { %1234 = vmatmul.f32.gmra.mxu0 %v1118_v37  ;;  %1347 = vmatmul.f32.gmra.mxu1 %v1118_v37  ;;  %1544 = vst [vmem:[%s2710_s13 + $0x88] sm:$0xff] %v1480_v27  ;;  %v1424_v27 = vld [vmem:[%s2665_s8 + $0xc8] sm:$0xff] }
 0x2ee   : > { %v1265_v20 = vpop.f32.mrf.mxu2  ;;  %v1378_v10 = vpop.f32.mrf.mxu3 }
 0x2ef   : > { %v1266_v59 = vadd.f32 %v1265_v20, %v2671_v12  ;;  %v1379_v9 = vadd.f32 %v1378_v10, %v2673_v63  ;;  %v1217_v7 = vpop.f32.mrf.mxu0  ;;  %v1330_v15 = vpop.f32.mrf.mxu1 }
 0x2f0   : > { %v1218_v41 = vadd.f32 %v1217_v7, %v2671_v12  ;;  %v1331_v6 = vadd.f32 %v1330_v15, %v2673_v63  ;;  %v1458_v7 = vld [vmem:[%s2665_s8 + $0x1d8] sm:$0xff] }
 0x2f1   : > { %v1513_v16 = vmul.f32 %v1449_v55, %v1266_v59  ;;  %v1514_v26 = vmul.f32 %v1450_v42, %v1379_v9  ;;  %v1457_v42 = vld [vmem:[%s2665_s8 + $0x1d0] sm:$0xff] }
 0x2f2   : > { %v1481_v17 = vmul.f32 %v1417_v57, %v1218_v41  ;;  %v1482_v1 = vmul.f32 %v1418_v25, %v1331_v6  ;;  %v1425_v25 = vld [vmem:[%s2665_s8 + $0xd0] sm:$0xff] }
 0x2f3   : > { %1577 = vst [vmem:[%s2710_s13 + $0x190] sm:$0xff] %v1513_v16 }
 0x2f4   : > { %1578 = vst [vmem:[%s2710_s13 + $0x198] sm:$0xff] %v1514_v26  ;;  %v1426_v26 = vld [vmem:[%s2665_s8 + $0xd8] sm:$0xff] }
 0x2f5   : > { %1545 = vst [vmem:[%s2710_s13 + $0x90] sm:$0xff] %v1481_v17 }
 0x2f6   : > { %1546 = vst [vmem:[%s2710_s13 + $0x98] sm:$0xff] %v1482_v1 }
 0x2fd   : > { %v1268_v32 = vpop.f32.mrf.mxu2  ;;  %v1381_v2 = vpop.f32.mrf.mxu3 }
 0x2fe   : > { %v1269_v47 = vadd.f32 %v1268_v32, %v2671_v12  ;;  %v1382_v38 = vadd.f32 %v1381_v2, %v2673_v63 }
 0x2ff   : > { %v1220_v0 = vpop.f32.mrf.mxu0  ;;  %v1333_v18 = vpop.f32.mrf.mxu1 }
 0x300   : > { %v1515_v49 = vmul.f32 %v1451_v51, %v1269_v47  ;;  %v1516_v30 = vmul.f32 %v1452_v14, %v1382_v38  ;;  %v1221_v23 = vadd.f32 %v1220_v0, %v2671_v12  ;;  %v1334_v39 = vadd.f32 %v1333_v18, %v2673_v63  ;;  %v1459_v14 = vld [vmem:[%s2665_s8 + $0x1e0] sm:$0xff]  ;;  %v1460_v0 = vld [vmem:[%s2665_s8 + $0x1e8] sm:$0xff] }
 0x302   : > { %1579 = vst [vmem:[%s2710_s13 + $0x1a0] sm:$0xff] %v1515_v49  ;;  %v1483_v43 = vmul.f32 %v1419_v45, %v1221_v23  ;;  %v1484_v36 = vmul.f32 %v1420_v3, %v1334_v39  ;;  %v1428_v39 = vld [vmem:[%s2665_s8 + $0xe8] sm:$0xff] }
 0x303   : > { %1580 = vst [vmem:[%s2710_s13 + $0x1a8] sm:$0xff] %v1516_v30  ;;  %v1427_v30 = vld [vmem:[%s2665_s8 + $0xe0] sm:$0xff] }
 0x304   : > { %1547 = vst [vmem:[%s2710_s13 + $0xa0] sm:$0xff] %v1483_v43 }
 0x305   : > { %1548 = vst [vmem:[%s2710_s13 + $0xa8] sm:$0xff] %v1484_v36 }
 0x30d   : > { %v1271_v44 = vpop.f32.mrf.mxu2  ;;  %v1384_v13 = vpop.f32.mrf.mxu3 }
 0x30e   : > { %v1272_v40 = vadd.f32 %v1271_v44, %v2671_v12  ;;  %v1385_v31 = vadd.f32 %v1384_v13, %v2673_v63 }
 0x310   : > { %v1517_v48 = vmul.f32 %v1453_v28, %v1272_v40  ;;  %v1518_v21 = vmul.f32 %v1454_v53, %v1385_v31  ;;  %v1461_v53 = vld [vmem:[%s2665_s8 + $0x1f0] sm:$0xff]  ;;  %v1462_v31 = vld [vmem:[%s2665_s8 + $0x1f8] sm:$0xff] }
 0x312   : > { %1581 = vst [vmem:[%s2710_s13 + $0x1b0] sm:$0xff] %v1517_v48 }
 0x313   : > { %1582 = vst [vmem:[%s2710_s13 + $0x1b8] sm:$0xff] %v1518_v21 }
 0x315   : > { %v1274_v4 = vpop.f32.mrf.mxu2  ;;  %v1387_v19 = vpop.f32.mrf.mxu3 }
 0x316   : > { %v1275_v34 = vadd.f32 %v1274_v4, %v2671_v12  ;;  %v1388_v29 = vadd.f32 %v1387_v19, %v2673_v63 }
 0x318   : > { %v1519_v60 = vmul.f32 %v1455_v22, %v1275_v34  ;;  %v1520_v50 = vmul.f32 %v1456_v54, %v1388_v29  ;;  %v1429_v22 = vld [vmem:[%s2665_s8 + $0xf0] sm:$0xff]  ;;  %v1430_v54 = vld [vmem:[%s2665_s8 + $0xf8] sm:$0xff]  ;;  %s1902_s8 = sshra.s32 %s1610_s11, 4  ;;  %s1903_s8 = int_to_ptr.hbm [resolvable:$true] %s1902_s8 }
 0x319   : > { %s1904_s12 = scalar_lea.hbm %s1903_s8, 512  ;;  %p1909_p1 = scmp.lt.s32.totalorder %s1903_s8, %s3178_s6 }
 0x31a   : > { %1583 = vst [vmem:[%s2710_s13 + $0x1c0] sm:$0xff] %v1519_v60  ;;  %p1905_p12 = scmp.ne.s32.totalorder %s1903_s8, %s1904_s12  ;;  %p1910_p2 = scmp.lt.s32.totalorder %s1908_s16, %s1904_s12 }
 0x31b   : > { %1584 = vst [vmem:[%s2710_s13 + $0x1c8] sm:$0xff] %v1520_v50 }
 0x31c   : > { %p1906_p13 = pnand %p1905_p12, %p2046_p4  ;;  %p1911_p3 = por %p1910_p2, %p1909_p1 }
 0x31e   : > { %p1907_p0 = pneg %p1906_p13 }
 0x320   : > { %p1912_p5 = pnand %p1911_p3, %p1907_p0 }
 0x340   : > { %v1223_v46 = vpop.f32.mrf.mxu0  ;;  %v1336_v56 = vpop.f32.mrf.mxu1 }
 0x341   : > { %v1224_v8 = vadd.f32 %v1223_v46, %v2671_v12  ;;  %v1337_v33 = vadd.f32 %v1336_v56, %v2673_v63 }
 0x343   : > { %v1485_v58 = vmul.f32 %v1421_v52, %v1224_v8  ;;  %v1486_v35 = vmul.f32 %v1422_v5, %v1337_v33 }
 0x345   : > { %1549 = vst [vmem:[%s2710_s13 + $0xb0] sm:$0xff] %v1485_v58 }
 0x346   : > { %1550 = vst [vmem:[%s2710_s13 + $0xb8] sm:$0xff] %v1486_v35 }
 0x348   : > { %v1226_v11 = vpop.f32.mrf.mxu0 }
 0x349   : > { %v1227_v24 = vadd.f32 %v1226_v11, %v2671_v12  ;;  %v1339_v62 = vpop.f32.mrf.mxu1 }
 0x34a   : > { %v1340_v37 = vadd.f32 %v1339_v62, %v2673_v63 }
 0x34b   : > { %v1487_v20 = vmul.f32 %v1423_v61, %v1227_v24 }
 0x34c   : > { %v1488_v55 = vmul.f32 %v1424_v27, %v1340_v37 }
 0x34d   : > { %1551 = vst [vmem:[%s2710_s13 + $0xc0] sm:$0xff] %v1487_v20 }
 0x34e   : > { %1552 = vst [vmem:[%s2710_s13 + $0xc8] sm:$0xff] %v1488_v55  ;;  %v1277_v10 = vpop.f32.mrf.mxu2 }
 0x34f   : > { %v1278_v59 = vadd.f32 %v1277_v10, %v2671_v12  ;;  %v1390_v9 = vpop.f32.mrf.mxu3 }
 0x350   : > { %v1391_v57 = vadd.f32 %v1390_v9, %v2673_v63  ;;  %v1229_v15 = vpop.f32.mrf.mxu0 }
 0x351   : > { %v1521_v41 = vmul.f32 %v1457_v42, %v1278_v59  ;;  %v1230_v6 = vadd.f32 %v1229_v15, %v2671_v12  ;;  %v1342_v16 = vpop.f32.mrf.mxu1 }
 0x352   : > { %v1522_v17 = vmul.f32 %v1458_v7, %v1391_v57  ;;  %v1343_v1 = vadd.f32 %v1342_v16, %v2673_v63 }
 0x353   : > { %1585 = vst [vmem:[%s2710_s13 + $0x1d0] sm:$0xff] %v1521_v41  ;;  %v1489_v32 = vmul.f32 %v1425_v25, %v1230_v6 }
 0x354   : > { %1586 = vst [vmem:[%s2710_s13 + $0x1d8] sm:$0xff] %v1522_v17  ;;  %v1490_v51 = vmul.f32 %v1426_v26, %v1343_v1 }
 0x355   : > { %1553 = vst [vmem:[%s2710_s13 + $0xd0] sm:$0xff] %v1489_v32 }
 0x356   : > { %1554 = vst [vmem:[%s2710_s13 + $0xd8] sm:$0xff] %v1490_v51 }
 0x357   : > { %v1280_v2 = vpop.f32.mrf.mxu2 }
 0x358   : > { %v1281_v47 = vadd.f32 %v1280_v2, %v2671_v12  ;;  %v1393_v38 = vpop.f32.mrf.mxu3 }
 0x359   : > { %v1394_v45 = vadd.f32 %v1393_v38, %v2673_v63 }
 0x35a   : > { %v1523_v18 = vmul.f32 %v1459_v14, %v1281_v47 }
 0x35b   : > { %v1524_v3 = vmul.f32 %v1460_v0, %v1394_v45 }
 0x35c   : > { %1587 = vst [vmem:[%s2710_s13 + $0x1e0] sm:$0xff] %v1523_v18 }
 0x35d   : > { %1588 = vst [vmem:[%s2710_s13 + $0x1e8] sm:$0xff] %v1524_v3 }
 0x361   : > { %v1232_v49 = vpop.f32.mrf.mxu0  ;;  %v1345_v23 = vpop.f32.mrf.mxu1 }
 0x362   : > { %v1233_v43 = vadd.f32 %v1232_v49, %v2671_v12  ;;  %v1346_v36 = vadd.f32 %v1345_v23, %v2673_v63 }
 0x364   : > { %v1491_v44 = vmul.f32 %v1427_v30, %v1233_v43  ;;  %v1492_v28 = vmul.f32 %v1428_v39, %v1346_v36 }
 0x366   : > { %1555 = vst [vmem:[%s2710_s13 + $0xe0] sm:$0xff] %v1491_v44 }
 0x367   : > { %1556 = vst [vmem:[%s2710_s13 + $0xe8] sm:$0xff] %v1492_v28 }
 0x369   : > { %v1283_v13 = vpop.f32.mrf.mxu2  ;;  %v1396_v40 = vpop.f32.mrf.mxu3 }
 0x36a   : > { %v1284_v48 = vadd.f32 %v1283_v13, %v2671_v12  ;;  %v1397_v21 = vadd.f32 %v1396_v40, %v2673_v63  ;;  %v1235_v4 = vpop.f32.mrf.mxu0  ;;  %v1348_v19 = vpop.f32.mrf.mxu1 }
 0x36b   : > { %v1236_v34 = vadd.f32 %v1235_v4, %v2671_v12  ;;  %v1349_v29 = vadd.f32 %v1348_v19, %v2673_v63 }
 0x36c   : > { %v1525_v60 = vmul.f32 %v1461_v53, %v1284_v48  ;;  %v1526_v50 = vmul.f32 %v1462_v31, %v1397_v21 }
 0x36d   : > { %v1493_v46 = vmul.f32 %v1429_v22, %v1236_v34  ;;  %v1494_v52 = vmul.f32 %v1430_v54, %v1349_v29 }
 0x36e   : > { %1589 = vst [vmem:[%s2710_s13 + $0x1f0] sm:$0xff] %v1525_v60 }
 0x36f   : > { %1590 = vst [vmem:[%s2710_s13 + $0x1f8] sm:$0xff] %v1526_v50 }
 0x370   : > { %1557 = vst [vmem:[%s2710_s13 + $0xf0] sm:$0xff] %v1493_v46 }
 0x371   : > { %1558 = vst [vmem:[%s2710_s13 + $0xf8] sm:$0xff] %v1494_v52 }
 0x372   : > { %1915 = shalt.err (!%p1912_p5)
}
 0x373   : > { %s1969_s28 = smov 256   ;;  %s1970_s13 = smov 16  }
 0x374   : > { %1760 = dma.vmem_to_hbm [thread:$0]  (%p2046_p4), %s1608_s24, 8192, %s1610_s11, %s1592_s30, %s1969_s28, %s1969_s28, %s1970_s13  }
 0x375 PF: > { %p1766_p6 = scmp.ge.s32.totalorder %s1966_s26, 2  ;;  %s1624_s19 = sand.u32 1, %s1946_s21  }
 0x376   : > { %s1625_s20 = scalar_lea.sflag [#allocation3], %s1624_s19 }
 0x377   : > { %p1763_p7 = pnand %p1766_p6, %p2053_p8 }
 0x379   : > { %p1764_p9 = pneg %p1763_p7 }
 0x37b   : > { %1941 = dma.done.wait (%p1764_p9), %s1625_s20, 8192  }
 0x37c   : > { %1943 = vsyncadd (%p1764_p9), %s1625_s20, 4294959104  ;;  %s19_s26 = sadd.s32 1, %s1966_s26   ;;  %s3207_s21 = smov %s1950_s22 }
 0x37d   : > { %p16_p10 = scmp.ge.s32.totalorder %s19_s26, 4   ;;  %s3208_s22 = smov %s1954_s23 }
 0x37e   : > { %s3209_s23 = smov %s2059_s10  ;;  %s3210_s24 = smov %s1962_s25 }
 0x37f   : > { %s3211_s25 = smov %s3213_s29  ;;  %18 = sbr.rel (!%p16_p10) target bundleno = 4 (0x4), region = 82 }
 0x384   :  { %1631 = vsyncpa [#allocation3], 1 }
 0x385   :  { %1633 = vsyncpa [#allocation3 + $0x1], 1 }

</bundles_post_ra>
